<compile_context>
chip_gen: v5e
topology: v5e:2x2
jax: 0.10.0
libtpu: 0.0.40
codegen_flags: <defaults>
</compile_context>

<pallas_src>
import jax
import jax.numpy as jnp
from jax import lax
from jax.experimental import pallas as pl
from jax.experimental.pallas import tpu as pltpu


# ----------------------------------------------------------------------------
# Kernel
# ----------------------------------------------------------------------------
def make_lang_gcn_kernel(num_graphs):
    """4x GCNConv -> per-branch ReLU+mean-pool -> concat(B,2048) -> dense head (+0.5)."""

    def kernel(x_ref, adj_ref, bid_ref,
               w1_ref, b1_ref, w2_ref, b2_ref, w3_ref, b3_ref, w4_ref, b4_ref,
               wd1_ref, bd1_ref, wd2_ref, bd2_ref,
               out_ref):
        f32 = jnp.float32
        bf16 = jnp.bfloat16

        def bdot(a, b):  # bf16 operands, f32 MXU accumulation
            return jnp.dot(a.astype(bf16), b.astype(bf16),
                           preferred_element_type=f32)

        x = x_ref[...]            # (N, 384) bf16 atom embeddings
        adj = adj_ref[...]        # (N, N)  bf16 normalized dense adjacency (with self loops)

        # --- GCN layers with the cheaper association per layer -------------
        # layer 1: d_out (128) < d_in (384)  ->  adj @ (x @ W1)
        h1 = bdot(adj, bdot(x, w1_ref[...])) + b1_ref[...]          # (N, 128)  f32
        # layers 2-4: d_in < d_out           ->  (adj @ h) @ W
        h2 = bdot(bdot(adj, h1), w2_ref[...]) + b2_ref[...]         # (N, 384)
        h3 = bdot(bdot(adj, h2), w3_ref[...]) + b3_ref[...]         # (N, 512)
        h4 = bdot(bdot(adj, h3), w4_ref[...]) + b4_ref[...]         # (N, 1024)

        # --- scatter_mean pooling (per-branch, no (N,2048) concat) ---------
        bid = bid_ref[...]                                           # (1, N) int32
        n_nodes = bid.shape[1]
        graph_iota = lax.broadcasted_iota(jnp.int32, (num_graphs, n_nodes), 0)
        onehot = (graph_iota == bid).astype(f32)                     # (B, N); pad ids never match
        counts = jnp.sum(onehot, axis=-1, keepdims=True)             # (B, 1)
        inv = pl.reciprocal(jnp.maximum(counts, 1.0), approx=False)  # guard empty graphs
        onehot_n = onehot * inv                                      # mean folded into MXU operand

        def pool(h):  # ReLU (Dropout = identity in eval) then mean-pool on the MXU
            return bdot(onehot_n, jnp.maximum(h, 0.0))               # (B, d)

        pooled = jnp.concatenate([pool(h1), pool(h2), pool(h3), pool(h4)],
                                 axis=-1)                            # (B, 2048) f32

        # --- dense head: Linear(2048,512) -> ReLU -> Linear(512,P_pad) ------
        d1 = jnp.maximum(bdot(pooled, wd1_ref[...]) + bd1_ref[...], 0.0)
        p = bdot(d1, wd2_ref[...]) + bd2_ref[...]                    # (B, P_pad)

        out_ref[...] = p + 0.5                                       # final_layer = Identity

    return kernel


# ----------------------------------------------------------------------------
# Wrapper-side graph preprocessing (data-dependent scatter stays outside)
# ----------------------------------------------------------------------------
def _prepare_graph(atom_embeddings, edge_index, batch_ids, num_graphs, row_align=16):
    """Dense gcn_norm adjacency + pad N to a multiple of `row_align` (bf16 sublanes)."""
    N = atom_embeddings.shape[0]
    src, dst = edge_index[0], edge_index[1]
    # PyG GCNConv gcn_norm: A_hat = A + I, deg = row-sum, A_norm = D^-1/2 A_hat D^-1/2.
    adj = jnp.zeros((N, N), jnp.float32).at[dst, src].add(1.0)
    adj = adj + jnp.eye(N, dtype=jnp.float32)
    deg = jnp.sum(adj, axis=1)
    dinv = lax.rsqrt(jnp.maximum(deg, 1e-12))
    adj_norm = adj * dinv[:, None] * dinv[None, :]

    batch_ids = batch_ids.astype(jnp.int32)
    n_pad = (-N) % row_align
    if n_pad:
        adj_norm = jnp.pad(adj_norm, ((0, n_pad), (0, n_pad)))
        atom_embeddings = jnp.pad(atom_embeddings, ((0, n_pad), (0, 0)))
        # pad nodes get an out-of-range graph id -> excluded from pooling
        batch_ids = jnp.concatenate(
            [batch_ids, jnp.full((n_pad,), num_graphs, jnp.int32)])
    bid2d = batch_ids.reshape(1, -1)
    return atom_embeddings, adj_norm, bid2d


def _vmem_limit_bytes():
    """Per-generation VMEM budget: ~56 MiB on v7x (64 MiB phys), ~100 MiB on v5e/v6e."""
    cap = 64 << 20
    try:
        info = pltpu.get_tpu_info()
        cap = int(getattr(info, "vmem_capacity_bytes", cap) or cap)
    except Exception:
        pass
    return max(32 << 20, min(cap - (8 << 20), 100 << 20))


def lang_gcn_forward(atom_embeddings, edge_index, batch_ids, params, num_graphs):
    """Full LangGCN forward (post ChemBERTa) in a single fused pallas_call.

    atom_embeddings: (N, 384) f32
    edge_index:      (2, E) int32, [src; dst]
    batch_ids:       (N,)  int32, graph id per node (0..num_graphs-1)
    """
    P = params["wd2"].shape[1]
    P_pad = max(128, ((P + 127) // 128) * 128)     # lane-dense output

    x, adj_norm, bid2d = _prepare_graph(atom_embeddings, edge_index, batch_ids, num_graphs)

    bf16 = jnp.bfloat16
    g = params["gcn"]
    wd2p = jnp.zeros((params["wd2"].shape[0], P_pad), jnp.float32).at[:, :P].set(params["wd2"])
    bd2p = jnp.zeros((1, P_pad), jnp.float32).at[:, :P].set(params["bd2"])

    kernel = make_lang_gcn_kernel(num_graphs)
    vmem = pl.BlockSpec(memory_space=pltpu.MemorySpace.VMEM)

    out = pl.pallas_call(
        kernel,
        out_shape=jax.ShapeDtypeStruct((num_graphs, P_pad), jnp.float32),
        in_specs=[vmem] * 15,
        out_specs=vmem,
        compiler_params=pltpu.CompilerParams(vmem_limit_bytes=_vmem_limit_bytes()),
    )(x.astype(bf16), adj_norm.astype(bf16), bid2d,
      g[0]["w"].astype(bf16), g[0]["b"], g[1]["w"].astype(bf16), g[1]["b"],
      g[2]["w"].astype(bf16), g[2]["b"], g[3]["w"].astype(bf16), g[3]["b"],
      params["wd1"].astype(bf16), params["bd1"], wd2p.astype(bf16), bd2p)

    return out[:, :P]


# ----------------------------------------------------------------------------
# References for correctness checking
# ----------------------------------------------------------------------------
def lang_gcn_mixed_reference(atom_embeddings, edge_index, batch_ids, params, num_graphs):
    """Pure-JAX reference replicating the kernel's bf16-operand / f32-accum math."""
    bf16 = jnp.bfloat16

    def mdot(a, b):
        return jnp.dot(a.astype(bf16), b.astype(bf16), preferred_element_type=jnp.float32)

    x, adj, bid2d = _prepare_graph(atom_embeddings, edge_index, batch_ids, num_graphs)
    g = params["gcn"]
    h1 = mdot(adj, mdot(x, g[0]["w"])) + g[0]["b"]
    h2 = mdot(mdot(adj, h1), g[1]["w"]) + g[1]["b"]
    h3 = mdot(mdot(adj, h2), g[2]["w"]) + g[2]["b"]
    h4 = mdot(mdot(adj, h3), g[3]["w"]) + g[3]["b"]

    iota = jnp.arange(num_graphs, dtype=jnp.int32)[:, None]
    onehot = (iota == bid2d).astype(jnp.float32)
    counts = jnp.sum(onehot, axis=-1, keepdims=True)
    onehot_n = onehot / jnp.maximum(counts, 1.0)

    pooled = jnp.concatenate(
        [mdot(onehot_n, jnp.maximum(h, 0.0)) for h in (h1, h2, h3, h4)], axis=-1)
    d1 = jnp.maximum(mdot(pooled, params["wd1"]) + params["bd1"], 0.0)
    p = mdot(d1, params["wd2"]) + params["bd2"]
    return p + 0.5


def lang_gcn_reference(atom_embeddings, edge_index, batch_ids, params, num_graphs):
    """Full-f32, HIGHEST-precision reference (matches the PyTorch module numerics)."""
    hp = jax.lax.Precision.HIGHEST
    N, _ = atom_embeddings.shape
    src, dst = edge_index[0], edge_index[1]
    adj = jnp.zeros((N, N), jnp.float32).at[dst, src].add(1.0)
    adj = adj + jnp.eye(N, dtype=jnp.float32)
    deg = jnp.sum(adj, axis=1)
    dinv = lax.rsqrt(jnp.maximum(deg, 1e-12))
    adj_norm = adj * dinv[:, None] * dinv[None, :]

    h = atom_embeddings
    outs = []
    for layer in params["gcn"]:
        h = jnp.dot(adj_norm, jnp.dot(h, layer["w"], precision=hp), precision=hp) + layer["b"]
        outs.append(h)
    cat = jnp.maximum(jnp.concatenate(outs, axis=-1), 0.0)
    seg_sum = jax.ops.segment_sum(cat, batch_ids, num_segments=num_graphs)
    counts = jax.ops.segment_sum(jnp.ones((N,), jnp.float32), batch_ids,
                                 num_segments=num_graphs)
    pooled = seg_sum / jnp.maximum(counts, 1.0)[:, None]
    d1 = jnp.maximum(jnp.dot(pooled, params["wd1"], precision=hp) + params["bd1"], 0.0)
    p = jnp.dot(d1, params["wd2"], precision=hp) + params["bd2"]
    return p + 0.5


# ----------------------------------------------------------------------------
# Parameter init
# ----------------------------------------------------------------------------
def init_params(key, embedding_dim=384, n_hidden=512, num_predictions=1):
    dims = [(embedding_dim, 128), (128, 384), (384, 512), (512, 1024)]
    ks = jax.random.split(key, 6)
    gcn = []
    for i, (din, dout) in enumerate(dims):
        kw, kb = jax.random.split(ks[i])
        gcn.append({
            "w": jax.random.normal(kw, (din, dout), jnp.float32) * din ** -0.5,
            "b": jax.random.normal(kb, (1, dout), jnp.float32) * 0.01,
        })
    kw1, kb1 = jax.random.split(ks[4])
    kw2, kb2 = jax.random.split(ks[5])
    cat_dim = 128 + 384 + 512 + 1024   # 2048
    return {
        "gcn": gcn,
        "wd1": jax.random.normal(kw1, (cat_dim, n_hidden), jnp.float32) * cat_dim ** -0.5,
        "bd1": jax.random.normal(kb1, (1, n_hidden), jnp.float32) * 0.01,
        "wd2": jax.random.normal(kw2, (n_hidden, num_predictions), jnp.float32) * n_hidden ** -0.5,
        "bd2": jax.random.normal(kb2, (1, num_predictions), jnp.float32) * 0.01,
    }


if __name__ == "__main__":
    embedding_dim = 384
    num_graphs = 2          # batch of 2 molecular graphs
    nodes_per_graph = 8
    N = num_graphs * nodes_per_graph

    key = jax.random.PRNGKey(0)
    kp, kx = jax.random.split(key)
    params = init_params(kp, embedding_dim=embedding_dim, n_hidden=512, num_predictions=1)

    # TODO(synk): atom embeddings stand in for ChemBERTa token embeddings after
    #             the attention-mask gather (pretrained LM not reproducible here).
    atom_embeddings = jax.random.normal(kx, (N, embedding_dim), jnp.float32)

    # Simple undirected chain graph per molecule.
    edges = []
    for gidx in range(num_graphs):
        off = gidx * nodes_per_graph
        for i in range(nodes_per_graph - 1):
            edges.append((off + i, off + i + 1))
            edges.append((off + i + 1, off + i))
    edge_index = jnp.array(edges, dtype=jnp.int32).T                    # (2, E)
    batch_ids = jnp.repeat(jnp.arange(num_graphs, dtype=jnp.int32), nodes_per_graph)

    out = lang_gcn_forward(atom_embeddings, edge_index, batch_ids, params, num_graphs)
    out = jax.block_until_ready(out)

    assert out.shape == (num_graphs, 1), out.shape
    assert bool(jnp.all(jnp.isfinite(out)))

    # Tight check against an identically-cast (bf16-operand) pure-JAX reference.
    mref = lang_gcn_mixed_reference(atom_embeddings, edge_index, batch_ids, params, num_graphs)
    assert jnp.allclose(out, mref, rtol=2e-3, atol=2e-3), (out, mref)

    # Looser check against the full-f32 HIGHEST-precision reference (bf16 MXU operands).
    ref = lang_gcn_reference(atom_embeddings, edge_index, batch_ids, params, num_graphs)
    assert jnp.allclose(out, ref, rtol=5e-2, atol=5e-2), (out, ref)

    print("KERNEL_OK")
</pallas_src>

<mosaic_0001>
module attributes {stable_mosaic.version = 11 : i64} {
  func.func @kernel(%arg0: memref<16x384xbf16, #tpu.memory_space<vmem>>, %arg1: memref<16x16xbf16, #tpu.memory_space<vmem>>, %arg2: memref<1x16xi32, #tpu.memory_space<vmem>>, %arg3: memref<384x128xbf16, #tpu.memory_space<vmem>>, %arg4: memref<1x128xf32, #tpu.memory_space<vmem>>, %arg5: memref<128x384xbf16, #tpu.memory_space<vmem>>, %arg6: memref<1x384xf32, #tpu.memory_space<vmem>>, %arg7: memref<384x512xbf16, #tpu.memory_space<vmem>>, %arg8: memref<1x512xf32, #tpu.memory_space<vmem>>, %arg9: memref<512x1024xbf16, #tpu.memory_space<vmem>>, %arg10: memref<1x1024xf32, #tpu.memory_space<vmem>>, %arg11: memref<2048x512xbf16, #tpu.memory_space<vmem>>, %arg12: memref<1x512xf32, #tpu.memory_space<vmem>>, %arg13: memref<512x128xbf16, #tpu.memory_space<vmem>>, %arg14: memref<1x128xf32, #tpu.memory_space<vmem>>, %arg15: memref<2x128xf32, #tpu.memory_space<vmem>>) attributes {dimension_semantics = [], scalar_prefetch = 0 : i64, scratch_operands = 0 : i64, tpu.core_type = #tpu.core_type<tc>} {
    %c0 = arith.constant 0 : index
    %c0_0 = arith.constant 0 : index
    %0 = vector.load %arg0[%c0, %c0_0] : memref<16x384xbf16, #tpu.memory_space<vmem>>, vector<16x384xbf16>
    %c0_1 = arith.constant 0 : index
    %c0_2 = arith.constant 0 : index
    %1 = vector.load %arg1[%c0_1, %c0_2] : memref<16x16xbf16, #tpu.memory_space<vmem>>, vector<16x16xbf16>
    %c0_3 = arith.constant 0 : index
    %c0_4 = arith.constant 0 : index
    %2 = vector.load %arg3[%c0_3, %c0_4] : memref<384x128xbf16, #tpu.memory_space<vmem>>, vector<384x128xbf16>
    %cst = arith.constant dense<0.000000e+00> : vector<16x128xf32>
    %3 = tpu.matmul %0, %2, %cst {dimension_numbers = #tpu.dot_dimension_numbers<[1], [0], [0], [1], [0, 0, 1, 1], [], []>} : vector<16x384xbf16>, vector<384x128xbf16>, vector<16x128xf32> -> vector<16x128xf32>
    %4 = arith.truncf %3 : vector<16x128xf32> to vector<16x128xbf16>
    %cst_5 = arith.constant dense<0.000000e+00> : vector<16x128xf32>
    %5 = tpu.matmul %1, %4, %cst_5 {dimension_numbers = #tpu.dot_dimension_numbers<[1], [0], [0], [1], [0, 0, 1, 1], [], []>} : vector<16x16xbf16>, vector<16x128xbf16>, vector<16x128xf32> -> vector<16x128xf32>
    %c0_6 = arith.constant 0 : index
    %c0_7 = arith.constant 0 : index
    %6 = vector.load %arg4[%c0_6, %c0_7] : memref<1x128xf32, #tpu.memory_space<vmem>>, vector<1x128xf32>
    %7 = vector.broadcast %6 : vector<1x128xf32> to vector<16x128xf32>
    %8 = arith.addf %5, %7 : vector<16x128xf32>
    %9 = arith.truncf %8 : vector<16x128xf32> to vector<16x128xbf16>
    %cst_8 = arith.constant dense<0.000000e+00> : vector<16x128xf32>
    %10 = tpu.matmul %1, %9, %cst_8 {dimension_numbers = #tpu.dot_dimension_numbers<[1], [0], [0], [1], [0, 0, 1, 1], [], []>} : vector<16x16xbf16>, vector<16x128xbf16>, vector<16x128xf32> -> vector<16x128xf32>
    %c0_9 = arith.constant 0 : index
    %c0_10 = arith.constant 0 : index
    %11 = vector.load %arg5[%c0_9, %c0_10] : memref<128x384xbf16, #tpu.memory_space<vmem>>, vector<128x384xbf16>
    %12 = arith.truncf %10 : vector<16x128xf32> to vector<16x128xbf16>
    %cst_11 = arith.constant dense<0.000000e+00> : vector<16x384xf32>
    %13 = tpu.matmul %12, %11, %cst_11 {dimension_numbers = #tpu.dot_dimension_numbers<[1], [0], [0], [1], [0, 0, 1, 1], [], []>} : vector<16x128xbf16>, vector<128x384xbf16>, vector<16x384xf32> -> vector<16x384xf32>
    %c0_12 = arith.constant 0 : index
    %c0_13 = arith.constant 0 : index
    %14 = vector.load %arg6[%c0_12, %c0_13] : memref<1x384xf32, #tpu.memory_space<vmem>>, vector<1x384xf32>
    %15 = vector.broadcast %14 : vector<1x384xf32> to vector<16x384xf32>
    %16 = arith.addf %13, %15 : vector<16x384xf32>
    %17 = arith.truncf %16 : vector<16x384xf32> to vector<16x384xbf16>
    %cst_14 = arith.constant dense<0.000000e+00> : vector<16x384xf32>
    %18 = tpu.matmul %1, %17, %cst_14 {dimension_numbers = #tpu.dot_dimension_numbers<[1], [0], [0], [1], [0, 0, 1, 1], [], []>} : vector<16x16xbf16>, vector<16x384xbf16>, vector<16x384xf32> -> vector<16x384xf32>
    %c0_15 = arith.constant 0 : index
    %c0_16 = arith.constant 0 : index
    %19 = vector.load %arg7[%c0_15, %c0_16] : memref<384x512xbf16, #tpu.memory_space<vmem>>, vector<384x512xbf16>
    %20 = arith.truncf %18 : vector<16x384xf32> to vector<16x384xbf16>
    %cst_17 = arith.constant dense<0.000000e+00> : vector<16x512xf32>
    %21 = tpu.matmul %20, %19, %cst_17 {dimension_numbers = #tpu.dot_dimension_numbers<[1], [0], [0], [1], [0, 0, 1, 1], [], []>} : vector<16x384xbf16>, vector<384x512xbf16>, vector<16x512xf32> -> vector<16x512xf32>
    %c0_18 = arith.constant 0 : index
    %c0_19 = arith.constant 0 : index
    %22 = vector.load %arg8[%c0_18, %c0_19] : memref<1x512xf32, #tpu.memory_space<vmem>>, vector<1x512xf32>
    %23 = vector.broadcast %22 : vector<1x512xf32> to vector<16x512xf32>
    %24 = arith.addf %21, %23 : vector<16x512xf32>
    %25 = arith.truncf %24 : vector<16x512xf32> to vector<16x512xbf16>
    %cst_20 = arith.constant dense<0.000000e+00> : vector<16x512xf32>
    %26 = tpu.matmul %1, %25, %cst_20 {dimension_numbers = #tpu.dot_dimension_numbers<[1], [0], [0], [1], [0, 0, 1, 1], [], []>} : vector<16x16xbf16>, vector<16x512xbf16>, vector<16x512xf32> -> vector<16x512xf32>
    %c0_21 = arith.constant 0 : index
    %c0_22 = arith.constant 0 : index
    %27 = vector.load %arg9[%c0_21, %c0_22] : memref<512x1024xbf16, #tpu.memory_space<vmem>>, vector<512x1024xbf16>
    %28 = arith.truncf %26 : vector<16x512xf32> to vector<16x512xbf16>
    %cst_23 = arith.constant dense<0.000000e+00> : vector<16x1024xf32>
    %29 = tpu.matmul %28, %27, %cst_23 {dimension_numbers = #tpu.dot_dimension_numbers<[1], [0], [0], [1], [0, 0, 1, 1], [], []>} : vector<16x512xbf16>, vector<512x1024xbf16>, vector<16x1024xf32> -> vector<16x1024xf32>
    %c0_24 = arith.constant 0 : index
    %c0_25 = arith.constant 0 : index
    %30 = vector.load %arg10[%c0_24, %c0_25] : memref<1x1024xf32, #tpu.memory_space<vmem>>, vector<1x1024xf32>
    %31 = vector.broadcast %30 : vector<1x1024xf32> to vector<16x1024xf32>
    %32 = arith.addf %29, %31 : vector<16x1024xf32>
    %c0_26 = arith.constant 0 : index
    %c0_27 = arith.constant 0 : index
    %33 = vector.load %arg2[%c0_26, %c0_27] : memref<1x16xi32, #tpu.memory_space<vmem>>, vector<1x16xi32>
    %34 = tpu.iota {dimensions = array<i32: 0>} : vector<2x16xi32>
    %35 = vector.broadcast %33 : vector<1x16xi32> to vector<2x16xi32>
    %36 = arith.cmpi eq, %34, %35 : vector<2x16xi32>
    %37 = arith.extui %36 : vector<2x16xi1> to vector<2x16xi32>
    %38 = arith.sitofp %37 : vector<2x16xi32> to vector<2x16xf32>
    %cst_28 = arith.constant dense<0.000000e+00> : vector<2xf32>
    %39 = vector.multi_reduction <add>, %38, %cst_28 [1] : vector<2x16xf32> to vector<2xf32>
    %40 = vector.shape_cast %39 : vector<2xf32> to vector<2x1xf32>
    %cst_29 = arith.constant 1.000000e+00 : f32
    %41 = vector.broadcast %cst_29 : f32 to vector<2x1xf32>
    %42 = arith.maximumf %40, %41 : vector<2x1xf32>
    %43 = tpu.reciprocal %42 : vector<2x1xf32> -> vector<2x1xf32>
    %44 = vector.broadcast %43 : vector<2x1xf32> to vector<2x16xf32>
    %45 = arith.mulf %38, %44 : vector<2x16xf32>
    %cst_30 = arith.constant 0.000000e+00 : f32
    %46 = vector.broadcast %cst_30 : f32 to vector<16x128xf32>
    %47 = arith.maximumf %8, %46 : vector<16x128xf32>
    %48 = arith.truncf %45 : vector<2x16xf32> to vector<2x16xbf16>
    %49 = arith.truncf %47 : vector<16x128xf32> to vector<16x128xbf16>
    %cst_31 = arith.constant dense<0.000000e+00> : vector<2x128xf32>
    %50 = tpu.matmul %48, %49, %cst_31 {dimension_numbers = #tpu.dot_dimension_numbers<[1], [0], [0], [1], [0, 0, 1, 1], [], []>} : vector<2x16xbf16>, vector<16x128xbf16>, vector<2x128xf32> -> vector<2x128xf32>
    %cst_32 = arith.constant 0.000000e+00 : f32
    %51 = vector.broadcast %cst_32 : f32 to vector<16x384xf32>
    %52 = arith.maximumf %16, %51 : vector<16x384xf32>
    %53 = arith.truncf %45 : vector<2x16xf32> to vector<2x16xbf16>
    %54 = arith.truncf %52 : vector<16x384xf32> to vector<16x384xbf16>
    %cst_33 = arith.constant dense<0.000000e+00> : vector<2x384xf32>
    %55 = tpu.matmul %53, %54, %cst_33 {dimension_numbers = #tpu.dot_dimension_numbers<[1], [0], [0], [1], [0, 0, 1, 1], [], []>} : vector<2x16xbf16>, vector<16x384xbf16>, vector<2x384xf32> -> vector<2x384xf32>
    %cst_34 = arith.constant 0.000000e+00 : f32
    %56 = vector.broadcast %cst_34 : f32 to vector<16x512xf32>
    %57 = arith.maximumf %24, %56 : vector<16x512xf32>
    %58 = arith.truncf %45 : vector<2x16xf32> to vector<2x16xbf16>
    %59 = arith.truncf %57 : vector<16x512xf32> to vector<16x512xbf16>
    %cst_35 = arith.constant dense<0.000000e+00> : vector<2x512xf32>
    %60 = tpu.matmul %58, %59, %cst_35 {dimension_numbers = #tpu.dot_dimension_numbers<[1], [0], [0], [1], [0, 0, 1, 1], [], []>} : vector<2x16xbf16>, vector<16x512xbf16>, vector<2x512xf32> -> vector<2x512xf32>
    %cst_36 = arith.constant 0.000000e+00 : f32
    %61 = vector.broadcast %cst_36 : f32 to vector<16x1024xf32>
    %62 = arith.maximumf %32, %61 : vector<16x1024xf32>
    %63 = arith.truncf %45 : vector<2x16xf32> to vector<2x16xbf16>
    %64 = arith.truncf %62 : vector<16x1024xf32> to vector<16x1024xbf16>
    %cst_37 = arith.constant dense<0.000000e+00> : vector<2x1024xf32>
    %65 = tpu.matmul %63, %64, %cst_37 {dimension_numbers = #tpu.dot_dimension_numbers<[1], [0], [0], [1], [0, 0, 1, 1], [], []>} : vector<2x16xbf16>, vector<16x1024xbf16>, vector<2x1024xf32> -> vector<2x1024xf32>
    %66 = tpu.concatenate %50, %55, %60, %65 in 1 : vector<2x128xf32>, vector<2x384xf32>, vector<2x512xf32>, vector<2x1024xf32> -> vector<2x2048xf32>
    %c0_38 = arith.constant 0 : index
    %c0_39 = arith.constant 0 : index
    %67 = vector.load %arg11[%c0_38, %c0_39] : memref<2048x512xbf16, #tpu.memory_space<vmem>>, vector<2048x512xbf16>
    %68 = arith.truncf %66 : vector<2x2048xf32> to vector<2x2048xbf16>
    %cst_40 = arith.constant dense<0.000000e+00> : vector<2x512xf32>
    %69 = tpu.matmul %68, %67, %cst_40 {dimension_numbers = #tpu.dot_dimension_numbers<[1], [0], [0], [1], [0, 0, 1, 1], [], []>} : vector<2x2048xbf16>, vector<2048x512xbf16>, vector<2x512xf32> -> vector<2x512xf32>
    %c0_41 = arith.constant 0 : index
    %c0_42 = arith.constant 0 : index
    %70 = vector.load %arg12[%c0_41, %c0_42] : memref<1x512xf32, #tpu.memory_space<vmem>>, vector<1x512xf32>
    %71 = vector.broadcast %70 : vector<1x512xf32> to vector<2x512xf32>
    %72 = arith.addf %69, %71 : vector<2x512xf32>
    %cst_43 = arith.constant 0.000000e+00 : f32
    %73 = vector.broadcast %cst_43 : f32 to vector<2x512xf32>
    %74 = arith.maximumf %72, %73 : vector<2x512xf32>
    %c0_44 = arith.constant 0 : index
    %c0_45 = arith.constant 0 : index
    %75 = vector.load %arg13[%c0_44, %c0_45] : memref<512x128xbf16, #tpu.memory_space<vmem>>, vector<512x128xbf16>
    %76 = arith.truncf %74 : vector<2x512xf32> to vector<2x512xbf16>
    %cst_46 = arith.constant dense<0.000000e+00> : vector<2x128xf32>
    %77 = tpu.matmul %76, %75, %cst_46 {dimension_numbers = #tpu.dot_dimension_numbers<[1], [0], [0], [1], [0, 0, 1, 1], [], []>} : vector<2x512xbf16>, vector<512x128xbf16>, vector<2x128xf32> -> vector<2x128xf32>
    %c0_47 = arith.constant 0 : index
    %c0_48 = arith.constant 0 : index
    %78 = vector.load %arg14[%c0_47, %c0_48] : memref<1x128xf32, #tpu.memory_space<vmem>>, vector<1x128xf32>
    %79 = vector.broadcast %78 : vector<1x128xf32> to vector<2x128xf32>
    %80 = arith.addf %77, %79 : vector<2x128xf32>
    %cst_49 = arith.constant 5.000000e-01 : f32
    %81 = vector.broadcast %cst_49 : f32 to vector<2x128xf32>
    %82 = arith.addf %80, %81 : vector<2x128xf32>
    %c0_50 = arith.constant 0 : index
    %c0_51 = arith.constant 0 : index
    %83 = vector.load %arg15[%c0_50, %c0_51] : memref<2x128xf32, #tpu.memory_space<vmem>>, vector<2x128xf32>
    tpu.vector_store %arg15[%c0_50, %c0_51], %82 {strides = array<i32>} : memref<2x128xf32, #tpu.memory_space<vmem>>, vector<2x128xf32>,
    return
  }
}

</mosaic_0001>

<bundles_post_ra>
// kernel: tpu_custom_call.1
= control target key start
LH: loop header
LB: loop body
LE: loop exit
PB: predicated region body
PF: predicated region fallthrough
CT: control target
= control target key end

     0   :  { %20 = vsyncpa [#allocation3], 0  ;;  %s14060_s0 = inlined_call_operand.hbm [shape: bf16[16,384], index: 0, kind: input, shape index: {}]   ;;  %s14061_s1 = inlined_call_operand.hbm [shape: bf16[16,16], index: 1, kind: input, shape index: {}]   ;;  %s14062_s2 = inlined_call_operand.hbm [shape: s32[1,16], index: 2, kind: input, shape index: {}]   ;;  %s14063_s3 = inlined_call_operand.hbm [shape: bf16[384,128], index: 3, kind: input, shape index: {}]   ;;  %s14064_s4 = inlined_call_operand.hbm [shape: f32[1,128], index: 4, kind: input, shape index: {}]   ;;  %s14065_s5 = inlined_call_operand.hbm [shape: bf16[128,384], index: 5, kind: input, shape index: {}]   ;;  %s14066_s6 = inlined_call_operand.hbm [shape: f32[1,384], index: 6, kind: input, shape index: {}]   ;;  %s14067_s7 = inlined_call_operand.hbm [shape: bf16[384,512], index: 7, kind: input, shape index: {}]   ;;  %s14068_s8 = inlined_call_operand.hbm [shape: f32[1,512], index: 8, kind: input, shape index: {}]   ;;  %s14069_s9 = inlined_call_operand.hbm [shape: bf16[512,1024], index: 9, kind: input, shape index: {}]   ;;  %s14070_s10 = inlined_call_operand.hbm [shape: f32[1,1024], index: 10, kind: input, shape index: {}]   ;;  %s14071_s11 = inlined_call_operand.hbm [shape: bf16[2048,512], index: 11, kind: input, shape index: {}]   ;;  %s14072_s12 = inlined_call_operand.hbm [shape: f32[1,512], index: 12, kind: input, shape index: {}]   ;;  %s14073_s13 = inlined_call_operand.hbm [shape: bf16[512,128], index: 13, kind: input, shape index: {}]   ;;  %s14074_s14 = inlined_call_operand.hbm [shape: f32[1,128], index: 14, kind: input, shape index: {}]   ;;  %s14075_s15 = inlined_call_operand.hbm [shape: f32[2,128], index: 15, kind: output, shape index: {}]  }
   0x1   :  { %21 = vsyncpa [#allocation6], 0 }
   0x2   :  { %22 = vsyncpa [#allocation9], 0 }
   0x3   :  { %23 = vsyncpa [#allocation12], 0 }
   0x4   :  { %24 = vsyncpa [#allocation15], 0 }
   0x5   :  { %25 = vsyncpa [#allocation18], 0 }
   0x6   :  { %26 = vsyncpa [#allocation21], 0 }
   0x7   :  { %27 = vsyncpa [#allocation24], 0  ;;  %s46_s20 = sshll.u32 %s14061_s1, 4  ;;  %s47_s20 = int_to_ptr.hbm [resolvable:$true] %s46_s20 }
   0x8   :  { %28 = vsyncpa [#allocation4], 0  ;;  %s13413_s21 = smov [#allocation5]   ;;  %s70_s25 = sshll.u32 %s14063_s3, 4  ;;  %s71_s25 = int_to_ptr.hbm [resolvable:$true] %s70_s25 }
   0x9   :  { %s48_s22 = sshll.u32 %s13413_s21, 4  ;;  %s13414_s26 = smov 64   ;;  %s49_s22 = int_to_ptr.vmem [resolvable:$true] %s48_s22 }
   0xa   :  { %s13415_s27 = smov 4   ;;  %s13416_s28 = smov [#allocation8]  }
   0xb   :  { %54 = dma.hbm_to_vmem [thread:$0]  %s47_s20, 128, %s49_s22, [#allocation6], %s13414_s26, %s13414_s26, %s13415_s27  }
   0xc   :  { %s72_s29 = sshll.u32 %s13416_s28, 4  ;;  %s94_s16 = sshll.u32 %s14065_s5, 4  ;;  %s73_s29 = int_to_ptr.vmem [resolvable:$true] %s72_s29  ;;  %s95_s16 = int_to_ptr.hbm [resolvable:$true] %s94_s16 }
   0xd   :  { %78 = dma.hbm_to_vmem [thread:$0]  %s71_s25, 3072, %s73_s29, [#allocation9], %s13414_s26, %s13414_s26, %s13415_s27  }
   0xe   :  { %s13417_s3 = smov [#allocation11]   ;;  %s118_s20 = sshll.u32 %s14067_s7, 4  ;;  %s119_s20 = int_to_ptr.hbm [resolvable:$true] %s118_s20 }
   0xf   :  { %s96_s17 = sshll.u32 %s13417_s3, 4  ;;  %s14076_s21 = smov 192   ;;  %s97_s17 = int_to_ptr.vmem [resolvable:$true] %s96_s17 }
  0x10   :  { %s14077_s22 = smov 12   ;;  %s13420_s23 = smov [#allocation14]  }
  0x11   :  { %102 = dma.hbm_to_vmem [thread:$0]  %s95_s16, 3072, %s97_s17, [#allocation12], %s14076_s21, %s14076_s21, %s14077_s22  }
  0x12   :  { %s120_s24 = sshll.u32 %s13420_s23, 4  ;;  %s13421_s25 = smov 256   ;;  %s121_s24 = int_to_ptr.vmem [resolvable:$true] %s120_s24 }
  0x13   :  { %s13422_s5 = smov 16   ;;  %s142_s1 = sshll.u32 %s14069_s9, 4  ;;  %s143_s1 = int_to_ptr.hbm [resolvable:$true] %s142_s1 }
  0x14   :  { %126 = dma.hbm_to_vmem [thread:$0]  %s119_s20, 12288, %s121_s24, [#allocation15], %s13421_s25, %s13421_s25, %s13422_s5  }
  0x15   :  { %s13423_s30 = smov [#allocation17]   ;;  %s166_s19 = sshll.u32 %s14071_s11, 4  ;;  %s167_s19 = int_to_ptr.hbm [resolvable:$true] %s166_s19 }
  0x16   :  { %s144_s7 = sshll.u32 %s13423_s30, 4  ;;  %s13424_s16 = smov 512   ;;  %s145_s7 = int_to_ptr.vmem [resolvable:$true] %s144_s7 }
  0x17   :  { %s13425_s17 = smov 32   ;;  %s13426_s23 = smov [#allocation20]  }
  0x18   :  { %150 = dma.hbm_to_vmem [thread:$0]  %s143_s1, 32768, %s145_s7, [#allocation18], %s13424_s16, %s13424_s16, %s13425_s17  }
  0x19   :  { %s168_s21 = sshll.u32 %s13426_s23, 4  ;;  %s190_s24 = sshll.u32 %s14073_s13, 4  ;;  %s169_s21 = int_to_ptr.vmem [resolvable:$true] %s168_s21  ;;  %s191_s24 = int_to_ptr.hbm [resolvable:$true] %s190_s24 }
  0x1a   :  { %174 = dma.hbm_to_vmem [thread:$0]  %s167_s19, 65536, %s169_s21, [#allocation21], %s13421_s25, %s13421_s25, %s13422_s5  }
  0x1b   :  { %s33_s29 = sshll.u32 %s14060_s0, 4  ;;  %s13427_s30 = smov [#allocation23]   ;;  %s34_s29 = int_to_ptr.hbm [resolvable:$true] %s33_s29 }
  0x1c   :  { %s192_s3 = sshll.u32 %s13427_s30, 4  ;;  %s13428_s11 = smov [#allocation2]   ;;  %s193_s3 = int_to_ptr.vmem [resolvable:$true] %s192_s3 }
  0x1d   :  { %198 = dma.hbm_to_vmem [thread:$0]  %s191_s24, 4096, %s193_s3, [#allocation24], %s13414_s26, %s13414_s26, %s13415_s27  }
  0x1e   :  { %s35_s1 = sshll.u32 %s13428_s11, 4  ;;  %s60_s13 = sshll.u32 %s14062_s2, 4  ;;  %s36_s1 = int_to_ptr.vmem [resolvable:$true] %s35_s1  ;;  %s61_s13 = int_to_ptr.hbm [resolvable:$true] %s60_s13 }
  0x1f   :  { %s14078_s21 = smov 12   ;;  %s14079_s25 = smov 192  }
  0x20   :  { %41 = dma.hbm_to_vmem [thread:$0]  %s34_s29, 384, %s36_s1, [#allocation3], %s14079_s25, %s14079_s25, %s14078_s21  }
  0x21   :  { %s84_s18 = sshll.u32 %s14064_s4, 4  ;;  %s13429_s19 = smov [#allocation7]   ;;  %s85_s18 = int_to_ptr.hbm [resolvable:$true] %s84_s18 }
  0x22   :  { %s62_s16 = sshll.u32 %s13429_s19, 4  ;;  %s13430_s26 = smov [#allocation10]   ;;  %s63_s16 = int_to_ptr.vmem [resolvable:$true] %s62_s16 }
  0x23   :  { %65 = dma.hbm_to_vmem [thread:$0]  %s61_s13, 16, %s63_s16, [#allocation6]  }
  0x24   :  { %s86_s27 = sshll.u32 %s13430_s26, 4  ;;  %s108_s2 = sshll.u32 %s14066_s6, 4  ;;  %s87_s27 = int_to_ptr.vmem [resolvable:$true] %s86_s27  ;;  %s109_s2 = int_to_ptr.hbm [resolvable:$true] %s108_s2 }
  0x25   :  { %89 = dma.hbm_to_vmem [thread:$0]  %s85_s18, 16, %s87_s27, [#allocation9]  }
  0x26   :  { %s132_s9 = sshll.u32 %s14068_s8, 4  ;;  %s13431_s28 = smov [#allocation13]   ;;  %s133_s9 = int_to_ptr.hbm [resolvable:$true] %s132_s9 }
  0x27   :  { %s110_s4 = sshll.u32 %s13431_s28, 4  ;;  %s13432_s29 = smov [#allocation16]   ;;  %s111_s4 = int_to_ptr.vmem [resolvable:$true] %s110_s4 }
  0x28   :  { %113 = dma.hbm_to_vmem [thread:$0]  %s109_s2, 48, %s111_s4, [#allocation12]  }
  0x29   :  { %s134_s30 = sshll.u32 %s13432_s29, 4  ;;  %s156_s1 = sshll.u32 %s14070_s10, 4  ;;  %s135_s30 = int_to_ptr.vmem [resolvable:$true] %s134_s30  ;;  %s157_s1 = int_to_ptr.hbm [resolvable:$true] %s156_s1 }
  0x2a   :  { %137 = dma.hbm_to_vmem [thread:$0]  %s133_s9, 64, %s135_s30, [#allocation15]  }
  0x2b   :  { %s180_s22 = sshll.u32 %s14072_s12, 4  ;;  %s13433_s13 = smov [#allocation19]   ;;  %s181_s22 = int_to_ptr.hbm [resolvable:$true] %s180_s22 }
  0x2c   :  { %s158_s8 = sshll.u32 %s13433_s13, 4  ;;  %s13434_s21 = smov [#allocation22]   ;;  %s159_s8 = int_to_ptr.vmem [resolvable:$true] %s158_s8 }
  0x2d   :  { %161 = dma.hbm_to_vmem [thread:$0]  %s157_s1, 128, %s159_s8, [#allocation18]  }
  0x2e   :  { %s182_s25 = sshll.u32 %s13434_s21, 4  ;;  %s204_s18 = sshll.u32 %s14074_s14, 4  ;;  %s183_s25 = int_to_ptr.vmem [resolvable:$true] %s182_s25  ;;  %s205_s18 = int_to_ptr.hbm [resolvable:$true] %s204_s18 }
  0x2f   :  { %185 = dma.hbm_to_vmem [thread:$0]  %s181_s22, 64, %s183_s25, [#allocation21]  }
  0x30   :  { %s13435_s10 = smov [#allocation25]  }
  0x31   :  { %s206_s19 = sshll.u32 %s13435_s10, 4  ;;  %s207_s19 = int_to_ptr.vmem [resolvable:$true] %s206_s19 }
  0x32   :  { %209 = dma.hbm_to_vmem [thread:$0]  %s205_s18, 16, %s207_s19, [#allocation24]  }
  0x33   :  { %13395 = dma.done.wait [#allocation3], 384  }
  0x34   :  { %13396 = vsyncadd [#allocation3], 4294966912 }
  0x35   :  { %13397 = dma.done.wait [#allocation6], 144  }
  0x36   :  { %13398 = vsyncadd [#allocation6], 4294967152 }
  0x37   :  { %13399 = dma.done.wait [#allocation9], 3088  }
  0x38   :  { %13400 = vsyncadd [#allocation9], 4294964208 }
  0x39   :  { %13401 = dma.done.wait [#allocation12], 3120  }
  0x3a   :  { %13402 = vsyncadd [#allocation12], 4294964176 }
  0x3b   :  { %13403 = dma.done.wait [#allocation15], 12352  }
  0x3c   :  { %13404 = vsyncadd [#allocation15], 4294954944 }
  0x3d   :  { %13405 = dma.done.wait [#allocation18], 32896  }
  0x3e   :  { %13406 = vsyncadd [#allocation18], 4294934400 }
  0x3f   :  { %13407 = dma.done.wait [#allocation21], 65600  }
  0x40   :  { %13408 = vsyncadd [#allocation21], 4294901696 }
  0x41   :  { %13409 = dma.done.wait [#allocation24], 4112  }
  0x42   :  { %13410 = vsyncadd [#allocation24], 4294963184  ;;  %v12041_v0 = vld [vmem:[#allocation8 + $0x38] sm:$0xff]  ;;  %v12040_v3 = vld [vmem:[#allocation8 + $0x30] sm:$0xff]  ;;  %vm537_vm0 = vcmask 130048   ;;  %vm3656_vm2 = vcmask 123904  }
  0x43   :  { %v12049_v1 = vld [vmem:[#allocation8 + $0x78] sm:$0xff]  ;;  %485 = vmatpush.bf16.msra.mxu0 %v12041_v0  ;;  %v12048_v4 = vld [vmem:[#allocation8 + $0x70] sm:$0xff]  ;;  %v12039_v6 = vld [vmem:[#allocation8 + $0x28] sm:$0xff]  ;;  %s13437_s12 = smov [#allocation26]   ;;  %s8195_s27 = sshll.u32 %s14075_s15, 4  ;;  %s8196_s27 = int_to_ptr.hbm [resolvable:$true] %s8195_s27 }
  0x44   :  { %v12057_v2 = vld [vmem:[#allocation8 + $0xb8] sm:$0xff]  ;;  %499 = vmatpush.bf16.msra.mxu1 %v12049_v1  ;;  %v12056_v5 = vld [vmem:[#allocation8 + $0xb0] sm:$0xff]  ;;  %v12047_v7 = vld [vmem:[#allocation8 + $0x68] sm:$0xff]  ;;  %s8193_s14 = sshll.u32 %s13437_s12, 4  ;;  %s8194_s14 = int_to_ptr.vmem [resolvable:$true] %s8193_s14 }
  0x45   :  { %513 = vmatpush.bf16.msra.mxu2 %v12057_v2  ;;  %v12055_v8 = vld [vmem:[#allocation8 + $0xa8] sm:$0xff]  ;;  %v12038_v9 = vld [vmem:[#allocation8 + $0x20] sm:$0xff]  ;;  %v12037_v12 = vld [vmem:[#allocation8 + $0x18] sm:$0xff] }
  0x46   :  { %v12046_v10 = vld [vmem:[#allocation8 + $0x60] sm:$0xff]  ;;  %v12045_v13 = vld [vmem:[#allocation8 + $0x58] sm:$0xff]  ;;  %v12036_v15 = vld [vmem:[#allocation8 + $0x10] sm:$0xff] }
  0x47   :  { %486 = vmatpush.bf16.msra.mxu0 %v12040_v3  ;;  %v12054_v11 = vld [vmem:[#allocation8 + $0xa0] sm:$0xff]  ;;  %v12053_v14 = vld [vmem:[#allocation8 + $0x98] sm:$0xff]  ;;  %v12044_v16 = vld [vmem:[#allocation8 + $0x50] sm:$0xff] }
  0x48   :  { %500 = vmatpush.bf16.msra.mxu1 %v12048_v4  ;;  %v12052_v17 = vld [vmem:[#allocation8 + $0x90] sm:$0xff]  ;;  %v12035_v18 = vld [vmem:[#allocation8 + $0x8] sm:$0xff]  ;;  %v12034_v21 = vld [vmem:[#allocation8] sm:$0xff] }
  0x49   :  { %514 = vmatpush.bf16.msra.mxu2 %v12056_v5  ;;  %v12043_v19 = vld [vmem:[#allocation8 + $0x48] sm:$0xff]  ;;  %v12042_v22 = vld [vmem:[#allocation8 + $0x40] sm:$0xff]  ;;  %v12032_v29 = vld [vmem:[#allocation2 + $0x10] sm:$0xf0] }
  0x4a   :  { %v12051_v20 = vld [vmem:[#allocation8 + $0x88] sm:$0xff]  ;;  %v8214_v23 = vld [vmem:[#allocation2] sm:$0xf]  ;;  %v12030_v25 = vld [vmem:[#allocation2 + $0x4] sm:$0xf] }
  0x4b   :  { %487 = vmatpush.bf16.msra.mxu0 %v12039_v6  ;;  %v12031_v24 = vld [vmem:[#allocation2 + $0x8] sm:$0xf0]  ;;  %v8216_v26 = vld [vmem:[#allocation2 + $0xc] sm:$0xf0]  ;;  %v12050_v27 = vld [vmem:[#allocation8 + $0x80] sm:$0xff] }
  0x4c   :  { %501 = vmatpush.bf16.msra.mxu1 %v12047_v7  ;;  %v8222_v28 = vld [vmem:[#allocation2 + $0x8] sm:$0xf]  ;;  %v8215_v30 = vor.u32 %v12031_v24, %v8214_v23  ;;  %v8219_v31 = vor.u32 %v12030_v25, %v8216_v26  ;;  %v13578_v44 = vld [vmem:[#allocation5] sm:$0xff]  ;;  %v12079_v45 = vld [vmem:[#allocation11 + $0xac] sm:$0xf] }
  0x4d   :  { %515 = vmatpush.bf16.msra.mxu2 %v12055_v8  ;;  %v8223_v32 = vor.u32 %v12032_v29, %v8222_v28  ;;  %v8414_v46 = vld [vmem:[#allocation11 + $0xb4] sm:$0xf0]  ;;  %v8420_v47 = vld [vmem:[#allocation11 + $0xb0] sm:$0xf]  ;;  %v12081_v48 = vld [vmem:[#allocation11 + $0xb8] sm:$0xf0] }
  0x4e   :  { %v8417_v49 = vor.u32 %v12079_v45, %v8414_v46  ;;  %v8421_v50 = vor.u32 %v12081_v48, %v8420_v47  ;;  %v12076_v51 = vld [vmem:[#allocation11 + $0x94] sm:$0xf]  ;;  %v8402_v52 = vld [vmem:[#allocation11 + $0x9c] sm:$0xf0]  ;;  %v8408_v53 = vld [vmem:[#allocation11 + $0x98] sm:$0xf] }
  0x4f   :  { %488 = vmatpush.bf16.msra.mxu0 %v12038_v9  ;;  %v12078_v54 = vld [vmem:[#allocation11 + $0xa0] sm:$0xf0]  ;;  %v8405_v55 = vor.u32 %v12076_v51, %v8402_v52  ;;  %v12073_v57 = vld [vmem:[#allocation11 + $0x7c] sm:$0xf]  ;;  %v8390_v58 = vld [vmem:[#allocation11 + $0x84] sm:$0xf0] }
  0x50   :  { %502 = vmatpush.bf16.msra.mxu1 %v12046_v10  ;;  %v8409_v56 = vor.u32 %v12078_v54, %v8408_v53  ;;  %v8396_v59 = vld [vmem:[#allocation11 + $0x80] sm:$0xf]  ;;  %v12075_v60 = vld [vmem:[#allocation11 + $0x88] sm:$0xf0]  ;;  %v8393_v61 = vor.u32 %v12073_v57, %v8390_v58  ;;  %v12070_v63 = vld [vmem:[#allocation11 + $0x64] sm:$0xf] }
  0x51   :  { %516 = vmatpush.bf16.msra.mxu2 %v12054_v11  ;;  %v8397_v62 = vor.u32 %v12075_v60, %v8396_v59  ;;  %v8378_v0 = vld [vmem:[#allocation11 + $0x6c] sm:$0xf0]  ;;  %v8384_v1 = vld [vmem:[#allocation11 + $0x68] sm:$0xf]  ;;  %v12072_v2 = vld [vmem:[#allocation11 + $0x70] sm:$0xf0] }
  0x52   :  { %v8381_v3 = vor.u32 %v12070_v63, %v8378_v0  ;;  %v8385_v4 = vor.u32 %v12072_v2, %v8384_v1  ;;  %v12067_v5 = vld [vmem:[#allocation11 + $0x4c] sm:$0xf]  ;;  %v8366_v6 = vld [vmem:[#allocation11 + $0x54] sm:$0xf0]  ;;  %v8372_v7 = vld [vmem:[#allocation11 + $0x50] sm:$0xf] }
  0x53   :  { %489 = vmatpush.bf16.msra.mxu0 %v12037_v12  ;;  %v12069_v8 = vld [vmem:[#allocation11 + $0x58] sm:$0xf0]  ;;  %v8369_v10 = vor.u32 %v12067_v5, %v8366_v6  ;;  %v8388_v26 = vld [vmem:[#allocation11 + $0x78] sm:$0xf]  ;;  %v8376_v29 = vld [vmem:[#allocation11 + $0x60] sm:$0xf] }
  0x54   :  { %503 = vmatpush.bf16.msra.mxu1 %v12045_v13  ;;  %v8373_v11 = vor.u32 %v12069_v8, %v8372_v7  ;;  %v13003_v12 = vld [vmem:[#allocation10] ss:$0 sm:$0xff]  ;;  %v8340_v45 = vld [vmem:[#allocation11 + $0x18] sm:$0xf]  ;;  %v12062_v46 = vld [vmem:[#allocation11 + $0x20] sm:$0xf0] }
  0x55   :  { %517 = vmatpush.bf16.msra.mxu2 %v12053_v14  ;;  %v8412_v14 = vld [vmem:[#allocation11 + $0xa8] sm:$0xf]  ;;  %v12077_v23 = vld [vmem:[#allocation11 + $0x98] sm:$0xf0]  ;;  %v8341_v48 = vor.u32 %v12062_v46, %v8340_v45  ;;  %v12063_v51 = vld [vmem:[#allocation11 + $0x28] sm:$0xf0] }
  0x56   :  { %v12061_v47 = vld [vmem:[#allocation11 + $0x1c] sm:$0xf]  ;;  %v8328_v54 = vld [vmem:[#allocation11] sm:$0xf]  ;;  %v8330_v58 = vld [vmem:[#allocation11 + $0xc] sm:$0xf0] }
  0x57   :  { %490 = vmatpush.bf16.msra.mxu0 %v12036_v15  ;;  %v12080_v15 = vld [vmem:[#allocation11 + $0xb0] sm:$0xf0]  ;;  %v8336_v59 = vld [vmem:[#allocation11 + $0x8] sm:$0xf]  ;;  %v603_v2 = vld [vmem:[#allocation13] sm:$0x7] }
  0x58   :  { %504 = vmatpush.bf16.msra.mxu1 %v12044_v16  ;;  %v12060_v60 = vld [vmem:[#allocation11 + $0x10] sm:$0xf0]  ;;  %v606_v5 = vperm.slane %v603_v2, 1  ;;  %v607_v6 = vperm.slane %v603_v2, 2  ;;  %v12102_v46 = vld [vmem:[#allocation14 + $0xa4] sm:$0xf] }
  0x59   :  { %518 = vmatpush.bf16.msra.mxu2 %v12052_v17  ;;  %v12176_v45 = vld [vmem:[#allocation14 + $0x2ec] sm:$0xf0] }
  0x5b   :  { %491 = vmatpush.bf16.msra.mxu0 %v12035_v18  ;;  %v8413_v18 = vor.u32 %v12080_v15, %v8412_v14  ;;  %v12110_v14 = vld [vmem:[#allocation14 + $0xe4] sm:$0xf]  ;;  %v8541_v15 = vld [vmem:[#allocation14 + $0xf0] sm:$0xf0] }
  0x5c   :  { %505 = vmatpush.bf16.msra.mxu1 %v12043_v19 }
  0x5d   :  { %519 = vmatpush.bf16.msra.mxu2 %v12051_v20 }
  0x5f   :  { %492 = vmatpush.bf16.msra.mxu0 %v12034_v21 }
  0x60   :  { %506 = vmatpush.bf16.msra.mxu1 %v12042_v22  ;;  %v8400_v22 = vld [vmem:[#allocation11 + $0x90] sm:$0xf] }
  0x61   :  { %520 = vmatpush.bf16.msra.mxu2 %v12050_v27  ;;  %v8401_v25 = vor.u32 %v12077_v23, %v8400_v22  ;;  %v12074_v27 = vld [vmem:[#allocation11 + $0x80] sm:$0xf0] }
  0x62   :  { %493 = vmatmul.bf16.vlgmr.msra.gmra.mxu0 %v8215_v30  ;;  %v8389_v28 = vor.u32 %v12074_v27, %v8388_v26  ;;  %v12071_v30 = vld [vmem:[#allocation11 + $0x68] sm:$0xf0]  ;;  %v12106_v27 = vld [vmem:[#allocation14 + $0xc4] sm:$0xf] }
  0x63   :  { %507 = vmatmul.bf16.vlgmr.msra.gmra.mxu1 %v8219_v31  ;;  %753 = vmatpush.bf16.msrb.mxu0 %v8417_v49  ;;  %v8377_v31 = vor.u32 %v12071_v30, %v8376_v29  ;;  %v8342_v49 = vld [vmem:[#allocation11 + $0x24] sm:$0xf0] }
  0x64   :  { %521 = vmatmul.bf16.vlgmr.msra.gmra.mxu2 %v8223_v32  ;;  %767 = vmatpush.bf16.msrb.mxu1 %v8421_v50  ;;  %v8364_v32 = vld [vmem:[#allocation11 + $0x48] sm:$0xf]  ;;  %v8348_v50 = vld [vmem:[#allocation11 + $0x20] sm:$0xf]  ;;  %v8345_v52 = vor.u32 %v12061_v47, %v8342_v49  ;;  %v8509_v47 = vld [vmem:[#allocation14 + $0xb0] sm:$0xf0] }
  0x65   :  { %v8349_v53 = vor.u32 %v12063_v51, %v8348_v50  ;;  %v8667_v51 = vld [vmem:[#allocation14 + $0x1e0] sm:$0xf] }
  0x67   :  { %754 = vmatpush.bf16.msrb.mxu0 %v8405_v55  ;;  %v12059_v55 = vld [vmem:[#allocation11 + $0x8] sm:$0xf0] }
  0x68   :  { %768 = vmatpush.bf16.msrb.mxu1 %v8409_v56  ;;  %v12058_v56 = vld [vmem:[#allocation11 + $0x4] sm:$0xf]  ;;  %v8329_v57 = vor.u32 %v12059_v55, %v8328_v54  ;;  %v12172_v55 = vld [vmem:[#allocation14 + $0x2cc] sm:$0xf0] }
  0x69   :  { %v8779_v54 = vld [vmem:[#allocation14 + $0x2c0] sm:$0xf] }
  0x6b   :  { %755 = vmatpush.bf16.msrb.mxu0 %v8393_v61  ;;  %v8333_v61 = vor.u32 %v12058_v56, %v8330_v58 }
  0x6c   :  { %769 = vmatpush.bf16.msrb.mxu1 %v8397_v62  ;;  %v8337_v62 = vor.u32 %v12060_v60, %v8336_v59  ;;  %v8512_v60 = vor.u32 %v12102_v46, %v8509_v47  ;;  %v8587_v46 = vld [vmem:[#allocation14 + $0x140] sm:$0xf]  ;;  %v12124_v47 = vld [vmem:[#allocation14 + $0x14c] sm:$0xf0] }
  0x6f   :  { %756 = vmatpush.bf16.msrb.mxu0 %v8381_v3 }
  0x70   :  { %770 = vmatpush.bf16.msrb.mxu1 %v8385_v4 }
  0x73   :  { %757 = vmatpush.bf16.msrb.mxu0 %v8369_v10  ;;  %v12112_v10 = vld [vmem:[#allocation14 + $0xec] sm:$0xf0] }
  0x74   :  { %771 = vmatpush.bf16.msrb.mxu1 %v8373_v11 }
  0xdf   :  { %v494_v33 = vpop.f32.mrf.mxu0 }
  0xe0   :  { %v508_v34 = vpop.f32.mrf.mxu1 }
  0xe1   :  { %v509_v38 = vadd.f32 %v508_v34, %v494_v33  ;;  %v12068_v33 = vld [vmem:[#allocation11 + $0x50] sm:$0xf0] }
  0xe2   :  { %v8365_v34 = vor.u32 %v12068_v33, %v8364_v32  ;;  %v8507_v32 = vld [vmem:[#allocation14 + $0xa0] sm:$0xf]  ;;  %v12104_v33 = vld [vmem:[#allocation14 + $0xac] sm:$0xf0] }
  0xe7   :  { %v522_v35 = vpop.f32.mrf.mxu2  ;;  %v496_v36 = vpop.f32.mrf.mxu0 }
  0xe8   :  { %v510_v37 = vpop.f32.mrf.mxu1  ;;  %v523_v41 = vadd.f32 %v522_v35, %v509_v38  ;;  %v8352_v35 = vld [vmem:[#allocation11 + $0x30] sm:$0xf] }
  0xe9   :  { %v511_v39 = vadd.f32 %v510_v37, %v496_v36  ;;  %v12065_v36 = vld [vmem:[#allocation11 + $0x38] sm:$0xf0]  ;;  %v12064_v37 = vld [vmem:[#allocation11 + $0x34] sm:$0xf] }
  0xea   :  { %v8353_v38 = vor.u32 %v12065_v36, %v8352_v35 }
  0xef   :  { %v524_v40 = vpop.f32.mrf.mxu2 }
  0xf0   :  { %v525_v42 = vadd.f32 %v524_v40, %v511_v39  ;;  %v8354_v39 = vld [vmem:[#allocation11 + $0x3c] sm:$0xf0]  ;;  %v8360_v40 = vld [vmem:[#allocation11 + $0x38] sm:$0xf] }
  0xf2   :  { %v527_v43 = vpack.c.bf16 %v525_v42, %v523_v41  ;;  %v12066_v41 = vld [vmem:[#allocation11 + $0x40] sm:$0xf0]  ;;  %v8357_v42 = vor.u32 %v12064_v37, %v8354_v39 }
  0xf4   :  { %548 = vmatpush.bf16.msra.mxu3 %v527_v43  ;;  %v8361_v43 = vor.u32 %v12066_v41, %v8360_v40  ;;  %758 = vmatpush.bf16.msrb.mxu0 %v8357_v42  ;;  %v8795_v40 = vld [vmem:[#allocation14 + $0x2e0] sm:$0xf] }
  0xf5   :  { %v8491_v42 = vld [vmem:[#allocation14 + $0x80] sm:$0xf]  ;;  %v8796_v59 = vor.u32 %v12176_v45, %v8795_v40  ;;  %v12086_v40 = vld [vmem:[#allocation14 + $0x24] sm:$0xf]  ;;  %v8669_v45 = vld [vmem:[#allocation14 + $0x1f0] sm:$0xf0] }
  0xf6   :  { %772 = vmatpush.bf16.msrb.mxu1 %v8361_v43  ;;  %v12100_v43 = vld [vmem:[#allocation14 + $0x8c] sm:$0xf0] }
  0xf7   :  { %8324 = vmatmul.msk.bf16.vlgmr.msra.gmra.mxu3 %vm537_vm0, %v13578_v44  ;;  %v8492_v56 = vor.u32 %v12100_v43, %v8491_v42  ;;  %v12142_v42 = vld [vmem:[#allocation14 + $0x1e4] sm:$0xf] }
  0xf8   :  { %759 = vmatpush.bf16.msrb.mxu0 %v8345_v52  ;;  %v12144_v52 = vld [vmem:[#allocation14 + $0x1ec] sm:$0xf0] }
  0xfa   :  { %773 = vmatpush.bf16.msrb.mxu1 %v8349_v53 }
  0xfc   :  { %760 = vmatpush.bf16.msrb.mxu0 %v8333_v61  ;;  %v12098_v61 = vld [vmem:[#allocation14 + $0x84] sm:$0xf] }
  0xfe   :  { %774 = vmatpush.bf16.msrb.mxu1 %v8337_v62  ;;  %v8475_v62 = vld [vmem:[#allocation14 + $0x60] sm:$0xf] }
 0x17a   :  { %v550_v9 = vpop.f32.mrf.mxu3 }
 0x17b   :  { %v551_v13 = vadd.f32 %v13003_v12, %v550_v9  ;;  %v8539_v9 = vld [vmem:[#allocation14 + $0xe0] sm:$0xf] }
 0x17d   :  { %v3676_v19 = vmax.f32 %v551_v13, 0.0 }
 0x182   :  { %v552_v16 = vpop.f32.mrf.mxu3 }
 0x183   :  { %v553_v17 = vadd.f32 %v13003_v12, %v552_v16  ;;  %v605_v16 = vperm.slane %v603_v2, 0  ;;  %v12140_v2 = vld [vmem:[#allocation14 + $0x1cc] sm:$0xf0] }
 0x185   :  { %v3677_v20 = vmax.f32 %v553_v17, 0.0  ;;  %v555_v21 = vpack.c.bf16 %v553_v17, %v551_v13  ;;  %v8540_v13 = vor.u32 %v12112_v10, %v8539_v9  ;;  %v12092_v9 = vld [vmem:[#allocation14 + $0x4c] sm:$0xf0]  ;;  %v8635_v10 = vld [vmem:[#allocation14 + $0x1a0] sm:$0xf] }
 0x187   :  { %v13582_v24 = vpack.c.bf16 %v3677_v20, %v3676_v19  ;;  %563 = vmatpush.bf16.msrb.mxu3 %v555_v21  ;;  %v8523_v19 = vld [vmem:[#allocation14 + $0xc0] sm:$0xf]  ;;  %1415 = vmatpush.bf16.msra.mxu0 %v8540_v13  ;;  %v12108_v21 = vld [vmem:[#allocation14 + $0xcc] sm:$0xf0]  ;;  %v12094_v13 = vld [vmem:[#allocation14 + $0x64] sm:$0xf] }
 0x188   :  { %v8524_v26 = vor.u32 %v12108_v21, %v8523_v19 }
 0x18a   :  { %8325 = vmatmul.msk.bf16.vlgmr.msrb.gmra.mxu3 %vm537_vm0, %v13578_v44 }
 0x18b   :  { %739 = vmatpush.bf16.msra.mxu3 %v8413_v18  ;;  %1416 = vmatpush.bf16.msra.mxu0 %v8524_v26  ;;  %v12090_v26 = vld [vmem:[#allocation14 + $0x44] sm:$0xf] }
 0x18f   :  { %740 = vmatpush.bf16.msra.mxu3 %v8401_v25  ;;  %v8544_v25 = vor.u32 %v12110_v14, %v8541_v15  ;;  %v8477_v14 = vld [vmem:[#allocation14 + $0x70] sm:$0xf0] }
 0x190   :  { %v8480_v21 = vor.u32 %v12094_v13, %v8477_v14  ;;  %v12113_v13 = vld [vmem:[#allocation14 + $0xf4] sm:$0xf0]  ;;  %v8643_v14 = vld [vmem:[#allocation14 + $0x1a8] sm:$0xf] }
 0x193   :  { %741 = vmatpush.bf16.msra.mxu3 %v8389_v28  ;;  %v8525_v28 = vld [vmem:[#allocation14 + $0xd0] sm:$0xf0] }
 0x194   :  { %v8528_v41 = vor.u32 %v12106_v27, %v8525_v28  ;;  %v8461_v27 = vld [vmem:[#allocation14 + $0x50] sm:$0xf0] }
 0x197   :  { %742 = vmatpush.bf16.msra.mxu3 %v8377_v31 }
 0x19b   :  { %743 = vmatpush.bf16.msra.mxu3 %v8365_v34 }
 0x19f   :  { %744 = vmatpush.bf16.msra.mxu3 %v8353_v38  ;;  %v8508_v38 = vor.u32 %v12104_v33, %v8507_v32 }
 0x1a1   :  { %1417 = vmatpush.bf16.msra.mxu0 %v8508_v38  ;;  %v8427_v38 = vld [vmem:[#allocation14] sm:$0xf] }
 0x1a3   :  { %745 = vmatpush.bf16.msra.mxu3 %v8341_v48 }
 0x1a5   :  { %1418 = vmatpush.bf16.msra.mxu0 %v8492_v56  ;;  %v8675_v56 = vld [vmem:[#allocation14 + $0x1e8] sm:$0xf] }
 0x1a7   :  { %746 = vmatpush.bf16.msra.mxu3 %v8329_v57  ;;  %v8668_v57 = vor.u32 %v12144_v52, %v8667_v51  ;;  %v12156_v51 = vld [vmem:[#allocation14 + $0x24c] sm:$0xf0] }
 0x1a9   :  { %1429 = vmatpush.bf16.msra.mxu1 %v8668_v57  ;;  %v8588_v57 = vor.u32 %v12124_v47, %v8587_v46  ;;  %v8555_v46 = vld [vmem:[#allocation14 + $0x100] sm:$0xf] }
 0x20d   :  { %v565_v63 = vpop.f32.mrf.mxu3 }
 0x215   :  { %v567_v0 = vpop.f32.mrf.mxu3 }
 0x216   :  { %v602_v1 = vpack.c.bf16 %v567_v0, %v565_v63  ;;  %v12096_v63 = vld [vmem:[#allocation14 + $0x6c] sm:$0xf0]  ;;  %v8493_v0 = vld [vmem:[#allocation14 + $0x90] sm:$0xf0] }
 0x218   :  { %747 = vmatmul.bf16.vlgmr.msra.gmra.mxu3 %v602_v1  ;;  %761 = vmatmul.bf16.vlgmr.msrb.gmra.mxu0 %v602_v1 }
 0x219   :  { %775 = vmatmul.bf16.vlgmr.msrb.gmra.mxu1 %v602_v1  ;;  %v8651_v1 = vld [vmem:[#allocation14 + $0x1c0] sm:$0xf] }
 0x295   :  { %v762_v3 = vpop.f32.mrf.mxu0 }
 0x296   :  { %v776_v4 = vpop.f32.mrf.mxu1  ;;  %v763_v8 = vadd.f32 %v762_v3, %v606_v5  ;;  %v8652_v3 = vor.u32 %v12140_v2, %v8651_v1  ;;  %v12152_v1 = vld [vmem:[#allocation14 + $0x22c] sm:$0xf0] }
 0x297   :  { %v777_v11 = vadd.f32 %v776_v4, %v607_v6  ;;  %v8763_v4 = vld [vmem:[#allocation14 + $0x2a0] sm:$0xf] }
 0x298   :  { %v3697_v22 = vmax.f32 %v763_v8, 0.0  ;;  %1430 = vmatpush.bf16.msra.mxu1 %v8652_v3 }
 0x299   :  { %v3698_v29 = vmax.f32 %v777_v11, 0.0 }
 0x29b   :  { %v748_v7 = vpop.f32.mrf.mxu3 }
 0x29c   :  { %v749_v34 = vadd.f32 %v748_v7, %v605_v16  ;;  %v8780_v7 = vor.u32 %v12172_v55, %v8779_v54  ;;  %v8429_v54 = vld [vmem:[#allocation14 + $0x10] sm:$0xf0]  ;;  %v8672_v55 = vor.u32 %v12142_v42, %v8669_v45  ;;  %v12093_v45 = vld [vmem:[#allocation14 + $0x54] sm:$0xf0] }
 0x29d   :  { %v764_v12 = vpop.f32.mrf.mxu0 }
 0x29e   :  { %v765_v17 = vadd.f32 %v764_v12, %v606_v5  ;;  %v778_v18 = vpop.f32.mrf.mxu1  ;;  %v3696_v48 = vmax.f32 %v749_v34, 0.0  ;;  %v8476_v5 = vor.u32 %v12096_v63, %v8475_v62  ;;  %v12168_v12 = vld [vmem:[#allocation14 + $0x2ac] sm:$0xf0] }
 0x29f   :  { %v779_v20 = vadd.f32 %v778_v18, %v607_v6  ;;  %v8459_v6 = vld [vmem:[#allocation14 + $0x40] sm:$0xf]  ;;  %v12132_v18 = vld [vmem:[#allocation14 + $0x18c] sm:$0xf0]  ;;  %v8764_v19 = vor.u32 %v12168_v12, %v8763_v4  ;;  %v8659_v4 = vld [vmem:[#allocation14 + $0x1c8] sm:$0xf] }
 0x2a0   :  { %v3700_v23 = vmax.f32 %v765_v17, 0.0  ;;  %v782_v53 = vpack.c.bf16 %v765_v17, %v763_v8  ;;  %v8496_v8 = vor.u32 %v12098_v61, %v8493_v0  ;;  %1419 = vmatpush.bf16.msra.mxu0 %v8476_v5  ;;  %v8619_v17 = vld [vmem:[#allocation14 + $0x180] sm:$0xf]  ;;  %v8653_v61 = vld [vmem:[#allocation14 + $0x1d0] sm:$0xf0] }
 0x2a1   :  { %v783_v30 = vpack.c.bf16 %v779_v20, %v777_v11  ;;  %v3701_v31 = vmax.f32 %v779_v20, 0.0  ;;  %v12136_v11 = vld [vmem:[#allocation14 + $0x1ac] sm:$0xf0]  ;;  %v8747_v20 = vld [vmem:[#allocation14 + $0x280] sm:$0xf]  ;;  %v8620_v28 = vor.u32 %v12132_v18, %v8619_v17 }
 0x2a2   :  { %v13586_v35 = vpack.c.bf16 %v3700_v23, %v3697_v22  ;;  %v8636_v15 = vor.u32 %v12136_v11, %v8635_v10  ;;  %v8443_v22 = vld [vmem:[#allocation14 + $0x20] sm:$0xf]  ;;  %v12088_v23 = vld [vmem:[#allocation14 + $0x2c] sm:$0xf0]  ;;  %v12141_v5 = vld [vmem:[#allocation14 + $0x1d4] sm:$0xf0] }
 0x2a3   :  { %v13588_v36 = vpack.c.bf16 %v3701_v31, %v3698_v29  ;;  %819 = vmatpush.bf16.msrb.mxu3 %v783_v30  ;;  %v750_v37 = vpop.f32.mrf.mxu3  ;;  %v8603_v29 = vld [vmem:[#allocation14 + $0x160] sm:$0xf]  ;;  %v12128_v30 = vld [vmem:[#allocation14 + $0x16c] sm:$0xf0]  ;;  %v8444_v32 = vor.u32 %v12088_v23, %v8443_v22  ;;  %v8547_v10 = vld [vmem:[#allocation14 + $0xe8] sm:$0xf]  ;;  %v8660_v11 = vor.u32 %v12141_v5, %v8659_v4 }
 0x2a4   :  { %v751_v39 = vadd.f32 %v750_v37, %v605_v16  ;;  %v8460_v16 = vor.u32 %v12092_v9, %v8459_v6  ;;  %1431 = vmatpush.bf16.msra.mxu1 %v8636_v15  ;;  %v8731_v31 = vld [vmem:[#allocation14 + $0x260] sm:$0xf]  ;;  %v8464_v37 = vor.u32 %v12090_v26, %v8461_v27  ;;  %v8604_v43 = vor.u32 %v12128_v30, %v8603_v29  ;;  %v12134_v6 = vld [vmem:[#allocation14 + $0x1a4] sm:$0xf]  ;;  %v12137_v15 = vld [vmem:[#allocation14 + $0x1b4] sm:$0xf0] }
 0x2a5   :  { %v8699_v0 = vld [vmem:[#allocation14 + $0x220] sm:$0xf]  ;;  %v8548_v17 = vor.u32 %v12113_v13, %v8547_v10  ;;  %v8644_v18 = vor.u32 %v12137_v15, %v8643_v14  ;;  %v8515_v22 = vld [vmem:[#allocation14 + $0xa8] sm:$0xf]  ;;  %v12105_v23 = vld [vmem:[#allocation14 + $0xb4] sm:$0xf0] }
 0x2a6   :  { %v3699_v49 = vmax.f32 %v751_v39, 0.0  ;;  %8424 = vmatmul.msk.bf16.vlgmr.msrb.gmra.mxu3 %vm537_vm0, %v13578_v44  ;;  %v781_v50 = vpack.c.bf16 %v751_v39, %v749_v34  ;;  %1420 = vmatpush.bf16.msra.mxu0 %v8460_v16  ;;  %v12160_v34 = vld [vmem:[#allocation14 + $0x26c] sm:$0xf0]  ;;  %v8683_v9 = vld [vmem:[#allocation14 + $0x200] sm:$0xf] }
 0x2a7   :  { %1457 = vmatpush.bf16.msra.mxu3 %v8544_v25  ;;  %v12164_v25 = vld [vmem:[#allocation14 + $0x28c] sm:$0xf0]  ;;  %v8499_v26 = vld [vmem:[#allocation14 + $0x88] sm:$0xf]  ;;  %v12101_v27 = vld [vmem:[#allocation14 + $0x94] sm:$0xf0] }
 0x2a8   :  { %v13592_v58 = vpack.c.bf16 %v3699_v49, %v3696_v48  ;;  %791 = vmatpush.bf16.msrb.mxu2 %v781_v50  ;;  %v8748_v33 = vor.u32 %v12164_v25, %v8747_v20  ;;  %v12084_v39 = vld [vmem:[#allocation14 + $0xc] sm:$0xf0]  ;;  %1432 = vmatpush.bf16.msra.mxu1 %v8620_v28  ;;  %v8732_v49 = vor.u32 %v12160_v34, %v8731_v31  ;;  %v8715_v50 = vld [vmem:[#allocation14 + $0x240] sm:$0xf]  ;;  %v12109_v20 = vld [vmem:[#allocation14 + $0xd4] sm:$0xf0] }
 0x2a9   :  { %v8428_v48 = vor.u32 %v12084_v39, %v8427_v38  ;;  %v8716_v62 = vor.u32 %v12156_v51, %v8715_v50  ;;  %v8516_v25 = vor.u32 %v12105_v23, %v8515_v22  ;;  %v8500_v28 = vor.u32 %v12101_v27, %v8499_v26  ;;  %v8483_v29 = vld [vmem:[#allocation14 + $0x68] sm:$0xf]  ;;  %v12097_v30 = vld [vmem:[#allocation14 + $0x74] sm:$0xf0]  ;;  %v8621_v38 = vld [vmem:[#allocation14 + $0x190] sm:$0xf0] }
 0x2aa   :  { %1421 = vmatpush.bf16.msra.mxu0 %v8444_v32  ;;  %v8484_v31 = vor.u32 %v12097_v30, %v8483_v29  ;;  %v8571_v32 = vld [vmem:[#allocation14 + $0x120] sm:$0xf]  ;;  %v8627_v39 = vld [vmem:[#allocation14 + $0x188] sm:$0xf]  ;;  %v8605_v50 = vld [vmem:[#allocation14 + $0x170] sm:$0xf0] }
 0x2ab   :  { %1458 = vmatpush.bf16.msra.mxu3 %v8528_v41  ;;  %8422 = vmatmul.msk.bf16.vlgmr.msrb.gmra.mxu2 %vm537_vm0, %v13578_v44  ;;  %v8445_v41 = vld [vmem:[#allocation14 + $0x30] sm:$0xf0]  ;;  %v8595_v4 = vld [vmem:[#allocation14 + $0x148] sm:$0xf]  ;;  %v12125_v5 = vld [vmem:[#allocation14 + $0x154] sm:$0xf0] }
 0x2ac   :  { %805 = vmatpush.bf16.msra.mxu2 %v782_v53  ;;  %v8448_v52 = vor.u32 %v12086_v40, %v8445_v41  ;;  %v12082_v53 = vld [vmem:[#allocation14 + $0x4] sm:$0xf]  ;;  %1433 = vmatpush.bf16.msra.mxu1 %v8604_v43  ;;  %v12133_v41 = vld [vmem:[#allocation14 + $0x194] sm:$0xf0]  ;;  %v8467_v43 = vld [vmem:[#allocation14 + $0x48] sm:$0xf] }
 0x2ad   :  { %v8432_v63 = vor.u32 %v12082_v53, %v8429_v54  ;;  %v8628_v42 = vor.u32 %v12133_v41, %v8627_v39  ;;  %v8468_v47 = vor.u32 %v12093_v45, %v8467_v43  ;;  %v12174_v53 = vld [vmem:[#allocation14 + $0x2e4] sm:$0xf]  ;;  %v8797_v54 = vld [vmem:[#allocation14 + $0x2f0] sm:$0xf0]  ;;  %v8579_v15 = vld [vmem:[#allocation14 + $0x128] sm:$0xf] }
 0x2ae   :  { %1422 = vmatpush.bf16.msra.mxu0 %v8428_v48  ;;  %v12116_v48 = vld [vmem:[#allocation14 + $0x10c] sm:$0xf0]  ;;  %v12118_v10 = vld [vmem:[#allocation14 + $0x124] sm:$0xf]  ;;  %v8765_v14 = vld [vmem:[#allocation14 + $0x2b0] sm:$0xf0] }
 0x2af   :  { %1459 = vmatpush.bf16.msra.mxu3 %v8512_v60  ;;  %v12138_v60 = vld [vmem:[#allocation14 + $0x1c4] sm:$0xf]  ;;  %v8556_v51 = vor.u32 %v12116_v48, %v8555_v46  ;;  %v8749_v23 = vld [vmem:[#allocation14 + $0x290] sm:$0xf0]  ;;  %v12117_v26 = vld [vmem:[#allocation14 + $0x114] sm:$0xf0] }
 0x2b0   :  { %1443 = vmatpush.bf16.msrb.mxu2 %v8796_v59  ;;  %v12145_v59 = vld [vmem:[#allocation14 + $0x1f4] sm:$0xf0]  ;;  %v8656_v3 = vor.u32 %v12138_v60, %v8653_v61  ;;  %1434 = vmatpush.bf16.msra.mxu1 %v8588_v57  ;;  %v8451_v60 = vld [vmem:[#allocation14 + $0x28] sm:$0xf]  ;;  %v12158_v29 = vld [vmem:[#allocation14 + $0x264] sm:$0xf] }
 0x2b1   :  { %v8676_v2 = vor.u32 %v12145_v59, %v8675_v56  ;;  %v8800_v56 = vor.u32 %v12174_v53, %v8797_v54  ;;  %v12129_v57 = vld [vmem:[#allocation14 + $0x174] sm:$0xf0]  ;;  %v8733_v30 = vld [vmem:[#allocation14 + $0x270] sm:$0xf0]  ;;  %v12143_v46 = vld [vmem:[#allocation14 + $0x1ec] sm:$0xf] }
 0x2b2   :  { %1471 = vmatpush.bf16.msrb.mxu0 %v8672_v55  ;;  %v8611_v55 = vld [vmem:[#allocation14 + $0x168] sm:$0xf]  ;;  %v12089_v61 = vld [vmem:[#allocation14 + $0x34] sm:$0xf0]  ;;  %v8685_v41 = vld [vmem:[#allocation14 + $0x210] sm:$0xf0] }
 0x2b3   :  { %1460 = vmatpush.bf16.msra.mxu3 %v8496_v8  ;;  %v8700_v8 = vor.u32 %v12152_v1, %v8699_v0  ;;  %v8612_v59 = vor.u32 %v12129_v57, %v8611_v55  ;;  %v8589_v0 = vld [vmem:[#allocation14 + $0x150] sm:$0xf0]  ;;  %v12170_v1 = vld [vmem:[#allocation14 + $0x2c4] sm:$0xf]  ;;  %v8803_v53 = vld [vmem:[#allocation14 + $0x2e8] sm:$0xf] }
 0x2b4   :  { %1444 = vmatpush.bf16.msrb.mxu2 %v8780_v7  ;;  %v8637_v7 = vld [vmem:[#allocation14 + $0x1b0] sm:$0xf0]  ;;  %v12177_v54 = vld [vmem:[#allocation14 + $0x2f4] sm:$0xf0]  ;;  %v12175_v55 = vld [vmem:[#allocation14 + $0x2ec] sm:$0xf] }
 0x2b5   :  { %v8640_v12 = vor.u32 %v12134_v6, %v8637_v7  ;;  %v8596_v7 = vor.u32 %v12125_v5, %v8595_v4  ;;  %v8789_v4 = vld [vmem:[#allocation14 + $0x2d8] sm:$0xf0] }
 0x2b6   :  { %1472 = vmatpush.bf16.msrb.mxu0 %v8656_v3  ;;  %v8781_v3 = vld [vmem:[#allocation14 + $0x2d0] sm:$0xf0] }
 0x2b7   :  { %1461 = vmatpush.bf16.msra.mxu3 %v8480_v21  ;;  %v8784_v6 = vor.u32 %v12170_v1, %v8781_v3  ;;  %v8787_v1 = vld [vmem:[#allocation14 + $0x2c8] sm:$0xf]  ;;  %v12171_v3 = vld [vmem:[#allocation14 + $0x2cc] sm:$0xf] }
 0x2b8   :  { %1445 = vmatpush.bf16.msrb.mxu2 %v8764_v19  ;;  %v8531_v19 = vld [vmem:[#allocation14 + $0xc8] sm:$0xf] }
 0x2b9   :  { %v8532_v21 = vor.u32 %v12109_v20, %v8531_v19  ;;  %v12114_v19 = vld [vmem:[#allocation14 + $0x104] sm:$0xf]  ;;  %v8557_v20 = vld [vmem:[#allocation14 + $0x110] sm:$0xf0] }
 0x2ba   :  { %1473 = vmatpush.bf16.msrb.mxu0 %v8640_v12  ;;  %v12166_v12 = vld [vmem:[#allocation14 + $0x2a4] sm:$0xf]  ;;  %v8560_v22 = vor.u32 %v12114_v19, %v8557_v20  ;;  %v8755_v19 = vld [vmem:[#allocation14 + $0x288] sm:$0xf]  ;;  %v12165_v20 = vld [vmem:[#allocation14 + $0x294] sm:$0xf0] }
 0x2bb   :  { %1462 = vmatpush.bf16.msra.mxu3 %v8464_v37  ;;  %8423 = vmatmul.msk.bf16.vlgmr.msra.gmra.mxu2 %vm537_vm0, %v13578_v44  ;;  %v12148_v44 = vld [vmem:[#allocation14 + $0x20c] sm:$0xf0]  ;;  %v12130_v37 = vld [vmem:[#allocation14 + $0x184] sm:$0xf] }
 0x2bc   :  { %1446 = vmatpush.bf16.msrb.mxu2 %v8748_v33  ;;  %v8684_v16 = vor.u32 %v12148_v44, %v8683_v9  ;;  %v12120_v33 = vld [vmem:[#allocation14 + $0x12c] sm:$0xf0]  ;;  %v8624_v40 = vor.u32 %v12130_v37, %v8621_v38  ;;  %v12085_v9 = vld [vmem:[#allocation14 + $0x14] sm:$0xf0]  ;;  %v12150_v37 = vld [vmem:[#allocation14 + $0x224] sm:$0xf] }
 0x2bd   :  { %v8572_v34 = vor.u32 %v12120_v33, %v8571_v32  ;;  %v12154_v32 = vld [vmem:[#allocation14 + $0x244] sm:$0xf]  ;;  %v8717_v33 = vld [vmem:[#allocation14 + $0x250] sm:$0xf0] }
 0x2be   :  { %1474 = vmatpush.bf16.msrb.mxu0 %v8624_v40  ;;  %v8701_v38 = vld [vmem:[#allocation14 + $0x230] sm:$0xf0]  ;;  %v12146_v40 = vld [vmem:[#allocation14 + $0x204] sm:$0xf] }
 0x2bf   :  { %1463 = vmatpush.bf16.msra.mxu3 %v8448_v52  ;;  %1435 = vmatpush.bf16.msra.mxu1 %v8572_v34  ;;  %v8720_v34 = vor.u32 %v12154_v32, %v8717_v33  ;;  %v8704_v39 = vor.u32 %v12150_v37, %v8701_v38  ;;  %v8549_v32 = vld [vmem:[#allocation14 + $0xf8] sm:$0xf0] }
 0x2c0   :  { %1447 = vmatpush.bf16.msrb.mxu2 %v8732_v49  ;;  %v12126_v49 = vld [vmem:[#allocation14 + $0x164] sm:$0xf]  ;;  %v8741_v37 = vld [vmem:[#allocation14 + $0x278] sm:$0xf0] }
 0x2c1   :  { %v8608_v52 = vor.u32 %v12126_v49, %v8605_v50 }
 0x2c3   :  { %1464 = vmatpush.bf16.msra.mxu3 %v8432_v63  ;;  %1436 = vmatpush.bf16.msra.mxu1 %v8556_v51  ;;  %v12122_v63 = vld [vmem:[#allocation14 + $0x144] sm:$0xf]  ;;  %v12139_v51 = vld [vmem:[#allocation14 + $0x1cc] sm:$0xf] }
 0x2c4   :  { %1448 = vmatpush.bf16.msrb.mxu2 %v8716_v62  ;;  %1475 = vmatpush.bf16.msrb.mxu0 %v8608_v52  ;;  %v8452_v62 = vor.u32 %v12089_v61, %v8451_v60  ;;  %v8661_v52 = vld [vmem:[#allocation14 + $0x1d8] sm:$0xf0]  ;;  %v8804_v60 = vor.u32 %v12177_v54, %v8803_v53  ;;  %v12135_v61 = vld [vmem:[#allocation14 + $0x1ac] sm:$0xf] }
 0x2c5   :  { %v8664_v57 = vor.u32 %v12139_v51, %v8661_v52  ;;  %v12155_v52 = vld [vmem:[#allocation14 + $0x24c] sm:$0xf]  ;;  %v8725_v53 = vld [vmem:[#allocation14 + $0x258] sm:$0xf0] }
 0x2c6   :  { %v12115_v54 = vld [vmem:[#allocation14 + $0x10c] sm:$0xf] }
 0x2c7   :  { %1513 = vmatpush.bf16.msrb.mxu3 %v8676_v2  ;;  %1485 = vmatpush.bf16.msrb.mxu1 %v8800_v56  ;;  %v8592_v2 = vor.u32 %v12122_v63, %v8589_v0  ;;  %v8805_v56 = vld [vmem:[#allocation14 + $0x2f8] sm:$0xf0] }
 0x2c8   :  { %1449 = vmatpush.bf16.msrb.mxu2 %v8700_v8  ;;  %v8435_v8 = vld [vmem:[#allocation14 + $0x8] sm:$0xf]  ;;  %v8808_v0 = vor.u32 %v12175_v55, %v8805_v56  ;;  %v8565_v55 = vld [vmem:[#allocation14 + $0x118] sm:$0xf0] }
 0x2c9   :  { %1476 = vmatpush.bf16.msrb.mxu0 %v8592_v2  ;;  %v8436_v44 = vor.u32 %v12085_v9, %v8435_v8  ;;  %v12173_v2 = vld [vmem:[#allocation14 + $0x2d4] sm:$0xf0]  ;;  %v8629_v8 = vld [vmem:[#allocation14 + $0x198] sm:$0xf0]  ;;  %v8792_v9 = vor.u32 %v12171_v3, %v8789_v4 }
 0x2ca   :  { %v8709_v3 = vld [vmem:[#allocation14 + $0x238] sm:$0xf0] }
 0x2cb   :  { %1514 = vmatpush.bf16.msrb.mxu3 %v8660_v11  ;;  %1486 = vmatpush.bf16.msrb.mxu1 %v8784_v6  ;;  %v8573_v11 = vld [vmem:[#allocation14 + $0x130] sm:$0xf0]  ;;  %v8788_v6 = vor.u32 %v12173_v2, %v8787_v1  ;;  %v8568_v1 = vor.u32 %v12115_v54, %v8565_v55  ;;  %v12151_v2 = vld [vmem:[#allocation14 + $0x22c] sm:$0xf] }
 0x2cc   :  { %1450 = vmatpush.bf16.msrb.mxu2 %v8684_v16  ;;  %v8576_v13 = vor.u32 %v12118_v10, %v8573_v11  ;;  %v12121_v16 = vld [vmem:[#allocation14 + $0x134] sm:$0xf0]  ;;  %v12167_v11 = vld [vmem:[#allocation14 + $0x2ac] sm:$0xf] }
 0x2cd   :  { %v12169_v10 = vld [vmem:[#allocation14 + $0x2b4] sm:$0xf0] }
 0x2ce   :  { %1477 = vmatpush.bf16.msrb.mxu0 %v8576_v13 }
 0x2cf   :  { %1515 = vmatpush.bf16.msrb.mxu3 %v8644_v18  ;;  %v8580_v18 = vor.u32 %v12121_v16, %v8579_v15  ;;  %v12127_v16 = vld [vmem:[#allocation14 + $0x16c] sm:$0xf] }
 0x2d0   :  { %1499 = vmatpush.bf16.msra.mxu2 %v8548_v17  ;;  %v8768_v17 = vor.u32 %v12166_v12, %v8765_v14  ;;  %v8773_v12 = vld [vmem:[#allocation14 + $0x2b8] sm:$0xf0] }
 0x2d2   :  { %1487 = vmatpush.bf16.msrb.mxu1 %v8768_v17  ;;  %1478 = vmatpush.bf16.msrb.mxu0 %v8560_v22  ;;  %v8613_v17 = vld [vmem:[#allocation14 + $0x178] sm:$0xf0] }
 0x2d3   :  { %1516 = vmatpush.bf16.msrb.mxu3 %v8628_v42  ;;  %v8688_v42 = vor.u32 %v12146_v40, %v8685_v41  ;;  %v8757_v22 = vld [vmem:[#allocation14 + $0x298] sm:$0xf0] }
 0x2d4   :  { %1500 = vmatpush.bf16.msra.mxu2 %v8532_v21  ;;  %v12162_v21 = vld [vmem:[#allocation14 + $0x284] sm:$0xf]  ;;  %v8581_v40 = vld [vmem:[#allocation14 + $0x138] sm:$0xf0] }
 0x2d5   :  { %v8752_v27 = vor.u32 %v12162_v21, %v8749_v23  ;;  %v12163_v21 = vld [vmem:[#allocation14 + $0x28c] sm:$0xf]  ;;  %v8616_v23 = vor.u32 %v12127_v16, %v8613_v17  ;;  %v8485_v16 = vld [vmem:[#allocation14 + $0x78] sm:$0xf0] }
 0x2d7   :  { %1517 = vmatpush.bf16.msrb.mxu3 %v8612_v59  ;;  %1488 = vmatpush.bf16.msrb.mxu1 %v8752_v27  ;;  %v8597_v27 = vld [vmem:[#allocation14 + $0x158] sm:$0xf0] }
 0x2d8   :  { %1501 = vmatpush.bf16.msra.mxu2 %v8516_v25  ;;  %v8563_v25 = vld [vmem:[#allocation14 + $0x108] sm:$0xf] }
 0x2db   :  { %1518 = vmatpush.bf16.msrb.mxu3 %v8596_v7  ;;  %v12131_v7 = vld [vmem:[#allocation14 + $0x18c] sm:$0xf] }
 0x2dc   :  { %1502 = vmatpush.bf16.msra.mxu2 %v8500_v28  ;;  %v8564_v28 = vor.u32 %v12117_v26, %v8563_v25  ;;  %v8632_v13 = vor.u32 %v12131_v7, %v8629_v8  ;;  %v8756_v25 = vor.u32 %v12165_v20, %v8755_v19  ;;  %v12123_v26 = vld [vmem:[#allocation14 + $0x14c] sm:$0xf]  ;;  %v8712_v7 = vor.u32 %v12151_v2, %v8709_v3  ;;  %v12149_v8 = vld [vmem:[#allocation14 + $0x214] sm:$0xf0]  ;;  %v8469_v19 = vld [vmem:[#allocation14 + $0x58] sm:$0xf0] }
 0x2dd   :  { %v8600_v33 = vor.u32 %v12123_v26, %v8597_v27  ;;  %v8437_v26 = vld [vmem:[#allocation14 + $0x18] sm:$0xf0]  ;;  %v9039_v3 = vld [vmem:[#allocation17 + $0x1c0] sm:$0xf] }
 0x2df   :  { %1519 = vmatpush.bf16.msrb.mxu3 %v8580_v18  ;;  %v8776_v18 = vor.u32 %v12167_v11, %v8773_v12  ;;  %v8693_v11 = vld [vmem:[#allocation14 + $0x218] sm:$0xf0] }
 0x2e0   :  { %1503 = vmatpush.bf16.msra.mxu2 %v8484_v31  ;;  %v8736_v31 = vor.u32 %v12158_v29, %v8733_v30  ;;  %v8739_v29 = vld [vmem:[#allocation14 + $0x268] sm:$0xf]  ;;  %v12161_v30 = vld [vmem:[#allocation14 + $0x274] sm:$0xf0] }
 0x2e2   :  { %1489 = vmatpush.bf16.msrb.mxu1 %v8736_v31  ;;  %v12111_v31 = vld [vmem:[#allocation14 + $0xec] sm:$0xf] }
 0x2e3   :  { %1520 = vmatpush.bf16.msrb.mxu3 %v8564_v28  ;;  %v8760_v28 = vor.u32 %v12163_v21, %v8757_v22  ;;  %v12087_v21 = vld [vmem:[#allocation14 + $0x2c] sm:$0xf]  ;;  %v8453_v22 = vld [vmem:[#allocation14 + $0x38] sm:$0xf0] }
 0x2e4   :  { %1504 = vmatpush.bf16.msra.mxu2 %v8468_v47  ;;  %v8677_v47 = vld [vmem:[#allocation14 + $0x1f8] sm:$0xf0] }
 0x2e5   :  { %v8680_v49 = vor.u32 %v12143_v46, %v8677_v47  ;;  %v12157_v47 = vld [vmem:[#allocation14 + $0x254] sm:$0xf0] }
 0x2e6   :  { %1490 = vmatpush.bf16.msrb.mxu1 %v8720_v34  ;;  %v12159_v34 = vld [vmem:[#allocation14 + $0x26c] sm:$0xf] }
 0x2e7   :  { %v8744_v46 = vor.u32 %v12159_v34, %v8741_v37 }
 0x2e8   :  { %1505 = vmatpush.bf16.msra.mxu2 %v8452_v62  ;;  %v8645_v62 = vld [vmem:[#allocation14 + $0x1b8] sm:$0xf0] }
 0x2e9   :  { %v8648_v5 = vor.u32 %v12135_v61, %v8645_v62  ;;  %v12153_v61 = vld [vmem:[#allocation14 + $0x234] sm:$0xf0]  ;;  %v12103_v62 = vld [vmem:[#allocation14 + $0xac] sm:$0xf] }
 0x2ea   :  { %1491 = vmatpush.bf16.msrb.mxu1 %v8704_v39  ;;  %v12119_v39 = vld [vmem:[#allocation14 + $0x12c] sm:$0xf] }
 0x2eb   :  { %v8584_v51 = vor.u32 %v12119_v39, %v8581_v40 }
 0x2ec   :  { %1506 = vmatpush.bf16.msra.mxu2 %v8436_v44  ;;  %v8771_v44 = vld [vmem:[#allocation14 + $0x2a8] sm:$0xf] }
 0x2ed   :  { %v8772_v15 = vor.u32 %v12169_v10, %v8771_v44  ;;  %v8501_v44 = vld [vmem:[#allocation14 + $0x98] sm:$0xf0]  ;;  %v12147_v10 = vld [vmem:[#allocation14 + $0x20c] sm:$0xf] }
 0x2ee   :  { %1492 = vmatpush.bf16.msrb.mxu1 %v8688_v42  ;;  %v8740_v42 = vor.u32 %v12161_v30, %v8739_v29 }
 0x329   :  { %v821_v43 = vpop.f32.mrf.mxu3 }
 0x32e   :  { %v793_v45 = vpop.f32.mrf.mxu2 }
 0x331   :  { %v823_v48 = vpop.f32.mrf.mxu3 }
 0x332   :  { %v13598_v50 = vpack.c.bf16 %v823_v48, %v821_v43  ;;  %v8552_v43 = vor.u32 %v12111_v31, %v8549_v32  ;;  %v12107_v48 = vld [vmem:[#allocation14 + $0xcc] sm:$0xf]  ;;  %v13610_v32 = vld [vmem:[#allocation16] sm:$0xf] }
 0x333   :  { %v929_v55 = vperm.slane %v13610_v32, 2 }
 0x334   :  { %1451 = vmatmul.bf16.vlgmr.msrb.gmra.mxu2 %v13598_v50 }
 0x335   :  { %1555 = vmatpush.bf16.msrb.mxu2 %v8680_v49  ;;  %v8533_v49 = vld [vmem:[#allocation14 + $0xd8] sm:$0xf0] }
 0x336   :  { %v795_v59 = vpop.f32.mrf.mxu2 }
 0x337   :  { %v13601_v63 = vpack.c.bf16 %v795_v59, %v793_v45  ;;  %v8723_v45 = vld [vmem:[#allocation14 + $0x248] sm:$0xf] }
 0x338   :  { %v8724_v56 = vor.u32 %v12157_v47, %v8723_v45  ;;  %v8707_v59 = vld [vmem:[#allocation14 + $0x228] sm:$0xf] }
 0x339   :  { %1556 = vmatpush.bf16.msrb.mxu2 %v8664_v57  ;;  %1423 = vmatmul.bf16.vlgmr.msra.gmra.mxu0 %v13601_v63  ;;  %v8536_v57 = vor.u32 %v12107_v48, %v8533_v49  ;;  %v8708_v4 = vor.u32 %v12153_v61, %v8707_v59  ;;  %v13617_v59 = vld [vmem:[#allocation5] sm:$0xff] }
 0x33a   :  { %1465 = vmatmul.bf16.vlgmr.msra.gmra.mxu3 %v13601_v63  ;;  %1527 = vmatpush.bf16.msra.mxu0 %v8804_v60  ;;  %v8728_v60 = vor.u32 %v12155_v52, %v8725_v53  ;;  %v928_v53 = vperm.slane %v13610_v32, 1 }
 0x33b   :  { %1569 = vmatpush.bf16.msra.mxu3 %v8808_v0  ;;  %v8517_v0 = vld [vmem:[#allocation14 + $0xb8] sm:$0xf0] }
 0x33d   :  { %1557 = vmatpush.bf16.msrb.mxu2 %v8648_v5  ;;  %v8520_v5 = vor.u32 %v12103_v62, %v8517_v0 }
 0x33e   :  { %v807_v14 = vpop.f32.mrf.mxu2  ;;  %1528 = vmatpush.bf16.msra.mxu0 %v8788_v6  ;;  %v8691_v6 = vld [vmem:[#allocation14 + $0x208] sm:$0xf] }
 0x33f   :  { %1570 = vmatpush.bf16.msra.mxu3 %v8792_v9  ;;  %v12099_v9 = vld [vmem:[#allocation14 + $0x8c] sm:$0xf]  ;;  %v8692_v12 = vor.u32 %v12149_v8, %v8691_v6 }
 0x341   :  { %1558 = vmatpush.bf16.msrb.mxu2 %v8632_v13  ;;  %v8504_v13 = vor.u32 %v12099_v9, %v8501_v44  ;;  %v12230_v9 = vld [vmem:[#allocation17 + $0x19c] sm:$0xf0] }
 0x342   :  { %1529 = vmatpush.bf16.msra.mxu0 %v8772_v15  ;;  %v12095_v15 = vld [vmem:[#allocation14 + $0x6c] sm:$0xf] }
 0x343   :  { %1571 = vmatpush.bf16.msra.mxu3 %v8776_v18  ;;  %v8488_v17 = vor.u32 %v12095_v15, %v8485_v16  ;;  %v12091_v18 = vld [vmem:[#allocation14 + $0x4c] sm:$0xf]  ;;  %v12302_v16 = vld [vmem:[#allocation17 + $0x3dc] sm:$0xf0] }
 0x344   :  { %1507 = vmatmul.bf16.vlgmr.msra.gmra.mxu2 %v13601_v63  ;;  %v8472_v20 = vor.u32 %v12091_v18, %v8469_v19  ;;  %v8975_v19 = vld [vmem:[#allocation17 + $0x140] sm:$0xf] }
 0x345   :  { %1559 = vmatpush.bf16.msrb.mxu2 %v8616_v23  ;;  %v8456_v23 = vor.u32 %v12087_v21, %v8453_v22 }
 0x346   :  { %v809_v38 = vpop.f32.mrf.mxu2  ;;  %1530 = vmatpush.bf16.msra.mxu0 %v8756_v25  ;;  %v12083_v25 = vld [vmem:[#allocation14 + $0xc] sm:$0xf] }
 0x347   :  { %v923_v41 = vpack.c.bf16 %v809_v38, %v807_v14  ;;  %1572 = vmatpush.bf16.msra.mxu3 %v8760_v28  ;;  %v8696_v14 = vor.u32 %v12147_v10, %v8693_v11  ;;  %v8440_v27 = vor.u32 %v12083_v25, %v8437_v26  ;;  %v9295_v11 = vld [vmem:[#allocation17 + $0x3c0] sm:$0xf] }
 0x348   :  { %v9296_v22 = vor.u32 %v12302_v16, %v9295_v11  ;;  %v12366_v25 = vld [vmem:[#allocation17 + $0x5dc] sm:$0xf0] }
 0x349   :  { %1560 = vmatpush.bf16.msrb.mxu2 %v8600_v33  ;;  %1437 = vmatmul.bf16.vlgmr.msra.gmra.mxu1 %v923_v41  ;;  %v12190_v16 = vld [vmem:[#allocation17 + $0x5c] sm:$0xf0] }
 0x34a   :  { %1479 = vmatmul.bf16.vlgmr.msrb.gmra.mxu0 %v923_v41  ;;  %1521 = vmatmul.bf16.vlgmr.msrb.gmra.mxu3 %v923_v41 }
 0x34b   :  { %1531 = vmatpush.bf16.msra.mxu0 %v8740_v42  ;;  %1541 = vmatpush.bf16.msra.mxu1 %v8552_v43 }
 0x34c   :  { %1573 = vmatpush.bf16.msra.mxu3 %v8744_v46 }
 0x34d   :  { %1561 = vmatpush.bf16.msrb.mxu2 %v8584_v51 }
 0x34f   :  { %1532 = vmatpush.bf16.msra.mxu0 %v8724_v56  ;;  %1542 = vmatpush.bf16.msra.mxu1 %v8536_v57 }
 0x350   :  { %1574 = vmatpush.bf16.msra.mxu3 %v8728_v60 }
 0x351   :  { %1562 = vmatpush.bf16.msrb.mxu2 %v8568_v1 }
 0x353   :  { %1533 = vmatpush.bf16.msra.mxu0 %v8708_v4  ;;  %1543 = vmatpush.bf16.msra.mxu1 %v8520_v5  ;;  %v12238_v4 = vld [vmem:[#allocation17 + $0x1dc] sm:$0xf0] }
 0x354   :  { %1575 = vmatpush.bf16.msra.mxu3 %v8712_v7  ;;  %1563 = vmatmul.bf16.vlgmr.msrb.gmra.mxu2 %v923_v41  ;;  %v9007_v5 = vld [vmem:[#allocation17 + $0x180] sm:$0xf]  ;;  %v9040_v8 = vor.u32 %v12238_v4, %v9039_v3 }
 0x355   :  { %v9008_v15 = vor.u32 %v12230_v9, %v9007_v5  ;;  %v9455_v3 = vld [vmem:[#allocation17 + $0x500] sm:$0xf] }
 0x356   :  { %v12342_v4 = vld [vmem:[#allocation17 + $0x51c] sm:$0xf0] }
 0x357   :  { %1534 = vmatpush.bf16.msra.mxu0 %v8692_v12  ;;  %1544 = vmatpush.bf16.msra.mxu1 %v8504_v13  ;;  %v8879_v5 = vld [vmem:[#allocation17 + $0x80] sm:$0xf] }
 0x358   :  { %1576 = vmatpush.bf16.msra.mxu3 %v8696_v14  ;;  %v12270_v9 = vld [vmem:[#allocation17 + $0x2dc] sm:$0xf0] }
 0x359   :  { %1493 = vmatmul.bf16.vlgmr.msrb.gmra.mxu1 %v13598_v50 }
 0x35a   :  { %1535 = vmatmul.bf16.vlgmr.msra.gmra.mxu0 %v13598_v50 }
 0x35b   :  { %1577 = vmatmul.bf16.vlgmr.msra.gmra.mxu3 %v13598_v50  ;;  %1545 = vmatpush.bf16.msra.mxu1 %v8488_v17  ;;  %v927_v50 = vperm.slane %v13610_v32, 0 }
 0x35f   :  { %1546 = vmatpush.bf16.msra.mxu1 %v8472_v20  ;;  %v12222_v20 = vld [vmem:[#allocation17 + $0x15c] sm:$0xf0] }
 0x363   :  { %1547 = vmatpush.bf16.msra.mxu1 %v8456_v23  ;;  %v9551_v23 = vld [vmem:[#allocation17 + $0x5c0] sm:$0xf] }
 0x367   :  { %1548 = vmatpush.bf16.msra.mxu1 %v8440_v27 }
 0x36a   :  { %1549 = vmatmul.bf16.vlgmr.msra.gmra.mxu1 %v13601_v63 }
 0x3b6   :  { %v1424_v28 = vpop.f32.mrf.mxu0 }
 0x3b7   :  { %v1452_v29 = vpop.f32.mrf.mxu2  ;;  %v1425_v39 = vadd.f32 %v1424_v28, %v927_v50 }
 0x3bd   :  { %v1466_v30 = vpop.f32.mrf.mxu3 }
 0x3be   :  { %v1426_v31 = vpop.f32.mrf.mxu0  ;;  %v1467_v60 = vadd.f32 %v1466_v30, %v928_v53  ;;  %v12294_v30 = vld [vmem:[#allocation17 + $0x39c] sm:$0xf0] }
 0x3bf   :  { %v1454_v33 = vpop.f32.mrf.mxu2  ;;  %v1427_v41 = vadd.f32 %v1426_v31, %v927_v50  ;;  %v9552_v31 = vor.u32 %v12366_v25, %v9551_v23  ;;  %v9391_v23 = vld [vmem:[#allocation17 + $0x480] sm:$0xf] }
 0x3c5   :  { %v1468_v37 = vpop.f32.mrf.mxu3 }
 0x3c6   :  { %v1438_v34 = vpop.f32.mrf.mxu1  ;;  %v1469_v0 = vadd.f32 %v1468_v37, %v928_v53  ;;  %v8976_v37 = vor.u32 %v12222_v20, %v8975_v19  ;;  %v9135_v20 = vld [vmem:[#allocation17 + $0x280] sm:$0xf] }
 0x3c7   :  { %v1480_v38 = vpop.f32.mrf.mxu0  ;;  %v1439_v40 = vadd.f32 %v1438_v34, %v1425_v39  ;;  %v1508_v45 = vpop.f32.mrf.mxu2 }
 0x3c8   :  { %v1509_v62 = vadd.f32 %v1508_v45, %v929_v55  ;;  %v1481_v1 = vadd.f32 %v1480_v38, %v1467_v60  ;;  %v8943_v38 = vld [vmem:[#allocation17 + $0x100] sm:$0xf] }
 0x3c9   :  { %v1453_v43 = vadd.f32 %v1452_v29, %v1439_v40  ;;  %v9263_v29 = vld [vmem:[#allocation17 + $0x380] sm:$0xf] }
 0x3ca   :  { %v12214_v40 = vld [vmem:[#allocation17 + $0x11c] sm:$0xf0]  ;;  %v9264_v45 = vor.u32 %v12294_v30, %v9263_v29 }
 0x3cb   :  { %v3744_v49 = vmax.f32 %v1453_v43, 0.0  ;;  %v9807_v29 = vld [vmem:[#allocation17 + $0x7c0] sm:$0xf] }
 0x3cc   :  { %v12430_v30 = vld [vmem:[#allocation17 + $0x7dc] sm:$0xf0] }
 0x3cd   :  { %v1522_v47 = vpop.f32.mrf.mxu3 }
 0x3ce   :  { %v1440_v42 = vpop.f32.mrf.mxu1  ;;  %v1523_v6 = vadd.f32 %v1522_v47, %v1509_v62  ;;  %v9199_v62 = vld [vmem:[#allocation17 + $0x300] sm:$0xf] }
 0x3cf   :  { %v1441_v46 = vadd.f32 %v1440_v42, %v1427_v41  ;;  %v1482_v63 = vpop.f32.mrf.mxu0  ;;  %v1510_v61 = vpop.f32.mrf.mxu2  ;;  %v9519_v41 = vld [vmem:[#allocation17 + $0x580] sm:$0xf] }
 0x3d0   :  { %v1511_v7 = vadd.f32 %v1510_v61, %v929_v55  ;;  %v1483_v44 = vadd.f32 %v1482_v63, %v1469_v0  ;;  %v12358_v42 = vld [vmem:[#allocation17 + $0x59c] sm:$0xf0] }
 0x3d1   :  { %v1455_v48 = vadd.f32 %v1454_v33, %v1441_v46  ;;  %v9231_v46 = vld [vmem:[#allocation17 + $0x340] sm:$0xf]  ;;  %v9520_v47 = vor.u32 %v12358_v42, %v9519_v41 }
 0x3d2   :  { %v12286_v63 = vld [vmem:[#allocation17 + $0x35c] sm:$0xf0] }
 0x3d3   :  { %v1583_v51 = vpack.c.bf16 %v1455_v48, %v1453_v43  ;;  %v3748_v52 = vmax.f32 %v1455_v48, 0.0  ;;  %v930_v48 = vperm.slane %v13610_v32, 3  ;;  %v9232_v60 = vor.u32 %v12286_v63, %v9231_v46  ;;  %v12278_v32 = vld [vmem:[#allocation17 + $0x31c] sm:$0xf0] }
 0x3d4   :  { %v9103_v41 = vld [vmem:[#allocation17 + $0x240] sm:$0xf]  ;;  %v9808_v46 = vor.u32 %v12430_v30, %v9807_v29  ;;  %v9553_v29 = vld [vmem:[#allocation17 + $0x5e0] sm:$0xf0] }
 0x3d5   :  { %1594 = vmatpush.bf16.msrb.mxu0 %v1583_v51  ;;  %v13614_v54 = vpack.c.bf16 %v3748_v52, %v3744_v49  ;;  %v1524_v2 = vpop.f32.mrf.mxu3  ;;  %v8944_v49 = vor.u32 %v12214_v40, %v8943_v38  ;;  %v9487_v51 = vld [vmem:[#allocation17 + $0x540] sm:$0xf]  ;;  %v9041_v38 = vld [vmem:[#allocation17 + $0x1e0] sm:$0xf0] }
 0x3d6   :  { %v1494_v56 = vpop.f32.mrf.mxu1  ;;  %v1525_v12 = vadd.f32 %v1524_v2, %v1511_v7  ;;  %v12350_v52 = vld [vmem:[#allocation17 + $0x55c] sm:$0xf0]  ;;  %v9200_v7 = vor.u32 %v12278_v32, %v9199_v62  ;;  %v12282_v30 = vld [vmem:[#allocation17 + $0x344] sm:$0xf] }
 0x3d7   :  { %v1536_v57 = vpop.f32.mrf.mxu0  ;;  %v1495_v10 = vadd.f32 %v1494_v56, %v1481_v1  ;;  %v1564_v53 = vpop.f32.mrf.mxu2  ;;  %v8911_v56 = vld [vmem:[#allocation17 + $0xc0] sm:$0xf]  ;;  %v9488_v0 = vor.u32 %v12350_v52, %v9487_v51 }
 0x3d8   :  { %8809 = vmatmul.msk.bf16.vlgmr.msrb.gmra.mxu0 %vm537_vm0, %v13617_v59  ;;  %v1537_v13 = vadd.f32 %v1536_v57, %v1523_v6  ;;  %v12206_v57 = vld [vmem:[#allocation17 + $0xdc] sm:$0xf0] }
 0x3d9   :  { %3201 = vmatpush.bf16.msra.mxu0 %v9040_v8  ;;  %v3745_v26 = vmax.f32 %v1495_v10, 0.0  ;;  %v8912_v2 = vor.u32 %v12206_v57, %v8911_v56  ;;  %v12198_v6 = vld [vmem:[#allocation17 + $0x9c] sm:$0xf0]  ;;  %v12226_v57 = vld [vmem:[#allocation17 + $0x184] sm:$0xf] }
 0x3da   :  { %v3746_v50 = vmax.f32 %v1537_v13, 0.0  ;;  %v9167_v8 = vld [vmem:[#allocation17 + $0x2c0] sm:$0xf]  ;;  %v8880_v11 = vor.u32 %v12198_v6, %v8879_v5  ;;  %v12218_v6 = vld [vmem:[#allocation17 + $0x144] sm:$0xf] }
 0x3db   :  { %v12254_v42 = vld [vmem:[#allocation17 + $0x25c] sm:$0xf0] }
 0x3dc   :  { %v9359_v63 = vld [vmem:[#allocation17 + $0x440] sm:$0xf] }
 0x3dd   :  { %3202 = vmatpush.bf16.msra.mxu0 %v9008_v15  ;;  %v8847_v15 = vld [vmem:[#allocation17 + $0x40] sm:$0xf] }
 0x3de   :  { %v1496_v14 = vpop.f32.mrf.mxu1  ;;  %v1578_v61 = vpop.f32.mrf.mxu3  ;;  %v9071_v32 = vld [vmem:[#allocation17 + $0x200] sm:$0xf] }
 0x3df   :  { %v1497_v17 = vadd.f32 %v1496_v14, %v1483_v44  ;;  %v1538_v18 = vpop.f32.mrf.mxu0  ;;  %v9456_v44 = vor.u32 %v12342_v4, %v9455_v3  ;;  %v1566_v19 = vpop.f32.mrf.mxu2  ;;  %v12298_v3 = vld [vmem:[#allocation17 + $0x3c4] sm:$0xf] }
 0x3e0   :  { %v1539_v21 = vadd.f32 %v1538_v18, %v1525_v12  ;;  %v9423_v12 = vld [vmem:[#allocation17 + $0x4c0] sm:$0xf]  ;;  %v9168_v18 = vor.u32 %v12270_v9, %v9167_v8  ;;  %v9297_v4 = vld [vmem:[#allocation17 + $0x3e0] sm:$0xf0] }
 0x3e1   :  { %v1584_v27 = vpack.c.bf16 %v1497_v17, %v1495_v10  ;;  %v3749_v28 = vmax.f32 %v1497_v17, 0.0  ;;  %3203 = vmatpush.bf16.msra.mxu0 %v8976_v37  ;;  %v12234_v37 = vld [vmem:[#allocation17 + $0x1c4] sm:$0xf]  ;;  %v9300_v9 = vor.u32 %v12298_v3, %v9297_v4  ;;  %v9647_v3 = vld [vmem:[#allocation17 + $0x680] sm:$0xf] }
 0x3e2   :  { %v1585_v33 = vpack.c.bf16 %v1539_v21, %v1537_v13  ;;  %v3750_v34 = vmax.f32 %v1539_v21, 0.0  ;;  %v12334_v13 = vld [vmem:[#allocation17 + $0x4dc] sm:$0xf0]  ;;  %v9044_v56 = vor.u32 %v12234_v37, %v9041_v38 }
 0x3e3   :  { %v13621_v39 = vpack.c.bf16 %v3749_v28, %v3745_v26  ;;  %1608 = vmatpush.bf16.msrb.mxu1 %v1584_v27  ;;  %v12262_v21 = vld [vmem:[#allocation17 + $0x29c] sm:$0xf0]  ;;  %v8848_v27 = vor.u32 %v12190_v16, %v8847_v15  ;;  %v12290_v15 = vld [vmem:[#allocation17 + $0x384] sm:$0xf] }
 0x3e4   :  { %v13623_v43 = vpack.c.bf16 %v3750_v34, %v3746_v50  ;;  %1622 = vmatpush.bf16.msra.mxu2 %v1585_v33  ;;  %v12326_v28 = vld [vmem:[#allocation17 + $0x49c] sm:$0xf0]  ;;  %v9136_v40 = vor.u32 %v12262_v21, %v9135_v20  ;;  %v9265_v16 = vld [vmem:[#allocation17 + $0x3a0] sm:$0xf0] }
 0x3e5   :  { %3204 = vmatpush.bf16.msra.mxu0 %v8944_v49  ;;  %v8815_v50 = vld [vmem:[#allocation17] sm:$0xf] }
 0x3e6   :  { %8810 = vmatmul.msk.bf16.vlgmr.msrb.gmra.mxu1 %vm537_vm0, %v13617_v59  ;;  %v12182_v33 = vld [vmem:[#allocation17 + $0x1c] sm:$0xf0] }
 0x3e7   :  { %3215 = vmatpush.bf16.msra.mxu1 %v9296_v22  ;;  %v1550_v55 = vpop.f32.mrf.mxu1  ;;  %8811 = vmatmul.msk.bf16.vlgmr.msra.gmra.mxu2 %vm537_vm0, %v13617_v59  ;;  %v9424_v22 = vor.u32 %v12334_v13, %v9423_v12  ;;  %v8816_v52 = vor.u32 %v12182_v33, %v8815_v50  ;;  %v12202_v13 = vld [vmem:[#allocation17 + $0xc4] sm:$0xf]  ;;  %v9743_v20 = vld [vmem:[#allocation17 + $0x740] sm:$0xf] }
 0x3e8   :  { %3229 = vmatpush.bf16.msrb.mxu2 %v9552_v31  ;;  %v1551_v1 = vadd.f32 %v1550_v55, %v930_v48  ;;  %v1580_v31 = vpop.f32.mrf.mxu3  ;;  %v12422_v55 = vld [vmem:[#allocation17 + $0x79c] sm:$0xf0]  ;;  %v9233_v50 = vld [vmem:[#allocation17 + $0x360] sm:$0xf0] }
 0x3e9   :  { %3205 = vmatpush.bf16.msra.mxu0 %v8912_v2  ;;  %v9711_v33 = vld [vmem:[#allocation17 + $0x700] sm:$0xf]  ;;  %v9236_v37 = vor.u32 %v12282_v30, %v9233_v50  ;;  %v9073_v30 = vld [vmem:[#allocation17 + $0x220] sm:$0xf0] }
 0x3ea   :  { %v1565_v10 = vadd.f32 %v1564_v53, %v1551_v1  ;;  %v9775_v53 = vld [vmem:[#allocation17 + $0x780] sm:$0xf]  ;;  %v12314_v50 = vld [vmem:[#allocation17 + $0x444] sm:$0xf] }
 0x3eb   :  { %3216 = vmatpush.bf16.msra.mxu1 %v9264_v45  ;;  %v9392_v45 = vor.u32 %v12326_v28, %v9391_v23  ;;  %v9776_v2 = vor.u32 %v12422_v55, %v9775_v53  ;;  %v12194_v23 = vld [vmem:[#allocation17 + $0x84] sm:$0xf]  ;;  %v12390_v4 = vld [vmem:[#allocation17 + $0x69c] sm:$0xf0] }
 0x3ec   :  { %3230 = vmatpush.bf16.msrb.mxu2 %v9520_v47  ;;  %v1579_v25 = vadd.f32 %v1578_v61, %v1565_v10  ;;  %v12318_v47 = vld [vmem:[#allocation17 + $0x45c] sm:$0xf0]  ;;  %v9104_v61 = vor.u32 %v12254_v42, %v9103_v41  ;;  %v12210_v10 = vld [vmem:[#allocation17 + $0x104] sm:$0xf] }
 0x3ed   :  { %3206 = vmatpush.bf16.msra.mxu0 %v8880_v11  ;;  %v9360_v1 = vor.u32 %v12318_v47, %v9359_v63  ;;  %v8945_v11 = vld [vmem:[#allocation17 + $0x120] sm:$0xf0] }
 0x3ee   :  { %v8948_v12 = vor.u32 %v12210_v10, %v8945_v11  ;;  %v12362_v28 = vld [vmem:[#allocation17 + $0x5c4] sm:$0xf]  ;;  %v9615_v11 = vld [vmem:[#allocation17 + $0x640] sm:$0xf] }
 0x3ef   :  { %3217 = vmatpush.bf16.msra.mxu1 %v9232_v60  ;;  %v1552_v14 = vpop.f32.mrf.mxu1  ;;  %v9009_v60 = vld [vmem:[#allocation17 + $0x1a0] sm:$0xf0] }
 0x3f0   :  { %3231 = vmatpush.bf16.msrb.mxu2 %v9488_v0  ;;  %v1553_v17 = vadd.f32 %v1552_v14, %v930_v48  ;;  %v3747_v48 = vmax.f32 %v1579_v25, 0.0  ;;  %v12246_v0 = vld [vmem:[#allocation17 + $0x21c] sm:$0xf0]  ;;  %v9012_v5 = vor.u32 %v12226_v57, %v9009_v60  ;;  %v8913_v14 = vld [vmem:[#allocation17 + $0xe0] sm:$0xf0] }
 0x3f1   :  { %3207 = vmatpush.bf16.msra.mxu0 %v8848_v27  ;;  %v9072_v8 = vor.u32 %v12246_v0, %v9071_v32  ;;  %v8849_v41 = vld [vmem:[#allocation17 + $0x60] sm:$0xf0] }
 0x3f2   :  { %v1567_v26 = vadd.f32 %v1566_v19, %v1553_v17  ;;  %v9268_v17 = vor.u32 %v12290_v15, %v9265_v16  ;;  %v12310_v19 = vld [vmem:[#allocation17 + $0x41c] sm:$0xf0]  ;;  %v12354_v42 = vld [vmem:[#allocation17 + $0x584] sm:$0xf] }
 0x3f3   :  { %3218 = vmatpush.bf16.msra.mxu1 %v9200_v7  ;;  %v8977_v7 = vld [vmem:[#allocation17 + $0x160] sm:$0xf0] }
 0x3f4   :  { %3232 = vmatpush.bf16.msrb.mxu2 %v9456_v44  ;;  %v1581_v34 = vadd.f32 %v1580_v31, %v1567_v26  ;;  %v8980_v44 = vor.u32 %v12218_v6, %v8977_v7  ;;  %v9556_v31 = vor.u32 %v12362_v28, %v9553_v29  ;;  %v12274_v47 = vld [vmem:[#allocation17 + $0x304] sm:$0xf] }
 0x3f5   :  { %3208 = vmatpush.bf16.msra.mxu0 %v8816_v52  ;;  %v12398_v52 = vld [vmem:[#allocation17 + $0x6dc] sm:$0xf0]  ;;  %v12178_v55 = vld [vmem:[#allocation17 + $0x4] sm:$0xf] }
 0x3f6   :  { %v3751_v49 = vmax.f32 %v1581_v34, 0.0  ;;  %v1586_v51 = vpack.c.bf16 %v1581_v34, %v1579_v25  ;;  %v8881_v25 = vld [vmem:[#allocation17 + $0xa0] sm:$0xf0]  ;;  %v12406_v34 = vld [vmem:[#allocation17 + $0x71c] sm:$0xf0] }
 0x3f7   :  { %3219 = vmatpush.bf16.msra.mxu1 %v9168_v18  ;;  %v9327_v18 = vld [vmem:[#allocation17 + $0x400] sm:$0xf]  ;;  %v8884_v27 = vor.u32 %v12194_v23, %v8881_v25  ;;  %v9712_v38 = vor.u32 %v12406_v34, %v9711_v33  ;;  %v12346_v57 = vld [vmem:[#allocation17 + $0x544] sm:$0xf] }
 0x3f8   :  { %3233 = vmatpush.bf16.msrb.mxu2 %v9424_v22  ;;  %1636 = vmatpush.bf16.msrb.mxu3 %v1586_v51  ;;  %v13630_v62 = vpack.c.bf16 %v3751_v49, %v3747_v48  ;;  %v9328_v21 = vor.u32 %v12310_v19, %v9327_v18  ;;  %v12414_v22 = vld [vmem:[#allocation17 + $0x75c] sm:$0xf0]  ;;  %v9201_v48 = vld [vmem:[#allocation17 + $0x320] sm:$0xf0] }
 0x3f9   :  { %3257 = vmatpush.bf16.msrb.mxu0 %v9044_v56  ;;  %v9744_v26 = vor.u32 %v12414_v22, %v9743_v20  ;;  %v9204_v49 = vor.u32 %v12274_v47, %v9201_v48  ;;  %v9679_v51 = vld [vmem:[#allocation17 + $0x6c0] sm:$0xf]  ;;  %v8817_v56 = vld [vmem:[#allocation17 + $0x20] sm:$0xf0] }
 0x3fa   :  { %v9680_v53 = vor.u32 %v12398_v52, %v9679_v51  ;;  %v8820_v60 = vor.u32 %v12178_v55, %v8817_v56  ;;  %v12266_v0 = vld [vmem:[#allocation17 + $0x2c4] sm:$0xf]  ;;  %v9583_v19 = vld [vmem:[#allocation17 + $0x600] sm:$0xf]  ;;  %v12239_v55 = vld [vmem:[#allocation17 + $0x1e4] sm:$0xf0] }
 0x3fb   :  { %3220 = vmatpush.bf16.msra.mxu1 %v9136_v40  ;;  %8812 = vmatmul.msk.bf16.vlgmr.msrb.gmra.mxu3 %vm537_vm0, %v13617_v59  ;;  %v8916_v59 = vor.u32 %v12202_v13, %v8913_v14  ;;  %v12186_v40 = vld [vmem:[#allocation17 + $0x44] sm:$0xf]  ;;  %v12374_v20 = vld [vmem:[#allocation17 + $0x61c] sm:$0xf0] }
 0x3fc   :  { %3234 = vmatpush.bf16.msrb.mxu2 %v9392_v45  ;;  %3243 = vmatpush.bf16.msra.mxu3 %v9808_v46  ;;  %v8852_v45 = vor.u32 %v12186_v40, %v8849_v41  ;;  %v9521_v46 = vld [vmem:[#allocation17 + $0x5a0] sm:$0xf0] }
 0x3fd   :  { %3258 = vmatpush.bf16.msrb.mxu0 %v9012_v5  ;;  %v9524_v63 = vor.u32 %v12354_v42, %v9521_v46  ;;  %v9648_v5 = vor.u32 %v12390_v4, %v9647_v3  ;;  %v12338_v6 = vld [vmem:[#allocation17 + $0x504] sm:$0xf] }
 0x3fe   :  { %v9457_v7 = vld [vmem:[#allocation17 + $0x520] sm:$0xf0] }
 0x3ff   :  { %3221 = vmatpush.bf16.msra.mxu1 %v9104_v61  ;;  %v9489_v61 = vld [vmem:[#allocation17 + $0x560] sm:$0xf0] }
 0x400   :  { %3235 = vmatpush.bf16.msrb.mxu2 %v9360_v1  ;;  %3244 = vmatpush.bf16.msra.mxu3 %v9776_v2  ;;  %v9492_v32 = vor.u32 %v12346_v57, %v9489_v61  ;;  %v9169_v1 = vld [vmem:[#allocation17 + $0x2e0] sm:$0xf0] }
 0x401   :  { %3259 = vmatpush.bf16.msrb.mxu0 %v8980_v44  ;;  %v9172_v2 = vor.u32 %v12266_v0, %v9169_v1  ;;  %v9137_v44 = vld [vmem:[#allocation17 + $0x2a0] sm:$0xf0]  ;;  %v9015_v0 = vld [vmem:[#allocation17 + $0x188] sm:$0xf] }
 0x402   :  { %v12330_v13 = vld [vmem:[#allocation17 + $0x4c4] sm:$0xf] }
 0x403   :  { %3222 = vmatpush.bf16.msra.mxu1 %v9072_v8  ;;  %v9460_v8 = vor.u32 %v12338_v6, %v9457_v7  ;;  %v12250_v16 = vld [vmem:[#allocation17 + $0x244] sm:$0xf]  ;;  %v8983_v7 = vld [vmem:[#allocation17 + $0x148] sm:$0xf] }
 0x404   :  { %3236 = vmatpush.bf16.msrb.mxu2 %v9328_v21  ;;  %3245 = vmatpush.bf16.msra.mxu3 %v9744_v26  ;;  %v9584_v21 = vor.u32 %v12374_v20, %v9583_v19  ;;  %v12322_v22 = vld [vmem:[#allocation17 + $0x484] sm:$0xf] }
 0x405   :  { %3260 = vmatpush.bf16.msrb.mxu0 %v8948_v12  ;;  %v12382_v12 = vld [vmem:[#allocation17 + $0x65c] sm:$0xf0]  ;;  %v9393_v23 = vld [vmem:[#allocation17 + $0x4a0] sm:$0xf0] }
 0x406   :  { %v9616_v14 = vor.u32 %v12382_v12, %v9615_v11  ;;  %v12426_v25 = vld [vmem:[#allocation17 + $0x7c4] sm:$0xf]  ;;  %v9396_v26 = vor.u32 %v12322_v22, %v9393_v23  ;;  %v12207_v22 = vld [vmem:[#allocation17 + $0xe4] sm:$0xf0] }
 0x407   :  { %3271 = vmatpush.bf16.msrb.mxu1 %v9300_v9  ;;  %v12258_v9 = vld [vmem:[#allocation17 + $0x284] sm:$0xf] }
 0x408   :  { %3285 = vmatpush.bf16.msra.mxu2 %v9556_v31  ;;  %3246 = vmatpush.bf16.msra.mxu3 %v9712_v38  ;;  %v9140_v10 = vor.u32 %v12258_v9, %v9137_v44  ;;  %v12242_v29 = vld [vmem:[#allocation17 + $0x204] sm:$0xf] }
 0x409   :  { %3261 = vmatpush.bf16.msrb.mxu0 %v8916_v59  ;;  %v9425_v59 = vld [vmem:[#allocation17 + $0x4e0] sm:$0xf0]  ;;  %v9076_v31 = vor.u32 %v12242_v29, %v9073_v30  ;;  %v8887_v30 = vld [vmem:[#allocation17 + $0x88] sm:$0xf] }
 0x40a   :  { %v9428_v15 = vor.u32 %v12330_v13, %v9425_v59  ;;  %v9361_v33 = vld [vmem:[#allocation17 + $0x460] sm:$0xf0]  ;;  %v8951_v13 = vld [vmem:[#allocation17 + $0x108] sm:$0xf] }
 0x40b   :  { %3272 = vmatpush.bf16.msrb.mxu1 %v9268_v17  ;;  %v9105_v17 = vld [vmem:[#allocation17 + $0x260] sm:$0xf0] }
 0x40c   :  { %3286 = vmatpush.bf16.msra.mxu2 %v9524_v63  ;;  %3247 = vmatpush.bf16.msra.mxu3 %v9680_v53  ;;  %v9108_v18 = vor.u32 %v12250_v16, %v9105_v17  ;;  %v12418_v34 = vld [vmem:[#allocation17 + $0x784] sm:$0xf]  ;;  %v9047_v53 = vld [vmem:[#allocation17 + $0x1c8] sm:$0xf] }
 0x40d   :  { %3262 = vmatpush.bf16.msrb.mxu0 %v8884_v27  ;;  %v9809_v27 = vld [vmem:[#allocation17 + $0x7e0] sm:$0xf0]  ;;  %v9303_v17 = vld [vmem:[#allocation17 + $0x3c8] sm:$0xf] }
 0x40e   :  { %v9812_v28 = vor.u32 %v12426_v25, %v9809_v27  ;;  %v9777_v38 = vld [vmem:[#allocation17 + $0x7a0] sm:$0xf0]  ;;  %v9271_v27 = vld [vmem:[#allocation17 + $0x388] sm:$0xf] }
 0x40f   :  { %3273 = vmatpush.bf16.msrb.mxu1 %v9236_v37  ;;  %v9364_v37 = vor.u32 %v12314_v50, %v9361_v33  ;;  %v9780_v40 = vor.u32 %v12418_v34, %v9777_v38  ;;  %v12306_v41 = vld [vmem:[#allocation17 + $0x404] sm:$0xf]  ;;  %v9559_v33 = vld [vmem:[#allocation17 + $0x5c8] sm:$0xf] }
 0x410   :  { %3287 = vmatpush.bf16.msra.mxu2 %v9492_v32  ;;  %3248 = vmatpush.bf16.msra.mxu3 %v9648_v5  ;;  %v9329_v42 = vld [vmem:[#allocation17 + $0x420] sm:$0xf0]  ;;  %v9048_v32 = vor.u32 %v12239_v55, %v9047_v53  ;;  %v12367_v34 = vld [vmem:[#allocation17 + $0x5e4] sm:$0xf0]  ;;  %v13004_v53 = vld [vmem:[#allocation7] ss:$0 sm:$0xff] }
 0x411   :  { %3263 = vmatpush.bf16.msrb.mxu0 %v8852_v45  ;;  %v12410_v45 = vld [vmem:[#allocation17 + $0x744] sm:$0xf]  ;;  %v9332_v46 = vor.u32 %v12306_v41, %v9329_v42  ;;  %v12287_v38 = vld [vmem:[#allocation17 + $0x364] sm:$0xf0] }
 0x412   :  { %v9745_v63 = vld [vmem:[#allocation17 + $0x760] sm:$0xf0]  ;;  %v9207_v55 = vld [vmem:[#allocation17 + $0x308] sm:$0xf] }
 0x413   :  { %3274 = vmatpush.bf16.msrb.mxu1 %v9204_v49  ;;  %v9748_v47 = vor.u32 %v12410_v45, %v9745_v63  ;;  %v12402_v49 = vld [vmem:[#allocation17 + $0x704] sm:$0xf]  ;;  %v9560_v45 = vor.u32 %v12367_v34, %v9559_v33  ;;  %v12191_v63 = vld [vmem:[#allocation17 + $0x64] sm:$0xf0] }
 0x414   :  { %3288 = vmatpush.bf16.msra.mxu2 %v9460_v8  ;;  %3249 = vmatpush.bf16.msra.mxu3 %v9616_v14  ;;  %v9713_v51 = vld [vmem:[#allocation17 + $0x720] sm:$0xf0]  ;;  %v12223_v8 = vld [vmem:[#allocation17 + $0x164] sm:$0xf0] }
 0x415   :  { %3264 = vmatpush.bf16.msrb.mxu0 %v8820_v60  ;;  %v9716_v52 = vor.u32 %v12402_v49, %v9713_v51  ;;  %v12394_v56 = vld [vmem:[#allocation17 + $0x6c4] sm:$0xf]  ;;  %v8984_v12 = vor.u32 %v12223_v8, %v8983_v7  ;;  %v12215_v14 = vld [vmem:[#allocation17 + $0x124] sm:$0xf0]  ;;  %v9049_v7 = vld [vmem:[#allocation17 + $0x1e8] sm:$0xf0] }
 0x416   :  { %v9681_v57 = vld [vmem:[#allocation17 + $0x6e0] sm:$0xf0]  ;;  %v8952_v19 = vor.u32 %v12215_v14, %v8951_v13  ;;  %v9527_v51 = vld [vmem:[#allocation17 + $0x588] sm:$0xf] }
 0x417   :  { %3275 = vmatpush.bf16.msrb.mxu1 %v9172_v2  ;;  %v9684_v60 = vor.u32 %v12394_v56, %v9681_v57  ;;  %v12231_v2 = vld [vmem:[#allocation17 + $0x1a4] sm:$0xf0]  ;;  %v12386_v3 = vld [vmem:[#allocation17 + $0x684] sm:$0xf] }
 0x418   :  { %3289 = vmatpush.bf16.msra.mxu2 %v9428_v15  ;;  %3250 = vmatpush.bf16.msra.mxu3 %v9584_v21  ;;  %v9649_v4 = vld [vmem:[#allocation17 + $0x6a0] sm:$0xf0]  ;;  %v9016_v6 = vor.u32 %v12231_v2, %v9015_v0  ;;  %v8919_v21 = vld [vmem:[#allocation17 + $0xc8] sm:$0xf] }
 0x419   :  { %v9652_v5 = vor.u32 %v12386_v3, %v9649_v4  ;;  %v12378_v9 = vld [vmem:[#allocation17 + $0x644] sm:$0xf]  ;;  %v8920_v29 = vor.u32 %v12207_v22, %v8919_v21  ;;  %v12279_v56 = vld [vmem:[#allocation17 + $0x324] sm:$0xf0]  ;;  %v13436_v3 = vmov 0.0  }
 0x41a   :  { %v9617_v44 = vld [vmem:[#allocation17 + $0x660] sm:$0xf0]  ;;  %v9495_v0 = vld [vmem:[#allocation17 + $0x548] sm:$0xf] }
 0x41b   :  { %3276 = vmatpush.bf16.msrb.mxu1 %v9140_v10  ;;  %v9620_v11 = vor.u32 %v12378_v9, %v9617_v44  ;;  %v12370_v59 = vld [vmem:[#allocation17 + $0x604] sm:$0xf]  ;;  %v12351_v2 = vld [vmem:[#allocation17 + $0x564] sm:$0xf0] }
 0x41c   :  { %3290 = vmatpush.bf16.msra.mxu2 %v9396_v26  ;;  %3299 = vmatpush.bf16.msrb.mxu3 %v9812_v28  ;;  %v9585_v15 = vld [vmem:[#allocation17 + $0x620] sm:$0xf0]  ;;  %v12295_v28 = vld [vmem:[#allocation17 + $0x3a4] sm:$0xf0] }
 0x41d   :  { %v9588_v16 = vor.u32 %v12370_v59, %v9585_v15  ;;  %v9272_v50 = vor.u32 %v12295_v28, %v9271_v27  ;;  %v9175_v44 = vld [vmem:[#allocation17 + $0x2c8] sm:$0xf]  ;;  %v12227_v59 = vld [vmem:[#allocation17 + $0x18c] sm:$0xf] }
 0x41e   :  { %v9463_v13 = vld [vmem:[#allocation17 + $0x508] sm:$0xf]  ;;  %v9017_v15 = vld [vmem:[#allocation17 + $0x1a8] sm:$0xf0] }
 0x41f   :  { %3277 = vmatpush.bf16.msrb.mxu1 %v9108_v18  ;;  %v12303_v18 = vld [vmem:[#allocation17 + $0x3e4] sm:$0xf0]  ;;  %v9020_v21 = vor.u32 %v12227_v59, %v9017_v15  ;;  %v8985_v27 = vld [vmem:[#allocation17 + $0x168] sm:$0xf0] }
 0x420   :  { %3291 = vmatpush.bf16.msra.mxu2 %v9364_v37  ;;  %3300 = vmatpush.bf16.msrb.mxu3 %v9780_v40  ;;  %v9304_v25 = vor.u32 %v12303_v18, %v9303_v17  ;;  %v9239_v37 = vld [vmem:[#allocation17 + $0x348] sm:$0xf]  ;;  %v3650_v40 = vlaneseq  ;;  %v12363_v59 = vld [vmem:[#allocation17 + $0x5cc] sm:$0xf] }
 0x421   :  { %v9240_v49 = vor.u32 %v12287_v38, %v9239_v37  ;;  %v12343_v14 = vld [vmem:[#allocation17 + $0x524] sm:$0xf0]  ;;  %v9561_v15 = vld [vmem:[#allocation17 + $0x5e8] sm:$0xf0] }
 0x422   :  { %v9143_v17 = vld [vmem:[#allocation17 + $0x288] sm:$0xf] }
 0x423   :  { %3278 = vmatpush.bf16.msrb.mxu1 %v9076_v31  ;;  %v12199_v31 = vld [vmem:[#allocation17 + $0xa4] sm:$0xf0] }
 0x424   :  { %3292 = vmatpush.bf16.msra.mxu2 %v9332_v46  ;;  %3301 = vmatpush.bf16.msrb.mxu3 %v9748_v47  ;;  %v8888_v41 = vor.u32 %v12199_v31, %v8887_v30  ;;  %v8855_v46 = vld [vmem:[#allocation17 + $0x48] sm:$0xf]  ;;  %v3651_v47 = vshrl.u32 %v3650_v40, 7 }
 0x425   :  { %v8856_v57 = vor.u32 %v12191_v63, %v8855_v46  ;;  %v12263_v18 = vld [vmem:[#allocation17 + $0x2a4] sm:$0xf0] }
 0x426   :  { %vm3653_vm1 = vcmp.eq.s32.totalorder %v3651_v47, %v13004_v53  ;;  %v9431_v22 = vld [vmem:[#allocation17 + $0x4c8] sm:$0xf]  ;;  %v9144_v28 = vor.u32 %v12263_v18, %v9143_v17 }
 0x427   :  { %v13644_v4 = vsel %vm3653_vm1, 1.0, %v13436_v3  ;;  %v12255_v30 = vld [vmem:[#allocation17 + $0x264] sm:$0xf0] }
 0x428   :  { %3302 = vmatpush.bf16.msrb.mxu3 %v9716_v52  ;;  %v12359_v52 = vld [vmem:[#allocation17 + $0x5a4] sm:$0xf0]  ;;  %v3657_v8 = vsel %vm3656_vm2, %v13644_v4, 0.0 }
 0x429   :  { %3658 = vadd.xlane.f32.xlu0 %v3657_v8  ;;  %v9399_v33 = vld [vmem:[#allocation17 + $0x488] sm:$0xf]  ;;  %v9273_v8 = vld [vmem:[#allocation17 + $0x3a8] sm:$0xf0] }
 0x42a   :  { %v12327_v34 = vld [vmem:[#allocation17 + $0x4a4] sm:$0xf0] }
 0x42b   :  { %v9815_v37 = vld [vmem:[#allocation17 + $0x7c8] sm:$0xf]  ;;  %v9400_v47 = vor.u32 %v12327_v34, %v9399_v33  ;;  %v12275_v33 = vld [vmem:[#allocation17 + $0x30c] sm:$0xf] }
 0x42c   :  { %3303 = vmatpush.bf16.msrb.mxu3 %v9684_v60  ;;  %v8823_v60 = vld [vmem:[#allocation17 + $0x8] sm:$0xf]  ;;  %v9209_v34 = vld [vmem:[#allocation17 + $0x328] sm:$0xf0] }
 0x42d   :  { %v12431_v38 = vld [vmem:[#allocation17 + $0x7e4] sm:$0xf0] }
 0x42e   :  { %v12247_v46 = vld [vmem:[#allocation17 + $0x224] sm:$0xf0] }
 0x42f   :  { %v9367_v53 = vld [vmem:[#allocation17 + $0x448] sm:$0xf] }
 0x430   :  { %3304 = vmatpush.bf16.msrb.mxu3 %v9652_v5  ;;  %v9208_v5 = vor.u32 %v12279_v56, %v9207_v55 }
 0x434   :  { %3305 = vmatpush.bf16.msrb.mxu3 %v9620_v11  ;;  %v9496_v11 = vor.u32 %v12351_v2, %v9495_v0  ;;  %v12203_v0 = vld [vmem:[#allocation17 + $0xcc] sm:$0xf] }
 0x435   :  { %v8921_v2 = vld [vmem:[#allocation17 + $0xe8] sm:$0xf0] }
 0x438   :  { %3306 = vmatpush.bf16.msrb.mxu3 %v9588_v16 }
 0x455   :  { %v1596_v48 = vpop.f32.mrf.mxu0 }
 0x45d   :  { %v1598_v61 = vpop.f32.mrf.mxu0 }
 0x45e   :  { %v13634_v1 = vpack.c.bf16 %v1598_v61, %v1596_v48  ;;  %v12183_v61 = vld [vmem:[#allocation17 + $0x24] sm:$0xf0] }
 0x45f   :  { %v8824_v9 = vor.u32 %v12183_v61, %v8823_v60  ;;  %v9783_v60 = vld [vmem:[#allocation17 + $0x788] sm:$0xf] }
 0x460   :  { %3209 = vmatmul.bf16.vlgmr.msra.gmra.mxu0 %v13634_v1  ;;  %v12423_v61 = vld [vmem:[#allocation17 + $0x7a4] sm:$0xf0] }
 0x461   :  { %3313 = vmatpush.bf16.msra.mxu0 %v9048_v32  ;;  %v9528_v32 = vor.u32 %v12359_v52, %v9527_v51  ;;  %v12299_v51 = vld [vmem:[#allocation17 + $0x3cc] sm:$0xf] }
 0x462   :  { %v9305_v52 = vld [vmem:[#allocation17 + $0x3e8] sm:$0xf0] }
 0x463   :  { %v1610_v10 = vpop.f32.mrf.mxu1  ;;  %v9308_v3 = vor.u32 %v12299_v51, %v9305_v52  ;;  %v12240_v51 = vld [vmem:[#allocation17 + $0x1ec] sm:$0xf0] }
 0x465   :  { %3314 = vmatpush.bf16.msra.mxu0 %v9016_v6  ;;  %v12235_v6 = vld [vmem:[#allocation17 + $0x1cc] sm:$0xf] }
 0x469   :  { %3315 = vmatpush.bf16.msra.mxu0 %v8984_v12  ;;  %v9052_v12 = vor.u32 %v12235_v6, %v9049_v7  ;;  %v9784_v7 = vor.u32 %v12423_v61, %v9783_v60  ;;  %v9655_v61 = vld [vmem:[#allocation17 + $0x688] sm:$0xf] }
 0x46a   :  { %v1624_v20 = vpop.f32.mrf.mxu2 }
 0x46b   :  { %v1612_v23 = vpop.f32.mrf.mxu1 }
 0x46c   :  { %v13637_v26 = vpack.c.bf16 %v1612_v23, %v1610_v10  ;;  %v12271_v10 = vld [vmem:[#allocation17 + $0x2e4] sm:$0xf0] }
 0x46d   :  { %3316 = vmatpush.bf16.msra.mxu0 %v8952_v19  ;;  %v9176_v16 = vor.u32 %v12271_v10, %v9175_v44  ;;  %v12335_v23 = vld [vmem:[#allocation17 + $0x4e4] sm:$0xf0]  ;;  %v8924_v10 = vor.u32 %v12203_v0, %v8921_v2  ;;  %v12339_v2 = vld [vmem:[#allocation17 + $0x50c] sm:$0xf] }
 0x46e   :  { %3223 = vmatmul.bf16.vlgmr.msra.gmra.mxu1 %v13637_v26  ;;  %v9432_v31 = vor.u32 %v12335_v23, %v9431_v22  ;;  %v12311_v44 = vld [vmem:[#allocation17 + $0x424] sm:$0xf0]  ;;  %v9564_v22 = vor.u32 %v12363_v59, %v9561_v15  ;;  %v9433_v59 = vld [vmem:[#allocation17 + $0x4e8] sm:$0xf0] }
 0x46f   :  { %3327 = vmatpush.bf16.msra.mxu1 %v9304_v25  ;;  %v12219_v25 = vld [vmem:[#allocation17 + $0x14c] sm:$0xf]  ;;  %v9719_v23 = vld [vmem:[#allocation17 + $0x708] sm:$0xf] }
 0x470   :  { %3265 = vmatmul.bf16.vlgmr.msrb.gmra.mxu0 %v13634_v1 }
 0x471   :  { %3317 = vmatpush.bf16.msra.mxu0 %v8920_v29  ;;  %v9111_v29 = vld [vmem:[#allocation17 + $0x248] sm:$0xf] }
 0x472   :  { %v1626_v42 = vpop.f32.mrf.mxu2  ;;  %v9112_v40 = vor.u32 %v12255_v30, %v9111_v29  ;;  %v12355_v29 = vld [vmem:[#allocation17 + $0x58c] sm:$0xf] }
 0x473   :  { %v13641_v48 = vpack.c.bf16 %v1626_v42, %v1624_v20  ;;  %3328 = vmatpush.bf16.msra.mxu1 %v9272_v50  ;;  %v9464_v20 = vor.u32 %v12343_v14, %v9463_v13  ;;  %v8988_v50 = vor.u32 %v12219_v25, %v8985_v27  ;;  %v8953_v42 = vld [vmem:[#allocation17 + $0x128] sm:$0xf0]  ;;  %v12407_v25 = vld [vmem:[#allocation17 + $0x724] sm:$0xf0] }
 0x474   :  { %v12195_v13 = vld [vmem:[#allocation17 + $0x8c] sm:$0xf] }
 0x475   :  { %3237 = vmatmul.bf16.vlgmr.msrb.gmra.mxu2 %v13641_v48  ;;  %3318 = vmatpush.bf16.msra.mxu0 %v8888_v41  ;;  %v12211_v41 = vld [vmem:[#allocation17 + $0x10c] sm:$0xf] }
 0x476   :  { %3341 = vmatpush.bf16.msrb.mxu2 %v9560_v45  ;;  %v9079_v45 = vld [vmem:[#allocation17 + $0x208] sm:$0xf]  ;;  %v8956_v56 = vor.u32 %v12211_v41, %v8953_v42  ;;  %v8889_v14 = vld [vmem:[#allocation17 + $0xa8] sm:$0xf0] }
 0x477   :  { %3329 = vmatpush.bf16.msra.mxu1 %v9240_v49  ;;  %v9816_v49 = vor.u32 %v12431_v38, %v9815_v37  ;;  %v12187_v27 = vld [vmem:[#allocation17 + $0x4c] sm:$0xf]  ;;  %v12399_v41 = vld [vmem:[#allocation17 + $0x6e4] sm:$0xf0] }
 0x478   :  { %v9529_v30 = vld [vmem:[#allocation17 + $0x5a8] sm:$0xf0] }
 0x479   :  { %3319 = vmatpush.bf16.msra.mxu0 %v8856_v57  ;;  %v12319_v57 = vld [vmem:[#allocation17 + $0x464] sm:$0xf0]  ;;  %v9532_v38 = vor.u32 %v12355_v29, %v9529_v30  ;;  %v12179_v42 = vld [vmem:[#allocation17 + $0xc] sm:$0xf] }
 0x47a   :  { %3342 = vmatpush.bf16.msrb.mxu2 %v9528_v32  ;;  %v9080_v32 = vor.u32 %v12247_v46, %v9079_v45  ;;  %v9368_v6 = vor.u32 %v12319_v57, %v9367_v53  ;;  %v8825_v45 = vld [vmem:[#allocation17 + $0x28] sm:$0xf0] }
 0x47b   :  { %3330 = vmatpush.bf16.msra.mxu1 %v9208_v5  ;;  %v12291_v5 = vld [vmem:[#allocation17 + $0x38c] sm:$0xf]  ;;  %v8828_v57 = vor.u32 %v12179_v42, %v8825_v45  ;;  %v9311_v42 = vld [vmem:[#allocation17 + $0x3d0] sm:$0xf] }
 0x47c   :  { %v12347_v46 = vld [vmem:[#allocation17 + $0x54c] sm:$0xf]  ;;  %v12304_v45 = vld [vmem:[#allocation17 + $0x3ec] sm:$0xf0] }
 0x47d   :  { %3320 = vmatpush.bf16.msra.mxu0 %v8824_v9  ;;  %v9335_v9 = vld [vmem:[#allocation17 + $0x408] sm:$0xf]  ;;  %v12267_v53 = vld [vmem:[#allocation17 + $0x2cc] sm:$0xf] }
 0x47e   :  { %3343 = vmatpush.bf16.msrb.mxu2 %v9496_v11  ;;  %v1638_v19 = vpop.f32.mrf.mxu3  ;;  %3279 = vmatmul.bf16.vlgmr.msrb.gmra.mxu1 %v13637_v26  ;;  %v9751_v11 = vld [vmem:[#allocation17 + $0x748] sm:$0xf]  ;;  %v9336_v17 = vor.u32 %v12311_v44, %v9335_v9  ;;  %v12259_v9 = vld [vmem:[#allocation17 + $0x28c] sm:$0xf] }
 0x47f   :  { %3331 = vmatpush.bf16.msra.mxu1 %v9176_v16  ;;  %v9276_v16 = vor.u32 %v12291_v5, %v9273_v8  ;;  %v9145_v44 = vld [vmem:[#allocation17 + $0x2a8] sm:$0xf0] }
 0x480   :  { %3321 = vmatmul.bf16.vlgmr.msra.gmra.mxu0 %v13634_v1  ;;  %v9148_v15 = vor.u32 %v12259_v9, %v9145_v44  ;;  %v12427_v29 = vld [vmem:[#allocation17 + $0x7cc] sm:$0xf]  ;;  %v12200_v9 = vld [vmem:[#allocation17 + $0xac] sm:$0xf0] }
 0x481   :  { %3369 = vmatpush.bf16.msrb.mxu0 %v9052_v12  ;;  %v12415_v12 = vld [vmem:[#allocation17 + $0x764] sm:$0xf0]  ;;  %v9817_v30 = vld [vmem:[#allocation17 + $0x7e8] sm:$0xf0]  ;;  %v9567_v44 = vld [vmem:[#allocation17 + $0x5d0] sm:$0xf] }
 0x482   :  { %3344 = vmatpush.bf16.msrb.mxu2 %v9464_v20  ;;  %v9752_v18 = vor.u32 %v12415_v12, %v9751_v11  ;;  %v9241_v20 = vld [vmem:[#allocation17 + $0x368] sm:$0xf0]  ;;  %v9623_v11 = vld [vmem:[#allocation17 + $0x648] sm:$0xf] }
 0x483   :  { %3332 = vmatpush.bf16.msra.mxu1 %v9144_v28  ;;  %v8857_v28 = vld [vmem:[#allocation17 + $0x68] sm:$0xf0]  ;;  %v12383_v12 = vld [vmem:[#allocation17 + $0x664] sm:$0xf0] }
 0x484   :  { %v8860_v37 = vor.u32 %v12187_v27, %v8857_v28  ;;  %v9401_v28 = vld [vmem:[#allocation17 + $0x4a8] sm:$0xf0] }
 0x485   :  { %3370 = vmatpush.bf16.msrb.mxu0 %v9020_v21  ;;  %3293 = vmatmul.bf16.vlgmr.msra.gmra.mxu2 %v13641_v48  ;;  %v8892_v21 = vor.u32 %v12195_v13, %v8889_v14  ;;  %v12331_v14 = vld [vmem:[#allocation17 + $0x4cc] sm:$0xf] }
 0x486   :  { %3345 = vmatpush.bf16.msrb.mxu2 %v9432_v31  ;;  %v1640_v63 = vpop.f32.mrf.mxu3 }
 0x487   :  { %v13650_v55 = vpack.c.bf16 %v1640_v63, %v1638_v19  ;;  %3333 = vmatpush.bf16.msra.mxu1 %v9112_v40  ;;  %v12283_v19 = vld [vmem:[#allocation17 + $0x34c] sm:$0xf]  ;;  %v9687_v40 = vld [vmem:[#allocation17 + $0x6c8] sm:$0xf] }
 0x488   :  { %v9244_v31 = vor.u32 %v12283_v19, %v9241_v20  ;;  %v9497_v63 = vld [vmem:[#allocation17 + $0x568] sm:$0xf0]  ;;  %v9688_v52 = vor.u32 %v12399_v41, %v9687_v40  ;;  %v9820_v41 = vor.u32 %v12427_v29, %v9817_v30 }
 0x489   :  { %3371 = vmatpush.bf16.msrb.mxu0 %v8988_v50  ;;  %3251 = vmatmul.bf16.vlgmr.msra.gmra.mxu3 %v13650_v55  ;;  %v9720_v50 = vor.u32 %v12407_v25, %v9719_v23  ;;  %v9500_v60 = vor.u32 %v12347_v46, %v9497_v63  ;;  %v12251_v19 = vld [vmem:[#allocation17 + $0x24c] sm:$0xf]  ;;  %v12375_v23 = vld [vmem:[#allocation17 + $0x624] sm:$0xf0] }
 0x48a   :  { %3346 = vmatpush.bf16.msrb.mxu2 %v9400_v47  ;;  %3355 = vmatpush.bf16.msra.mxu3 %v9816_v49  ;;  %v9212_v47 = vor.u32 %v12275_v33, %v9209_v34  ;;  %v9055_v49 = vld [vmem:[#allocation17 + $0x1d0] sm:$0xf]  ;;  %v9113_v20 = vld [vmem:[#allocation17 + $0x268] sm:$0xf0] }
 0x48b   :  { %3334 = vmatpush.bf16.msra.mxu1 %v9080_v32  ;;  %v12391_v32 = vld [vmem:[#allocation17 + $0x6a4] sm:$0xf0]  ;;  %v9056_v0 = vor.u32 %v12240_v51, %v9055_v49  ;;  %v12323_v25 = vld [vmem:[#allocation17 + $0x48c] sm:$0xf]  ;;  %v12216_v33 = vld [vmem:[#allocation17 + $0x12c] sm:$0xf0] }
 0x48c   :  { %v9656_v8 = vor.u32 %v12391_v32, %v9655_v61  ;;  %v9404_v40 = vor.u32 %v12323_v25, %v9401_v28  ;;  %v12315_v46 = vld [vmem:[#allocation17 + $0x44c] sm:$0xf]  ;;  %v12280_v28 = vld [vmem:[#allocation17 + $0x32c] sm:$0xf0] }
 0x48d   :  { %3372 = vmatpush.bf16.msrb.mxu0 %v8956_v56  ;;  %v9177_v56 = vld [vmem:[#allocation17 + $0x2e8] sm:$0xf0] }
 0x48e   :  { %3347 = vmatpush.bf16.msrb.mxu2 %v9368_v6  ;;  %3356 = vmatpush.bf16.msra.mxu3 %v9784_v7  ;;  %v9180_v5 = vor.u32 %v12267_v53, %v9177_v56  ;;  %v9023_v6 = vld [vmem:[#allocation17 + $0x190] sm:$0xf]  ;;  %v12419_v49 = vld [vmem:[#allocation17 + $0x78c] sm:$0xf] }
 0x48f   :  { %3383 = vmatpush.bf16.msrb.mxu1 %v9308_v3  ;;  %v9465_v3 = vld [vmem:[#allocation17 + $0x528] sm:$0xf0]  ;;  %v12232_v7 = vld [vmem:[#allocation17 + $0x1ac] sm:$0xf0] }
 0x490   :  { %3335 = vmatmul.bf16.vlgmr.msra.gmra.mxu1 %v13637_v26  ;;  %v9024_v13 = vor.u32 %v12232_v7, %v9023_v6  ;;  %v9785_v51 = vld [vmem:[#allocation17 + $0x7a8] sm:$0xf0]  ;;  %v8927_v53 = vld [vmem:[#allocation17 + $0xd0] sm:$0xf] }
 0x491   :  { %3373 = vmatpush.bf16.msrb.mxu0 %v8924_v10  ;;  %v9468_v10 = vor.u32 %v12339_v2, %v9465_v3  ;;  %v12208_v56 = vld [vmem:[#allocation17 + $0xec] sm:$0xf0]  ;;  %v9788_v32 = vor.u32 %v12419_v49, %v9785_v51  ;;  %v12307_v2 = vld [vmem:[#allocation17 + $0x40c] sm:$0xf] }
 0x492   :  { %3348 = vmatpush.bf16.msrb.mxu2 %v9336_v17  ;;  %3357 = vmatpush.bf16.msra.mxu3 %v9752_v18  ;;  %v12224_v17 = vld [vmem:[#allocation17 + $0x16c] sm:$0xf0]  ;;  %v9624_v18 = vor.u32 %v12383_v12, %v9623_v11  ;;  %v9337_v3 = vld [vmem:[#allocation17 + $0x428] sm:$0xf0] }
 0x493   :  { %3384 = vmatpush.bf16.msrb.mxu1 %v9276_v16  ;;  %v8991_v16 = vld [vmem:[#allocation17 + $0x150] sm:$0xf]  ;;  %v12411_v6 = vld [vmem:[#allocation17 + $0x74c] sm:$0xf]  ;;  %v9340_v12 = vor.u32 %v12307_v2, %v9337_v3 }
 0x494   :  { %v8992_v27 = vor.u32 %v12224_v17, %v8991_v16  ;;  %v9753_v7 = vld [vmem:[#allocation17 + $0x768] sm:$0xf0]  ;;  %v9151_v2 = vld [vmem:[#allocation17 + $0x290] sm:$0xf] }
 0x495   :  { %3374 = vmatpush.bf16.msrb.mxu0 %v8892_v21  ;;  %3349 = vmatmul.bf16.vlgmr.msrb.gmra.mxu2 %v13641_v48  ;;  %v9436_v21 = vor.u32 %v12331_v14, %v9433_v59  ;;  %v9247_v14 = vld [vmem:[#allocation17 + $0x350] sm:$0xf]  ;;  %v12403_v17 = vld [vmem:[#allocation17 + $0x70c] sm:$0xf] }
 0x496   :  { %3397 = vmatpush.bf16.msra.mxu2 %v9564_v22  ;;  %3358 = vmatpush.bf16.msra.mxu3 %v9720_v50  ;;  %v9591_v22 = vld [vmem:[#allocation17 + $0x608] sm:$0xf]  ;;  %v8959_v50 = vld [vmem:[#allocation17 + $0x110] sm:$0xf]  ;;  %v12387_v51 = vld [vmem:[#allocation17 + $0x68c] sm:$0xf] }
 0x497   :  { %3385 = vmatpush.bf16.msrb.mxu1 %v9244_v31  ;;  %v9116_v31 = vor.u32 %v12251_v19, %v9113_v20  ;;  %v9592_v34 = vor.u32 %v12375_v23, %v9591_v22  ;;  %v8960_v63 = vor.u32 %v12216_v33, %v8959_v50  ;;  %v12288_v59 = vld [vmem:[#allocation17 + $0x36c] sm:$0xf0]  ;;  %v9689_v50 = vld [vmem:[#allocation17 + $0x6e8] sm:$0xf0] }
 0x498   :  { %v8863_v19 = vld [vmem:[#allocation17 + $0x50] sm:$0xf]  ;;  %v9248_v23 = vor.u32 %v12288_v59, %v9247_v14 }
 0x499   :  { %3375 = vmatpush.bf16.msrb.mxu0 %v8860_v37  ;;  %3307 = vmatmul.bf16.vlgmr.msrb.gmra.mxu3 %v13650_v55  ;;  %v12243_v37 = vld [vmem:[#allocation17 + $0x20c] sm:$0xf]  ;;  %v12192_v20 = vld [vmem:[#allocation17 + $0x6c] sm:$0xf0] }
 0x49a   :  { %3398 = vmatpush.bf16.msra.mxu2 %v9532_v38  ;;  %3359 = vmatpush.bf16.msra.mxu3 %v9688_v52  ;;  %v9081_v38 = vld [vmem:[#allocation17 + $0x228] sm:$0xf0]  ;;  %v12360_v22 = vld [vmem:[#allocation17 + $0x5ac] sm:$0xf0]  ;;  %v8864_v29 = vor.u32 %v12192_v20, %v8863_v19 }
 0x49b   :  { %3386 = vmatpush.bf16.msrb.mxu1 %v9212_v47  ;;  %v9369_v47 = vld [vmem:[#allocation17 + $0x468] sm:$0xf0]  ;;  %v9084_v52 = vor.u32 %v12243_v37, %v9081_v38  ;;  %v8831_v33 = vld [vmem:[#allocation17 + $0x10] sm:$0xf] }
 0x49c   :  { %v9372_v61 = vor.u32 %v12315_v46, %v9369_v47  ;;  %v9503_v37 = vld [vmem:[#allocation17 + $0x550] sm:$0xf] }
 0x49d   :  { %3376 = vmatpush.bf16.msrb.mxu0 %v8828_v57  ;;  %v9312_v57 = vor.u32 %v12304_v45, %v9311_v42  ;;  %v12352_v38 = vld [vmem:[#allocation17 + $0x56c] sm:$0xf0]  ;;  %v9057_v42 = vld [vmem:[#allocation17 + $0x1f0] sm:$0xf0] }
 0x49e   :  { %3399 = vmatpush.bf16.msra.mxu2 %v9500_v60  ;;  %3360 = vmatpush.bf16.msra.mxu3 %v9656_v8  ;;  %v9279_v60 = vld [vmem:[#allocation17 + $0x390] sm:$0xf]  ;;  %v9504_v49 = vor.u32 %v12352_v38, %v9503_v37 }
 0x49f   :  { %3387 = vmatpush.bf16.msrb.mxu1 %v9180_v5  ;;  %v8928_v5 = vor.u32 %v12208_v56, %v8927_v53  ;;  %v8895_v8 = vld [vmem:[#allocation17 + $0x90] sm:$0xf] }
 0x4a0   :  { %3377 = vmatmul.bf16.vlgmr.msrb.gmra.mxu0 %v13634_v1  ;;  %v9183_v46 = vld [vmem:[#allocation17 + $0x2d0] sm:$0xf] }
 0x4a1   :  { %3425 = vmatpush.bf16.msra.mxu0 %v9056_v0  ;;  %v12296_v0 = vld [vmem:[#allocation17 + $0x3ac] sm:$0xf0] }
 0x4a2   :  { %3400 = vmatpush.bf16.msra.mxu2 %v9468_v10  ;;  %3361 = vmatpush.bf16.msra.mxu3 %v9624_v18  ;;  %v12368_v10 = vld [vmem:[#allocation17 + $0x5ec] sm:$0xf0]  ;;  %v9280_v11 = vor.u32 %v12296_v0, %v9279_v60  ;;  %v9721_v18 = vld [vmem:[#allocation17 + $0x728] sm:$0xf0] }
 0x4a3   :  { %3388 = vmatpush.bf16.msrb.mxu1 %v9148_v15  ;;  %v8896_v15 = vor.u32 %v12200_v9, %v8895_v8  ;;  %v9568_v16 = vor.u32 %v12368_v10, %v9567_v44  ;;  %v9724_v25 = vor.u32 %v12403_v17, %v9721_v18  ;;  %v9471_v56 = vld [vmem:[#allocation17 + $0x510] sm:$0xf]  ;;  %v9593_v17 = vld [vmem:[#allocation17 + $0x628] sm:$0xf0] }
 0x4a4   :  { %v12264_v3 = vld [vmem:[#allocation17 + $0x2ac] sm:$0xf0] }
 0x4a5   :  { %3426 = vmatpush.bf16.msra.mxu0 %v9024_v13  ;;  %v9756_v13 = vor.u32 %v12411_v6, %v9753_v7  ;;  %v12379_v6 = vld [vmem:[#allocation17 + $0x64c] sm:$0xf]  ;;  %v9439_v9 = vld [vmem:[#allocation17 + $0x4d0] sm:$0xf]  ;;  %v9152_v10 = vor.u32 %v12264_v3, %v9151_v2  ;;  %v8897_v2 = vld [vmem:[#allocation17 + $0xb0] sm:$0xf0] }
 0x4a6   :  { %3401 = vmatpush.bf16.msra.mxu2 %v9436_v21  ;;  %3362 = vmatpush.bf16.msra.mxu3 %v9592_v34  ;;  %v9535_v21 = vld [vmem:[#allocation17 + $0x590] sm:$0xf]  ;;  %v9625_v7 = vld [vmem:[#allocation17 + $0x668] sm:$0xf0]  ;;  %v12364_v3 = vld [vmem:[#allocation17 + $0x5d4] sm:$0xf] }
 0x4a7   :  { %3389 = vmatpush.bf16.msrb.mxu1 %v9116_v31  ;;  %v9536_v30 = vor.u32 %v12360_v22, %v9535_v21  ;;  %v12395_v31 = vld [vmem:[#allocation17 + $0x6cc] sm:$0xf]  ;;  %v12184_v34 = vld [vmem:[#allocation17 + $0x2c] sm:$0xf0] }
 0x4a8   :  { %v9692_v45 = vor.u32 %v12395_v31, %v9689_v50  ;;  %v8832_v47 = vor.u32 %v12184_v34, %v8831_v33  ;;  %v12336_v44 = vld [vmem:[#allocation17 + $0x4ec] sm:$0xf0]  ;;  %v12300_v33 = vld [vmem:[#allocation17 + $0x3d4] sm:$0xf] }
 0x4a9   :  { %3427 = vmatpush.bf16.msra.mxu0 %v8992_v27  ;;  %3363 = vmatmul.bf16.vlgmr.msra.gmra.mxu3 %v13650_v55  ;;  %v9215_v27 = vld [vmem:[#allocation17 + $0x310] sm:$0xf]  ;;  %v9313_v34 = vld [vmem:[#allocation17 + $0x3f0] sm:$0xf0] }
 0x4aa   :  { %3402 = vmatpush.bf16.msra.mxu2 %v9404_v40  ;;  %3411 = vmatpush.bf16.msrb.mxu3 %v9820_v41  ;;  %v9216_v40 = vor.u32 %v12280_v28, %v9215_v27  ;;  %v12236_v41 = vld [vmem:[#allocation17 + $0x1d4] sm:$0xf]  ;;  %v9119_v14 = vld [vmem:[#allocation17 + $0x250] sm:$0xf] }
 0x4ab   :  { %3390 = vmatpush.bf16.msrb.mxu1 %v9084_v52  ;;  %v9657_v52 = vld [vmem:[#allocation17 + $0x6a8] sm:$0xf0]  ;;  %v9060_v53 = vor.u32 %v12236_v41, %v9057_v42  ;;  %v12256_v59 = vld [vmem:[#allocation17 + $0x26c] sm:$0xf0]  ;;  %v8961_v27 = vld [vmem:[#allocation17 + $0x130] sm:$0xf0] }
 0x4ac   :  { %v9660_v0 = vor.u32 %v12387_v51, %v9657_v52  ;;  %v9407_v18 = vld [vmem:[#allocation17 + $0x490] sm:$0xf] }
 0x4ad   :  { %3428 = vmatpush.bf16.msra.mxu0 %v8960_v63  ;;  %v12272_v63 = vld [vmem:[#allocation17 + $0x2ec] sm:$0xf0] }
 0x4ae   :  { %3403 = vmatpush.bf16.msra.mxu2 %v9372_v61  ;;  %3412 = vmatpush.bf16.msrb.mxu3 %v9788_v32  ;;  %v9184_v60 = vor.u32 %v12272_v63, %v9183_v46  ;;  %v12228_v61 = vld [vmem:[#allocation17 + $0x194] sm:$0xf]  ;;  %v12328_v20 = vld [vmem:[#allocation17 + $0x4ac] sm:$0xf0] }
 0x4af   :  { %3439 = vmatpush.bf16.msra.mxu1 %v9312_v57  ;;  %v12344_v57 = vld [vmem:[#allocation17 + $0x52c] sm:$0xf0]  ;;  %v9025_v32 = vld [vmem:[#allocation17 + $0x1b0] sm:$0xf0]  ;;  %v9408_v31 = vor.u32 %v12328_v20, %v9407_v18 }
 0x4b0   :  { %3391 = vmatmul.bf16.vlgmr.msrb.gmra.mxu1 %v13637_v26  ;;  %v9028_v8 = vor.u32 %v12228_v61, %v9025_v32  ;;  %v9823_v21 = vld [vmem:[#allocation17 + $0x7d0] sm:$0xf]  ;;  %v12204_v46 = vld [vmem:[#allocation17 + $0xd4] sm:$0xf] }
 0x4b1   :  { %3429 = vmatpush.bf16.msra.mxu0 %v8928_v5  ;;  %v9472_v5 = vor.u32 %v12344_v57, %v9471_v56  ;;  %v12432_v22 = vld [vmem:[#allocation17 + $0x7ec] sm:$0xf0]  ;;  %v8929_v63 = vld [vmem:[#allocation17 + $0xf0] sm:$0xf0] }
 0x4b2   :  { %3404 = vmatpush.bf16.msra.mxu2 %v9340_v12  ;;  %3413 = vmatpush.bf16.msrb.mxu3 %v9756_v13  ;;  %v8993_v12 = vld [vmem:[#allocation17 + $0x170] sm:$0xf0]  ;;  %v9628_v13 = vor.u32 %v12379_v6, %v9625_v7  ;;  %v9824_v50 = vor.u32 %v12432_v22, %v9823_v21  ;;  %v9375_v37 = vld [vmem:[#allocation17 + $0x450] sm:$0xf] }
 0x4b3   :  { %3440 = vmatpush.bf16.msra.mxu1 %v9280_v11  ;;  %v12220_v11 = vld [vmem:[#allocation17 + $0x154] sm:$0xf]  ;;  %v9791_v41 = vld [vmem:[#allocation17 + $0x790] sm:$0xf] }
 0x4b4   :  { %v8996_v19 = vor.u32 %v12220_v11, %v8993_v12  ;;  %v12424_v42 = vld [vmem:[#allocation17 + $0x7ac] sm:$0xf0]  ;;  %v9217_v20 = vld [vmem:[#allocation17 + $0x330] sm:$0xf0] }
 0x4b5   :  { %3430 = vmatpush.bf16.msra.mxu0 %v8896_v15  ;;  %3405 = vmatmul.bf16.vlgmr.msra.gmra.mxu2 %v13641_v48  ;;  %v9440_v15 = vor.u32 %v12336_v44, %v9439_v9  ;;  %v9792_v52 = vor.u32 %v12424_v42, %v9791_v41  ;;  %v9343_v56 = vld [vmem:[#allocation17 + $0x410] sm:$0xf]  ;;  %v12284_v9 = vld [vmem:[#allocation17 + $0x354] sm:$0xf] }
 0x4b6   :  { %3453 = vmatpush.bf16.msrb.mxu2 %v9568_v16  ;;  %3414 = vmatpush.bf16.msrb.mxu3 %v9724_v25  ;;  %v12371_v16 = vld [vmem:[#allocation17 + $0x60c] sm:$0xf]  ;;  %v12212_v25 = vld [vmem:[#allocation17 + $0x114] sm:$0xf]  ;;  %v12312_v57 = vld [vmem:[#allocation17 + $0x42c] sm:$0xf0] }
 0x4b7   :  { %3441 = vmatpush.bf16.msra.mxu1 %v9248_v23  ;;  %v9120_v23 = vor.u32 %v12256_v59, %v9119_v14  ;;  %v9596_v28 = vor.u32 %v12371_v16, %v9593_v17  ;;  %v8964_v38 = vor.u32 %v12212_v25, %v8961_v27  ;;  %v9759_v61 = vld [vmem:[#allocation17 + $0x750] sm:$0xf]  ;;  %v9344_v7 = vor.u32 %v12312_v57, %v9343_v56  ;;  %v9249_v44 = vld [vmem:[#allocation17 + $0x370] sm:$0xf0] }
 0x4b8   :  { %v12416_v32 = vld [vmem:[#allocation17 + $0x76c] sm:$0xf0]  ;;  %v12188_v14 = vld [vmem:[#allocation17 + $0x54] sm:$0xf]  ;;  %v9252_v17 = vor.u32 %v12284_v9, %v9249_v44 }
 0x4b9   :  { %3431 = vmatpush.bf16.msra.mxu0 %v8864_v29  ;;  %v9087_v29 = vld [vmem:[#allocation17 + $0x210] sm:$0xf]  ;;  %v8865_v59 = vld [vmem:[#allocation17 + $0x70] sm:$0xf0] }
 0x4ba   :  { %3454 = vmatpush.bf16.msrb.mxu2 %v9536_v30  ;;  %3415 = vmatpush.bf16.msrb.mxu3 %v9692_v45  ;;  %v12248_v30 = vld [vmem:[#allocation17 + $0x22c] sm:$0xf0]  ;;  %v9537_v16 = vld [vmem:[#allocation17 + $0x5b0] sm:$0xf0]  ;;  %v8868_v21 = vor.u32 %v12188_v14, %v8865_v59 }
 0x4bb   :  { %3442 = vmatpush.bf16.msra.mxu1 %v9216_v40  ;;  %v12320_v40 = vld [vmem:[#allocation17 + $0x46c] sm:$0xf0]  ;;  %v9088_v45 = vor.u32 %v12248_v30, %v9087_v29  ;;  %v12180_v27 = vld [vmem:[#allocation17 + $0x14] sm:$0xf] }
 0x4bc   :  { %v9376_v51 = vor.u32 %v12320_v40, %v9375_v37  ;;  %v9727_v12 = vld [vmem:[#allocation17 + $0x710] sm:$0xf]  ;;  %v12348_v29 = vld [vmem:[#allocation17 + $0x554] sm:$0xf] }
 0x4bd   :  { %3432 = vmatpush.bf16.msra.mxu0 %v8832_v47  ;;  %v9316_v47 = vor.u32 %v12300_v33, %v9313_v34  ;;  %v12400_v25 = vld [vmem:[#allocation17 + $0x6ec] sm:$0xf0]  ;;  %v9505_v30 = vld [vmem:[#allocation17 + $0x570] sm:$0xf0]  ;;  %v12241_v33 = vld [vmem:[#allocation17 + $0x1f4] sm:$0xf0] }
 0x4be   :  { %3455 = vmatpush.bf16.msrb.mxu2 %v9504_v49  ;;  %3416 = vmatpush.bf16.msrb.mxu3 %v9660_v0  ;;  %v12292_v49 = vld [vmem:[#allocation17 + $0x394] sm:$0xf]  ;;  %v9508_v41 = vor.u32 %v12348_v29, %v9505_v30  ;;  %v9663_v42 = vld [vmem:[#allocation17 + $0x690] sm:$0xf] }
 0x4bf   :  { %3443 = vmatpush.bf16.msra.mxu1 %v9184_v60  ;;  %v8932_v60 = vor.u32 %v12204_v46, %v8929_v63  ;;  %v12196_v0 = vld [vmem:[#allocation17 + $0x94] sm:$0xf] }
 0x4c0   :  { %3433 = vmatmul.bf16.vlgmr.msra.gmra.mxu0 %v13634_v1  ;;  %v12268_v37 = vld [vmem:[#allocation17 + $0x2d4] sm:$0xf] }
 0x4c1   :  { %3481 = vmatpush.bf16.msrb.mxu0 %v9060_v53  ;;  %v9281_v53 = vld [vmem:[#allocation17 + $0x3b0] sm:$0xf0] }
 0x4c2   :  { %3456 = vmatpush.bf16.msrb.mxu2 %v9472_v5  ;;  %3417 = vmatpush.bf16.msrb.mxu3 %v9628_v13  ;;  %v9569_v5 = vld [vmem:[#allocation17 + $0x5f0] sm:$0xf0]  ;;  %v9284_v6 = vor.u32 %v12292_v49, %v9281_v53  ;;  %v12408_v13 = vld [vmem:[#allocation17 + $0x72c] sm:$0xf0] }
 0x4c3   :  { %3444 = vmatpush.bf16.msra.mxu1 %v9152_v10  ;;  %v8900_v10 = vor.u32 %v12196_v0, %v8897_v2  ;;  %v9572_v11 = vor.u32 %v12364_v3, %v9569_v5  ;;  %v9728_v18 = vor.u32 %v12408_v13, %v9727_v12  ;;  %v12340_v63 = vld [vmem:[#allocation17 + $0x514] sm:$0xf]  ;;  %v12376_v12 = vld [vmem:[#allocation17 + $0x62c] sm:$0xf0] }
 0x4c4   :  { %v12260_v56 = vld [vmem:[#allocation17 + $0x294] sm:$0xf] }
 0x4c5   :  { %3482 = vmatpush.bf16.msrb.mxu0 %v9028_v8  ;;  %v9760_v8 = vor.u32 %v12416_v32, %v9759_v61  ;;  %v9153_v57 = vld [vmem:[#allocation17 + $0x2b0] sm:$0xf0]  ;;  %v9631_v61 = vld [vmem:[#allocation17 + $0x650] sm:$0xf] }
 0x4c6   :  { %3457 = vmatpush.bf16.msrb.mxu2 %v9440_v15  ;;  %3418 = vmatpush.bf16.msrb.mxu3 %v9596_v28  ;;  %v12356_v15 = vld [vmem:[#allocation17 + $0x594] sm:$0xf]  ;;  %v12384_v32 = vld [vmem:[#allocation17 + $0x66c] sm:$0xf0]  ;;  %v9156_v5 = vor.u32 %v12260_v56, %v9153_v57  ;;  %v12201_v56 = vld [vmem:[#allocation17 + $0xb4] sm:$0xf0] }
 0x4c7   :  { %3445 = vmatpush.bf16.msra.mxu1 %v9120_v23  ;;  %v9540_v22 = vor.u32 %v12356_v15, %v9537_v16  ;;  %v9695_v23 = vld [vmem:[#allocation17 + $0x6d0] sm:$0xf]  ;;  %v8833_v28 = vld [vmem:[#allocation17 + $0x30] sm:$0xf0]  ;;  %v9575_v57 = vld [vmem:[#allocation17 + $0x5d8] sm:$0xf] }
 0x4c8   :  { %v9696_v34 = vor.u32 %v12400_v25, %v9695_v23  ;;  %v8836_v40 = vor.u32 %v12180_v27, %v8833_v28  ;;  %v12332_v2 = vld [vmem:[#allocation17 + $0x4d4] sm:$0xf]  ;;  %v9319_v27 = vld [vmem:[#allocation17 + $0x3d8] sm:$0xf] }
 0x4c9   :  { %3483 = vmatpush.bf16.msrb.mxu0 %v8996_v19  ;;  %3419 = vmatmul.bf16.vlgmr.msrb.gmra.mxu3 %v13650_v55  ;;  %v12276_v19 = vld [vmem:[#allocation17 + $0x314] sm:$0xf]  ;;  %v12305_v28 = vld [vmem:[#allocation17 + $0x3f4] sm:$0xf0] }
 0x4ca   :  { %3458 = vmatpush.bf16.msrb.mxu2 %v9408_v31  ;;  %3467 = vmatpush.bf16.msra.mxu3 %v9824_v50  ;;  %v9220_v31 = vor.u32 %v12276_v19, %v9217_v20  ;;  %v9063_v50 = vld [vmem:[#allocation17 + $0x1d8] sm:$0xf]  ;;  %v9441_v3 = vld [vmem:[#allocation17 + $0x4f0] sm:$0xf0] }
 0x4cb   :  { %3446 = vmatpush.bf16.msra.mxu1 %v9088_v45  ;;  %v12392_v45 = vld [vmem:[#allocation17 + $0x6ac] sm:$0xf0]  ;;  %v9064_v46 = vor.u32 %v12241_v33, %v9063_v50  ;;  %v12252_v9 = vld [vmem:[#allocation17 + $0x254] sm:$0xf]  ;;  %v12217_v19 = vld [vmem:[#allocation17 + $0x134] sm:$0xf0] }
 0x4cc   :  { %v9664_v53 = vor.u32 %v12392_v45, %v9663_v42  ;;  %v9121_v44 = vld [vmem:[#allocation17 + $0x270] sm:$0xf0] }
 0x4cd   :  { %3484 = vmatpush.bf16.msrb.mxu0 %v8964_v38  ;;  %v9185_v38 = vld [vmem:[#allocation17 + $0x2f0] sm:$0xf0] }
 0x4ce   :  { %3459 = vmatpush.bf16.msrb.mxu2 %v9376_v51  ;;  %3468 = vmatpush.bf16.msra.mxu3 %v9792_v52  ;;  %v9188_v49 = vor.u32 %v12268_v37, %v9185_v38  ;;  %v9031_v51 = vld [vmem:[#allocation17 + $0x198] sm:$0xf]  ;;  %v12324_v13 = vld [vmem:[#allocation17 + $0x494] sm:$0xf] }
 0x4cf   :  { %3495 = vmatpush.bf16.msrb.mxu1 %v9316_v47  ;;  %v9473_v47 = vld [vmem:[#allocation17 + $0x530] sm:$0xf0]  ;;  %v12233_v52 = vld [vmem:[#allocation17 + $0x1b4] sm:$0xf0] }
 0x4d0   :  { %3447 = vmatmul.bf16.vlgmr.msra.gmra.mxu1 %v13637_v26  ;;  %v9032_v0 = vor.u32 %v12233_v52, %v9031_v51  ;;  %v9409_v59 = vld [vmem:[#allocation17 + $0x4b0] sm:$0xf0]  ;;  %v8935_v37 = vld [vmem:[#allocation17 + $0xd8] sm:$0xf] }
 0x4d1   :  { %3485 = vmatpush.bf16.msrb.mxu0 %v8932_v60  ;;  %v9476_v60 = vor.u32 %v12340_v63, %v9473_v47  ;;  %v12428_v15 = vld [vmem:[#allocation17 + $0x7d4] sm:$0xf]  ;;  %v9412_v23 = vor.u32 %v12324_v13, %v9409_v59  ;;  %v12209_v38 = vld [vmem:[#allocation17 + $0xf4] sm:$0xf0] }
 0x4d2   :  { %3460 = vmatpush.bf16.msrb.mxu2 %v9344_v7  ;;  %3469 = vmatpush.bf16.msra.mxu3 %v9760_v8  ;;  %v12225_v7 = vld [vmem:[#allocation17 + $0x174] sm:$0xf0]  ;;  %v9632_v8 = vor.u32 %v12384_v32, %v9631_v61  ;;  %v9825_v16 = vld [vmem:[#allocation17 + $0x7f0] sm:$0xf0] }
 0x4d3   :  { %3496 = vmatpush.bf16.msrb.mxu1 %v9284_v6  ;;  %v8999_v6 = vld [vmem:[#allocation17 + $0x158] sm:$0xf]  ;;  %v9828_v25 = vor.u32 %v12428_v15, %v9825_v16  ;;  %v12316_v29 = vld [vmem:[#allocation17 + $0x454] sm:$0xf] }
 0x4d4   :  { %v9000_v14 = vor.u32 %v12225_v7, %v8999_v6  ;;  %v12420_v50 = vld [vmem:[#allocation17 + $0x794] sm:$0xf]  ;;  %v12281_v59 = vld [vmem:[#allocation17 + $0x334] sm:$0xf0] }
 0x4d5   :  { %3486 = vmatpush.bf16.msrb.mxu0 %v8900_v10  ;;  %3461 = vmatmul.bf16.vlgmr.msrb.gmra.mxu2 %v13641_v48  ;;  %v9444_v10 = vor.u32 %v12332_v2, %v9441_v3  ;;  %v9793_v33 = vld [vmem:[#allocation17 + $0x7b0] sm:$0xf0]  ;;  %v9255_v2 = vld [vmem:[#allocation17 + $0x358] sm:$0xf] }
 0x4d6   :  { %3509 = vmatpush.bf16.msra.mxu2 %v9572_v11  ;;  %3470 = vmatpush.bf16.msra.mxu3 %v9728_v18  ;;  %v9599_v11 = vld [vmem:[#allocation17 + $0x610] sm:$0xf]  ;;  %v8967_v18 = vld [vmem:[#allocation17 + $0x118] sm:$0xf]  ;;  %v9796_v45 = vor.u32 %v12420_v50, %v9793_v33  ;;  %v12308_v63 = vld [vmem:[#allocation17 + $0x414] sm:$0xf] }
 0x4d7   :  { %3497 = vmatpush.bf16.msrb.mxu1 %v9252_v17  ;;  %v9124_v17 = vor.u32 %v12252_v9, %v9121_v44  ;;  %v9600_v20 = vor.u32 %v12376_v12, %v9599_v11  ;;  %v8968_v30 = vor.u32 %v12217_v19, %v8967_v18  ;;  %v9345_v47 = vld [vmem:[#allocation17 + $0x430] sm:$0xf0]  ;;  %v12289_v3 = vld [vmem:[#allocation17 + $0x374] sm:$0xf0] }
 0x4d8   :  { %v12412_v51 = vld [vmem:[#allocation17 + $0x754] sm:$0xf]  ;;  %v9348_v32 = vor.u32 %v12308_v63, %v9345_v47  ;;  %v8871_v9 = vld [vmem:[#allocation17 + $0x58] sm:$0xf]  ;;  %v9256_v12 = vor.u32 %v12289_v3, %v9255_v2 }
 0x4d9   :  { %3487 = vmatpush.bf16.msrb.mxu0 %v8868_v21  ;;  %v12244_v21 = vld [vmem:[#allocation17 + $0x214] sm:$0xf]  ;;  %v12193_v44 = vld [vmem:[#allocation17 + $0x74] sm:$0xf0] }
 0x4da   :  { %3510 = vmatpush.bf16.msra.mxu2 %v9540_v22  ;;  %3471 = vmatpush.bf16.msra.mxu3 %v9696_v34  ;;  %v9089_v22 = vld [vmem:[#allocation17 + $0x230] sm:$0xf0]  ;;  %v12361_v11 = vld [vmem:[#allocation17 + $0x5b4] sm:$0xf0]  ;;  %v8872_v15 = vor.u32 %v12193_v44, %v8871_v9 }
 0x4db   :  { %3498 = vmatpush.bf16.msrb.mxu1 %v9220_v31  ;;  %v9377_v31 = vld [vmem:[#allocation17 + $0x470] sm:$0xf0]  ;;  %v9092_v34 = vor.u32 %v12244_v21, %v9089_v22  ;;  %v8839_v19 = vld [vmem:[#allocation17 + $0x18] sm:$0xf] }
 0x4dc   :  { %v9380_v42 = vor.u32 %v12316_v29, %v9377_v31  ;;  %v9761_v52 = vld [vmem:[#allocation17 + $0x770] sm:$0xf0]  ;;  %v9511_v21 = vld [vmem:[#allocation17 + $0x558] sm:$0xf] }
 0x4dd   :  { %3488 = vmatpush.bf16.msrb.mxu0 %v8836_v40  ;;  %v9320_v40 = vor.u32 %v12305_v28, %v9319_v27  ;;  %v12404_v7 = vld [vmem:[#allocation17 + $0x714] sm:$0xf]  ;;  %v12353_v22 = vld [vmem:[#allocation17 + $0x574] sm:$0xf0]  ;;  %v9065_v27 = vld [vmem:[#allocation17 + $0x1f8] sm:$0xf0] }
 0x4de   :  { %3511 = vmatpush.bf16.msra.mxu2 %v9508_v41  ;;  %3472 = vmatpush.bf16.msra.mxu3 %v9664_v53  ;;  %v9287_v41 = vld [vmem:[#allocation17 + $0x398] sm:$0xf]  ;;  %v9697_v18 = vld [vmem:[#allocation17 + $0x6f0] sm:$0xf0]  ;;  %v9512_v50 = vor.u32 %v12353_v22, %v9511_v21  ;;  %v12301_v22 = vld [vmem:[#allocation17 + $0x3dc] sm:$0xf] }
 0x4df   :  { %3499 = vmatpush.bf16.msrb.mxu1 %v9188_v49  ;;  %v8936_v49 = vor.u32 %v12209_v38, %v8935_v37  ;;  %v8903_v53 = vld [vmem:[#allocation17 + $0x98] sm:$0xf]  ;;  %v12388_v33 = vld [vmem:[#allocation17 + $0x694] sm:$0xf] }
 0x4e0   :  { %3489 = vmatmul.bf16.vlgmr.msrb.gmra.mxu0 %v13634_v1  ;;  %v9191_v29 = vld [vmem:[#allocation17 + $0x2d8] sm:$0xf] }
 0x4e1   :  { %3537 = vmatpush.bf16.msra.mxu0 %v9064_v46  ;;  %v12297_v46 = vld [vmem:[#allocation17 + $0x3b4] sm:$0xf0] }
 0x4e2   :  { %3512 = vmatpush.bf16.msra.mxu2 %v9476_v60  ;;  %3473 = vmatpush.bf16.msra.mxu3 %v9632_v8  ;;  %v12369_v60 = vld [vmem:[#allocation17 + $0x5f4] sm:$0xf0]  ;;  %v9288_v61 = vor.u32 %v12297_v46, %v9287_v41  ;;  %v9729_v8 = vld [vmem:[#allocation17 + $0x730] sm:$0xf0] }
 0x4e3   :  { %3500 = vmatpush.bf16.msrb.mxu1 %v9156_v5  ;;  %v8904_v5 = vor.u32 %v12201_v56, %v8903_v53  ;;  %v9576_v6 = vor.u32 %v12369_v60, %v9575_v57  ;;  %v9732_v13 = vor.u32 %v12404_v7, %v9729_v8  ;;  %v9479_v38 = vld [vmem:[#allocation17 + $0x518] sm:$0xf]  ;;  %v9601_v8 = vld [vmem:[#allocation17 + $0x630] sm:$0xf0] }
 0x4e4   :  { %v9159_v63 = vld [vmem:[#allocation17 + $0x298] sm:$0xf] }
 0x4e5   :  { %3538 = vmatpush.bf16.msra.mxu0 %v9032_v0  ;;  %v9764_v0 = vor.u32 %v12412_v51, %v9761_v52  ;;  %v12265_v47 = vld [vmem:[#allocation17 + $0x2b4] sm:$0xf0]  ;;  %v12380_v51 = vld [vmem:[#allocation17 + $0x654] sm:$0xf] }
 0x4e6   :  { %3513 = vmatpush.bf16.msra.mxu2 %v9444_v10  ;;  %3474 = vmatpush.bf16.msra.mxu3 %v9600_v20  ;;  %v9543_v10 = vld [vmem:[#allocation17 + $0x598] sm:$0xf]  ;;  %v9633_v52 = vld [vmem:[#allocation17 + $0x670] sm:$0xf0]  ;;  %v9160_v60 = vor.u32 %v12265_v47, %v9159_v63 }
 0x4e7   :  { %3501 = vmatpush.bf16.msrb.mxu1 %v9124_v17  ;;  %v9544_v16 = vor.u32 %v12361_v11, %v9543_v10  ;;  %v12396_v17 = vld [vmem:[#allocation17 + $0x6d4] sm:$0xf]  ;;  %v12185_v20 = vld [vmem:[#allocation17 + $0x34] sm:$0xf0]  ;;  %v9636_v2 = vor.u32 %v12380_v51, %v9633_v52  ;;  %v12197_v52 = vld [vmem:[#allocation17 + $0x9c] sm:$0xf] }
 0x4e8   :  { %v9700_v28 = vor.u32 %v12396_v17, %v9697_v18  ;;  %v8840_v31 = vor.u32 %v12185_v20, %v8839_v19  ;;  %v9447_v56 = vld [vmem:[#allocation17 + $0x4d8] sm:$0xf]  ;;  %v13671_v19 = vpop.f32.mrf.mxu0 }
 0x4e9   :  { %3539 = vmatpush.bf16.msra.mxu0 %v9000_v14  ;;  %3475 = vmatmul.bf16.vlgmr.msra.gmra.mxu3 %v13650_v55  ;;  %v9223_v14 = vld [vmem:[#allocation17 + $0x318] sm:$0xf] }
 0x4ea   :  { %3514 = vmatpush.bf16.msra.mxu2 %v9412_v23  ;;  %3523 = vmatpush.bf16.msrb.mxu3 %v9828_v25  ;;  %v9224_v23 = vor.u32 %v12281_v59, %v9223_v14  ;;  %v12237_v25 = vld [vmem:[#allocation17 + $0x1dc] sm:$0xf]  ;;  %v12337_v57 = vld [vmem:[#allocation17 + $0x4f4] sm:$0xf0] }
 0x4eb   :  { %3502 = vmatpush.bf16.msrb.mxu1 %v9092_v34  ;;  %v9665_v34 = vld [vmem:[#allocation17 + $0x6b0] sm:$0xf0]  ;;  %v9068_v37 = vor.u32 %v12237_v25, %v9065_v27  ;;  %v9127_v3 = vld [vmem:[#allocation17 + $0x258] sm:$0xf]  ;;  %v9448_v7 = vor.u32 %v12337_v57, %v9447_v56  ;;  %v12213_v59 = vld [vmem:[#allocation17 + $0x11c] sm:$0xf] }
 0x4ec   :  { %v9668_v46 = vor.u32 %v12388_v33, %v9665_v34  ;;  %v9415_v9 = vld [vmem:[#allocation17 + $0x498] sm:$0xf]  ;;  %v12205_v33 = vld [vmem:[#allocation17 + $0xdc] sm:$0xf] }
 0x4ed   :  { %3540 = vmatpush.bf16.msra.mxu0 %v8968_v30  ;;  %v12273_v30 = vld [vmem:[#allocation17 + $0x2f4] sm:$0xf0]  ;;  %v8937_v34 = vld [vmem:[#allocation17 + $0xf8] sm:$0xf0] }
 0x4ee   :  { %3515 = vmatpush.bf16.msra.mxu2 %v9380_v42  ;;  %3524 = vmatpush.bf16.msrb.mxu3 %v9796_v45  ;;  %v9192_v41 = vor.u32 %v12273_v30, %v9191_v29  ;;  %v12229_v42 = vld [vmem:[#allocation17 + $0x19c] sm:$0xf]  ;;  %v12329_v44 = vld [vmem:[#allocation17 + $0x4b4] sm:$0xf0]  ;;  %v8940_v47 = vor.u32 %v12205_v33, %v8937_v34 }
 0x4ef   :  { %3551 = vmatpush.bf16.msra.mxu1 %v9320_v40  ;;  %v12345_v40 = vld [vmem:[#allocation17 + $0x534] sm:$0xf0]  ;;  %v9033_v45 = vld [vmem:[#allocation17 + $0x1b8] sm:$0xf0]  ;;  %v9416_v20 = vor.u32 %v12329_v44, %v9415_v9 }
 0x4f0   :  { %3503 = vmatmul.bf16.vlgmr.msrb.gmra.mxu1 %v13637_v26  ;;  %v9036_v53 = vor.u32 %v12229_v42, %v9033_v45  ;;  %v9831_v11 = vld [vmem:[#allocation17 + $0x7d8] sm:$0xf]  ;;  %v9289_v45 = vld [vmem:[#allocation17 + $0x3b8] sm:$0xf0]  ;;  %v3212_v44 = vpop.f32.mrf.mxu0 }
 0x4f1   :  { %3541 = vmatpush.bf16.msra.mxu0 %v8936_v49  ;;  %v9480_v49 = vor.u32 %v12345_v40, %v9479_v38  ;;  %v9095_v17 = vld [vmem:[#allocation17 + $0x218] sm:$0xf]  ;;  %v12293_v38 = vld [vmem:[#allocation17 + $0x39c] sm:$0xf] }
 0x4f2   :  { %3516 = vmatpush.bf16.msra.mxu2 %v9348_v32  ;;  %3525 = vmatpush.bf16.msrb.mxu3 %v9764_v0  ;;  %v9001_v32 = vld [vmem:[#allocation17 + $0x178] sm:$0xf0]  ;;  %v3659_v0 = vpop.xlane.xlu0 %3658  ;;  %v12249_v18 = vld [vmem:[#allocation17 + $0x234] sm:$0xf0] }
 0x4f3   :  { %3552 = vmatpush.bf16.msra.mxu1 %v9288_v61  ;;  %v12221_v61 = vld [vmem:[#allocation17 + $0x15c] sm:$0xf]  ;;  %v9383_v25 = vld [vmem:[#allocation17 + $0x458] sm:$0xf] }
 0x4f4   :  { %v9004_v10 = vor.u32 %v12221_v61, %v9001_v32  ;;  %v9799_v29 = vld [vmem:[#allocation17 + $0x798] sm:$0xf]  ;;  %v12365_v56 = vld [vmem:[#allocation17 + $0x5dc] sm:$0xf]  ;;  %v9292_v61 = vor.u32 %v12293_v38, %v9289_v45 }
 0x4f5   :  { %3542 = vmatpush.bf16.msra.mxu0 %v8904_v5  ;;  %3517 = vmatmul.bf16.vlgmr.msra.gmra.mxu2 %v13641_v48  ;;  %v12257_v5 = vld [vmem:[#allocation17 + $0x274] sm:$0xf0]  ;;  %v9577_v57 = vld [vmem:[#allocation17 + $0x5f8] sm:$0xf0] }
 0x4f6   :  { %3565 = vmatpush.bf16.msrb.mxu2 %v9576_v6  ;;  %3526 = vmatpush.bf16.msrb.mxu3 %v9732_v13  ;;  %v12372_v6 = vld [vmem:[#allocation17 + $0x614] sm:$0xf]  ;;  %v13669_v13 = vmax.f32 %v3659_v0, 1.0  ;;  %v9128_v14 = vor.u32 %v12257_v5, %v9127_v3  ;;  %v12425_v30 = vld [vmem:[#allocation17 + $0x7b4] sm:$0xf0] }
 0x4f7   :  { %3553 = vmatpush.bf16.msra.mxu1 %v9256_v12  ;;  %v12433_v12 = vld [vmem:[#allocation17 + $0x7f4] sm:$0xf0]  ;;  %v9800_v42 = vor.u32 %v12425_v30, %v9799_v29  ;;  %v9257_v3 = vld [vmem:[#allocation17 + $0x378] sm:$0xf0] }
 0x4f8   :  { %v9832_v21 = vor.u32 %v12433_v12, %v9831_v11  ;;  %13006 = vrcp.f32 %v13669_v13  ;;  %v13676_v40 = vpop.f32.mrf.mxu2  ;;  %v12313_v63 = vld [vmem:[#allocation17 + $0x434] sm:$0xf0]  ;;  %v12189_v9 = vld [vmem:[#allocation17 + $0x5c] sm:$0xf]  ;;  %vm3666_vm3 = vweird.f32 %v13669_v13 }
 0x4f9   :  { %3543 = vmatpush.bf16.msra.mxu0 %v8872_v15  ;;  %v8969_v15 = vld [vmem:[#allocation17 + $0x138] sm:$0xf0]  ;;  %v12417_v51 = vld [vmem:[#allocation17 + $0x774] sm:$0xf0] }
 0x4fa   :  { %3566 = vmatpush.bf16.msrb.mxu2 %v9544_v16  ;;  %3527 = vmatpush.bf16.msrb.mxu3 %v9700_v28  ;;  %v9604_v16 = vor.u32 %v12372_v6, %v9601_v8  ;;  %v8972_v27 = vor.u32 %v12213_v59, %v8969_v15  ;;  %v12321_v28 = vld [vmem:[#allocation17 + $0x474] sm:$0xf0]  ;;  %v9580_v6 = vor.u32 %v12365_v56, %v9577_v57  ;;  %v8873_v11 = vld [vmem:[#allocation17 + $0x78] sm:$0xf0]  ;;  %v3670_v56 = vand.u32 2147483647, %v13669_v13 }
 0x4fb   :  { %3554 = vmatpush.bf16.msra.mxu1 %v9224_v23  ;;  %v9321_v23 = vld [vmem:[#allocation17 + $0x3f8] sm:$0xf0]  ;;  %v12409_v8 = vld [vmem:[#allocation17 + $0x734] sm:$0xf0] }
 0x4fc   :  { %v12357_v12 = vld [vmem:[#allocation17 + $0x59c] sm:$0xf]  ;;  %vm13716_vm6 = vcmp.eq.f32.partialorder %v3670_v56, 8.507059e+37 }
 0x4fd   :  { %3544 = vmatpush.bf16.msra.mxu0 %v8840_v31  ;;  %v13674_v31 = vpop.f32.mrf.mxu1  ;;  %v9513_v33 = vld [vmem:[#allocation17 + $0x578] sm:$0xf0] }
 0x4fe   :  { %3567 = vmatpush.bf16.msrb.mxu2 %v9512_v50  ;;  %3528 = vmatpush.bf16.msrb.mxu3 %v9668_v46  ;;  %v9096_v50 = vor.u32 %v12249_v18, %v9095_v17  ;;  %v9351_v46 = vld [vmem:[#allocation17 + $0x418] sm:$0xf]  ;;  %v12277_v17 = vld [vmem:[#allocation17 + $0x31c] sm:$0xf] }
 0x4ff   :  { %3555 = vmatpush.bf16.msra.mxu1 %v9192_v41  ;;  %v9384_v41 = vor.u32 %v12321_v28, %v9383_v25  ;;  %v9352_v32 = vor.u32 %v12313_v63, %v9351_v46  ;;  %v9225_v18 = vld [vmem:[#allocation17 + $0x338] sm:$0xf0]  ;;  %v13686_v28 = vld [vmem:[#allocation19] sm:$0xff]  ;;  %v9671_v63 = vld [vmem:[#allocation17 + $0x698] sm:$0xf] }
 0x500   :  { %3545 = vmatmul.bf16.vlgmr.msra.gmra.mxu0 %v13634_v1  ;;  %v12181_v25 = vld [vmem:[#allocation17 + $0x1c] sm:$0xf]  ;;  %v13688_v29 = vpop.f32.mrf.mxu2  ;;  %v9228_v34 = vor.u32 %v12277_v17, %v9225_v18 }
 0x501   :  { %3593 = vmatpush.bf16.msrb.mxu0 %v9068_v37  ;;  %v9324_v37 = vor.u32 %v12301_v22, %v9321_v23  ;;  %v12401_v23 = vld [vmem:[#allocation17 + $0x6f4] sm:$0xf0]  ;;  %v12269_v38 = vld [vmem:[#allocation17 + $0x2dc] sm:$0xf] }
 0x502   :  { %3568 = vmatpush.bf16.msrb.mxu2 %v9480_v49  ;;  %3529 = vmatpush.bf16.msrb.mxu3 %v9636_v2  ;;  %v9767_v49 = vld [vmem:[#allocation17 + $0x758] sm:$0xf]  ;;  %v12285_v2 = vld [vmem:[#allocation17 + $0x35c] sm:$0xf] }
 0x503   :  { %3556 = vmatpush.bf16.msra.mxu1 %v9160_v60  ;;  %v13679_v60 = vpop.eup %13006  ;;  %v9768_v0 = vor.u32 %v12417_v51, %v9767_v49  ;;  %v9260_v59 = vor.u32 %v12285_v2, %v9257_v3  ;;  %v12261_v2 = vld [vmem:[#allocation17 + $0x29c] sm:$0xf] }
 0x504   :  { %vm3667_vm4 = vweird.f32 %v13679_v60  ;;  %v9161_v3 = vld [vmem:[#allocation17 + $0x2b8] sm:$0xf0] }
 0x505   :  { %3594 = vmatpush.bf16.msrb.mxu0 %v9036_v53  ;;  %v8905_v53 = vld [vmem:[#allocation17 + $0xb8] sm:$0xf0]  ;;  %v13684_v15 = vpop.f32.mrf.mxu1  ;;  %vm13710_vm5 = vmor %vm3666_vm3, %vm3667_vm4 }
 0x506   :  { %3569 = vmatpush.bf16.msrb.mxu2 %v9448_v7  ;;  %3530 = vmatpush.bf16.msrb.mxu3 %v9604_v16  ;;  %v8908_v5 = vor.u32 %v12197_v52, %v8905_v53  ;;  %v9735_v7 = vld [vmem:[#allocation17 + $0x718] sm:$0xf]  ;;  %v12341_v52 = vld [vmem:[#allocation17 + $0x51c] sm:$0xf] }
 0x507   :  { %3557 = vmatpush.bf16.msra.mxu1 %v9128_v14  ;;  %v9545_v14 = vld [vmem:[#allocation17 + $0x5b8] sm:$0xf0]  ;;  %v9736_v16 = vor.u32 %v12409_v8, %v9735_v7  ;;  %v9639_v7 = vld [vmem:[#allocation17 + $0x658] sm:$0xf] }
 0x508   :  { %v9548_v22 = vor.u32 %v12357_v12, %v9545_v14  ;;  %v9481_v53 = vld [vmem:[#allocation17 + $0x538] sm:$0xf0]  ;;  %v12385_v8 = vld [vmem:[#allocation17 + $0x674] sm:$0xf0] }
 0x509   :  { %3595 = vmatpush.bf16.msrb.mxu0 %v9004_v10  ;;  %3531 = vmatmul.bf16.vlgmr.msrb.gmra.mxu3 %v13650_v55  ;;  %v3662_v10 = vmul.f32 %v13679_v60, %v13669_v13  ;;  %v9449_v12 = vld [vmem:[#allocation17 + $0x4f8] sm:$0xf0] }
 0x50a   :  { %3570 = vmatpush.bf16.msrb.mxu2 %v9416_v20  ;;  %3579 = vmatpush.bf16.msra.mxu3 %v9832_v21  ;;  %v9703_v20 = vld [vmem:[#allocation17 + $0x6d8] sm:$0xf]  ;;  %v8876_v21 = vor.u32 %v12189_v9, %v8873_v11  ;;  %v12333_v11 = vld [vmem:[#allocation17 + $0x4dc] sm:$0xf] }
 0x50b   :  { %3558 = vmatpush.bf16.msra.mxu1 %v9096_v50  ;;  %v3663_v30 = vsub.f32 1.0, %v3662_v10  ;;  %v12349_v50 = vld [vmem:[#allocation17 + $0x55c] sm:$0xf] }
 0x50c   :  { %v9516_v46 = vor.u32 %v12349_v50, %v9513_v33  ;;  %v13693_v51 = vpop.f32.mrf.mxu3  ;;  %v12253_v18 = vld [vmem:[#allocation17 + $0x25c] sm:$0xf] }
 0x50d   :  { %3596 = vmatpush.bf16.msrb.mxu0 %v8972_v27  ;;  %v8841_v27 = vld [vmem:[#allocation17 + $0x38] sm:$0xf0]  ;;  %v3664_v49 = vmul.f32 %v13679_v60, %v3663_v30  ;;  %v13701_v9 = vpop.f32.mrf.mxu1 }
 0x50e   :  { %3571 = vmatpush.bf16.msrb.mxu2 %v9384_v41  ;;  %3580 = vmatpush.bf16.msra.mxu3 %v9800_v42  ;;  %v9193_v41 = vld [vmem:[#allocation17 + $0x2f8] sm:$0xf0]  ;;  %v1905_v42 = vperm.slane %v13686_v28, 0  ;;  %v8844_v45 = vor.u32 %v12181_v25, %v8841_v27 }
 0x50f   :  { %3607 = vmatpush.bf16.msrb.mxu1 %v9324_v37  ;;  %v9704_v37 = vor.u32 %v12401_v23, %v9703_v20  ;;  %v9196_v57 = vor.u32 %v12269_v38, %v9193_v41  ;;  %v3665_v10 = vadd.f32 %v13679_v60, %v3664_v49  ;;  %v9129_v20 = vld [vmem:[#allocation17 + $0x278] sm:$0xf0]  ;;  %v12377_v23 = vld [vmem:[#allocation17 + $0x634] sm:$0xf0] }
 0x510   :  { %3559 = vmatmul.bf16.vlgmr.msra.gmra.mxu1 %v13637_v26  ;;  %v3211_v14 = vadd.f32 %v13671_v19, %v1905_v42  ;;  %v9640_v19 = vor.u32 %v12385_v8, %v9639_v7  ;;  %v12325_v25 = vld [vmem:[#allocation17 + $0x49c] sm:$0xf]  ;;  %v1906_v8 = vperm.slane %v13686_v28, 1 }
 0x511   :  { %3597 = vmatpush.bf16.msrb.mxu0 %v8940_v47  ;;  %v12393_v47 = vld [vmem:[#allocation17 + $0x6b4] sm:$0xf0]  ;;  %v3669_v27 = vsel %vm13710_vm5, %v13679_v60, %v3665_v10  ;;  %v9417_v50 = vld [vmem:[#allocation17 + $0x4b8] sm:$0xf0] }
 0x512   :  { %3572 = vmatpush.bf16.msrb.mxu2 %v9352_v32  ;;  %3581 = vmatpush.bf16.msra.mxu3 %v9768_v0  ;;  %v3672_v32 = vand.u32 2147483648, %v13669_v13  ;;  %v9672_v0 = vor.u32 %v12393_v47, %v9671_v63  ;;  %v12429_v33 = vld [vmem:[#allocation17 + $0x7dc] sm:$0xf] }
 0x513   :  { %3608 = vmatpush.bf16.msrb.mxu1 %v9292_v61  ;;  %v13696_v61 = vpop.f32.mrf.mxu0  ;;  %v12245_v38 = vld [vmem:[#allocation17 + $0x21c] sm:$0xf] }
 0x514   :  { %v3254_v30 = vpop.f32.mrf.mxu3  ;;  %v9385_v47 = vld [vmem:[#allocation17 + $0x478] sm:$0xf0] }
 0x515   :  { %3598 = vmatpush.bf16.msrb.mxu0 %v8908_v5  ;;  %3573 = vmatmul.bf16.vlgmr.msrb.gmra.mxu2 %v13641_v48  ;;  %v3213_v5 = vadd.f32 %v3212_v44, %v1905_v42  ;;  %v12421_v49 = vld [vmem:[#allocation17 + $0x79c] sm:$0xf]  ;;  %v3267_v44 = vadd.f32 %v13696_v61, %v1906_v8 }
 0x516   :  { %3621 = vmatpush.bf16.msra.mxu2 %v9580_v6  ;;  %3582 = vmatpush.bf16.msra.mxu3 %v9736_v16  ;;  %v9484_v6 = vor.u32 %v12341_v52, %v9481_v53  ;;  %v13714_v16 = vpop.f32.mrf.mxu2  ;;  %v9801_v52 = vld [vmem:[#allocation17 + $0x7b8] sm:$0xf0] }
 0x517   :  { %3609 = vmatpush.bf16.msrb.mxu1 %v9260_v59  ;;  %v9164_v59 = vor.u32 %v12261_v2, %v9161_v3  ;;  %v3227_v13 = vadd.f32 %v13684_v15, %v3213_v5  ;;  %v9804_v2 = vor.u32 %v12421_v49, %v9801_v52  ;;  %v9353_v7 = vld [vmem:[#allocation17 + $0x438] sm:$0xf0]  ;;  %v3281_v61 = vadd.f32 %v13701_v9, %v3267_v44 }
 0x518   :  { %v12413_v10 = vld [vmem:[#allocation17 + $0x75c] sm:$0xf] }
 0x519   :  { %3599 = vmatpush.bf16.msrb.mxu0 %v8876_v21  ;;  %v9452_v21 = vor.u32 %v12333_v11, %v9449_v12  ;;  %v3241_v41 = vadd.f32 %v13688_v29, %v3227_v13  ;;  %v9769_v11 = vld [vmem:[#allocation17 + $0x778] sm:$0xf0] }
 0x51a   :  { %3622 = vmatpush.bf16.msra.mxu2 %v9548_v22  ;;  %3583 = vmatpush.bf16.msra.mxu3 %v9704_v37  ;;  %v9607_v22 = vld [vmem:[#allocation17 + $0x618] sm:$0xf]  ;;  %v9132_v37 = vor.u32 %v12253_v18, %v9129_v20  ;;  %v12373_v49 = vld [vmem:[#allocation17 + $0x61c] sm:$0xf] }
 0x51b   :  { %3610 = vmatpush.bf16.msrb.mxu1 %v9228_v34  ;;  %v3225_v34 = vadd.f32 %v13674_v31, %v3211_v14  ;;  %v9608_v15 = vor.u32 %v12377_v23, %v9607_v22  ;;  %v3268_v63 = vpop.f32.mrf.mxu0  ;;  %v3255_v53 = vadd.f32 %v3254_v30, %v3241_v41  ;;  %v9772_v14 = vor.u32 %v12413_v10, %v9769_v11  ;;  %v12397_v22 = vld [vmem:[#allocation17 + $0x6dc] sm:$0xf] }
 0x51c   :  { %v3308_v5 = vpop.f32.mrf.mxu3  ;;  %v9641_v41 = vld [vmem:[#allocation17 + $0x678] sm:$0xf0] }
 0x51d   :  { %3600 = vmatpush.bf16.msrb.mxu0 %v8844_v45  ;;  %v9420_v45 = vor.u32 %v12325_v25, %v9417_v50  ;;  %v3239_v31 = vadd.f32 %v13676_v40, %v3225_v34  ;;  %v3816_v40 = vmax.f32 %v3255_v53, 0.0  ;;  %v3295_v25 = vadd.f32 %v13714_v16, %v3281_v61  ;;  %v9609_v52 = vld [vmem:[#allocation17 + $0x638] sm:$0xf0] }
 0x51e   :  { %3623 = vmatpush.bf16.msra.mxu2 %v9516_v46  ;;  %3584 = vmatpush.bf16.msra.mxu3 %v9672_v0  ;;  %v12317_v46 = vld [vmem:[#allocation17 + $0x45c] sm:$0xf]  ;;  %v3296_v3 = vpop.f32.mrf.mxu2  ;;  %v1907_v50 = vperm.slane %v13686_v28, 2 }
 0x51f   :  { %3611 = vmatpush.bf16.msrb.mxu1 %v9196_v57  ;;  %v3282_v57 = vpop.f32.mrf.mxu1  ;;  %v3253_v29 = vadd.f32 %v13693_v51, %v3239_v31  ;;  %v9388_v0 = vor.u32 %v12317_v46, %v9385_v47 }
 0x520   :  { %3601 = vmatmul.bf16.vlgmr.msrb.gmra.mxu0 %v13634_v1  ;;  %v9833_v1 = vld [vmem:[#allocation17 + $0x7f8] sm:$0xf0] }
 0x521   :  { %3690 = vmatpush.bf16.msra.mxu0 %v13582_v24  ;;  %v3673_v24 = vor.u32 1.1754944e-38, %v3672_v32  ;;  %v9836_v60 = vor.u32 %v12429_v33, %v9833_v1  ;;  %v3808_v51 = vmax.f32 %v3253_v29, 0.0  ;;  %v12389_v33 = vld [vmem:[#allocation17 + $0x69c] sm:$0xf] }
 0x522   :  { %3624 = vmatpush.bf16.msra.mxu2 %v9484_v6  ;;  %3585 = vmatpush.bf16.msra.mxu3 %v9640_v19  ;;  %v12309_v6 = vld [vmem:[#allocation17 + $0x41c] sm:$0xf] }
 0x523   :  { %3612 = vmatpush.bf16.msrb.mxu1 %v9164_v59  ;;  %v3674_v42 = vsel %vm13716_vm6, %v3673_v24, %v3669_v27  ;;  %v9356_v12 = vor.u32 %v12309_v6, %v9353_v7  ;;  %v3269_v59 = vadd.f32 %v3268_v63, %v1906_v8  ;;  %v3824_v17 = vpack.c.bf16 %v3816_v40, %v3808_v51  ;;  %v12405_v24 = vld [vmem:[#allocation17 + $0x71c] sm:$0xf]  ;;  %v3322_v18 = vpop.f32.mrf.mxu0 }
 0x524   :  { %v3675_v32 = vmul.f32 %v13644_v4, %v3674_v42  ;;  %v9737_v19 = vld [vmem:[#allocation17 + $0x738] sm:$0xf0]  ;;  %v1908_v7 = vperm.slane %v13686_v28, 3 }
 0x525   :  { %3763 = vmatpush.bf16.msrb.mxu0 %v13614_v54  ;;  %v9097_v54 = vld [vmem:[#allocation17 + $0x238] sm:$0xf0]  ;;  %v9740_v13 = vor.u32 %v12405_v24, %v9737_v19 }
 0x526   :  { %3625 = vmatpush.bf16.msra.mxu2 %v9452_v21  ;;  %v9100_v56 = vor.u32 %v12245_v38, %v9097_v54  ;;  %3586 = vmatpush.bf16.msra.mxu3 %v9608_v15  ;;  %v13735_v4 = vpack.c.bf16 %v3675_v32, %v3675_v32  ;;  %v3350_v23 = vpop.f32.mrf.mxu2  ;;  %v9673_v1 = vld [vmem:[#allocation17 + $0x6b8] sm:$0xf0]  ;;  %v3323_v38 = vadd.f32 %v3322_v18, %v1907_v50 }
 0x527   :  { %3613 = vmatpush.bf16.msrb.mxu1 %v9132_v37  ;;  %v3336_v20 = vpop.f32.mrf.mxu1  ;;  %v9676_v15 = vor.u32 %v12389_v33, %v9673_v1 }
 0x529   :  { %3587 = vmatmul.bf16.vlgmr.msra.gmra.mxu3 %v13650_v55 }
 0x52a   :  { %3626 = vmatpush.bf16.msra.mxu2 %v9420_v45  ;;  %3635 = vmatpush.bf16.msrb.mxu3 %v9836_v60  ;;  %v3337_v45 = vadd.f32 %v3336_v20, %v3323_v38 }
 0x52b   :  { %3614 = vmatpush.bf16.msrb.mxu1 %v9100_v56  ;;  %v3324_v9 = vpop.f32.mrf.mxu0 }
 0x52c   :  { %v3325_v42 = vadd.f32 %v3324_v9, %v1907_v50  ;;  %v3351_v47 = vadd.f32 %v3350_v23, %v3337_v45 }
 0x52e   :  { %3627 = vmatpush.bf16.msra.mxu2 %v9388_v0  ;;  %3636 = vmatpush.bf16.msrb.mxu3 %v9804_v2  ;;  %v3352_v60 = vpop.f32.mrf.mxu2 }
 0x52f   :  { %3712 = vmatpush.bf16.msra.mxu1 %v13592_v58  ;;  %v3283_v58 = vadd.f32 %v3282_v57, %v3269_v59  ;;  %v3338_v16 = vpop.f32.mrf.mxu1  ;;  %v9612_v57 = vor.u32 %v12373_v49, %v9609_v52  ;;  %v9920_v49 = vld [vmem:[#allocation20 + $0x80] sm:$0xf]  ;;  %v12452_v52 = vld [vmem:[#allocation20 + $0x8c] sm:$0xf0] }
 0x530   :  { %3615 = vmatmul.bf16.vlgmr.msrb.gmra.mxu1 %v13637_v26  ;;  %9838 = vmatmul.msk.bf16.vlgmr.msra.gmra.mxu0 %vm537_vm0, %v13735_v4  ;;  %v3310_v26 = vpop.f32.mrf.mxu3  ;;  %v3339_v63 = vadd.f32 %v3338_v16, %v3325_v42  ;;  %v9952_v16 = vld [vmem:[#allocation20 + $0xc0] sm:$0xf]  ;;  %v12460_v42 = vld [vmem:[#allocation20 + $0xcc] sm:$0xf0] }
 0x531   :  { %3839 = vmatpush.bf16.msra.mxu0 %v3824_v17  ;;  %v3297_v21 = vadd.f32 %v3296_v3, %v3283_v58 }
 0x532   :  { %3628 = vmatpush.bf16.msra.mxu2 %v9356_v12  ;;  %3637 = vmatpush.bf16.msrb.mxu3 %v9772_v14  ;;  %v3353_v31 = vadd.f32 %v3352_v60, %v3339_v63  ;;  %v9936_v60 = vld [vmem:[#allocation20 + $0xa0] sm:$0xf] }
 0x533   :  { %3776 = vmatpush.bf16.msrb.mxu1 %v13621_v39  ;;  %v9705_v39 = vld [vmem:[#allocation17 + $0x6f8] sm:$0xf0]  ;;  %v3311_v27 = vadd.f32 %v3310_v26, %v3297_v21  ;;  %v3378_v3 = vpop.f32.mrf.mxu0 }
 0x534   :  { %v9708_v30 = vor.u32 %v12397_v22, %v9705_v39 }
 0x535   :  { %3629 = vmatmul.bf16.vlgmr.msra.gmra.mxu2 %v13641_v48  ;;  %v3817_v34 = vmax.f32 %v3311_v27, 0.0  ;;  %v12381_v48 = vld [vmem:[#allocation17 + $0x65c] sm:$0xf] }
 0x536   :  { %3725 = vmatpush.bf16.msrb.mxu2 %v13586_v35  ;;  %3638 = vmatpush.bf16.msrb.mxu3 %v9740_v13  ;;  %v3309_v35 = vadd.f32 %v3308_v5, %v3295_v25  ;;  %v9644_v46 = vor.u32 %v12381_v48, %v9641_v41  ;;  %v1909_v13 = vperm.slane %v13686_v28, 4 }
 0x537   :  { %v3392_v5 = vpop.f32.mrf.mxu1 }
 0x538   :  { %v3364_v37 = vpop.f32.mrf.mxu3  ;;  %v3809_v54 = vmax.f32 %v3309_v35, 0.0  ;;  %v3406_v6 = vpop.f32.mrf.mxu2 }
 0x539   :  { %v3365_v53 = vadd.f32 %v3364_v37, %v3351_v47  ;;  %v9968_v37 = vld [vmem:[#allocation20 + $0xe0] sm:$0xf] }
 0x53a   :  { %3789 = vmatpush.bf16.msra.mxu2 %v13623_v43  ;;  %3639 = vmatpush.bf16.msrb.mxu3 %v9708_v30  ;;  %v3825_v43 = vpack.c.bf16 %v3817_v34, %v3809_v54 }
 0x53b   :  { %v3810_v29 = vmax.f32 %v3365_v53, 0.0 }
 0x53e   :  { %3640 = vmatpush.bf16.msrb.mxu3 %v9676_v15  ;;  %v12464_v15 = vld [vmem:[#allocation20 + $0xec] sm:$0xf0] }
 0x53f   :  { %v3394_v40 = vpop.f32.mrf.mxu1  ;;  %v9969_v48 = vor.u32 %v12464_v15, %v9968_v37  ;;  %v10064_v37 = vld [vmem:[#allocation20 + $0x1a0] sm:$0xf]  ;;  %v12488_v15 = vld [vmem:[#allocation20 + $0x1ac] sm:$0xf0] }
 0x540   :  { %9839 = vmatmul.msk.bf16.vlgmr.msra.gmra.mxu1 %vm537_vm0, %v13735_v4  ;;  %9842 = vmatmul.msk.bf16.vlgmr.msrb.gmra.mxu0 %vm537_vm0, %v13735_v4  ;;  %v3366_v56 = vpop.f32.mrf.mxu3  ;;  %v3408_v11 = vpop.f32.mrf.mxu2 }
 0x541   :  { %3852 = vmatpush.bf16.msra.mxu1 %v3825_v43  ;;  %v3367_v32 = vadd.f32 %v3366_v56, %v3353_v31  ;;  %v9953_v43 = vor.u32 %v12460_v42, %v9952_v16  ;;  %v9921_v56 = vor.u32 %v12452_v52, %v9920_v49  ;;  %v10065_v42 = vor.u32 %v12488_v15, %v10064_v37  ;;  %v10032_v52 = vld [vmem:[#allocation20 + $0x160] sm:$0xf] }
 0x542   :  { %3641 = vmatpush.bf16.msrb.mxu3 %v9644_v46  ;;  %v12456_v46 = vld [vmem:[#allocation20 + $0xac] sm:$0xf0] }
 0x543   :  { %v3818_v0 = vmax.f32 %v3367_v32, 0.0  ;;  %v9937_v47 = vor.u32 %v12456_v46, %v9936_v60  ;;  %v12448_v32 = vld [vmem:[#allocation20 + $0x6c] sm:$0xf0]  ;;  %v10432_v46 = vld [vmem:[#allocation20 + $0x480] sm:$0xf] }
 0x544   :  { %v12484_v60 = vld [vmem:[#allocation20 + $0x18c] sm:$0xf0] }
 0x545   :  { %9840 = vmatmul.msk.bf16.vlgmr.msrb.gmra.mxu2 %vm537_vm0, %v13735_v4  ;;  %v3826_v2 = vpack.c.bf16 %v3818_v0, %v3810_v29  ;;  %v1910_v29 = vperm.slane %v13686_v28, 5 }
 0x546   :  { %3642 = vmatpush.bf16.msrb.mxu3 %v9612_v57  ;;  %v9904_v57 = vld [vmem:[#allocation20 + $0x60] sm:$0xf] }
 0x547   :  { %3865 = vmatpush.bf16.msrb.mxu2 %v3826_v2  ;;  %v9905_v0 = vor.u32 %v12448_v32, %v9904_v57  ;;  %v12576_v57 = vld [vmem:[#allocation20 + $0x46c] sm:$0xf0]  ;;  %v1911_v32 = vperm.slane %v13686_v28, 6 }
 0x549   :  { %3643 = vmatmul.bf16.vlgmr.msrb.gmra.mxu3 %v13650_v55  ;;  %v3379_v55 = vadd.f32 %v3378_v3, %v1908_v7 }
 0x54a   :  { %3738 = vmatpush.bf16.msra.mxu3 %v13588_v36  ;;  %v3380_v36 = vpop.f32.mrf.mxu0 }
 0x54b   :  { %v3393_v10 = vadd.f32 %v3392_v5, %v3379_v55  ;;  %v9888_v5 = vld [vmem:[#allocation20 + $0x40] sm:$0xf] }
 0x54c   :  { %v3420_v8 = vpop.f32.mrf.mxu3 }
 0x54d   :  { %v3407_v12 = vadd.f32 %v3406_v6, %v3393_v10  ;;  %v3448_v20 = vpop.f32.mrf.mxu1  ;;  %v12444_v6 = vld [vmem:[#allocation20 + $0x4c] sm:$0xf0]  ;;  %v9872_v10 = vld [vmem:[#allocation20 + $0x20] sm:$0xf] }
 0x54e   :  { %3802 = vmatpush.bf16.msrb.mxu3 %v13630_v62  ;;  %v3381_v62 = vadd.f32 %v3380_v36, %v1908_v7  ;;  %v9889_v55 = vor.u32 %v12444_v6, %v9888_v5 }
 0x54f   :  { %v3421_v44 = vadd.f32 %v3420_v8, %v3407_v12 }
 0x550   :  { %9843 = vmatmul.msk.bf16.vlgmr.msrb.gmra.mxu1 %vm537_vm0, %v13735_v4  ;;  %9846 = vmatmul.msk.bf16.vlgmr.msra.gmra.mxu0 %vm537_vm0, %v13735_v4  ;;  %v3395_v51 = vadd.f32 %v3394_v40, %v3381_v62 }
 0x551   :  { %v3811_v24 = vmax.f32 %v3421_v44, 0.0 }
 0x552   :  { %v3409_v14 = vadd.f32 %v3408_v11, %v3395_v51  ;;  %v3434_v58 = vpop.f32.mrf.mxu0  ;;  %v12440_v11 = vld [vmem:[#allocation20 + $0x2c] sm:$0xf0] }
 0x553   :  { %v3435_v22 = vadd.f32 %v3434_v58, %v1909_v13  ;;  %v10096_v58 = vld [vmem:[#allocation20 + $0x1e0] sm:$0xf] }
 0x554   :  { %v3422_v59 = vpop.f32.mrf.mxu3 }
 0x555   :  { %9844 = vmatmul.msk.bf16.vlgmr.msra.gmra.mxu2 %vm537_vm0, %v13735_v4  ;;  %v3423_v17 = vadd.f32 %v3422_v59, %v3409_v14  ;;  %v3450_v39 = vpop.f32.mrf.mxu1  ;;  %v3449_v25 = vadd.f32 %v3448_v20, %v3435_v22  ;;  %v9873_v59 = vor.u32 %v12440_v11, %v9872_v10 }
 0x557   :  { %v3819_v19 = vmax.f32 %v3423_v17, 0.0 }
 0x558   :  { %v3462_v26 = vpop.f32.mrf.mxu2 }
 0x559   :  { %9841 = vmatmul.msk.bf16.vlgmr.msra.gmra.mxu3 %vm537_vm0, %v13735_v4  ;;  %v3827_v18 = vpack.c.bf16 %v3819_v19, %v3811_v24  ;;  %v3463_v50 = vadd.f32 %v3462_v26, %v3449_v25  ;;  %v9856_v19 = vld [vmem:[#allocation20] sm:$0xf]  ;;  %v12496_v26 = vld [vmem:[#allocation20 + $0x1ec] sm:$0xf0] }
 0x55a   :  { %v3436_v61 = vpop.f32.mrf.mxu0  ;;  %v10097_v25 = vor.u32 %v12496_v26, %v10096_v58 }
 0x55b   :  { %3878 = vmatpush.bf16.msra.mxu3 %v3827_v18  ;;  %v3437_v23 = vadd.f32 %v3436_v61, %v1909_v13  ;;  %v12436_v18 = vld [vmem:[#allocation20 + $0xc] sm:$0xf0]  ;;  %v10480_v13 = vld [vmem:[#allocation20 + $0x4e0] sm:$0xf] }
 0x55c   :  { %v12592_v61 = vld [vmem:[#allocation20 + $0x4ec] sm:$0xf0] }
 0x55d   :  { %v3451_v30 = vadd.f32 %v3450_v39, %v3437_v23  ;;  %v9857_v39 = vor.u32 %v12436_v18, %v9856_v19  ;;  %v12568_v19 = vld [vmem:[#allocation20 + $0x42c] sm:$0xf0] }
 0x560   :  { %9847 = vmatmul.msk.bf16.vlgmr.msra.gmra.mxu1 %vm537_vm0, %v13735_v4  ;;  %v3464_v27 = vpop.f32.mrf.mxu2 }
 0x561   :  { %v3465_v33 = vadd.f32 %v3464_v27, %v3451_v30  ;;  %v10481_v27 = vor.u32 %v12592_v61, %v10480_v13  ;;  %v10080_v30 = vld [vmem:[#allocation20 + $0x1c0] sm:$0xf] }
 0x562   :  { %v3490_v35 = vpop.f32.mrf.mxu0  ;;  %v9984_v61 = vld [vmem:[#allocation20 + $0x100] sm:$0xf] }
 0x563   :  { %v3491_v7 = vadd.f32 %v3490_v35, %v1910_v29  ;;  %v12492_v35 = vld [vmem:[#allocation20 + $0x1cc] sm:$0xf0] }
 0x565   :  { %9848 = vmatmul.msk.bf16.vlgmr.msrb.gmra.mxu2 %vm537_vm0, %v13735_v4 }
 0x569   :  { %9845 = vmatmul.msk.bf16.vlgmr.msrb.gmra.mxu3 %vm537_vm0, %v13735_v4 }
 0x56a   :  { %v3492_v45 = vpop.f32.mrf.mxu0 }
 0x56b   :  { %v3493_v36 = vadd.f32 %v3492_v45, %v1910_v29 }
 0x56c   :  { %v3476_v21 = vpop.f32.mrf.mxu3 }
 0x56d   :  { %v3477_v1 = vadd.f32 %v3476_v21, %v3463_v50  ;;  %v3504_v63 = vpop.f32.mrf.mxu1 }
 0x56e   :  { %v3505_v8 = vadd.f32 %v3504_v63, %v3491_v7  ;;  %v12580_v63 = vld [vmem:[#allocation20 + $0x48c] sm:$0xf0] }
 0x56f   :  { %v3812_v38 = vmax.f32 %v3477_v1, 0.0  ;;  %v12588_v1 = vld [vmem:[#allocation20 + $0x4cc] sm:$0xf0]  ;;  %v10433_v49 = vor.u32 %v12580_v63, %v10432_v46  ;;  %v10592_v46 = vld [vmem:[#allocation20 + $0x5c0] sm:$0xf] }
 0x570   :  { %v12476_v7 = vld [vmem:[#allocation20 + $0x14c] sm:$0xf0] }
 0x574   :  { %v3478_v34 = vpop.f32.mrf.mxu3 }
 0x575   :  { %v3479_v9 = vadd.f32 %v3478_v34, %v3465_v33  ;;  %v3506_v2 = vpop.f32.mrf.mxu1  ;;  %v10464_v33 = vld [vmem:[#allocation20 + $0x4c0] sm:$0xf]  ;;  %v10081_v34 = vor.u32 %v12492_v35, %v10080_v30  ;;  %v12528_v35 = vld [vmem:[#allocation20 + $0x2ec] sm:$0xf0] }
 0x576   :  { %v3507_v51 = vadd.f32 %v3506_v2, %v3493_v36  ;;  %v10400_v36 = vld [vmem:[#allocation20 + $0x440] sm:$0xf] }
 0x577   :  { %v3820_v54 = vmax.f32 %v3479_v9, 0.0  ;;  %v10465_v9 = vor.u32 %v12588_v1, %v10464_v33  ;;  %v10608_v33 = vld [vmem:[#allocation20 + $0x5e0] sm:$0xf]  ;;  %v12624_v1 = vld [vmem:[#allocation20 + $0x5ec] sm:$0xf0] }
 0x578   :  { %v3518_v31 = vpop.f32.mrf.mxu2 }
 0x579   :  { %9849 = vmatmul.msk.bf16.vlgmr.msra.gmra.mxu3 %vm537_vm0, %v13735_v4  ;;  %v3828_v41 = vpack.c.bf16 %v3820_v54, %v3812_v38  ;;  %v3519_v12 = vadd.f32 %v3518_v31, %v3505_v8  ;;  %v10448_v38 = vld [vmem:[#allocation20 + $0x4a0] sm:$0xf]  ;;  %v12584_v54 = vld [vmem:[#allocation20 + $0x4ac] sm:$0xf0] }
 0x57a   :  { %v10449_v45 = vor.u32 %v12584_v54, %v10448_v38  ;;  %v12480_v31 = vld [vmem:[#allocation20 + $0x16c] sm:$0xf0] }
 0x57b   :  { %3891 = vmatpush.bf16.msrb.mxu0 %v3828_v41  ;;  %v12572_v8 = vld [vmem:[#allocation20 + $0x44c] sm:$0xf0] }
 0x57d   :  { %v13778_v53 = vpop.f32.mrf.mxu0 }
 0x57e   :  { %9850 = vmatmul.msk.bf16.vlgmr.msrb.gmra.mxu0 %vm537_vm0, %v13735_v4 }
 0x57f   :  { %7034 = vmatpush.bf16.msra.mxu0 %v9969_v48 }
 0x580   :  { %v3520_v40 = vpop.f32.mrf.mxu2 }
 0x581   :  { %v3521_v14 = vadd.f32 %v3520_v40, %v3507_v51  ;;  %v3547_v40 = vadd.f32 %v13778_v53, %v1911_v32 }
 0x583   :  { %7035 = vmatpush.bf16.msra.mxu0 %v9953_v43  ;;  %v10048_v43 = vld [vmem:[#allocation20 + $0x180] sm:$0xf] }
 0x585   :  { %v13781_v62 = vpop.f32.mrf.mxu0 }
 0x586   :  { %v3549_v11 = vadd.f32 %v13781_v62, %v1911_v32 }
 0x587   :  { %7036 = vmatpush.bf16.msra.mxu0 %v9937_v47  ;;  %v10049_v47 = vor.u32 %v12484_v60, %v10048_v43  ;;  %v10208_v43 = vld [vmem:[#allocation20 + $0x2c0] sm:$0xf]  ;;  %v12524_v60 = vld [vmem:[#allocation20 + $0x2cc] sm:$0xf0] }
 0x58b   :  { %7037 = vmatpush.bf16.msra.mxu0 %v9921_v56  ;;  %v10416_v56 = vld [vmem:[#allocation20 + $0x460] sm:$0xf] }
 0x58c   :  { %v3532_v3 = vpop.f32.mrf.mxu3  ;;  %v10417_v2 = vor.u32 %v12576_v57, %v10416_v56  ;;  %v10209_v57 = vor.u32 %v12524_v60, %v10208_v43 }
 0x58d   :  { %v3533_v44 = vadd.f32 %v3532_v3, %v3519_v12  ;;  %v13783_v17 = vpop.f32.mrf.mxu1  ;;  %v10016_v3 = vld [vmem:[#allocation20 + $0x140] sm:$0xf] }
 0x58e   :  { %v3561_v51 = vadd.f32 %v13783_v17, %v3547_v40  ;;  %v10017_v12 = vor.u32 %v12476_v7, %v10016_v3  ;;  %v10576_v7 = vld [vmem:[#allocation20 + $0x5a0] sm:$0xf]  ;;  %v12712_v40 = vld [vmem:[#allocation20 + $0x8ac] sm:$0xf0] }
 0x58f   :  { %7038 = vmatpush.bf16.msra.mxu0 %v9905_v0  ;;  %v3813_v21 = vmax.f32 %v3533_v44, 0.0  ;;  %v10033_v0 = vor.u32 %v12480_v31, %v10032_v52  ;;  %v10000_v44 = vld [vmem:[#allocation20 + $0x120] sm:$0xf]  ;;  %v12716_v52 = vld [vmem:[#allocation20 + $0x8cc] sm:$0xf0] }
 0x593   :  { %7039 = vmatpush.bf16.msra.mxu0 %v9889_v55 }
 0x594   :  { %v3534_v24 = vpop.f32.mrf.mxu3 }
 0x595   :  { %v3535_v20 = vadd.f32 %v3534_v24, %v3521_v14  ;;  %v3562_v48 = vpop.f32.mrf.mxu1  ;;  %v10401_v14 = vor.u32 %v12572_v8, %v10400_v36  ;;  %v10384_v24 = vld [vmem:[#allocation20 + $0x420] sm:$0xf]  ;;  %v12616_v36 = vld [vmem:[#allocation20 + $0x5ac] sm:$0xf0] }
 0x596   :  { %v3563_v18 = vadd.f32 %v3562_v48, %v3549_v11  ;;  %v10385_v62 = vor.u32 %v12568_v19, %v10384_v24  ;;  %v10960_v8 = vld [vmem:[#allocation20 + $0x8a0] sm:$0xf]  ;;  %v10577_v11 = vor.u32 %v12616_v36, %v10576_v7  ;;  %v12612_v24 = vld [vmem:[#allocation20 + $0x58c] sm:$0xf0] }
 0x597   :  { %v3821_v22 = vmax.f32 %v3535_v20, 0.0  ;;  %7040 = vmatpush.bf16.msra.mxu0 %v9873_v59  ;;  %v12472_v59 = vld [vmem:[#allocation20 + $0x12c] sm:$0xf0]  ;;  %v10944_v19 = vld [vmem:[#allocation20 + $0x880] sm:$0xf] }
 0x598   :  { %v3574_v41 = vpop.f32.mrf.mxu2  ;;  %v10001_v53 = vor.u32 %v12472_v59, %v10000_v44  ;;  %v10560_v44 = vld [vmem:[#allocation20 + $0x580] sm:$0xf]  ;;  %v12500_v36 = vld [vmem:[#allocation20 + $0x20c] sm:$0xf0] }
 0x599   :  { %v3829_v50 = vpack.c.bf16 %v3821_v22, %v3813_v21  ;;  %v3575_v58 = vadd.f32 %v3574_v41, %v3561_v51  ;;  %v12468_v22 = vld [vmem:[#allocation20 + $0x10c] sm:$0xf0]  ;;  %v10961_v51 = vor.u32 %v12712_v40, %v10960_v8  ;;  %v10112_v7 = vld [vmem:[#allocation20 + $0x200] sm:$0xf] }
 0x59a   :  { %v9985_v38 = vor.u32 %v12468_v22, %v9984_v61  ;;  %v12512_v61 = vld [vmem:[#allocation20 + $0x26c] sm:$0xf0]  ;;  %v10496_v8 = vld [vmem:[#allocation20 + $0x500] sm:$0xf] }
 0x59b   :  { %3904 = vmatpush.bf16.msrb.mxu1 %v3829_v50  ;;  %7041 = vmatpush.bf16.msra.mxu0 %v9857_v39  ;;  %v10368_v39 = vld [vmem:[#allocation20 + $0x400] sm:$0xf]  ;;  %v12608_v22 = vld [vmem:[#allocation20 + $0x56c] sm:$0xf0] }
 0x59c   :  { %v10224_v50 = vld [vmem:[#allocation20 + $0x2e0] sm:$0xf] }
 0x59d   :  { %v13785_v23 = vpop.f32.mrf.mxu0  ;;  %v10225_v48 = vor.u32 %v12528_v35, %v10224_v50 }
 0x59e   :  { %9851 = vmatmul.msk.bf16.vlgmr.msrb.gmra.mxu1 %vm537_vm0, %v13735_v4 }
 0x59f   :  { %7047 = vmatpush.bf16.msra.mxu1 %v10097_v25  ;;  %7086 = vmatpush.bf16.msrb.mxu0 %v10481_v27  ;;  %v12564_v25 = vld [vmem:[#allocation20 + $0x40c] sm:$0xf0] }
 0x5a0   :  { %v3576_v10 = vpop.f32.mrf.mxu2  ;;  %v10369_v54 = vor.u32 %v12564_v25, %v10368_v39  ;;  %v10928_v39 = vld [vmem:[#allocation20 + $0x860] sm:$0xf]  ;;  %v12704_v25 = vld [vmem:[#allocation20 + $0x86c] sm:$0xf0] }
 0x5a1   :  { %v3577_v26 = vadd.f32 %v3576_v10, %v3563_v18  ;;  %v12708_v18 = vld [vmem:[#allocation20 + $0x88c] sm:$0xf0] }
 0x5a3   :  { %7048 = vmatpush.bf16.msra.mxu1 %v10081_v34  ;;  %7087 = vmatpush.bf16.msrb.mxu0 %v10465_v9  ;;  %v10992_v34 = vld [vmem:[#allocation20 + $0x8e0] sm:$0xf]  ;;  %v12720_v9 = vld [vmem:[#allocation20 + $0x8ec] sm:$0xf0] }
 0x5a5   :  { %v13789_v16 = vpop.f32.mrf.mxu0 }
 0x5a7   :  { %7049 = vmatpush.bf16.msra.mxu1 %v10065_v42  ;;  %7088 = vmatpush.bf16.msrb.mxu0 %v10449_v45  ;;  %v10609_v42 = vor.u32 %v12624_v1, %v10608_v33  ;;  %v10993_v45 = vor.u32 %v12720_v9, %v10992_v34  ;;  %v10929_v33 = vor.u32 %v12704_v25, %v10928_v39  ;;  %v10144_v1 = vld [vmem:[#allocation20 + $0x240] sm:$0xf]  ;;  %v12508_v34 = vld [vmem:[#allocation20 + $0x24c] sm:$0xf0] }
 0x5a8   :  { %v10528_v9 = vld [vmem:[#allocation20 + $0x540] sm:$0xf] }
 0x5ab   :  { %7050 = vmatpush.bf16.msra.mxu1 %v10049_v47  ;;  %7089 = vmatpush.bf16.msrb.mxu0 %v10433_v49  ;;  %v12620_v47 = vld [vmem:[#allocation20 + $0x5cc] sm:$0xf0]  ;;  %v10976_v49 = vld [vmem:[#allocation20 + $0x8c0] sm:$0xf] }
 0x5ac   :  { %v3588_v6 = vpop.f32.mrf.mxu3  ;;  %v10977_v3 = vor.u32 %v12716_v52, %v10976_v49  ;;  %v12600_v49 = vld [vmem:[#allocation20 + $0x52c] sm:$0xf0] }
 0x5ad   :  { %v13792_v29 = vpop.f32.mrf.mxu1  ;;  %v3692_v5 = vpop.f32.mrf.mxu0  ;;  %v3589_v13 = vadd.f32 %v3588_v6, %v3575_v58  ;;  %v12520_v6 = vld [vmem:[#allocation20 + $0x2ac] sm:$0xf0] }
 0x5ae   :  { %v13794_v55 = vpack.c.bf16 %v3692_v5, %v3692_v5  ;;  %v10192_v5 = vld [vmem:[#allocation20 + $0x2a0] sm:$0xf] }
 0x5af   :  { %7051 = vmatpush.bf16.msra.mxu1 %v10033_v0  ;;  %7090 = vmatpush.bf16.msrb.mxu0 %v10417_v2  ;;  %v3814_v37 = vmax.f32 %v3589_v13, 0.0  ;;  %v10593_v2 = vor.u32 %v12620_v47, %v10592_v46  ;;  %v10193_v10 = vor.u32 %v12520_v6, %v10192_v5  ;;  %v10945_v13 = vor.u32 %v12708_v18, %v10944_v19  ;;  %v10512_v47 = vld [vmem:[#allocation20 + $0x520] sm:$0xf]  ;;  %v12752_v18 = vld [vmem:[#allocation20 + $0x9ec] sm:$0xf0] }
 0x5b0   :  { %7042 = vmatmul.bf16.vlgmr.msra.gmra.mxu0 %v13794_v55  ;;  %v11120_v19 = vld [vmem:[#allocation20 + $0x9e0] sm:$0xf] }
 0x5b3   :  { %7052 = vmatpush.bf16.msra.mxu1 %v10017_v12  ;;  %7091 = vmatpush.bf16.msrb.mxu0 %v10401_v14  ;;  %v10176_v12 = vld [vmem:[#allocation20 + $0x280] sm:$0xf]  ;;  %v12516_v14 = vld [vmem:[#allocation20 + $0x28c] sm:$0xf0] }
 0x5b4   :  { %v3590_v21 = vpop.f32.mrf.mxu3 }
 0x5b5   :  { %v13800_v20 = vpop.f32.mrf.mxu1  ;;  %v3694_v17 = vpop.f32.mrf.mxu0  ;;  %v3591_v27 = vadd.f32 %v3590_v21, %v3577_v26  ;;  %v10561_v26 = vor.u32 %v12612_v24, %v10560_v44  ;;  %v12560_v44 = vld [vmem:[#allocation20 + $0x3ec] sm:$0xf0]  ;;  %v10113_v24 = vor.u32 %v12500_v36, %v10112_v7  ;;  %v10688_v7 = vld [vmem:[#allocation20 + $0x680] sm:$0xf] }
 0x5b6   :  { %v10544_v17 = vld [vmem:[#allocation20 + $0x560] sm:$0xf] }
 0x5b7   :  { %v3822_v15 = vmax.f32 %v3591_v27, 0.0  ;;  %7053 = vmatpush.bf16.msra.mxu1 %v10001_v53  ;;  %7092 = vmatpush.bf16.msrb.mxu0 %v10385_v62  ;;  %v10177_v53 = vor.u32 %v12516_v14, %v10176_v12  ;;  %v10160_v62 = vld [vmem:[#allocation20 + $0x260] sm:$0xf]  ;;  %v1912_v27 = vperm.slane %v13686_v28, 7  ;;  %v10545_v35 = vor.u32 %v12608_v22, %v10544_v17  ;;  %v12692_v12 = vld [vmem:[#allocation20 + $0x80c] sm:$0xf0] }
 0x5b8   :  { %v13802_v30 = vpop.f32.mrf.mxu2  ;;  %v10161_v50 = vor.u32 %v12512_v61, %v10160_v62  ;;  %v10145_v28 = vor.u32 %v12508_v34, %v10144_v1  ;;  %v12848_v62 = vld [vmem:[#allocation20 + $0xcec] sm:$0xf0] }
 0x5b9   :  { %v3830_v41 = vpack.c.bf16 %v3822_v15, %v3814_v37  ;;  %v12652_v34 = vld [vmem:[#allocation20 + $0x6cc] sm:$0xf0] }
 0x5bb   :  { %3917 = vmatpush.bf16.msra.mxu2 %v3830_v41  ;;  %7054 = vmatpush.bf16.msra.mxu1 %v9985_v38  ;;  %v12604_v38 = vld [vmem:[#allocation20 + $0x54c] sm:$0xf0]  ;;  %v3603_v41 = vadd.f32 %v13785_v23, %v1912_v27 }
 0x5bc   :  { %7093 = vmatpush.bf16.msrb.mxu0 %v10369_v54  ;;  %v10912_v54 = vld [vmem:[#allocation20 + $0x840] sm:$0xf]  ;;  %v10529_v60 = vor.u32 %v12604_v38, %v10528_v9 }
 0x5bd   :  { %v3714_v63 = vpop.f32.mrf.mxu1  ;;  %v3765_v56 = vpop.f32.mrf.mxu0  ;;  %v3617_v43 = vadd.f32 %v13792_v29, %v3603_v41  ;;  %v11104_v9 = vld [vmem:[#allocation20 + $0x9c0] sm:$0xf] }
 0x5be   :  { %v13804_v31 = vpack.c.bf16 %v3714_v63, %v3714_v63  ;;  %v13806_v32 = vpack.c.bf16 %v3765_v56, %v3765_v56  ;;  %9852 = vmatmul.msk.bf16.vlgmr.msra.gmra.mxu2 %vm537_vm0, %v13735_v4  ;;  %v12504_v63 = vld [vmem:[#allocation20 + $0x22c] sm:$0xf0]  ;;  %v10896_v56 = vld [vmem:[#allocation20 + $0x820] sm:$0xf] }
 0x5bf   :  { %7060 = vmatpush.bf16.msrb.mxu2 %v10225_v48  ;;  %7099 = vmatpush.bf16.msrb.mxu1 %v10609_v42  ;;  %v12700_v48 = vld [vmem:[#allocation20 + $0x84c] sm:$0xf0]  ;;  %v3605_v42 = vadd.f32 %v13789_v16, %v1912_v27  ;;  %v3631_v23 = vadd.f32 %v13802_v30, %v3617_v43  ;;  %v10352_v30 = vld [vmem:[#allocation20 + $0x3e0] sm:$0xf]  ;;  %v11121_v27 = vor.u32 %v12752_v18, %v11120_v19 }
 0x5c0   :  { %7138 = vmatpush.bf16.msra.mxu0 %v10993_v45  ;;  %v13808_v0 = vpop.f32.mrf.mxu2  ;;  %7055 = vmatmul.bf16.vlgmr.msra.gmra.mxu1 %v13804_v31  ;;  %v10128_v45 = vld [vmem:[#allocation20 + $0x220] sm:$0xf]  ;;  %v10913_v46 = vor.u32 %v12700_v48, %v10912_v54  ;;  %v10353_v22 = vor.u32 %v12560_v44, %v10352_v30  ;;  %v12844_v48 = vld [vmem:[#allocation20 + $0xccc] sm:$0xf0] }
 0x5c1   :  { %7094 = vmatmul.bf16.vlgmr.msrb.gmra.mxu0 %v13806_v32  ;;  %v10129_v16 = vor.u32 %v12504_v63, %v10128_v45  ;;  %v11488_v54 = vld [vmem:[#allocation20 + $0xcc0] sm:$0xf]  ;;  %v12640_v18 = vld [vmem:[#allocation20 + $0x66c] sm:$0xf0] }
 0x5c2   :  { %v10320_v63 = vld [vmem:[#allocation20 + $0x3a0] sm:$0xf] }
 0x5c3   :  { %7061 = vmatpush.bf16.msrb.mxu2 %v10209_v57  ;;  %7100 = vmatpush.bf16.msrb.mxu1 %v10593_v2  ;;  %v12696_v57 = vld [vmem:[#allocation20 + $0x82c] sm:$0xf0]  ;;  %v3619_v2 = vadd.f32 %v13800_v20, %v3605_v42 }
 0x5c4   :  { %7139 = vmatpush.bf16.msra.mxu0 %v10977_v3  ;;  %v10513_v3 = vor.u32 %v12600_v49, %v10512_v47  ;;  %v10897_v6 = vor.u32 %v12696_v57, %v10896_v56  ;;  %v12552_v47 = vld [vmem:[#allocation20 + $0x3ac] sm:$0xf0]  ;;  %v10704_v49 = vld [vmem:[#allocation20 + $0x6a0] sm:$0xf] }
 0x5c5   :  { %v3716_v59 = vpop.f32.mrf.mxu1  ;;  %v3767_v58 = vpop.f32.mrf.mxu0  ;;  %v3633_v5 = vadd.f32 %v13808_v0, %v3619_v2  ;;  %v12656_v0 = vld [vmem:[#allocation20 + $0x6ec] sm:$0xf0]  ;;  %v11088_v56 = vld [vmem:[#allocation20 + $0x9a0] sm:$0xf] }
 0x5c6   :  { %v10736_v59 = vld [vmem:[#allocation20 + $0x6e0] sm:$0xf]  ;;  %v12744_v57 = vld [vmem:[#allocation20 + $0x9ac] sm:$0xf0] }
 0x5c7   :  { %7062 = vmatpush.bf16.msrb.mxu2 %v10193_v10  ;;  %7101 = vmatpush.bf16.msrb.mxu1 %v10577_v11  ;;  %v12596_v11 = vld [vmem:[#allocation20 + $0x50c] sm:$0xf0]  ;;  %v10737_v25 = vor.u32 %v12656_v0, %v10736_v59  ;;  %v11472_v2 = vld [vmem:[#allocation20 + $0xca0] sm:$0xf] }
 0x5c8   :  { %7140 = vmatpush.bf16.msra.mxu0 %v10961_v51  ;;  %v13814_v21 = vpop.f32.mrf.mxu2  ;;  %v10880_v51 = vld [vmem:[#allocation20 + $0x800] sm:$0xf] }
 0x5c9   :  { %v10881_v17 = vor.u32 %v12692_v12, %v10880_v51  ;;  %v13829_v38 = vpack.c.bf16 %v13814_v21, %v13814_v21  ;;  %v12836_v51 = vld [vmem:[#allocation20 + $0xc8c] sm:$0xf0]  ;;  %v10288_v59 = vld [vmem:[#allocation20 + $0x360] sm:$0xf] }
 0x5ca   :  { %v10672_v0 = vld [vmem:[#allocation20 + $0x660] sm:$0xf] }
 0x5cb   :  { %7063 = vmatpush.bf16.msrb.mxu2 %v10177_v53  ;;  %7102 = vmatpush.bf16.msrb.mxu1 %v10561_v26  ;;  %v10497_v26 = vor.u32 %v12596_v11, %v10496_v8  ;;  %v12644_v8 = vld [vmem:[#allocation20 + $0x68c] sm:$0xf0]  ;;  %v11456_v11 = vld [vmem:[#allocation20 + $0xc80] sm:$0xf] }
 0x5cc   :  { %7141 = vmatpush.bf16.msra.mxu0 %v10945_v13  ;;  %v3644_v15 = vpop.f32.mrf.mxu3  ;;  %v11504_v13 = vld [vmem:[#allocation20 + $0xce0] sm:$0xf]  ;;  %v10689_v30 = vor.u32 %v12644_v8, %v10688_v7  ;;  %v11457_v19 = vor.u32 %v12836_v51, %v11456_v11  ;;  %v12724_v8 = vld [vmem:[#allocation20 + $0x90c] sm:$0xf0] }
 0x5cd   :  { %v13817_v37 = vpop.f32.mrf.mxu1  ;;  %v3645_v29 = vadd.f32 %v3644_v15, %v3631_v23  ;;  %v3841_v20 = vpop.f32.mrf.mxu0  ;;  %v11505_v1 = vor.u32 %v12848_v62, %v11504_v13  ;;  %v12748_v15 = vld [vmem:[#allocation20 + $0x9cc] sm:$0xf0]  ;;  %v11008_v7 = vld [vmem:[#allocation20 + $0x900] sm:$0xf] }
 0x5ce   :  { %v13833_v41 = vpack.c.bf16 %v13817_v37, %v13817_v37  ;;  %v13839_v43 = vpack.c.bf16 %v3841_v20, %v3841_v20  ;;  %v11489_v37 = vor.u32 %v12844_v48, %v11488_v54  ;;  %v12840_v23 = vld [vmem:[#allocation20 + $0xcac] sm:$0xf0]  ;;  %v10864_v11 = vld [vmem:[#allocation20 + $0x7e0] sm:$0xf] }
 0x5cf   :  { %7064 = vmatpush.bf16.msrb.mxu2 %v10161_v50  ;;  %7103 = vmatpush.bf16.msrb.mxu1 %v10545_v35  ;;  %v3815_v58 = vmax.f32 %v3645_v29, 0.0  ;;  %v10336_v50 = vld [vmem:[#allocation20 + $0x3c0] sm:$0xf]  ;;  %v12556_v35 = vld [vmem:[#allocation20 + $0x3cc] sm:$0xf0]  ;;  %v11089_v29 = vor.u32 %v12744_v57, %v11088_v56  ;;  %v11473_v36 = vor.u32 %v12840_v23, %v11472_v2 }
 0x5d0   :  { %7142 = vmatpush.bf16.msra.mxu0 %v10929_v33  ;;  %v3729_v52 = vpop.f32.mrf.mxu2  ;;  %v10720_v33 = vld [vmem:[#allocation20 + $0x6c0] sm:$0xf]  ;;  %v10337_v45 = vor.u32 %v12556_v35, %v10336_v50  ;;  %v12832_v13 = vld [vmem:[#allocation20 + $0xc6c] sm:$0xf0] }
 0x5d1   :  { %v10721_v21 = vor.u32 %v12652_v34, %v10720_v33  ;;  %v12648_v52 = vld [vmem:[#allocation20 + $0x6ac] sm:$0xf0]  ;;  %v10656_v50 = vld [vmem:[#allocation20 + $0x640] sm:$0xf] }
 0x5d2   :  { %v12636_v33 = vld [vmem:[#allocation20 + $0x64c] sm:$0xf0]  ;;  %v11408_v56 = vld [vmem:[#allocation20 + $0xc20] sm:$0xf] }
 0x5d3   :  { %7065 = vmatpush.bf16.msrb.mxu2 %v10145_v28  ;;  %7104 = vmatpush.bf16.msrb.mxu1 %v10529_v60  ;;  %v12732_v34 = vld [vmem:[#allocation20 + $0x94c] sm:$0xf0] }
 0x5d4   :  { %7143 = vmatpush.bf16.msra.mxu0 %v10913_v46  ;;  %v3646_v10 = vpop.f32.mrf.mxu3  ;;  %v11105_v46 = vor.u32 %v12748_v15, %v11104_v9  ;;  %v11424_v9 = vld [vmem:[#allocation20 + $0xc40] sm:$0xf]  ;;  %v12828_v15 = vld [vmem:[#allocation20 + $0xc4c] sm:$0xf0] }
 0x5d5   :  { %v3780_v40 = vpop.f32.mrf.mxu1  ;;  %v3647_v14 = vadd.f32 %v3646_v10, %v3633_v5  ;;  %v3843_v60 = vpop.f32.mrf.mxu0  ;;  %v10705_v5 = vor.u32 %v12648_v52, %v10704_v49  ;;  %v12740_v10 = vld [vmem:[#allocation20 + $0x98c] sm:$0xf0] }
 0x5d6   :  { %v11072_v40 = vld [vmem:[#allocation20 + $0x980] sm:$0xf]  ;;  %v12632_v49 = vld [vmem:[#allocation20 + $0x62c] sm:$0xf0] }
 0x5d7   :  { %7066 = vmatpush.bf16.msrb.mxu2 %v10129_v16  ;;  %v3823_v53 = vmax.f32 %v3647_v14, 0.0  ;;  %7105 = vmatpush.bf16.msrb.mxu1 %v10513_v3  ;;  %v10321_v3 = vor.u32 %v12552_v47, %v10320_v63  ;;  %v11073_v44 = vor.u32 %v12740_v10, %v11072_v40  ;;  %v10640_v63 = vld [vmem:[#allocation20 + $0x620] sm:$0xf]  ;;  %v11425_v47 = vor.u32 %v12828_v15, %v11424_v9  ;;  %v12728_v52 = vld [vmem:[#allocation20 + $0x92c] sm:$0xf0] }
 0x5d8   :  { %7144 = vmatpush.bf16.msra.mxu0 %v10897_v6  ;;  %v13825_v61 = vpop.f32.mrf.mxu2  ;;  %v12548_v6 = vld [vmem:[#allocation20 + $0x38c] sm:$0xf0]  ;;  %v11392_v40 = vld [vmem:[#allocation20 + $0xc00] sm:$0xf]  ;;  %v12458_v9 = vld [vmem:[#allocation20 + $0xc4] sm:$0xf] }
 0x5d9   :  { %v3831_v39 = vpack.c.bf16 %v3823_v53, %v3815_v58  ;;  %v11056_v58 = vld [vmem:[#allocation20 + $0x960] sm:$0xf]  ;;  %v12736_v53 = vld [vmem:[#allocation20 + $0x96c] sm:$0xf0]  ;;  %v9954_v15 = vld [vmem:[#allocation20 + $0xd0] sm:$0xf0] }
 0x5da   :  { %v12824_v57 = vld [vmem:[#allocation20 + $0xc2c] sm:$0xf0] }
 0x5db   :  { %7067 = vmatpush.bf16.msrb.mxu2 %v10113_v24  ;;  %3930 = vmatpush.bf16.msrb.mxu3 %v3831_v39  ;;  %v12544_v24 = vld [vmem:[#allocation20 + $0x36c] sm:$0xf0]  ;;  %v11057_v39 = vor.u32 %v12736_v53, %v11056_v58 }
 0x5dc   :  { %7106 = vmatpush.bf16.msrb.mxu1 %v10497_v26  ;;  %7145 = vmatpush.bf16.msra.mxu0 %v10881_v17  ;;  %v13837_v28 = vpop.f32.mrf.mxu3  ;;  %v11440_v26 = vld [vmem:[#allocation20 + $0xc60] sm:$0xf]  ;;  %v10289_v17 = vor.u32 %v12544_v24, %v10288_v59  ;;  %v12820_v10 = vld [vmem:[#allocation20 + $0xc0c] sm:$0xf0] }
 0x5dd   :  { %v13835_v42 = vpop.f32.mrf.mxu1  ;;  %v11441_v35 = vor.u32 %v12832_v13, %v11440_v26  ;;  %v12688_v51 = vld [vmem:[#allocation20 + $0x7ec] sm:$0xf0]  ;;  %v11393_v58 = vor.u32 %v12820_v10, %v11392_v40 }
 0x5de   :  { %9853 = vmatmul.msk.bf16.vlgmr.msrb.gmra.mxu3 %vm537_vm0, %v13735_v4  ;;  %7068 = vmatmul.bf16.vlgmr.msrb.gmra.mxu2 %v13829_v38  ;;  %v10304_v4 = vld [vmem:[#allocation20 + $0x380] sm:$0xf]  ;;  %v12880_v59 = vld [vmem:[#allocation20 + $0xdec] sm:$0xf0]  ;;  %v10865_v53 = vor.u32 %v12688_v51, %v10864_v11 }
 0x5df   :  { %7073 = vmatpush.bf16.msra.mxu3 %v10353_v22  ;;  %7112 = vmatpush.bf16.msra.mxu2 %v10737_v25  ;;  %v10305_v14 = vor.u32 %v12548_v6, %v10304_v4  ;;  %v10673_v22 = vor.u32 %v12640_v18, %v10672_v0  ;;  %v10272_v25 = vld [vmem:[#allocation20 + $0x340] sm:$0xf]  ;;  %v12628_v6 = vld [vmem:[#allocation20 + $0x60c] sm:$0xf0]  ;;  %v11009_v0 = vor.u32 %v12724_v8, %v11008_v7  ;;  %v9970_v18 = vld [vmem:[#allocation20 + $0xf0] sm:$0xf0] }
 0x5e0   :  { %7151 = vmatpush.bf16.msra.mxu1 %v11121_v27  ;;  %7190 = vmatpush.bf16.msrb.mxu0 %v11505_v1  ;;  %v3793_v16 = vpop.f32.mrf.mxu2  ;;  %v12540_v27 = vld [vmem:[#allocation20 + $0x34c] sm:$0xf0]  ;;  %v11040_v1 = vld [vmem:[#allocation20 + $0x940] sm:$0xf]  ;;  %v12450_v7 = vld [vmem:[#allocation20 + $0x84] sm:$0xf] }
 0x5e1   :  { %7107 = vmatmul.bf16.vlgmr.msrb.gmra.mxu1 %v13833_v41  ;;  %7146 = vmatmul.bf16.vlgmr.msra.gmra.mxu0 %v13839_v43  ;;  %v10273_v48 = vor.u32 %v12540_v27, %v10272_v25  ;;  %v11041_v60 = vor.u32 %v12732_v34, %v11040_v1  ;;  %v10240_v16 = vld [vmem:[#allocation20 + $0x300] sm:$0xf]  ;;  %v13852_v25 = vpack.c.bf16 %v13837_v28, %v13837_v28 }
 0x5e2   :  { %v10624_v4 = vld [vmem:[#allocation20 + $0x600] sm:$0xf]  ;;  %v13856_v1 = vpack.c.bf16 %v13825_v61, %v13825_v61  ;;  %v13860_v34 = vpack.c.bf16 %v13835_v42, %v13835_v42  ;;  %v9957_v42 = vor.u32 %v12458_v9, %v9954_v15  ;;  %v9890_v9 = vld [vmem:[#allocation20 + $0x50] sm:$0xf0] }
 0x5e3   :  { %7074 = vmatpush.bf16.msra.mxu3 %v10337_v45  ;;  %7113 = vmatpush.bf16.msra.mxu2 %v10721_v21  ;;  %v10657_v45 = vor.u32 %v12636_v33, %v10656_v50  ;;  %v10256_v21 = vld [vmem:[#allocation20 + $0x320] sm:$0xf]  ;;  %v10625_v24 = vor.u32 %v12628_v6, %v10624_v4  ;;  %v12780_v50 = vld [vmem:[#allocation20 + $0xacc] sm:$0xf0] }
 0x5e4   :  { %7152 = vmatpush.bf16.msra.mxu1 %v11105_v46  ;;  %7191 = vmatpush.bf16.msrb.mxu0 %v11489_v37  ;;  %v3742_v20 = vpop.f32.mrf.mxu3  ;;  %v12536_v46 = vld [vmem:[#allocation20 + $0x32c] sm:$0xf0]  ;;  %v11024_v37 = vld [vmem:[#allocation20 + $0x920] sm:$0xf] }
 0x5e5   :  { %v3856_v12 = vpop.f32.mrf.mxu1  ;;  %v10257_v23 = vor.u32 %v12536_v46, %v10256_v21  ;;  %v12876_v33 = vld [vmem:[#allocation20 + $0xdcc] sm:$0xf0]  ;;  %v11216_v46 = vld [vmem:[#allocation20 + $0xaa0] sm:$0xf] }
 0x5e6   :  { %v11248_v12 = vld [vmem:[#allocation20 + $0xae0] sm:$0xf]  ;;  %v12680_v21 = vld [vmem:[#allocation20 + $0x7ac] sm:$0xf0] }
 0x5e7   :  { %7075 = vmatpush.bf16.msra.mxu3 %v10321_v3  ;;  %7114 = vmatpush.bf16.msra.mxu2 %v10705_v5  ;;  %v12532_v3 = vld [vmem:[#allocation20 + $0x30c] sm:$0xf0]  ;;  %v10641_v5 = vor.u32 %v12632_v49, %v10640_v63  ;;  %v11584_v4 = vld [vmem:[#allocation20 + $0xd80] sm:$0xf] }
 0x5e8   :  { %7153 = vmatpush.bf16.msra.mxu1 %v11089_v29  ;;  %7192 = vmatpush.bf16.msrb.mxu0 %v11473_v36  ;;  %v13846_v62 = vpop.f32.mrf.mxu2  ;;  %v11025_v29 = vor.u32 %v12728_v52, %v11024_v37  ;;  %v11409_v36 = vor.u32 %v12824_v57, %v11408_v56  ;;  %v12776_v63 = vld [vmem:[#allocation20 + $0xaac] sm:$0xf0]  ;;  %v12454_v37 = vld [vmem:[#allocation20 + $0xa4] sm:$0xf]  ;;  %v9938_v52 = vld [vmem:[#allocation20 + $0xb0] sm:$0xf0] }
 0x5e9   :  { %v12872_v49 = vld [vmem:[#allocation20 + $0xdac] sm:$0xf0]  ;;  %v11217_v57 = vor.u32 %v12776_v63, %v11216_v46  ;;  %v10800_v51 = vld [vmem:[#allocation20 + $0x760] sm:$0xf] }
 0x5ea   :  { %v12868_v6 = vld [vmem:[#allocation20 + $0xd8c] sm:$0xf0]  ;;  %v11152_v46 = vld [vmem:[#allocation20 + $0xa20] sm:$0xf] }
 0x5eb   :  { %7076 = vmatpush.bf16.msra.mxu3 %v10305_v14  ;;  %7115 = vmatpush.bf16.msra.mxu2 %v10689_v30  ;;  %v10241_v14 = vor.u32 %v12532_v3, %v10240_v16  ;;  %v12784_v30 = vld [vmem:[#allocation20 + $0xaec] sm:$0xf0]  ;;  %v11200_v3 = vld [vmem:[#allocation20 + $0xa80] sm:$0xf]  ;;  %v11585_v11 = vor.u32 %v12868_v6, %v11584_v4 }
 0x5ec   :  { %7154 = vmatpush.bf16.msra.mxu1 %v11073_v44  ;;  %7193 = vmatpush.bf16.msrb.mxu0 %v11457_v19  ;;  %v13848_v54 = vpop.f32.mrf.mxu3  ;;  %v11632_v44 = vld [vmem:[#allocation20 + $0xde0] sm:$0xf]  ;;  %v12462_v19 = vld [vmem:[#allocation20 + $0xe4] sm:$0xf]  ;;  %v11249_v26 = vor.u32 %v12784_v30, %v11248_v12  ;;  %v12676_v16 = vld [vmem:[#allocation20 + $0x78c] sm:$0xf0] }
 0x5ed   :  { %v11633_v13 = vor.u32 %v12880_v59, %v11632_v44  ;;  %v9973_v27 = vor.u32 %v12462_v19, %v9970_v18  ;;  %v12672_v12 = vld [vmem:[#allocation20 + $0x76c] sm:$0xf0]  ;;  %v12446_v19 = vld [vmem:[#allocation20 + $0x64] sm:$0xf]  ;;  %v9906_v18 = vld [vmem:[#allocation20 + $0x70] sm:$0xf0] }
 0x5ee   :  { %v12768_v59 = vld [vmem:[#allocation20 + $0xa6c] sm:$0xf0] }
 0x5ef   :  { %7077 = vmatpush.bf16.msra.mxu3 %v10289_v17  ;;  %7116 = vmatpush.bf16.msra.mxu2 %v10673_v22  ;;  %v10848_v17 = vld [vmem:[#allocation20 + $0x7c0] sm:$0xf]  ;;  %v12684_v22 = vld [vmem:[#allocation20 + $0x7cc] sm:$0xf0] }
 0x5f0   :  { %7155 = vmatpush.bf16.msra.mxu1 %v11057_v39  ;;  %7194 = vmatpush.bf16.msrb.mxu0 %v11441_v35  ;;  %v3869_v2 = vpop.f32.mrf.mxu2  ;;  %v11232_v39 = vld [vmem:[#allocation20 + $0xac0] sm:$0xf]  ;;  %v10849_v28 = vor.u32 %v12684_v22, %v10848_v17  ;;  %v12668_v17 = vld [vmem:[#allocation20 + $0x74c] sm:$0xf0] }
 0x5f1   :  { %v11616_v35 = vld [vmem:[#allocation20 + $0xdc0] sm:$0xf]  ;;  %v12760_v63 = vld [vmem:[#allocation20 + $0xa2c] sm:$0xf0] }
 0x5f2   :  { %v11168_v22 = vld [vmem:[#allocation20 + $0xa40] sm:$0xf]  ;;  %v12852_v6 = vld [vmem:[#allocation20 + $0xd0c] sm:$0xf0] }
 0x5f3   :  { %7078 = vmatpush.bf16.msra.mxu3 %v10273_v48  ;;  %7117 = vmatpush.bf16.msra.mxu2 %v10657_v45  ;;  %v11233_v48 = vor.u32 %v12780_v50, %v11232_v39  ;;  %v11617_v45 = vor.u32 %v12876_v33, %v11616_v35  ;;  %v9909_v39 = vor.u32 %v12446_v19, %v9906_v18  ;;  %v11552_v50 = vld [vmem:[#allocation20 + $0xd40] sm:$0xf]  ;;  %v12860_v35 = vld [vmem:[#allocation20 + $0xd4c] sm:$0xf0]  ;;  %v12442_v33 = vld [vmem:[#allocation20 + $0x44] sm:$0xf] }
 0x5f4   :  { %7156 = vmatpush.bf16.msra.mxu1 %v11041_v60  ;;  %7195 = vmatpush.bf16.msrb.mxu0 %v11425_v47  ;;  %v3806_v20 = vpop.f32.mrf.mxu3  ;;  %v10832_v60 = vld [vmem:[#allocation20 + $0x7a0] sm:$0xf] }
 0x5f5   :  { %v11600_v47 = vld [vmem:[#allocation20 + $0xda0] sm:$0xf]  ;;  %v10833_v56 = vor.u32 %v12680_v21, %v10832_v60  ;;  %v12664_v21 = vld [vmem:[#allocation20 + $0x72c] sm:$0xf0] }
 0x5f6   :  { %v11601_v2 = vor.u32 %v12872_v49, %v11600_v47  ;;  %v11184_v20 = vld [vmem:[#allocation20 + $0xa60] sm:$0xf]  ;;  %v12856_v49 = vld [vmem:[#allocation20 + $0xd2c] sm:$0xf0] }
 0x5f7   :  { %7079 = vmatpush.bf16.msra.mxu3 %v10257_v23  ;;  %7118 = vmatpush.bf16.msra.mxu2 %v10641_v5  ;;  %v10816_v23 = vld [vmem:[#allocation20 + $0x780] sm:$0xf]  ;;  %v9941_v5 = vor.u32 %v12454_v37, %v9938_v52  ;;  %v12438_v37 = vld [vmem:[#allocation20 + $0x24] sm:$0xf]  ;;  %v9874_v52 = vld [vmem:[#allocation20 + $0x30] sm:$0xf0] }
 0x5f8   :  { %7157 = vmatpush.bf16.msra.mxu1 %v11025_v29  ;;  %7196 = vmatpush.bf16.msrb.mxu0 %v11409_v36  ;;  %v12772_v29 = vld [vmem:[#allocation20 + $0xa8c] sm:$0xf0]  ;;  %v9922_v36 = vld [vmem:[#allocation20 + $0x90] sm:$0xf0]  ;;  %v10817_v8 = vor.u32 %v12676_v16, %v10816_v23  ;;  %v10768_v60 = vld [vmem:[#allocation20 + $0x720] sm:$0xf]  ;;  %v11153_v23 = vor.u32 %v12760_v63, %v11152_v46  ;;  %v9877_v4 = vor.u32 %v12438_v37, %v9874_v52 }
 0x5f9   :  { %v11201_v10 = vor.u32 %v12772_v29, %v11200_v3  ;;  %v9925_v44 = vor.u32 %v12450_v7, %v9922_v36  ;;  %v11536_v47 = vld [vmem:[#allocation20 + $0xd20] sm:$0xf]  ;;  %v12434_v7 = vld [vmem:[#allocation20 + $0x4] sm:$0xf]  ;;  %v9858_v36 = vld [vmem:[#allocation20 + $0x10] sm:$0xf0] }
 0x5fa   :  { %v11537_v16 = vor.u32 %v12856_v49, %v11536_v47  ;;  %v11136_v3 = vld [vmem:[#allocation20 + $0xa00] sm:$0xf]  ;;  %v10066_v63 = vld [vmem:[#allocation20 + $0x1b0] sm:$0xf0] }
 0x5fb   :  { %7080 = vmatpush.bf16.msra.mxu3 %v10241_v14  ;;  %7119 = vmatpush.bf16.msra.mxu2 %v10625_v24  ;;  %v3893_v40 = vpop.f32.mrf.mxu0  ;;  %v11568_v24 = vld [vmem:[#allocation20 + $0xd60] sm:$0xf]  ;;  %v10450_v47 = vld [vmem:[#allocation20 + $0x4b0] sm:$0xf0] }
 0x5fc   :  { %7158 = vmatpush.bf16.msra.mxu1 %v11009_v0  ;;  %7197 = vmatpush.bf16.msrb.mxu0 %v11393_v58  ;;  %v13863_v61 = vpop.f32.mrf.mxu3  ;;  %v13867_v30 = vpack.c.bf16 %v3893_v40, %v3893_v40  ;;  %v12864_v0 = vld [vmem:[#allocation20 + $0xd6c] sm:$0xf0]  ;;  %v10801_v58 = vor.u32 %v12672_v12, %v10800_v51  ;;  %v11520_v29 = vld [vmem:[#allocation20 + $0xd00] sm:$0xf]  ;;  %v12494_v12 = vld [vmem:[#allocation20 + $0x1e4] sm:$0xf] }
 0x5fd   :  { %v12816_v40 = vld [vmem:[#allocation20 + $0xbec] sm:$0xf0] }
 0x5fe   :  { %7081 = vmatmul.bf16.vlgmr.msra.gmra.mxu3 %v13852_v25  ;;  %7120 = vmatmul.bf16.vlgmr.msra.gmra.mxu2 %v13856_v1  ;;  %v12912_v51 = vld [vmem:[#allocation20 + $0xeec] sm:$0xf0] }
 0x5ff   :  { %7125 = vmatpush.bf16.msrb.mxu3 %v10865_v53  ;;  %7164 = vmatpush.bf16.msrb.mxu2 %v11249_v26  ;;  %v11185_v53 = vor.u32 %v12768_v59, %v11184_v20  ;;  %v11569_v26 = vor.u32 %v12864_v0, %v11568_v24  ;;  %v10098_v20 = vld [vmem:[#allocation20 + $0x1f0] sm:$0xf0]  ;;  %v12590_v59 = vld [vmem:[#allocation20 + $0x4e4] sm:$0xf]  ;;  %v9861_v0 = vor.u32 %v12434_v7, %v9858_v36 }
 0x600   :  { %7203 = vmatpush.bf16.msrb.mxu1 %v11633_v13  ;;  %7242 = vmatpush.bf16.msra.mxu0 %v9973_v27  ;;  %v10784_v13 = vld [vmem:[#allocation20 + $0x740] sm:$0xf]  ;;  %v12764_v27 = vld [vmem:[#allocation20 + $0xa4c] sm:$0xf0]  ;;  %v10482_v24 = vld [vmem:[#allocation20 + $0x4f0] sm:$0xf0] }
 0x601   :  { %7159 = vmatmul.bf16.vlgmr.msra.gmra.mxu1 %v13860_v34  ;;  %7198 = vmatmul.bf16.vlgmr.msrb.gmra.mxu0 %v13867_v30  ;;  %v10785_v15 = vor.u32 %v12668_v17, %v10784_v13  ;;  %v11744_v13 = vld [vmem:[#allocation20 + $0xec0] sm:$0xf]  ;;  %v10485_v17 = vor.u32 %v12590_v59, %v10482_v24  ;;  %v12574_v59 = vld [vmem:[#allocation20 + $0x464] sm:$0xf]  ;;  %v10418_v24 = vld [vmem:[#allocation20 + $0x470] sm:$0xf0] }
 0x603   :  { %7126 = vmatpush.bf16.msrb.mxu3 %v10849_v28  ;;  %7165 = vmatpush.bf16.msrb.mxu2 %v11233_v48  ;;  %v3895_v28 = vpop.f32.mrf.mxu0  ;;  %v11169_v48 = vor.u32 %v12764_v27, %v11168_v22  ;;  %v12908_v22 = vld [vmem:[#allocation20 + $0xecc] sm:$0xf0]  ;;  %v10082_v27 = vld [vmem:[#allocation20 + $0x1d0] sm:$0xf0] }
 0x604   :  { %7204 = vmatpush.bf16.msrb.mxu1 %v11617_v45  ;;  %7243 = vmatpush.bf16.msra.mxu0 %v9957_v42  ;;  %v3882_v14 = vpop.f32.mrf.mxu3  ;;  %v11553_v45 = vor.u32 %v12860_v35, %v11552_v50  ;;  %v9893_v42 = vor.u32 %v12442_v33, %v9890_v9  ;;  %v12586_v50 = vld [vmem:[#allocation20 + $0x4c4] sm:$0xf]  ;;  %v10466_v35 = vld [vmem:[#allocation20 + $0x4d0] sm:$0xf0]  ;;  %v13872_v33 = vpack.c.bf16 %v13848_v54, %v13848_v54  ;;  %v12904_v54 = vld [vmem:[#allocation20 + $0xeac] sm:$0xf0] }
 0x605   :  { %v11745_v28 = vor.u32 %v12908_v22, %v11744_v13  ;;  %v10469_v46 = vor.u32 %v12586_v50, %v10466_v35  ;;  %v10421_v13 = vor.u32 %v12574_v59, %v10418_v24  ;;  %v12474_v22 = vld [vmem:[#allocation20 + $0x144] sm:$0xf]  ;;  %v10402_v50 = vld [vmem:[#allocation20 + $0x450] sm:$0xf0] }
 0x607   :  { %7127 = vmatpush.bf16.msrb.mxu3 %v10833_v56  ;;  %7166 = vmatpush.bf16.msrb.mxu2 %v11217_v57  ;;  %v10769_v56 = vor.u32 %v12664_v21, %v10768_v60  ;;  %v10752_v57 = vld [vmem:[#allocation20 + $0x700] sm:$0xf]  ;;  %v12808_v60 = vld [vmem:[#allocation20 + $0xbac] sm:$0xf0] }
 0x608   :  { %7205 = vmatpush.bf16.msrb.mxu1 %v11601_v2  ;;  %7244 = vmatpush.bf16.msra.mxu0 %v9941_v5  ;;  %v12660_v2 = vld [vmem:[#allocation20 + $0x70c] sm:$0xf0]  ;;  %v11728_v21 = vld [vmem:[#allocation20 + $0xea0] sm:$0xf] }
 0x609   :  { %v12756_v5 = vld [vmem:[#allocation20 + $0xa0c] sm:$0xf0]  ;;  %v11729_v37 = vor.u32 %v12904_v54, %v11728_v21  ;;  %v11664_v21 = vld [vmem:[#allocation20 + $0xe20] sm:$0xf] }
 0x60a   :  { %v11137_v14 = vor.u32 %v12756_v5, %v11136_v3  ;;  %v12482_v3 = vld [vmem:[#allocation20 + $0x184] sm:$0xf]  ;;  %v10050_v5 = vld [vmem:[#allocation20 + $0x190] sm:$0xf0]  ;;  %v12888_v54 = vld [vmem:[#allocation20 + $0xe2c] sm:$0xf0] }
 0x60b   :  { %7128 = vmatpush.bf16.msrb.mxu3 %v10817_v8  ;;  %7167 = vmatpush.bf16.msrb.mxu2 %v11201_v10  ;;  %v11376_v8 = vld [vmem:[#allocation20 + $0xbe0] sm:$0xf] }
 0x60c   :  { %7206 = vmatpush.bf16.msrb.mxu1 %v11585_v11  ;;  %7245 = vmatpush.bf16.msra.mxu0 %v9925_v44  ;;  %v11760_v10 = vld [vmem:[#allocation20 + $0xee0] sm:$0xf]  ;;  %v10753_v11 = vor.u32 %v12660_v2, %v10752_v57  ;;  %v11521_v44 = vor.u32 %v12852_v6, %v11520_v29  ;;  %v11377_v19 = vor.u32 %v12816_v40, %v11376_v8  ;;  %v12804_v57 = vld [vmem:[#allocation20 + $0xb8c] sm:$0xf0]  ;;  %v12578_v29 = vld [vmem:[#allocation20 + $0x484] sm:$0xf] }
 0x60d   :  { %v11761_v18 = vor.u32 %v12912_v51, %v11760_v10  ;;  %v11712_v2 = vld [vmem:[#allocation20 + $0xe80] sm:$0xf]  ;;  %v10053_v40 = vor.u32 %v12482_v3, %v10050_v5  ;;  %v9986_v5 = vld [vmem:[#allocation20 + $0x110] sm:$0xf0] }
 0x60e   :  { %v11312_v10 = vld [vmem:[#allocation20 + $0xb60] sm:$0xf] }
 0x60f   :  { %7129 = vmatpush.bf16.msrb.mxu3 %v10801_v58  ;;  %7168 = vmatpush.bf16.msrb.mxu2 %v11185_v53  ;;  %v10101_v58 = vor.u32 %v12494_v12, %v10098_v20  ;;  %v11360_v53 = vld [vmem:[#allocation20 + $0xbc0] sm:$0xf]  ;;  %v12896_v20 = vld [vmem:[#allocation20 + $0xe6c] sm:$0xf0] }
 0x610   :  { %7207 = vmatpush.bf16.msrb.mxu1 %v11569_v26  ;;  %7246 = vmatpush.bf16.msra.mxu0 %v9909_v39  ;;  %v12812_v26 = vld [vmem:[#allocation20 + $0xbcc] sm:$0xf0]  ;;  %v12490_v39 = vld [vmem:[#allocation20 + $0x1c4] sm:$0xf]  ;;  %v11696_v51 = vld [vmem:[#allocation20 + $0xe60] sm:$0xf] }
 0x611   :  { %v11361_v9 = vor.u32 %v12812_v26, %v11360_v53  ;;  %v12796_v53 = vld [vmem:[#allocation20 + $0xb4c] sm:$0xf0]  ;;  %v11680_v26 = vld [vmem:[#allocation20 + $0xe40] sm:$0xf] }
 0x613   :  { %7130 = vmatpush.bf16.msrb.mxu3 %v10785_v15  ;;  %7169 = vmatpush.bf16.msrb.mxu2 %v11169_v48  ;;  %v13876_v15 = vpack.c.bf16 %v13846_v62, %v13846_v62  ;;  %v10085_v48 = vor.u32 %v12490_v39, %v10082_v27  ;;  %v12582_v62 = vld [vmem:[#allocation20 + $0x4a4] sm:$0xf]  ;;  %v10018_v39 = vld [vmem:[#allocation20 + $0x150] sm:$0xf0] }
 0x614   :  { %7208 = vmatpush.bf16.msrb.mxu1 %v11553_v45  ;;  %7247 = vmatpush.bf16.msra.mxu0 %v9893_v42  ;;  %v11344_v45 = vld [vmem:[#allocation20 + $0xba0] sm:$0xf]  ;;  %v12486_v42 = vld [vmem:[#allocation20 + $0x1a4] sm:$0xf] }
 0x615   :  { %v11345_v49 = vor.u32 %v12808_v60, %v11344_v45  ;;  %v10069_v52 = vor.u32 %v12486_v42, %v10066_v63  ;;  %v12570_v27 = vld [vmem:[#allocation20 + $0x444] sm:$0xf]  ;;  %v11280_v45 = vld [vmem:[#allocation20 + $0xb20] sm:$0xf]  ;;  %v12792_v60 = vld [vmem:[#allocation20 + $0xb2c] sm:$0xf0] }
 0x616   :  { %v12470_v42 = vld [vmem:[#allocation20 + $0x124] sm:$0xf]  ;;  %v10002_v63 = vld [vmem:[#allocation20 + $0x130] sm:$0xf0] }
 0x617   :  { %7131 = vmatpush.bf16.msrb.mxu3 %v10769_v56  ;;  %7170 = vmatpush.bf16.msrb.mxu2 %v11153_v23  ;;  %v11328_v56 = vld [vmem:[#allocation20 + $0xb80] sm:$0xf]  ;;  %v10453_v23 = vor.u32 %v12582_v62, %v10450_v47  ;;  %v12566_v62 = vld [vmem:[#allocation20 + $0x424] sm:$0xf]  ;;  %v10386_v47 = vld [vmem:[#allocation20 + $0x430] sm:$0xf0] }
 0x618   :  { %7209 = vmatpush.bf16.msrb.mxu1 %v11537_v16  ;;  %7248 = vmatpush.bf16.msra.mxu0 %v9877_v4  ;;  %v12900_v16 = vld [vmem:[#allocation20 + $0xe8c] sm:$0xf0]  ;;  %v10434_v4 = vld [vmem:[#allocation20 + $0x490] sm:$0xf0]  ;;  %v11329_v7 = vor.u32 %v12804_v57, %v11328_v56  ;;  %v11665_v56 = vor.u32 %v12888_v54, %v11664_v21  ;;  %v10005_v57 = vor.u32 %v12470_v42, %v10002_v63  ;;  %v12614_v63 = vld [vmem:[#allocation20 + $0x5a4] sm:$0xf] }
 0x619   :  { %v11713_v8 = vor.u32 %v12900_v16, %v11712_v2  ;;  %v10437_v12 = vor.u32 %v12578_v29, %v10434_v4  ;;  %v11648_v2 = vld [vmem:[#allocation20 + $0xe00] sm:$0xf]  ;;  %v12466_v16 = vld [vmem:[#allocation20 + $0x104] sm:$0xf]  ;;  %v10389_v3 = vor.u32 %v12566_v62, %v10386_v47  ;;  %v10370_v4 = vld [vmem:[#allocation20 + $0x410] sm:$0xf0] }
 0x61a   :  { %v12562_v29 = vld [vmem:[#allocation20 + $0x404] sm:$0xf]  ;;  %v10194_v21 = vld [vmem:[#allocation20 + $0x2b0] sm:$0xf0] }
 0x61b   :  { %7132 = vmatpush.bf16.msrb.mxu3 %v10753_v11  ;;  %7171 = vmatpush.bf16.msrb.mxu2 %v11137_v14  ;;  %v3906_v6 = vpop.f32.mrf.mxu1  ;;  %v12800_v11 = vld [vmem:[#allocation20 + $0xb6c] sm:$0xf0]  ;;  %v12478_v14 = vld [vmem:[#allocation20 + $0x164] sm:$0xf]  ;;  %v10373_v59 = vor.u32 %v12562_v29, %v10370_v4  ;;  %v10562_v4 = vld [vmem:[#allocation20 + $0x590] sm:$0xf0] }
 0x61c   :  { %7210 = vmatpush.bf16.msrb.mxu1 %v11521_v44  ;;  %7249 = vmatpush.bf16.msra.mxu0 %v9861_v0  ;;  %v13881_v36 = vpack.c.bf16 %v3906_v6, %v3906_v6  ;;  %v10034_v44 = vld [vmem:[#allocation20 + $0x170] sm:$0xf0]  ;;  %v11313_v0 = vor.u32 %v12800_v11, %v11312_v10  ;;  %v11888_v6 = vld [vmem:[#allocation20 + $0xfe0] sm:$0xf]  ;;  %v12622_v11 = vld [vmem:[#allocation20 + $0x5e4] sm:$0xf] }
 0x61d   :  { %v10226_v10 = vld [vmem:[#allocation20 + $0x2f0] sm:$0xf0]  ;;  %v12710_v47 = vld [vmem:[#allocation20 + $0x8a4] sm:$0xf] }
 0x61e   :  { %7133 = vmatmul.bf16.vlgmr.msrb.gmra.mxu3 %v13872_v33  ;;  %7172 = vmatmul.bf16.vlgmr.msrb.gmra.mxu2 %v13876_v15  ;;  %v12610_v29 = vld [vmem:[#allocation20 + $0x584] sm:$0xf] }
 0x61f   :  { %7177 = vmatpush.bf16.msra.mxu3 %v11377_v19  ;;  %7216 = vmatpush.bf16.msra.mxu2 %v11761_v18  ;;  %v11697_v19 = vor.u32 %v12896_v20, %v11696_v51  ;;  %v10037_v18 = vor.u32 %v12478_v14, %v10034_v44  ;;  %v10610_v51 = vld [vmem:[#allocation20 + $0x5f0] sm:$0xf0]  ;;  %v9989_v20 = vor.u32 %v12466_v16, %v9986_v5  ;;  %v12718_v14 = vld [vmem:[#allocation20 + $0x8e4] sm:$0xf] }
 0x620   :  { %7255 = vmatpush.bf16.msra.mxu1 %v10101_v58  ;;  %7294 = vmatpush.bf16.msrb.mxu0 %v10485_v17  ;;  %v11296_v58 = vld [vmem:[#allocation20 + $0xb40] sm:$0xf]  ;;  %v12892_v17 = vld [vmem:[#allocation20 + $0xe4c] sm:$0xf0]  ;;  %v10994_v44 = vld [vmem:[#allocation20 + $0x8f0] sm:$0xf0] }
 0x621   :  { %7250 = vmatmul.bf16.vlgmr.msra.gmra.mxu0 %v13794_v55  ;;  %7211 = vmatmul.bf16.vlgmr.msrb.gmra.mxu1 %v13881_v36  ;;  %v12514_v16 = vld [vmem:[#allocation20 + $0x284] sm:$0xf]  ;;  %v10178_v5 = vld [vmem:[#allocation20 + $0x290] sm:$0xf0] }
 0x623   :  { %7178 = vmatpush.bf16.msra.mxu3 %v11361_v9  ;;  %7217 = vmatpush.bf16.msra.mxu2 %v11745_v28  ;;  %v3908_v35 = vpop.f32.mrf.mxu1  ;;  %v11297_v9 = vor.u32 %v12796_v53, %v11296_v58  ;;  %v11681_v28 = vor.u32 %v12892_v17, %v11680_v26  ;;  %v12940_v58 = vld [vmem:[#allocation20 + $0xfcc] sm:$0xf0]  ;;  %v12522_v53 = vld [vmem:[#allocation20 + $0x2c4] sm:$0xf]  ;;  %v10997_v26 = vor.u32 %v12718_v14, %v10994_v44 }
 0x624   :  { %7256 = vmatpush.bf16.msra.mxu1 %v10085_v48  ;;  %7295 = vmatpush.bf16.msrb.mxu0 %v10469_v46  ;;  %v10021_v48 = vor.u32 %v12474_v22, %v10018_v39  ;;  %v10405_v46 = vor.u32 %v12570_v27, %v10402_v50  ;;  %v12618_v17 = vld [vmem:[#allocation20 + $0x5c4] sm:$0xf]  ;;  %v10594_v22 = vld [vmem:[#allocation20 + $0x5d0] sm:$0xf0]  ;;  %v13886_v50 = vpack.c.bf16 %v13863_v61, %v13863_v61 }
 0x625   :  { %v12714_v39 = vld [vmem:[#allocation20 + $0x8c4] sm:$0xf]  ;;  %v10978_v27 = vld [vmem:[#allocation20 + $0x8d0] sm:$0xf0] }
 0x626   :  { %v10981_v42 = vor.u32 %v12714_v39, %v10978_v27  ;;  %v10578_v61 = vld [vmem:[#allocation20 + $0x5b0] sm:$0xf0]  ;;  %v12510_v14 = vld [vmem:[#allocation20 + $0x264] sm:$0xf]  ;;  %v12924_v39 = vld [vmem:[#allocation20 + $0xf4c] sm:$0xf0] }
 0x627   :  { %7179 = vmatpush.bf16.msra.mxu3 %v11345_v49  ;;  %7218 = vmatpush.bf16.msra.mxu2 %v11729_v37  ;;  %v11281_v49 = vor.u32 %v12792_v60, %v11280_v45  ;;  %v11264_v37 = vld [vmem:[#allocation20 + $0xb00] sm:$0xf]  ;;  %v10597_v45 = vor.u32 %v12618_v17, %v10594_v22  ;;  %v12518_v60 = vld [vmem:[#allocation20 + $0x2a4] sm:$0xf] }
 0x628   :  { %7257 = vmatpush.bf16.msra.mxu1 %v10069_v52  ;;  %7296 = vmatpush.bf16.msrb.mxu0 %v10453_v23  ;;  %v12788_v52 = vld [vmem:[#allocation20 + $0xb0c] sm:$0xf0]  ;;  %v11808_v22 = vld [vmem:[#allocation20 + $0xf40] sm:$0xf]  ;;  %v12506_v27 = vld [vmem:[#allocation20 + $0x244] sm:$0xf] }
 0x629   :  { %v12884_v23 = vld [vmem:[#allocation20 + $0xe0c] sm:$0xf0] }
 0x62b   :  { %7180 = vmatpush.bf16.msra.mxu3 %v11329_v7  ;;  %7219 = vmatpush.bf16.msra.mxu2 %v11713_v8  ;;  %v12944_v7 = vld [vmem:[#allocation20 + $0xfec] sm:$0xf0]  ;;  %v12526_v8 = vld [vmem:[#allocation20 + $0x2e4] sm:$0xf] }
 0x62c   :  { %7258 = vmatpush.bf16.msra.mxu1 %v10053_v40  ;;  %7297 = vmatpush.bf16.msrb.mxu0 %v10437_v12  ;;  %v11265_v40 = vor.u32 %v12788_v52, %v11264_v37  ;;  %v11649_v12 = vor.u32 %v12884_v23, %v11648_v2  ;;  %v11889_v24 = vor.u32 %v12944_v7, %v11888_v6  ;;  %v11840_v2 = vld [vmem:[#allocation20 + $0xf80] sm:$0xf]  ;;  %v12932_v23 = vld [vmem:[#allocation20 + $0xf8c] sm:$0xf0]  ;;  %v12706_v6 = vld [vmem:[#allocation20 + $0x884] sm:$0xf] }
 0x62d   :  { %v7043_v54 = vpop.f32.mrf.mxu0  ;;  %v10946_v7 = vld [vmem:[#allocation20 + $0x890] sm:$0xf0] }
 0x62f   :  { %7181 = vmatpush.bf16.msra.mxu3 %v11313_v0  ;;  %7220 = vmatpush.bf16.msra.mxu2 %v11697_v19  ;;  %v10229_v0 = vor.u32 %v12526_v8, %v10226_v10  ;;  %v10613_v19 = vor.u32 %v12622_v11, %v10610_v51  ;;  %v10181_v11 = vor.u32 %v12514_v16, %v10178_v5  ;;  %v12916_v5 = vld [vmem:[#allocation20 + $0xf0c] sm:$0xf0] }
 0x630   :  { %7259 = vmatpush.bf16.msra.mxu1 %v10037_v18  ;;  %7298 = vmatpush.bf16.msrb.mxu0 %v10421_v13  ;;  %v11872_v18 = vld [vmem:[#allocation20 + $0xfc0] sm:$0xf]  ;;  %v10210_v13 = vld [vmem:[#allocation20 + $0x2d0] sm:$0xf0]  ;;  %v10565_v51 = vor.u32 %v12610_v29, %v10562_v4 }
 0x631   :  { %v11873_v35 = vor.u32 %v12940_v58, %v11872_v18  ;;  %v12702_v18 = vld [vmem:[#allocation20 + $0x864] sm:$0xf]  ;;  %v10930_v58 = vld [vmem:[#allocation20 + $0x870] sm:$0xf0] }
 0x633   :  { %7182 = vmatpush.bf16.msra.mxu3 %v11297_v9  ;;  %7221 = vmatpush.bf16.msra.mxu2 %v11681_v28  ;;  %v11856_v9 = vld [vmem:[#allocation20 + $0xfa0] sm:$0xf]  ;;  %v12936_v28 = vld [vmem:[#allocation20 + $0xfac] sm:$0xf0] }
 0x634   :  { %7260 = vmatpush.bf16.msra.mxu1 %v10021_v48  ;;  %7299 = vmatpush.bf16.msrb.mxu0 %v10405_v46  ;;  %v10213_v48 = vor.u32 %v12522_v53, %v10210_v13  ;;  %v4464_v46 = vld [vmem:[#allocation22] sm:$0xf]  ;;  %v11857_v37 = vor.u32 %v12936_v28, %v11856_v9  ;;  %v10146_v28 = vld [vmem:[#allocation20 + $0x250] sm:$0xf0] }
 0x635   :  { %v4466_v62 = vperm.slane %v4464_v46, 0  ;;  %v7045_v44 = vpop.f32.mrf.mxu0 }
 0x636   :  { %v10354_v44 = vld [vmem:[#allocation20 + $0x3f0] sm:$0xf0] }
 0x637   :  { %7183 = vmatpush.bf16.msra.mxu3 %v11281_v49  ;;  %7222 = vmatpush.bf16.msra.mxu2 %v11665_v56  ;;  %v10962_v49 = vld [vmem:[#allocation20 + $0x8b0] sm:$0xf0]  ;;  %v7044_v52 = vadd.f32 %v7043_v54, %v4466_v62  ;;  %v10197_v56 = vor.u32 %v12518_v60, %v10194_v21  ;;  %v12698_v60 = vld [vmem:[#allocation20 + $0x844] sm:$0xf]  ;;  %v11809_v54 = vor.u32 %v12924_v39, %v11808_v22  ;;  %v12920_v62 = vld [vmem:[#allocation20 + $0xf2c] sm:$0xf0] }
 0x638   :  { %7261 = vmatpush.bf16.msra.mxu1 %v10005_v57  ;;  %7300 = vmatpush.bf16.msrb.mxu0 %v10389_v3  ;;  %v10581_v57 = vor.u32 %v12614_v63, %v10578_v61  ;;  %v10965_v3 = vor.u32 %v12710_v47, %v10962_v49  ;;  %v10914_v21 = vld [vmem:[#allocation20 + $0x850] sm:$0xf0]  ;;  %v11792_v61 = vld [vmem:[#allocation20 + $0xf20] sm:$0xf]  ;;  %v12502_v47 = vld [vmem:[#allocation20 + $0x224] sm:$0xf] }
 0x639   :  { %v11793_v16 = vor.u32 %v12920_v62, %v11792_v61 }
 0x63b   :  { %7184 = vmatpush.bf16.msra.mxu3 %v11265_v40  ;;  %7223 = vmatpush.bf16.msra.mxu2 %v11649_v12  ;;  %v11841_v40 = vor.u32 %v12932_v23, %v11840_v2  ;;  %v11824_v12 = vld [vmem:[#allocation20 + $0xf60] sm:$0xf]  ;;  %v12694_v2 = vld [vmem:[#allocation20 + $0x824] sm:$0xf]  ;;  %v10898_v23 = vld [vmem:[#allocation20 + $0x830] sm:$0xf0] }
 0x63c   :  { %7262 = vmatpush.bf16.msra.mxu1 %v9989_v20  ;;  %7301 = vmatpush.bf16.msrb.mxu0 %v10373_v59  ;;  %v12928_v20 = vld [vmem:[#allocation20 + $0xf6c] sm:$0xf0]  ;;  %v10949_v59 = vor.u32 %v12706_v6, %v10946_v7  ;;  %v12498_v7 = vld [vmem:[#allocation20 + $0x204] sm:$0xf] }
 0x63d   :  { %v7056_v8 = vpop.f32.mrf.mxu1  ;;  %v11825_v53 = vor.u32 %v12928_v20, %v11824_v12  ;;  %v12690_v12 = vld [vmem:[#allocation20 + $0x804] sm:$0xf]  ;;  %v10882_v20 = vld [vmem:[#allocation20 + $0x810] sm:$0xf0] }
 0x63e   :  { %7185 = vmatmul.bf16.vlgmr.msra.gmra.mxu3 %v13886_v50  ;;  %v13891_v10 = vadd.f32 %v7056_v8, %v7044_v52  ;;  %v13896_v49 = vpop.f32.mrf.mxu0  ;;  %v10130_v52 = vld [vmem:[#allocation20 + $0x230] sm:$0xf0]  ;;  %v10885_v22 = vor.u32 %v12690_v12, %v10882_v20  ;;  %v12738_v12 = vld [vmem:[#allocation20 + $0x984] sm:$0xf] }
 0x63f   :  { %7229 = vmatpush.bf16.msrb.mxu3 %v11889_v24  ;;  %7268 = vmatpush.bf16.msrb.mxu2 %v10229_v0  ;;  %v10162_v24 = vld [vmem:[#allocation20 + $0x270] sm:$0xf0]  ;;  %v12606_v0 = vld [vmem:[#allocation20 + $0x564] sm:$0xf]  ;;  %v10133_v29 = vor.u32 %v12502_v47, %v10130_v52 }
 0x640   :  { %7307 = vmatpush.bf16.msrb.mxu1 %v10613_v19  ;;  %7346 = vmatpush.bf16.msra.mxu0 %v10997_v26  ;;  %v10546_v19 = vld [vmem:[#allocation20 + $0x570] sm:$0xf0]  ;;  %v10165_v26 = vor.u32 %v12510_v14, %v10162_v24  ;;  %v12558_v14 = vld [vmem:[#allocation20 + $0x3e4] sm:$0xf] }
 0x641   :  { %7263 = vmatmul.bf16.vlgmr.msra.gmra.mxu1 %v13804_v31  ;;  %7302 = vmatmul.bf16.vlgmr.msrb.gmra.mxu0 %v13806_v32  ;;  %v10549_v13 = vor.u32 %v12606_v0, %v10546_v19  ;;  %v3919_v17 = vpop.f32.mrf.mxu2  ;;  %v10114_v8 = vld [vmem:[#allocation20 + $0x210] sm:$0xf0]  ;;  %v12750_v19 = vld [vmem:[#allocation20 + $0x9e4] sm:$0xf]  ;;  %v10357_v39 = vor.u32 %v12558_v14, %v10354_v44 }
 0x642   :  { %v13893_v9 = vpack.c.bf16 %v3919_v17, %v3919_v17  ;;  %v10738_v0 = vld [vmem:[#allocation20 + $0x6f0] sm:$0xf0]  ;;  %v12834_v14 = vld [vmem:[#allocation20 + $0xc84] sm:$0xf] }
 0x643   :  { %7230 = vmatpush.bf16.msrb.mxu3 %v11873_v35  ;;  %7269 = vmatpush.bf16.msrb.mxu2 %v10213_v48  ;;  %v10933_v35 = vor.u32 %v12702_v18, %v10930_v58  ;;  %v12602_v48 = vld [vmem:[#allocation20 + $0x544] sm:$0xf]  ;;  %v11122_v18 = vld [vmem:[#allocation20 + $0x9f0] sm:$0xf0]  ;;  %v10117_v58 = vor.u32 %v12498_v7, %v10114_v8 }
 0x644   :  { %7308 = vmatpush.bf16.msrb.mxu1 %v10597_v45  ;;  %7347 = vmatpush.bf16.msra.mxu0 %v10981_v42  ;;  %v10530_v45 = vld [vmem:[#allocation20 + $0x550] sm:$0xf0]  ;;  %v10149_v42 = vor.u32 %v12506_v27, %v10146_v28  ;;  %v12554_v28 = vld [vmem:[#allocation20 + $0x3c4] sm:$0xf] }
 0x645   :  { %v7058_v46 = vpop.f32.mrf.mxu1  ;;  %7224 = vmatmul.bf16.vlgmr.msra.gmra.mxu2 %v13893_v9  ;;  %v10533_v63 = vor.u32 %v12602_v48, %v10530_v45  ;;  %v10338_v48 = vld [vmem:[#allocation20 + $0x3d0] sm:$0xf0]  ;;  %v12650_v45 = vld [vmem:[#allocation20 + $0x6c4] sm:$0xf] }
 0x646   :  { %v7097_v17 = vpop.f32.mrf.mxu0  ;;  %v12746_v46 = vld [vmem:[#allocation20 + $0x9c4] sm:$0xf]  ;;  %v10341_v61 = vor.u32 %v12554_v28, %v10338_v48  ;;  %v10322_v52 = vld [vmem:[#allocation20 + $0x3b0] sm:$0xf0] }
 0x647   :  { %7231 = vmatpush.bf16.msrb.mxu3 %v11857_v37  ;;  %7270 = vmatpush.bf16.msrb.mxu2 %v10197_v56  ;;  %v10917_v37 = vor.u32 %v12698_v60, %v10914_v21  ;;  %v12598_v56 = vld [vmem:[#allocation20 + $0x524] sm:$0xf]  ;;  %v10722_v21 = vld [vmem:[#allocation20 + $0x6d0] sm:$0xf0] }
 0x648   :  { %7309 = vmatpush.bf16.msrb.mxu1 %v10581_v57  ;;  %7348 = vmatpush.bf16.msra.mxu0 %v10965_v3  ;;  %v10514_v57 = vld [vmem:[#allocation20 + $0x530] sm:$0xf0]  ;;  %v11776_v3 = vld [vmem:[#allocation20 + $0xf00] sm:$0xf]  ;;  %v10725_v62 = vor.u32 %v12650_v45, %v10722_v21  ;;  %v12546_v7 = vld [vmem:[#allocation20 + $0x384] sm:$0xf] }
 0x649   :  { %v10517_v4 = vor.u32 %v12598_v56, %v10514_v57  ;;  %v3921_v6 = vpop.f32.mrf.mxu2  ;;  %v11777_v24 = vor.u32 %v12916_v5, %v11776_v3  ;;  %v12646_v56 = vld [vmem:[#allocation20 + $0x6a4] sm:$0xf]  ;;  %v11474_v5 = vld [vmem:[#allocation20 + $0xcb0] sm:$0xf0] }
 0x64a   :  { %v12838_v3 = vld [vmem:[#allocation20 + $0xca4] sm:$0xf]  ;;  %v10306_v8 = vld [vmem:[#allocation20 + $0x390] sm:$0xf0] }
 0x64b   :  { %7232 = vmatpush.bf16.msrb.mxu3 %v11841_v40  ;;  %7271 = vmatpush.bf16.msrb.mxu2 %v10181_v11  ;;  %v12594_v40 = vld [vmem:[#allocation20 + $0x504] sm:$0xf]  ;;  %v10901_v11 = vor.u32 %v12694_v2, %v10898_v23  ;;  %v10706_v2 = vld [vmem:[#allocation20 + $0x6b0] sm:$0xf0] }
 0x64c   :  { %7310 = vmatpush.bf16.msrb.mxu1 %v10565_v51  ;;  %7349 = vmatpush.bf16.msra.mxu0 %v10949_v59  ;;  %v10498_v51 = vld [vmem:[#allocation20 + $0x510] sm:$0xf0]  ;;  %v12654_v59 = vld [vmem:[#allocation20 + $0x6e4] sm:$0xf] }
 0x64d   :  { %v10741_v27 = vor.u32 %v12654_v59, %v10738_v0  ;;  %v12742_v23 = vld [vmem:[#allocation20 + $0x9a4] sm:$0xf]  ;;  %v11074_v20 = vld [vmem:[#allocation20 + $0x990] sm:$0xf0]  ;;  %v10309_v59 = vor.u32 %v12546_v7, %v10306_v8 }
 0x64e   :  { %v11458_v44 = vld [vmem:[#allocation20 + $0xc90] sm:$0xf0]  ;;  %v12538_v21 = vld [vmem:[#allocation20 + $0x344] sm:$0xf] }
 0x64f   :  { %7233 = vmatpush.bf16.msrb.mxu3 %v11825_v53  ;;  %7272 = vmatpush.bf16.msrb.mxu2 %v10165_v26  ;;  %v10501_v53 = vor.u32 %v12594_v40, %v10498_v51  ;;  %v12846_v26 = vld [vmem:[#allocation20 + $0xce4] sm:$0xf]  ;;  %v10690_v51 = vld [vmem:[#allocation20 + $0x690] sm:$0xf0] }
 0x650   :  { %7311 = vmatpush.bf16.msrb.mxu1 %v10549_v13  ;;  %7350 = vmatpush.bf16.msra.mxu0 %v10933_v35  ;;  %v11506_v13 = vld [vmem:[#allocation20 + $0xcf0] sm:$0xf0]  ;;  %v11125_v35 = vor.u32 %v12750_v19, %v11122_v18  ;;  %v12642_v40 = vld [vmem:[#allocation20 + $0x684] sm:$0xf]  ;;  %v11077_v19 = vor.u32 %v12738_v12, %v11074_v20 }
 0x651   :  { %v11509_v60 = vor.u32 %v12846_v26, %v11506_v13  ;;  %v10693_v0 = vor.u32 %v12642_v40, %v10690_v51  ;;  %v12542_v18 = vld [vmem:[#allocation20 + $0x364] sm:$0xf]  ;;  %v11461_v13 = vor.u32 %v12834_v14, %v11458_v44  ;;  %v10674_v17 = vld [vmem:[#allocation20 + $0x670] sm:$0xf0] }
 0x652   :  { %v10642_v8 = vld [vmem:[#allocation20 + $0x630] sm:$0xf0]  ;;  %v12726_v40 = vld [vmem:[#allocation20 + $0x924] sm:$0xf] }
 0x653   :  { %7234 = vmatpush.bf16.msrb.mxu3 %v11809_v54  ;;  %7273 = vmatpush.bf16.msrb.mxu2 %v10149_v42  ;;  %v11106_v54 = vld [vmem:[#allocation20 + $0x9d0] sm:$0xf0]  ;;  %v12842_v42 = vld [vmem:[#allocation20 + $0xcc4] sm:$0xf] }
 0x654   :  { %7312 = vmatpush.bf16.msrb.mxu1 %v10533_v63  ;;  %7351 = vmatpush.bf16.msra.mxu0 %v10917_v37  ;;  %v11490_v63 = vld [vmem:[#allocation20 + $0xcd0] sm:$0xf0]  ;;  %v11109_v47 = vor.u32 %v12746_v46, %v11106_v54  ;;  %v12550_v37 = vld [vmem:[#allocation20 + $0x3a4] sm:$0xf] }
 0x655   :  { %v11493_v57 = vor.u32 %v12842_v42, %v11490_v63  ;;  %v10274_v46 = vld [vmem:[#allocation20 + $0x350] sm:$0xf0]  ;;  %v12634_v54 = vld [vmem:[#allocation20 + $0x644] sm:$0xf] }
 0x656   :  { %v11410_v51 = vld [vmem:[#allocation20 + $0xc30] sm:$0xf0]  ;;  %v12530_v20 = vld [vmem:[#allocation20 + $0x304] sm:$0xf] }
 0x657   :  { %7235 = vmatpush.bf16.msrb.mxu3 %v11793_v16  ;;  %7274 = vmatpush.bf16.msrb.mxu2 %v10133_v29  ;;  %v11090_v16 = vld [vmem:[#allocation20 + $0x9b0] sm:$0xf0]  ;;  %v10325_v29 = vor.u32 %v12550_v37, %v10322_v52  ;;  %v12826_v52 = vld [vmem:[#allocation20 + $0xc44] sm:$0xf] }
 0x658   :  { %7313 = vmatpush.bf16.msrb.mxu1 %v10517_v4  ;;  %7352 = vmatpush.bf16.msra.mxu0 %v10901_v11  ;;  %v10709_v4 = vor.u32 %v12646_v56, %v10706_v2  ;;  %v11093_v6 = vor.u32 %v12742_v23, %v11090_v16  ;;  %v11477_v11 = vor.u32 %v12838_v3, %v11474_v5  ;;  %v11426_v56 = vld [vmem:[#allocation20 + $0xc50] sm:$0xf0]  ;;  %v12534_v5 = vld [vmem:[#allocation20 + $0x324] sm:$0xf] }
 0x659   :  { %v10277_v2 = vor.u32 %v12538_v21, %v10274_v46  ;;  %v11429_v7 = vor.u32 %v12826_v52, %v11426_v56  ;;  %v10242_v14 = vld [vmem:[#allocation20 + $0x310] sm:$0xf0]  ;;  %v12682_v56 = vld [vmem:[#allocation20 + $0x7c4] sm:$0xf] }
 0x65a   :  { %v11634_v21 = vld [vmem:[#allocation20 + $0xdf0] sm:$0xf0] }
 0x65b   :  { %7236 = vmatpush.bf16.msrb.mxu3 %v11777_v24  ;;  %7275 = vmatpush.bf16.msrb.mxu2 %v10117_v58  ;;  %v10290_v58 = vld [vmem:[#allocation20 + $0x370] sm:$0xf0] }
 0x65c   :  { %7314 = vmatpush.bf16.msrb.mxu1 %v10501_v53  ;;  %7353 = vmatpush.bf16.msra.mxu0 %v10885_v22  ;;  %v12638_v53 = vld [vmem:[#allocation20 + $0x664] sm:$0xf]  ;;  %v10293_v28 = vor.u32 %v12542_v18, %v10290_v58  ;;  %v10626_v18 = vld [vmem:[#allocation20 + $0x610] sm:$0xf0] }
 0x65d   :  { %v12734_v22 = vld [vmem:[#allocation20 + $0x964] sm:$0xf]  ;;  %v10677_v48 = vor.u32 %v12638_v53, %v10674_v17 }
 0x65e   :  { %7276 = vmatmul.bf16.vlgmr.msrb.gmra.mxu2 %v13829_v38  ;;  %v13901_v24 = vpop.f32.mrf.mxu1  ;;  %v13903_v26 = vpop.f32.mrf.mxu0  ;;  %v12722_v58 = vld [vmem:[#allocation20 + $0x904] sm:$0xf] }
 0x65f   :  { %7281 = vmatpush.bf16.msra.mxu3 %v10357_v39  ;;  %7320 = vmatpush.bf16.msra.mxu2 %v10741_v27  ;;  %v11058_v39 = vld [vmem:[#allocation20 + $0x970] sm:$0xf0]  ;;  %v12830_v27 = vld [vmem:[#allocation20 + $0xc64] sm:$0xf] }
 0x660   :  { %7359 = vmatpush.bf16.msra.mxu1 %v11125_v35  ;;  %7398 = vmatpush.bf16.msrb.mxu0 %v11509_v60  ;;  %v11442_v35 = vld [vmem:[#allocation20 + $0xc70] sm:$0xf0]  ;;  %v11061_v45 = vor.u32 %v12734_v22, %v11058_v39  ;;  %v12818_v17 = vld [vmem:[#allocation20 + $0xc04] sm:$0xf] }
 0x661   :  { %7315 = vmatmul.bf16.vlgmr.msrb.gmra.mxu1 %v13833_v41  ;;  %7354 = vmatmul.bf16.vlgmr.msra.gmra.mxu0 %v13839_v43  ;;  %v3932_v60 = vpop.f32.mrf.mxu3  ;;  %v11445_v42 = vor.u32 %v12830_v27, %v11442_v35  ;;  %v7069_v37 = vpop.f32.mrf.mxu2  ;;  %v11394_v22 = vld [vmem:[#allocation20 + $0xc10] sm:$0xf0]  ;;  %v12686_v27 = vld [vmem:[#allocation20 + $0x7e4] sm:$0xf] }
 0x662   :  { %v13905_v63 = vpack.c.bf16 %v3932_v60, %v3932_v60  ;;  %v10866_v35 = vld [vmem:[#allocation20 + $0x7f0] sm:$0xf0]  ;;  %v12878_v60 = vld [vmem:[#allocation20 + $0xde4] sm:$0xf] }
 0x663   :  { %7282 = vmatpush.bf16.msra.mxu3 %v10341_v61  ;;  %7321 = vmatpush.bf16.msra.mxu2 %v10725_v62  ;;  %v10658_v61 = vld [vmem:[#allocation20 + $0x650] sm:$0xf0]  ;;  %v12730_v62 = vld [vmem:[#allocation20 + $0x944] sm:$0xf]  ;;  %v11637_v52 = vor.u32 %v12878_v60, %v11634_v21 }
 0x664   :  { %7360 = vmatpush.bf16.msra.mxu1 %v11109_v47  ;;  %7399 = vmatpush.bf16.msrb.mxu0 %v11493_v57  ;;  %v11042_v47 = vld [vmem:[#allocation20 + $0x950] sm:$0xf0]  ;;  %v13908_v57 = vadd.f32 %v7069_v37, %v13891_v10  ;;  %v10661_v16 = vor.u32 %v12634_v54, %v10658_v61  ;;  %v12822_v10 = vld [vmem:[#allocation20 + $0xc24] sm:$0xf]  ;;  %v12465_v61 = vld [vmem:[#allocation20 + $0xf4] sm:$0xf0] }
 0x665   :  { %v11045_v3 = vor.u32 %v12730_v62, %v11042_v47  ;;  %7237 = vmatmul.bf16.vlgmr.msrb.gmra.mxu3 %v13905_v63  ;;  %v11413_v53 = vor.u32 %v12822_v10, %v11410_v51  ;;  %v11397_v62 = vor.u32 %v12818_v17, %v11394_v22  ;;  %v10869_v47 = vor.u32 %v12686_v27, %v10866_v35  ;;  %v10834_v10 = vld [vmem:[#allocation20 + $0x7b0] sm:$0xf0]  ;;  %v12774_v51 = vld [vmem:[#allocation20 + $0xaa4] sm:$0xf] }
 0x666   :  { %v7110_v23 = vpop.f32.mrf.mxu1  ;;  %v12770_v17 = vld [vmem:[#allocation20 + $0xa84] sm:$0xf]  ;;  %v11586_v35 = vld [vmem:[#allocation20 + $0xd90] sm:$0xf0] }
 0x667   :  { %7283 = vmatpush.bf16.msra.mxu3 %v10325_v29  ;;  %7322 = vmatpush.bf16.msra.mxu2 %v10709_v4  ;;  %v10258_v29 = vld [vmem:[#allocation20 + $0x330] sm:$0xf0]  ;;  %v12630_v4 = vld [vmem:[#allocation20 + $0x624] sm:$0xf] }
 0x668   :  { %7361 = vmatpush.bf16.msra.mxu1 %v11093_v6  ;;  %7400 = vmatpush.bf16.msrb.mxu0 %v11477_v11  ;;  %v7149_v6 = vpop.f32.mrf.mxu0  ;;  %v11026_v11 = vld [vmem:[#allocation20 + $0x930] sm:$0xf0]  ;;  %v10261_v12 = vor.u32 %v12534_v5, %v10258_v29  ;;  %v10645_v44 = vor.u32 %v12630_v4, %v10642_v8  ;;  %v12778_v23 = vld [vmem:[#allocation20 + $0xac4] sm:$0xf]  ;;  %v9960_v4 = vld [vmem:[#allocation20 + $0xc8] sm:$0xf] }
 0x669   :  { %v7071_v39 = vpop.f32.mrf.mxu2  ;;  %v12874_v5 = vld [vmem:[#allocation20 + $0xdc4] sm:$0xf]  ;;  %v11618_v29 = vld [vmem:[#allocation20 + $0xdd0] sm:$0xf0]  ;;  %v12461_v6 = vld [vmem:[#allocation20 + $0xd4] sm:$0xf0] }
 0x66a   :  { %v11202_v39 = vld [vmem:[#allocation20 + $0xa90] sm:$0xf0]  ;;  %v12866_v27 = vld [vmem:[#allocation20 + $0xd84] sm:$0xf] }
 0x66b   :  { %7284 = vmatpush.bf16.msra.mxu3 %v10309_v59  ;;  %7323 = vmatpush.bf16.msra.mxu2 %v10693_v0  ;;  %v11029_v59 = vor.u32 %v12726_v40, %v11026_v11  ;;  %v3934_v0 = vpop.f32.mrf.mxu3  ;;  %v11621_v40 = vor.u32 %v12874_v5, %v11618_v29  ;;  %v12678_v11 = vld [vmem:[#allocation20 + $0x7a4] sm:$0xf]  ;;  %v11205_v21 = vor.u32 %v12770_v17, %v11202_v39 }
 0x66c   :  { %7362 = vmatpush.bf16.msra.mxu1 %v11077_v19  ;;  %7401 = vmatpush.bf16.msrb.mxu0 %v11461_v13  ;;  %v12626_v19 = vld [vmem:[#allocation20 + $0x604] sm:$0xf]  ;;  %v11010_v13 = vld [vmem:[#allocation20 + $0x910] sm:$0xf0]  ;;  %v12457_v0 = vld [vmem:[#allocation20 + $0xb4] sm:$0xf0] }
 0x66d   :  { %v10629_v46 = vor.u32 %v12626_v19, %v10626_v18  ;;  %v11013_v54 = vor.u32 %v12722_v58, %v11010_v13  ;;  %v10837_v19 = vor.u32 %v12678_v11, %v10834_v10  ;;  %v10818_v13 = vld [vmem:[#allocation20 + $0x790] sm:$0xf0]  ;;  %v12666_v29 = vld [vmem:[#allocation20 + $0x744] sm:$0xf] }
 0x66e   :  { %v12858_v11 = vld [vmem:[#allocation20 + $0xd44] sm:$0xf]  ;;  %v11554_v10 = vld [vmem:[#allocation20 + $0xd50] sm:$0xf0] }
 0x66f   :  { %7285 = vmatpush.bf16.msra.mxu3 %v10293_v28  ;;  %7324 = vmatpush.bf16.msra.mxu2 %v10677_v48  ;;  %v12782_v28 = vld [vmem:[#allocation20 + $0xae4] sm:$0xf]  ;;  %v10245_v48 = vor.u32 %v12530_v20, %v10242_v14  ;;  %v11218_v20 = vld [vmem:[#allocation20 + $0xab0] sm:$0xf0] }
 0x670   :  { %7363 = vmatpush.bf16.msra.mxu1 %v11061_v45  ;;  %7402 = vmatpush.bf16.msrb.mxu0 %v11445_v42  ;;  %v11250_v45 = vld [vmem:[#allocation20 + $0xaf0] sm:$0xf0]  ;;  %v9976_v42 = vld [vmem:[#allocation20 + $0xe8] sm:$0xf]  ;;  %v12870_v14 = vld [vmem:[#allocation20 + $0xda4] sm:$0xf]  ;;  %v11221_v18 = vor.u32 %v12774_v51, %v11218_v20 }
 0x671   :  { %v11253_v37 = vor.u32 %v12782_v28, %v11250_v45  ;;  %v9928_v28 = vld [vmem:[#allocation20 + $0x88] sm:$0xf]  ;;  %v12445_v20 = vld [vmem:[#allocation20 + $0x54] sm:$0xf0]  ;;  %v12854_v39 = vld [vmem:[#allocation20 + $0xd24] sm:$0xf] }
 0x673   :  { %7286 = vmatpush.bf16.msra.mxu3 %v10277_v2  ;;  %7325 = vmatpush.bf16.msra.mxu2 %v10661_v16  ;;  %v10850_v2 = vld [vmem:[#allocation20 + $0x7d0] sm:$0xf0]  ;;  %v9977_v16 = vor.u32 %v12465_v61, %v9976_v42  ;;  %v12766_v61 = vld [vmem:[#allocation20 + $0xa64] sm:$0xf] }
 0x674   :  { %7364 = vmatpush.bf16.msra.mxu1 %v11045_v3  ;;  %7403 = vmatpush.bf16.msrb.mxu0 %v11429_v7  ;;  %v11234_v3 = vld [vmem:[#allocation20 + $0xad0] sm:$0xf0]  ;;  %v10853_v7 = vor.u32 %v12682_v56, %v10850_v2  ;;  %v9912_v56 = vld [vmem:[#allocation20 + $0x68] sm:$0xf]  ;;  %v12449_v2 = vld [vmem:[#allocation20 + $0x74] sm:$0xf0] }
 0x675   :  { %v11237_v8 = vor.u32 %v12778_v23, %v11234_v3  ;;  %v10802_v42 = vld [vmem:[#allocation20 + $0x770] sm:$0xf0] }
 0x677   :  { %7287 = vmatpush.bf16.msra.mxu3 %v10261_v12  ;;  %7326 = vmatpush.bf16.msra.mxu2 %v10645_v44  ;;  %v9961_v12 = vor.u32 %v12461_v6, %v9960_v4  ;;  %v11602_v44 = vld [vmem:[#allocation20 + $0xdb0] sm:$0xf0]  ;;  %v12762_v6 = vld [vmem:[#allocation20 + $0xa44] sm:$0xf] }
 0x678   :  { %7365 = vmatpush.bf16.msra.mxu1 %v11029_v59  ;;  %7404 = vmatpush.bf16.msrb.mxu0 %v11413_v53  ;;  %v9944_v59 = vld [vmem:[#allocation20 + $0xa8] sm:$0xf]  ;;  %v11605_v58 = vor.u32 %v12870_v14, %v11602_v44  ;;  %v12674_v53 = vld [vmem:[#allocation20 + $0x784] sm:$0xf]  ;;  %v10786_v4 = vld [vmem:[#allocation20 + $0x750] sm:$0xf0] }
 0x679   :  { %v9945_v22 = vor.u32 %v12457_v0, %v9944_v59  ;;  %v10821_v60 = vor.u32 %v12674_v53, %v10818_v13  ;;  %v10789_v59 = vor.u32 %v12666_v29, %v10786_v4  ;;  %v10770_v53 = vld [vmem:[#allocation20 + $0x730] sm:$0xf0]  ;;  %v10104_v4 = vld [vmem:[#allocation20 + $0x1e8] sm:$0xf] }
 0x67a   :  { %v11762_v29 = vld [vmem:[#allocation20 + $0xef0] sm:$0xf0] }
 0x67b   :  { %7288 = vmatpush.bf16.msra.mxu3 %v10245_v48  ;;  %7327 = vmatpush.bf16.msra.mxu2 %v10629_v46  ;;  %v12453_v48 = vld [vmem:[#allocation20 + $0x94] sm:$0xf0]  ;;  %v11589_v46 = vor.u32 %v12866_v27, %v11586_v35  ;;  %v11538_v27 = vld [vmem:[#allocation20 + $0xd30] sm:$0xf0]  ;;  %v9880_v35 = vld [vmem:[#allocation20 + $0x28] sm:$0xf] }
 0x67c   :  { %7366 = vmatpush.bf16.msra.mxu1 %v11013_v54  ;;  %7405 = vmatpush.bf16.msrb.mxu0 %v11397_v62  ;;  %v12670_v54 = vld [vmem:[#allocation20 + $0x764] sm:$0xf]  ;;  %v9929_v62 = vor.u32 %v12453_v48, %v9928_v28 }
 0x67d   :  { %v10805_v23 = vor.u32 %v12670_v54, %v10802_v42  ;;  %v11541_v54 = vor.u32 %v12854_v39, %v11538_v27  ;;  %v12754_v42 = vld [vmem:[#allocation20 + $0xa04] sm:$0xf] }
 0x67e   :  { %7328 = vmatmul.bf16.vlgmr.msra.gmra.mxu2 %v13856_v1  ;;  %7289 = vmatmul.bf16.vlgmr.msra.gmra.mxu3 %v13852_v25  ;;  %v13915_v45 = vpop.f32.mrf.mxu1 }
 0x67f   :  { %7333 = vmatpush.bf16.msrb.mxu3 %v10869_v47  ;;  %7372 = vmatpush.bf16.msrb.mxu2 %v11253_v37  ;;  %v11186_v47 = vld [vmem:[#allocation20 + $0xa70] sm:$0xf0]  ;;  %v12862_v37 = vld [vmem:[#allocation20 + $0xd64] sm:$0xf] }
 0x680   :  { %7411 = vmatpush.bf16.msrb.mxu1 %v11637_v52  ;;  %7450 = vmatpush.bf16.msra.mxu0 %v9977_v16  ;;  %v11570_v52 = vld [vmem:[#allocation20 + $0xd70] sm:$0xf0]  ;;  %v11189_v16 = vor.u32 %v12766_v61, %v11186_v47 }
 0x681   :  { %7367 = vmatmul.bf16.vlgmr.msra.gmra.mxu1 %v13860_v34  ;;  %7406 = vmatmul.bf16.vlgmr.msrb.gmra.mxu0 %v13867_v30  ;;  %v11573_v3 = vor.u32 %v12862_v37, %v11570_v52  ;;  %v7082_v5 = vpop.f32.mrf.mxu3  ;;  %v7121_v51 = vpop.f32.mrf.mxu2  ;;  %v11138_v61 = vld [vmem:[#allocation20 + $0xa10] sm:$0xf0]  ;;  %v9864_v52 = vld [vmem:[#allocation20 + $0x8] sm:$0xf] }
 0x682   :  { %v11522_v37 = vld [vmem:[#allocation20 + $0xd10] sm:$0xf0] }
 0x683   :  { %7334 = vmatpush.bf16.msrb.mxu3 %v10853_v7  ;;  %7373 = vmatpush.bf16.msrb.mxu2 %v11237_v8  ;;  %v9913_v7 = vor.u32 %v12449_v2, %v9912_v56  ;;  %v7083_v8 = vadd.f32 %v7082_v5, %v13908_v57  ;;  %v12758_v57 = vld [vmem:[#allocation20 + $0xa24] sm:$0xf]  ;;  %v12437_v56 = vld [vmem:[#allocation20 + $0x14] sm:$0xf0] }
 0x684   :  { %7412 = vmatpush.bf16.msrb.mxu1 %v11621_v40  ;;  %7451 = vmatpush.bf16.msra.mxu0 %v9961_v12  ;;  %v11170_v40 = vld [vmem:[#allocation20 + $0xa50] sm:$0xf0]  ;;  %v9896_v12 = vld [vmem:[#allocation20 + $0x48] sm:$0xf] }
 0x685   :  { %v7096_v14 = vadd.f32 %v13896_v49, %v7083_v8  ;;  %v11173_v0 = vor.u32 %v12762_v6, %v11170_v40  ;;  %v9897_v13 = vor.u32 %v12445_v20, %v9896_v12  ;;  %v12441_v49 = vld [vmem:[#allocation20 + $0x34] sm:$0xf0]  ;;  %v10488_v40 = vld [vmem:[#allocation20 + $0x4e8] sm:$0xf] }
 0x686   :  { %v7162_v44 = vpop.f32.mrf.mxu1  ;;  %v12497_v6 = vld [vmem:[#allocation20 + $0x1f4] sm:$0xf0] }
 0x687   :  { %7335 = vmatpush.bf16.msrb.mxu3 %v10837_v19  ;;  %7374 = vmatpush.bf16.msrb.mxu2 %v11221_v18  ;;  %v11557_v19 = vor.u32 %v12858_v11, %v11554_v10  ;;  %v13919_v18 = vpop.f32.mrf.mxu0  ;;  %v7109_v17 = vadd.f32 %v13901_v24, %v7096_v14  ;;  %v9881_v24 = vor.u32 %v12441_v49, %v9880_v35  ;;  %v12593_v11 = vld [vmem:[#allocation20 + $0x4f4] sm:$0xf0]  ;;  %v12810_v44 = vld [vmem:[#allocation20 + $0xbc4] sm:$0xf]  ;;  %v11346_v49 = vld [vmem:[#allocation20 + $0xbb0] sm:$0xf0] }
 0x688   :  { %7413 = vmatpush.bf16.msrb.mxu1 %v11605_v58  ;;  %7452 = vmatpush.bf16.msra.mxu0 %v9945_v22  ;;  %v12662_v58 = vld [vmem:[#allocation20 + $0x724] sm:$0xf]  ;;  %v11154_v22 = vld [vmem:[#allocation20 + $0xa30] sm:$0xf0]  ;;  %v10105_v14 = vor.u32 %v12497_v6, %v10104_v4 }
 0x689   :  { %v13922_v28 = vadd.f32 %v7121_v51, %v7109_v17  ;;  %v10773_v48 = vor.u32 %v12662_v58, %v10770_v53  ;;  %v7084_v47 = vpop.f32.mrf.mxu3  ;;  %v7123_v2 = vpop.f32.mrf.mxu2  ;;  %v9865_v51 = vor.u32 %v12437_v56, %v9864_v52  ;;  %v11746_v58 = vld [vmem:[#allocation20 + $0xed0] sm:$0xf0]  ;;  %v10088_v53 = vld [vmem:[#allocation20 + $0x1c8] sm:$0xf]  ;;  %v12589_v17 = vld [vmem:[#allocation20 + $0x4d4] sm:$0xf0] }
 0x68a   :  { %v12806_v35 = vld [vmem:[#allocation20 + $0xba4] sm:$0xf]  ;;  %v11330_v52 = vld [vmem:[#allocation20 + $0xb90] sm:$0xf0] }
 0x68b   :  { %7336 = vmatpush.bf16.msrb.mxu3 %v10821_v60  ;;  %7375 = vmatpush.bf16.msrb.mxu2 %v11205_v21  ;;  %v12658_v60 = vld [vmem:[#allocation20 + $0x704] sm:$0xf]  ;;  %v10754_v21 = vld [vmem:[#allocation20 + $0x710] sm:$0xf0] }
 0x68c   :  { %7414 = vmatpush.bf16.msrb.mxu1 %v11589_v46  ;;  %7453 = vmatpush.bf16.msra.mxu0 %v9929_v62  ;;  %v11157_v46 = vor.u32 %v12758_v57, %v11154_v22  ;;  %v12850_v62 = vld [vmem:[#allocation20 + $0xd04] sm:$0xf]  ;;  %v10757_v5 = vor.u32 %v12658_v60, %v10754_v21  ;;  %v12493_v57 = vld [vmem:[#allocation20 + $0x1d4] sm:$0xf0]  ;;  %v11730_v21 = vld [vmem:[#allocation20 + $0xeb0] sm:$0xf0] }
 0x68d   :  { %v11525_v8 = vor.u32 %v12850_v62, %v11522_v37  ;;  %v10089_v27 = vor.u32 %v12493_v57, %v10088_v53  ;;  %v11349_v62 = vor.u32 %v12806_v35, %v11346_v49  ;;  %v12802_v37 = vld [vmem:[#allocation20 + $0xb84] sm:$0xf]  ;;  %v11682_v35 = vld [vmem:[#allocation20 + $0xe50] sm:$0xf0]  ;;  %v10024_v49 = vld [vmem:[#allocation20 + $0x148] sm:$0xf] }
 0x68e   :  { %v12898_v56 = vld [vmem:[#allocation20 + $0xe84] sm:$0xf]  ;;  %v11333_v6 = vor.u32 %v12802_v37, %v11330_v52  ;;  %v11282_v37 = vld [vmem:[#allocation20 + $0xb30] sm:$0xf0] }
 0x68f   :  { %7337 = vmatpush.bf16.msrb.mxu3 %v10805_v23  ;;  %7376 = vmatpush.bf16.msrb.mxu2 %v11189_v16  ;;  %v12814_v23 = vld [vmem:[#allocation20 + $0xbe4] sm:$0xf]  ;;  %v11378_v16 = vld [vmem:[#allocation20 + $0xbf0] sm:$0xf0]  ;;  %v7201_v10 = vpop.f32.mrf.mxu0 }
 0x690   :  { %7415 = vmatpush.bf16.msrb.mxu1 %v11573_v3  ;;  %7454 = vmatpush.bf16.msra.mxu0 %v9913_v7  ;;  %v12910_v3 = vld [vmem:[#allocation20 + $0xee4] sm:$0xf]  ;;  %v11141_v7 = vor.u32 %v12754_v42, %v11138_v61  ;;  %v11381_v12 = vor.u32 %v12814_v23, %v11378_v16  ;;  %v10456_v42 = vld [vmem:[#allocation20 + $0x4a8] sm:$0xf]  ;;  %v12585_v61 = vld [vmem:[#allocation20 + $0x4b4] sm:$0xf0] }
 0x691   :  { %v11765_v20 = vor.u32 %v12910_v3, %v11762_v29  ;;  %v10457_v2 = vor.u32 %v12585_v61, %v10456_v42  ;;  %v11714_v23 = vld [vmem:[#allocation20 + $0xe90] sm:$0xf0]  ;;  %v10056_v16 = vld [vmem:[#allocation20 + $0x188] sm:$0xf]  ;;  %v12485_v3 = vld [vmem:[#allocation20 + $0x194] sm:$0xf0] }
 0x692   :  { %v12581_v29 = vld [vmem:[#allocation20 + $0x494] sm:$0xf0]  ;;  %v12894_v10 = vld [vmem:[#allocation20 + $0xe64] sm:$0xf] }
 0x693   :  { %7338 = vmatpush.bf16.msrb.mxu3 %v10789_v59  ;;  %7377 = vmatpush.bf16.msrb.mxu2 %v11173_v0  ;;  %v11362_v59 = vld [vmem:[#allocation20 + $0xbd0] sm:$0xf0]  ;;  %v12906_v0 = vld [vmem:[#allocation20 + $0xec4] sm:$0xf] }
 0x694   :  { %7416 = vmatpush.bf16.msrb.mxu1 %v11557_v19  ;;  %7455 = vmatpush.bf16.msra.mxu0 %v9897_v13  ;;  %v10489_v19 = vor.u32 %v12593_v11, %v10488_v40  ;;  %v10472_v13 = vld [vmem:[#allocation20 + $0x4c8] sm:$0xf]  ;;  %v11365_v22 = vor.u32 %v12810_v44, %v11362_v59  ;;  %v11749_v39 = vor.u32 %v12906_v0, %v11746_v58  ;;  %v12798_v40 = vld [vmem:[#allocation20 + $0xb64] sm:$0xf]  ;;  %v11314_v11 = vld [vmem:[#allocation20 + $0xb70] sm:$0xf0] }
 0x695   :  { %v10473_v60 = vor.u32 %v12589_v17, %v10472_v13  ;;  %v10424_v44 = vld [vmem:[#allocation20 + $0x468] sm:$0xf]  ;;  %v12577_v59 = vld [vmem:[#allocation20 + $0x474] sm:$0xf0]  ;;  %v11317_v0 = vor.u32 %v12798_v40, %v11314_v11  ;;  %v12794_v57 = vld [vmem:[#allocation20 + $0xb44] sm:$0xf] }
 0x696   :  { %v11298_v13 = vld [vmem:[#allocation20 + $0xb50] sm:$0xf0]  ;;  %v12890_v17 = vld [vmem:[#allocation20 + $0xe44] sm:$0xf] }
 0x697   :  { %7339 = vmatpush.bf16.msrb.mxu3 %v10773_v48  ;;  %7378 = vmatpush.bf16.msrb.mxu2 %v11157_v46  ;;  %v12902_v48 = vld [vmem:[#allocation20 + $0xea4] sm:$0xf]  ;;  %v10072_v46 = vld [vmem:[#allocation20 + $0x1a8] sm:$0xf]  ;;  %v11301_v42 = vor.u32 %v12794_v57, %v11298_v13  ;;  %v12529_v57 = vld [vmem:[#allocation20 + $0x2f4] sm:$0xf0] }
 0x698   :  { %7417 = vmatpush.bf16.msrb.mxu1 %v11541_v54  ;;  %7456 = vmatpush.bf16.msra.mxu0 %v9881_v24  ;;  %v12489_v54 = vld [vmem:[#allocation20 + $0x1b4] sm:$0xf0]  ;;  %v11733_v47 = vor.u32 %v12902_v48, %v11730_v21  ;;  %v10616_v13 = vld [vmem:[#allocation20 + $0x5e8] sm:$0xf] }
 0x699   :  { %v10073_v24 = vor.u32 %v12489_v54, %v10072_v46  ;;  %v12477_v48 = vld [vmem:[#allocation20 + $0x154] sm:$0xf0] }
 0x69a   :  { %v12573_v21 = vld [vmem:[#allocation20 + $0x454] sm:$0xf0] }
 0x69b   :  { %7340 = vmatpush.bf16.msrb.mxu3 %v10757_v5  ;;  %7379 = vmatpush.bf16.msrb.mxu2 %v11141_v7  ;;  %v10440_v5 = vld [vmem:[#allocation20 + $0x488] sm:$0xf]  ;;  %v11717_v7 = vor.u32 %v12898_v56, %v11714_v23 }
 0x69c   :  { %7418 = vmatpush.bf16.msrb.mxu1 %v11525_v8  ;;  %7457 = vmatpush.bf16.msra.mxu0 %v9865_v51  ;;  %v10057_v8 = vor.u32 %v12485_v3, %v10056_v16  ;;  %v10441_v51 = vor.u32 %v12581_v29, %v10440_v5  ;;  %v10008_v23 = vld [vmem:[#allocation20 + $0x128] sm:$0xf]  ;;  %v12473_v16 = vld [vmem:[#allocation20 + $0x134] sm:$0xf0] }
 0x69d   :  { %v10392_v3 = vld [vmem:[#allocation20 + $0x428] sm:$0xf]  ;;  %v10009_v40 = vor.u32 %v12473_v16, %v10008_v23 }
 0x69e   :  { %7341 = vmatmul.bf16.vlgmr.msrb.gmra.mxu3 %v13872_v33  ;;  %7380 = vmatmul.bf16.vlgmr.msrb.gmra.mxu2 %v13876_v15  ;;  %v13928_v4 = vpop.f32.mrf.mxu0  ;;  %v13932_v61 = vpop.f32.mrf.mxu1 }
 0x69f   :  { %7385 = vmatpush.bf16.msra.mxu3 %v11381_v12  ;;  %7424 = vmatpush.bf16.msra.mxu2 %v11765_v20  ;;  %v11698_v12 = vld [vmem:[#allocation20 + $0xe70] sm:$0xf0]  ;;  %v10040_v20 = vld [vmem:[#allocation20 + $0x168] sm:$0xf] }
 0x6a0   :  { %7463 = vmatpush.bf16.msra.mxu1 %v10105_v14  ;;  %7502 = vmatpush.bf16.msrb.mxu0 %v10489_v19  ;;  %v12481_v14 = vld [vmem:[#allocation20 + $0x174] sm:$0xf0]  ;;  %v11701_v19 = vor.u32 %v12894_v10, %v11698_v12  ;;  %v12882_v10 = vld [vmem:[#allocation20 + $0xe04] sm:$0xf] }
 0x6a1   :  { %7419 = vmatmul.bf16.vlgmr.msrb.gmra.mxu1 %v13881_v36  ;;  %7458 = vmatmul.bf16.vlgmr.msra.gmra.mxu0 %v13794_v55  ;;  %v10041_v58 = vor.u32 %v12481_v14, %v10040_v20  ;;  %v7134_v53 = vpop.f32.mrf.mxu3  ;;  %v12469_v14 = vld [vmem:[#allocation20 + $0x114] sm:$0xf0] }
 0x6a3   :  { %7386 = vmatpush.bf16.msra.mxu3 %v11365_v22  ;;  %7425 = vmatpush.bf16.msra.mxu2 %v11749_v39  ;;  %v10425_v22 = vor.u32 %v12577_v59, %v10424_v44  ;;  %v7135_v39 = vadd.f32 %v7134_v53, %v13922_v28  ;;  %v12886_v28 = vld [vmem:[#allocation20 + $0xe24] sm:$0xf]  ;;  %v10376_v44 = vld [vmem:[#allocation20 + $0x408] sm:$0xf]  ;;  %v12565_v59 = vld [vmem:[#allocation20 + $0x414] sm:$0xf0] }
 0x6a4   :  { %7464 = vmatpush.bf16.msra.mxu1 %v10089_v27  ;;  %7503 = vmatpush.bf16.msrb.mxu0 %v10473_v60  ;;  %v7173_v27 = vpop.f32.mrf.mxu2  ;;  %v10408_v60 = vld [vmem:[#allocation20 + $0x448] sm:$0xf] }
 0x6a5   :  { %v7148_v46 = vadd.f32 %v13903_v26, %v7135_v39  ;;  %v10409_v56 = vor.u32 %v12573_v21, %v10408_v60  ;;  %v12569_v26 = vld [vmem:[#allocation20 + $0x434] sm:$0xf0] }
 0x6a6   :  { %v7253_v54 = vpop.f32.mrf.mxu0  ;;  %v10393_v12 = vor.u32 %v12569_v26, %v10392_v3  ;;  %v12934_v3 = vld [vmem:[#allocation20 + $0xfa4] sm:$0xf]  ;;  %v11858_v26 = vld [vmem:[#allocation20 + $0xfb0] sm:$0xf0] }
 0x6a7   :  { %7387 = vmatpush.bf16.msra.mxu3 %v11349_v62  ;;  %7426 = vmatpush.bf16.msra.mxu2 %v11733_v47  ;;  %v11685_v62 = vor.u32 %v12890_v17, %v11682_v35  ;;  %v10025_v47 = vor.u32 %v12477_v48, %v10024_v49  ;;  %v7161_v52 = vadd.f32 %v13915_v45, %v7148_v46  ;;  %v9992_v45 = vld [vmem:[#allocation20 + $0x108] sm:$0xf]  ;;  %v12625_v17 = vld [vmem:[#allocation20 + $0x5f4] sm:$0xf0]  ;;  %v12938_v54 = vld [vmem:[#allocation20 + $0xfc4] sm:$0xf] }
 0x6a8   :  { %7465 = vmatpush.bf16.msra.mxu1 %v10073_v24  ;;  %7504 = vmatpush.bf16.msrb.mxu0 %v10457_v2  ;;  %v12790_v24 = vld [vmem:[#allocation20 + $0xb24] sm:$0xf]  ;;  %v11666_v2 = vld [vmem:[#allocation20 + $0xe30] sm:$0xf0]  ;;  %v11000_v35 = vld [vmem:[#allocation20 + $0x8e8] sm:$0xf]  ;;  %v10377_v48 = vor.u32 %v12565_v59, %v10376_v44  ;;  %v10617_v46 = vor.u32 %v12625_v17, %v10616_v13 }
 0x6a9   :  { %v13935_v5 = vadd.f32 %v7173_v27, %v7161_v52  ;;  %v11285_v29 = vor.u32 %v12790_v24, %v11282_v37  ;;  %v7136_v11 = vpop.f32.mrf.mxu3  ;;  %v9993_v27 = vor.u32 %v12469_v14, %v9992_v45  ;;  %v12721_v49 = vld [vmem:[#allocation20 + $0x8f4] sm:$0xf0]  ;;  %v10600_v37 = vld [vmem:[#allocation20 + $0x5c8] sm:$0xf]  ;;  %v12930_v44 = vld [vmem:[#allocation20 + $0xf84] sm:$0xf] }
 0x6aa   :  { %v12525_v24 = vld [vmem:[#allocation20 + $0x2d4] sm:$0xf0]  ;;  %v10984_v52 = vld [vmem:[#allocation20 + $0x8c8] sm:$0xf]  ;;  %v13009_v11 = vld [vmem:[#allocation22] sm:$0xf] }
 0x6ab   :  { %7388 = vmatpush.bf16.msra.mxu3 %v11333_v6  ;;  %7427 = vmatpush.bf16.msra.mxu2 %v11717_v7  ;;  %v12786_v6 = vld [vmem:[#allocation20 + $0xb04] sm:$0xf]  ;;  %v11266_v7 = vld [vmem:[#allocation20 + $0xb10] sm:$0xf0]  ;;  %v12713_v45 = vld [vmem:[#allocation20 + $0x8b4] sm:$0xf0] }
 0x6ac   :  { %7466 = vmatpush.bf16.msra.mxu1 %v10057_v8  ;;  %7505 = vmatpush.bf16.msrb.mxu0 %v10441_v51  ;;  %v11669_v8 = vor.u32 %v12886_v28, %v11666_v2  ;;  %v11650_v51 = vld [vmem:[#allocation20 + $0xe10] sm:$0xf0]  ;;  %v7175_v20 = vpop.f32.mrf.mxu2  ;;  %v11269_v53 = vor.u32 %v12786_v6, %v11266_v7  ;;  %v12621_v28 = vld [vmem:[#allocation20 + $0x5d4] sm:$0xf0]  ;;  %v10952_v17 = vld [vmem:[#allocation20 + $0x888] sm:$0xf] }
 0x6ad   :  { %v11653_v39 = vor.u32 %v12882_v10, %v11650_v51  ;;  %v10601_v16 = vor.u32 %v12621_v28, %v10600_v37  ;;  %v12521_v7 = vld [vmem:[#allocation20 + $0x2b4] sm:$0xf0]  ;;  %v4467_v10 = vperm.slane %v13009_v11, 1  ;;  %v10968_v51 = vld [vmem:[#allocation20 + $0x8a8] sm:$0xf] }
 0x6ae   :  { %v11842_v59 = vld [vmem:[#allocation20 + $0xf90] sm:$0xf0]  ;;  %v12705_v37 = vld [vmem:[#allocation20 + $0x874] sm:$0xf0] }
 0x6af   :  { %7389 = vmatpush.bf16.msra.mxu3 %v11317_v0  ;;  %7428 = vmatpush.bf16.msra.mxu2 %v11701_v19  ;;  %v12942_v0 = vld [vmem:[#allocation20 + $0xfe4] sm:$0xf]  ;;  %v11890_v19 = vld [vmem:[#allocation20 + $0xff0] sm:$0xf0]  ;;  %v7252_v13 = vadd.f32 %v13928_v4, %v4467_v10  ;;  %v10552_v4 = vld [vmem:[#allocation20 + $0x568] sm:$0xf] }
 0x6b0   :  { %7467 = vmatpush.bf16.msra.mxu1 %v10041_v58  ;;  %7506 = vmatpush.bf16.msrb.mxu0 %v10425_v22  ;;  %v10232_v58 = vld [vmem:[#allocation20 + $0x2e8] sm:$0xf]  ;;  %v7214_v22 = vpop.f32.mrf.mxu1  ;;  %v11893_v60 = vor.u32 %v12942_v0, %v11890_v19  ;;  %v10969_v19 = vor.u32 %v12713_v45, %v10968_v51  ;;  %v12701_v11 = vld [vmem:[#allocation20 + $0x854] sm:$0xf0] }
 0x6b1   :  { %v10233_v21 = vor.u32 %v12529_v57, %v10232_v58  ;;  %v10184_v0 = vld [vmem:[#allocation20 + $0x288] sm:$0xf]  ;;  %v12517_v58 = vld [vmem:[#allocation20 + $0x294] sm:$0xf0] }
 0x6b2   :  { %v12613_v57 = vld [vmem:[#allocation20 + $0x594] sm:$0xf0] }
 0x6b3   :  { %7390 = vmatpush.bf16.msra.mxu3 %v11301_v42  ;;  %7429 = vmatpush.bf16.msra.mxu2 %v11685_v62  ;;  %v11874_v42 = vld [vmem:[#allocation20 + $0xfd0] sm:$0xf0]  ;;  %v10216_v62 = vld [vmem:[#allocation20 + $0x2c8] sm:$0xf]  ;;  %v12709_v22 = vld [vmem:[#allocation20 + $0x894] sm:$0xf0] }
 0x6b4   :  { %7468 = vmatpush.bf16.msra.mxu1 %v10025_v47  ;;  %7507 = vmatpush.bf16.msrb.mxu0 %v10409_v56  ;;  %v11001_v47 = vor.u32 %v12721_v49, %v11000_v35  ;;  %v12717_v56 = vld [vmem:[#allocation20 + $0x8d4] sm:$0xf0]  ;;  %v11877_v2 = vor.u32 %v12938_v54, %v11874_v42  ;;  %v10217_v23 = vor.u32 %v12525_v24, %v10216_v62  ;;  %v10168_v54 = vld [vmem:[#allocation20 + $0x268] sm:$0xf] }
 0x6b5   :  { %v10985_v6 = vor.u32 %v12717_v56, %v10984_v52  ;;  %v11845_v35 = vor.u32 %v12930_v44, %v11842_v59  ;;  %v10953_v42 = vor.u32 %v12709_v22, %v10952_v17  ;;  %v12513_v62 = vld [vmem:[#allocation20 + $0x274] sm:$0xf0]  ;;  %v10936_v24 = vld [vmem:[#allocation20 + $0x868] sm:$0xf]  ;;  %v12918_v44 = vld [vmem:[#allocation20 + $0xf24] sm:$0xf] }
 0x6b6   :  { %v10169_v52 = vor.u32 %v12513_v62, %v10168_v54  ;;  %v11794_v59 = vld [vmem:[#allocation20 + $0xf30] sm:$0xf0]  ;;  %v12697_v17 = vld [vmem:[#allocation20 + $0x834] sm:$0xf0]  ;;  %v12914_v22 = vld [vmem:[#allocation20 + $0xf04] sm:$0xf] }
 0x6b7   :  { %7391 = vmatpush.bf16.msra.mxu3 %v11285_v29  ;;  %7430 = vmatpush.bf16.msra.mxu2 %v11669_v8  ;;  %v10200_v29 = vld [vmem:[#allocation20 + $0x2a8] sm:$0xf]  ;;  %v12597_v62 = vld [vmem:[#allocation20 + $0x514] sm:$0xf0] }
 0x6b8   :  { %7469 = vmatpush.bf16.msra.mxu1 %v10009_v40  ;;  %7508 = vmatpush.bf16.msrb.mxu0 %v10393_v12  ;;  %v10584_v8 = vld [vmem:[#allocation20 + $0x5a8] sm:$0xf]  ;;  %v12617_v40 = vld [vmem:[#allocation20 + $0x5b4] sm:$0xf0]  ;;  %v11861_v12 = vor.u32 %v12934_v3, %v11858_v26  ;;  %v10201_v20 = vor.u32 %v12521_v7, %v10200_v29  ;;  %v10937_v26 = vor.u32 %v12705_v37, %v10936_v24 }
 0x6b9   :  { %v10585_v14 = vor.u32 %v12617_v40, %v10584_v8  ;;  %v10152_v3 = vld [vmem:[#allocation20 + $0x248] sm:$0xf]  ;;  %v12605_v8 = vld [vmem:[#allocation20 + $0x554] sm:$0xf0] }
 0x6ba   :  { %v10536_v7 = vld [vmem:[#allocation20 + $0x548] sm:$0xf]  ;;  %v12561_v24 = vld [vmem:[#allocation20 + $0x3f4] sm:$0xf0] }
 0x6bb   :  { %7392 = vmatpush.bf16.msra.mxu3 %v11269_v53  ;;  %7431 = vmatpush.bf16.msra.mxu2 %v11653_v39  ;;  %v10568_v53 = vld [vmem:[#allocation20 + $0x588] sm:$0xf] }
 0x6bc   :  { %7470 = vmatpush.bf16.msra.mxu1 %v9993_v27  ;;  %7509 = vmatpush.bf16.msrb.mxu0 %v10377_v48  ;;  %v10185_v48 = vor.u32 %v12517_v58, %v10184_v0  ;;  %v10920_v40 = vld [vmem:[#allocation20 + $0x848] sm:$0xf] }
 0x6bd   :  { %v10136_v0 = vld [vmem:[#allocation20 + $0x228] sm:$0xf] }
 0x6be   :  { %7393 = vmatmul.bf16.vlgmr.msra.gmra.mxu3 %v13886_v50  ;;  %7432 = vmatmul.bf16.vlgmr.msra.gmra.mxu2 %v13893_v9  ;;  %v7264_v39 = vpop.f32.mrf.mxu1  ;;  %v13942_v27 = vpop.f32.mrf.mxu0  ;;  %v10520_v58 = vld [vmem:[#allocation20 + $0x528] sm:$0xf] }
 0x6bf   :  { %7437 = vmatpush.bf16.msrb.mxu3 %v11893_v60  ;;  %7476 = vmatpush.bf16.msrb.mxu2 %v10233_v21  ;;  %v13944_v49 = vadd.f32 %v7264_v39, %v7252_v13  ;;  %v10569_v60 = vor.u32 %v12613_v57, %v10568_v53  ;;  %v12926_v21 = vld [vmem:[#allocation20 + $0xf64] sm:$0xf]  ;;  %v12601_v53 = vld [vmem:[#allocation20 + $0x534] sm:$0xf0]  ;;  %v10904_v13 = vld [vmem:[#allocation20 + $0x828] sm:$0xf] }
 0x6c0   :  { %7515 = vmatpush.bf16.msrb.mxu1 %v10617_v46  ;;  %7554 = vmatpush.bf16.msra.mxu0 %v11001_v47  ;;  %v11826_v46 = vld [vmem:[#allocation20 + $0xf70] sm:$0xf0]  ;;  %v12609_v47 = vld [vmem:[#allocation20 + $0x574] sm:$0xf0]  ;;  %v10504_v54 = vld [vmem:[#allocation20 + $0x508] sm:$0xf] }
 0x6c1   :  { %7471 = vmatmul.bf16.vlgmr.msra.gmra.mxu1 %v13804_v31  ;;  %7510 = vmatmul.bf16.vlgmr.msrb.gmra.mxu0 %v13806_v32  ;;  %v11829_v28 = vor.u32 %v12926_v21, %v11826_v46  ;;  %v10553_v56 = vor.u32 %v12609_v47, %v10552_v4  ;;  %v11778_v39 = vld [vmem:[#allocation20 + $0xf10] sm:$0xf0]  ;;  %v10120_v21 = vld [vmem:[#allocation20 + $0x208] sm:$0xf]  ;;  %v12501_v46 = vld [vmem:[#allocation20 + $0x214] sm:$0xf0] }
 0x6c2   :  { %v10888_v4 = vld [vmem:[#allocation20 + $0x808] sm:$0xf]  ;;  %v12693_v47 = vld [vmem:[#allocation20 + $0x814] sm:$0xf0] }
 0x6c3   :  { %7438 = vmatpush.bf16.msrb.mxu3 %v11877_v2  ;;  %7477 = vmatpush.bf16.msrb.mxu2 %v10217_v23  ;;  %v7186_v2 = vpop.f32.mrf.mxu3  ;;  %v12922_v23 = vld [vmem:[#allocation20 + $0xf44] sm:$0xf]  ;;  %v10744_v37 = vld [vmem:[#allocation20 + $0x6e8] sm:$0xf] }
 0x6c4   :  { %7516 = vmatpush.bf16.msrb.mxu1 %v10601_v16  ;;  %7555 = vmatpush.bf16.msra.mxu0 %v10985_v6  ;;  %v11810_v16 = vld [vmem:[#allocation20 + $0xf50] sm:$0xf0]  ;;  %v7187_v29 = vadd.f32 %v7186_v2, %v13935_v5  ;;  %v12509_v6 = vld [vmem:[#allocation20 + $0x254] sm:$0xf0]  ;;  %v10921_v5 = vor.u32 %v12701_v11, %v10920_v40  ;;  %v10344_v40 = vld [vmem:[#allocation20 + $0x3c8] sm:$0xf] }
 0x6c5   :  { %v12753_v2 = vld [vmem:[#allocation20 + $0x9f4] sm:$0xf0] }
 0x6c6   :  { %v7200_v10 = vadd.f32 %v13919_v18, %v7187_v29  ;;  %v7266_v51 = vpop.f32.mrf.mxu1  ;;  %v7305_v45 = vpop.f32.mrf.mxu0  ;;  %v11797_v18 = vor.u32 %v12918_v44, %v11794_v59  ;;  %v10889_v29 = vor.u32 %v12693_v47, %v10888_v4  ;;  %v12557_v11 = vld [vmem:[#allocation20 + $0x3d4] sm:$0xf0]  ;;  %v11496_v59 = vld [vmem:[#allocation20 + $0xcc8] sm:$0xf] }
 0x6c7   :  { %7439 = vmatpush.bf16.msrb.mxu3 %v11861_v12  ;;  %7478 = vmatpush.bf16.msrb.mxu2 %v10201_v20  ;;  %v11813_v12 = vor.u32 %v12922_v23, %v11810_v16  ;;  %v10153_v20 = vor.u32 %v12509_v6, %v10152_v3  ;;  %v10121_v23 = vor.u32 %v12501_v46, %v10120_v21  ;;  %v11512_v3 = vld [vmem:[#allocation20 + $0xce8] sm:$0xf] }
 0x6c8   :  { %7517 = vmatpush.bf16.msrb.mxu1 %v10585_v14  ;;  %7556 = vmatpush.bf16.msra.mxu0 %v10969_v19  ;;  %v10537_v14 = vor.u32 %v12605_v8, %v10536_v7  ;;  %v12505_v19 = vld [vmem:[#allocation20 + $0x234] sm:$0xf0]  ;;  %v7213_v57 = vadd.f32 %v13932_v61, %v7200_v10  ;;  %v10360_v61 = vld [vmem:[#allocation20 + $0x3e8] sm:$0xf]  ;;  %v10505_v16 = vor.u32 %v12597_v62, %v10504_v54  ;;  %v7225_v51 = vpop.f32.mrf.mxu2 }
 0x6c9   :  { %v10361_v6 = vor.u32 %v12561_v24, %v10360_v61  ;;  %v10728_v10 = vld [vmem:[#allocation20 + $0x6c8] sm:$0xf]  ;;  %v12645_v61 = vld [vmem:[#allocation20 + $0x694] sm:$0xf0] }
 0x6ca   :  { %v13949_v44 = vadd.f32 %v7225_v51, %v7213_v57  ;;  %v12649_v57 = vld [vmem:[#allocation20 + $0x6b4] sm:$0xf0]  ;;  %v10312_v54 = vld [vmem:[#allocation20 + $0x388] sm:$0xf] }
 0x6cb   :  { %7440 = vmatpush.bf16.msrb.mxu3 %v11845_v35  ;;  %7479 = vmatpush.bf16.msrb.mxu2 %v10185_v48  ;;  %v10137_v35 = vor.u32 %v12505_v19, %v10136_v0  ;;  %v10521_v48 = vor.u32 %v12601_v53, %v10520_v58  ;;  %v12845_v0 = vld [vmem:[#allocation20 + $0xcd4] sm:$0xf0]  ;;  %v10328_v53 = vld [vmem:[#allocation20 + $0x3a8] sm:$0xf] }
 0x6cc   :  { %7518 = vmatpush.bf16.msrb.mxu1 %v10569_v60  ;;  %7557 = vmatpush.bf16.msra.mxu0 %v10953_v42  ;;  %v7188_v60 = vpop.f32.mrf.mxu3  ;;  %v10905_v42 = vor.u32 %v12697_v17, %v10904_v13  ;;  %v12553_v13 = vld [vmem:[#allocation20 + $0x3b4] sm:$0xf0]  ;;  %v10712_v17 = vld [vmem:[#allocation20 + $0x6a8] sm:$0xf] }
 0x6cd   :  { %v10329_v60 = vor.u32 %v12553_v13, %v10328_v53  ;;  %v10713_v21 = vor.u32 %v12649_v57, %v10712_v17  ;;  %v10696_v62 = vld [vmem:[#allocation20 + $0x688] sm:$0xf]  ;;  %v12833_v51 = vld [vmem:[#allocation20 + $0xc74] sm:$0xf0] }
 0x6ce   :  { %v11080_v24 = vld [vmem:[#allocation20 + $0x988] sm:$0xf]  ;;  %v12733_v53 = vld [vmem:[#allocation20 + $0x954] sm:$0xf0] }
 0x6cf   :  { %7441 = vmatpush.bf16.msrb.mxu3 %v11829_v28  ;;  %7480 = vmatpush.bf16.msrb.mxu2 %v10169_v52  ;;  %v11781_v28 = vor.u32 %v12914_v22, %v11778_v39  ;;  %v12657_v52 = vld [vmem:[#allocation20 + $0x6f4] sm:$0xf0]  ;;  %v11096_v22 = vld [vmem:[#allocation20 + $0x9a8] sm:$0xf] }
 0x6d0   :  { %7519 = vmatpush.bf16.msrb.mxu1 %v10553_v56  ;;  %7558 = vmatpush.bf16.msra.mxu0 %v10937_v26  ;;  %v11128_v56 = vld [vmem:[#allocation20 + $0x9e8] sm:$0xf]  ;;  %v12849_v26 = vld [vmem:[#allocation20 + $0xcf4] sm:$0xf0]  ;;  %v10745_v7 = vor.u32 %v12657_v52, %v10744_v37  ;;  %v7227_v4 = vpop.f32.mrf.mxu2 }
 0x6d1   :  { %v11129_v8 = vor.u32 %v12753_v2, %v11128_v56  ;;  %v11513_v45 = vor.u32 %v12849_v26, %v11512_v3  ;;  %v12745_v39 = vld [vmem:[#allocation20 + $0x9b4] sm:$0xf0]  ;;  %v11464_v52 = vld [vmem:[#allocation20 + $0xc88] sm:$0xf] }
 0x6d2   :  { %v11097_v46 = vor.u32 %v12745_v39, %v11096_v22  ;;  %v12741_v37 = vld [vmem:[#allocation20 + $0x994] sm:$0xf0]  ;;  %v10296_v26 = vld [vmem:[#allocation20 + $0x368] sm:$0xf] }
 0x6d3   :  { %7442 = vmatpush.bf16.msrb.mxu3 %v11813_v12  ;;  %7481 = vmatpush.bf16.msrb.mxu2 %v10153_v20  ;;  %v12653_v12 = vld [vmem:[#allocation20 + $0x6d4] sm:$0xf0]  ;;  %v11112_v20 = vld [vmem:[#allocation20 + $0x9c8] sm:$0xf]  ;;  %v11081_v3 = vor.u32 %v12741_v37, %v11080_v24 }
 0x6d4   :  { %7520 = vmatpush.bf16.msrb.mxu1 %v10537_v14  ;;  %7559 = vmatpush.bf16.msra.mxu0 %v10921_v5  ;;  %v12749_v14 = vld [vmem:[#allocation20 + $0x9d4] sm:$0xf0]  ;;  %v10345_v5 = vor.u32 %v12557_v11, %v10344_v40  ;;  %v10729_v19 = vor.u32 %v12653_v12, %v10728_v10  ;;  %v11064_v40 = vld [vmem:[#allocation20 + $0x968] sm:$0xf] }
 0x6d5   :  { %v11113_v58 = vor.u32 %v12749_v14, %v11112_v20  ;;  %v12837_v56 = vld [vmem:[#allocation20 + $0xc94] sm:$0xf0]  ;;  %v11448_v10 = vld [vmem:[#allocation20 + $0xc68] sm:$0xf] }
 0x6d6   :  { %v12737_v11 = vld [vmem:[#allocation20 + $0x974] sm:$0xf0]  ;;  %v10280_v14 = vld [vmem:[#allocation20 + $0x348] sm:$0xf] }
 0x6d7   :  { %7443 = vmatpush.bf16.msrb.mxu3 %v11797_v18  ;;  %7482 = vmatpush.bf16.msrb.mxu2 %v10137_v35  ;;  %v11497_v18 = vor.u32 %v12845_v0, %v11496_v59  ;;  %v11480_v35 = vld [vmem:[#allocation20 + $0xca8] sm:$0xf]  ;;  %v11065_v20 = vor.u32 %v12737_v11, %v11064_v40  ;;  %v12541_v59 = vld [vmem:[#allocation20 + $0x354] sm:$0xf0] }
 0x6d8   :  { %7521 = vmatpush.bf16.msrb.mxu1 %v10521_v48  ;;  %7560 = vmatpush.bf16.msra.mxu0 %v10905_v42  ;;  %v12841_v48 = vld [vmem:[#allocation20 + $0xcb4] sm:$0xf0]  ;;  %v10664_v0 = vld [vmem:[#allocation20 + $0x648] sm:$0xf] }
 0x6d9   :  { %v12549_v42 = vld [vmem:[#allocation20 + $0x394] sm:$0xf0]  ;;  %v11481_v47 = vor.u32 %v12841_v48, %v11480_v35  ;;  %v10281_v35 = vor.u32 %v12541_v59, %v10280_v14  ;;  %v11032_v4 = vld [vmem:[#allocation20 + $0x928] sm:$0xf] }
 0x6da   :  { %v12829_v57 = vld [vmem:[#allocation20 + $0xc54] sm:$0xf0]  ;;  %v10248_v37 = vld [vmem:[#allocation20 + $0x308] sm:$0xf] }
 0x6db   :  { %7444 = vmatpush.bf16.msrb.mxu3 %v11781_v28  ;;  %7483 = vmatpush.bf16.msrb.mxu2 %v10121_v23  ;;  %v10313_v23 = vor.u32 %v12549_v42, %v10312_v54  ;;  %v10648_v54 = vld [vmem:[#allocation20 + $0x628] sm:$0xf]  ;;  %v12825_v24 = vld [vmem:[#allocation20 + $0xc34] sm:$0xf0] }
 0x6dc   :  { %7522 = vmatpush.bf16.msrb.mxu1 %v10505_v16  ;;  %7561 = vmatpush.bf16.msra.mxu0 %v10889_v29  ;;  %v10697_v16 = vor.u32 %v12645_v61, %v10696_v62  ;;  %v12545_v29 = vld [vmem:[#allocation20 + $0x374] sm:$0xf0]  ;;  %v11416_v61 = vld [vmem:[#allocation20 + $0xc28] sm:$0xf] }
 0x6dd   :  { %v12633_v62 = vld [vmem:[#allocation20 + $0x634] sm:$0xf0]  ;;  %v10872_v11 = vld [vmem:[#allocation20 + $0x7e8] sm:$0xf] }
 0x6de   :  { %7445 = vmatmul.bf16.vlgmr.msrb.gmra.mxu3 %v13905_v63  ;;  %7484 = vmatmul.bf16.vlgmr.msrb.gmra.mxu2 %v13829_v38  ;;  %v13955_v28 = vpop.f32.mrf.mxu1  ;;  %v13957_v2 = vpop.f32.mrf.mxu0  ;;  %v12881_v14 = vld [vmem:[#allocation20 + $0xdf4] sm:$0xf0] }
 0x6df   :  { %7489 = vmatpush.bf16.msra.mxu3 %v10361_v6  ;;  %7528 = vmatpush.bf16.msra.mxu2 %v10745_v7  ;;  %v10680_v6 = vld [vmem:[#allocation20 + $0x668] sm:$0xf]  ;;  %v11465_v7 = vor.u32 %v12837_v56, %v11464_v52  ;;  %v12533_v52 = vld [vmem:[#allocation20 + $0x314] sm:$0xf0]  ;;  %v10649_v56 = vor.u32 %v12633_v62, %v10648_v54  ;;  %v9962_v54 = vld [vmem:[#allocation20 + $0xd8] sm:$0xf0] }
 0x6e0   :  { %7567 = vmatpush.bf16.msra.mxu1 %v11129_v8  ;;  %7606 = vmatpush.bf16.msrb.mxu0 %v11513_v45  ;;  %v12641_v8 = vld [vmem:[#allocation20 + $0x674] sm:$0xf0]  ;;  %v10297_v45 = vor.u32 %v12545_v29, %v10296_v26  ;;  %v11016_v26 = vld [vmem:[#allocation20 + $0x908] sm:$0xf]  ;;  %v11417_v29 = vor.u32 %v12825_v24, %v11416_v61 }
 0x6e1   :  { %7523 = vmatmul.bf16.vlgmr.msrb.gmra.mxu1 %v13833_v41  ;;  %7562 = vmatmul.bf16.vlgmr.msra.gmra.mxu0 %v13839_v43  ;;  %v10681_v12 = vor.u32 %v12641_v8, %v10680_v6  ;;  %v7277_v13 = vpop.f32.mrf.mxu2  ;;  %v12725_v6 = vld [vmem:[#allocation20 + $0x914] sm:$0xf0]  ;;  %v10840_v24 = vld [vmem:[#allocation20 + $0x7a8] sm:$0xf] }
 0x6e2   :  { %v13960_v22 = vadd.f32 %v7277_v13, %v13944_v49  ;;  %v12821_v8 = vld [vmem:[#allocation20 + $0xc14] sm:$0xf0] }
 0x6e3   :  { %7490 = vmatpush.bf16.msra.mxu3 %v10345_v5  ;;  %7529 = vmatpush.bf16.msra.mxu2 %v10729_v19  ;;  %v11449_v5 = vor.u32 %v12833_v51, %v11448_v10  ;;  %v12637_v19 = vld [vmem:[#allocation20 + $0x654] sm:$0xf0]  ;;  %v11256_v51 = vld [vmem:[#allocation20 + $0xae8] sm:$0xf] }
 0x6e4   :  { %7568 = vmatpush.bf16.msra.mxu1 %v11113_v58  ;;  %7607 = vmatpush.bf16.msrb.mxu0 %v11497_v18  ;;  %v11048_v58 = vld [vmem:[#allocation20 + $0x948] sm:$0xf]  ;;  %v10665_v48 = vor.u32 %v12637_v19, %v10664_v0  ;;  %v12689_v10 = vld [vmem:[#allocation20 + $0x7f4] sm:$0xf0]  ;;  %v11017_v0 = vor.u32 %v12725_v6, %v11016_v26  ;;  %v9978_v19 = vld [vmem:[#allocation20 + $0xf8] sm:$0xf0] }
 0x6e5   :  { %v11432_v18 = vld [vmem:[#allocation20 + $0xc48] sm:$0xf] }
 0x6e6   :  { %v7318_v17 = vpop.f32.mrf.mxu1  ;;  %v7357_v39 = vpop.f32.mrf.mxu0  ;;  %v11433_v42 = vor.u32 %v12829_v57, %v11432_v18  ;;  %v10856_v18 = vld [vmem:[#allocation20 + $0x7c8] sm:$0xf]  ;;  %v12685_v57 = vld [vmem:[#allocation20 + $0x7d4] sm:$0xf0] }
 0x6e7   :  { %7491 = vmatpush.bf16.msra.mxu3 %v10329_v60  ;;  %7530 = vmatpush.bf16.msra.mxu2 %v10713_v21  ;;  %v11049_v60 = vor.u32 %v12733_v53, %v11048_v58  ;;  %v10264_v21 = vld [vmem:[#allocation20 + $0x328] sm:$0xf]  ;;  %v10873_v53 = vor.u32 %v12689_v10, %v10872_v11  ;;  %v10857_v62 = vor.u32 %v12685_v57, %v10856_v18  ;;  %v12773_v10 = vld [vmem:[#allocation20 + $0xa94] sm:$0xf0] }
 0x6e8   :  { %7569 = vmatpush.bf16.msra.mxu1 %v11097_v46  ;;  %7608 = vmatpush.bf16.msrb.mxu0 %v11481_v47  ;;  %v12537_v46 = vld [vmem:[#allocation20 + $0x334] sm:$0xf0]  ;;  %v11240_v39 = vld [vmem:[#allocation20 + $0xac8] sm:$0xf] }
 0x6e9   :  { %v12729_v47 = vld [vmem:[#allocation20 + $0x934] sm:$0xf0]  ;;  %v10265_v49 = vor.u32 %v12537_v46, %v10264_v21  ;;  %v7279_v40 = vpop.f32.mrf.mxu2  ;;  %v12459_v46 = vld [vmem:[#allocation20 + $0xcc] sm:$0xf] }
 0x6ea   :  { %v12877_v21 = vld [vmem:[#allocation20 + $0xdd4] sm:$0xf0]  ;;  %v11208_v40 = vld [vmem:[#allocation20 + $0xa88] sm:$0xf] }
 0x6eb   :  { %7492 = vmatpush.bf16.msra.mxu3 %v10313_v23  ;;  %7531 = vmatpush.bf16.msra.mxu2 %v10697_v16  ;;  %v11033_v23 = vor.u32 %v12729_v47, %v11032_v4  ;;  %v10632_v16 = vld [vmem:[#allocation20 + $0x608] sm:$0xf]  ;;  %v12769_v57 = vld [vmem:[#allocation20 + $0xa74] sm:$0xf0] }
 0x6ec   :  { %7570 = vmatpush.bf16.msra.mxu1 %v11081_v3  ;;  %7609 = vmatpush.bf16.msrb.mxu0 %v11465_v7  ;;  %v12629_v3 = vld [vmem:[#allocation20 + $0x614] sm:$0xf0]  ;;  %v11400_v7 = vld [vmem:[#allocation20 + $0xc08] sm:$0xf] }
 0x6ed   :  { %v10633_v59 = vor.u32 %v12629_v3, %v10632_v16  ;;  %v11401_v58 = vor.u32 %v12821_v8, %v11400_v7  ;;  %v12873_v16 = vld [vmem:[#allocation20 + $0xdb4] sm:$0xf0]  ;;  %v9946_v3 = vld [vmem:[#allocation20 + $0xb8] sm:$0xf0]  ;;  %v10824_v7 = vld [vmem:[#allocation20 + $0x788] sm:$0xf] }
 0x6ee   :  { %v12677_v8 = vld [vmem:[#allocation20 + $0x794] sm:$0xf0] }
 0x6ef   :  { %7493 = vmatpush.bf16.msra.mxu3 %v10297_v45  ;;  %7532 = vmatpush.bf16.msra.mxu2 %v10681_v12  ;;  %v10249_v45 = vor.u32 %v12533_v52, %v10248_v37  ;;  %v12785_v12 = vld [vmem:[#allocation20 + $0xaf4] sm:$0xf0]  ;;  %v11224_v37 = vld [vmem:[#allocation20 + $0xaa8] sm:$0xf]  ;;  %v9965_v52 = vor.u32 %v12459_v46, %v9962_v54 }
 0x6f0   :  { %7571 = vmatpush.bf16.msra.mxu1 %v11065_v20  ;;  %7610 = vmatpush.bf16.msrb.mxu0 %v11449_v5  ;;  %v11640_v20 = vld [vmem:[#allocation20 + $0xde8] sm:$0xf]  ;;  %v12463_v5 = vld [vmem:[#allocation20 + $0xec] sm:$0xf]  ;;  %v11257_v13 = vor.u32 %v12785_v12, %v11256_v51 }
 0x6f1   :  { %v11641_v17 = vor.u32 %v12881_v14, %v11640_v20  ;;  %v11592_v51 = vld [vmem:[#allocation20 + $0xd88] sm:$0xf]  ;;  %v12451_v12 = vld [vmem:[#allocation20 + $0x8c] sm:$0xf]  ;;  %v9930_v20 = vld [vmem:[#allocation20 + $0x98] sm:$0xf0] }
 0x6f2   :  { %v9933_v18 = vor.u32 %v12451_v12, %v9930_v20  ;;  %v12857_v12 = vld [vmem:[#allocation20 + $0xd34] sm:$0xf0]  ;;  %v12439_v20 = vld [vmem:[#allocation20 + $0x2c] sm:$0xf] }
 0x6f3   :  { %7494 = vmatpush.bf16.msra.mxu3 %v10281_v35  ;;  %7533 = vmatpush.bf16.msra.mxu2 %v10665_v48  ;;  %v9981_v35 = vor.u32 %v12463_v5, %v9978_v19  ;;  %v12781_v48 = vld [vmem:[#allocation20 + $0xad4] sm:$0xf0]  ;;  %v10825_v5 = vor.u32 %v12677_v8, %v10824_v7  ;;  %v11209_v19 = vor.u32 %v12773_v10, %v11208_v40  ;;  %v10776_v7 = vld [vmem:[#allocation20 + $0x728] sm:$0xf] }
 0x6f4   :  { %7572 = vmatpush.bf16.msra.mxu1 %v11049_v60  ;;  %7611 = vmatpush.bf16.msrb.mxu0 %v11433_v42  ;;  %v11624_v60 = vld [vmem:[#allocation20 + $0xdc8] sm:$0xf]  ;;  %v7238_v42 = vpop.f32.mrf.mxu3  ;;  %v11241_v47 = vor.u32 %v12781_v48, %v11240_v39  ;;  %v12447_v48 = vld [vmem:[#allocation20 + $0x6c] sm:$0xf]  ;;  %v12665_v8 = vld [vmem:[#allocation20 + $0x734] sm:$0xf0] }
 0x6f5   :  { %v13963_v4 = vadd.f32 %v7238_v42, %v13949_v44  ;;  %v11625_v61 = vor.u32 %v12877_v21, %v11624_v60  ;;  %v12455_v44 = vld [vmem:[#allocation20 + $0xac] sm:$0xf]  ;;  %v11576_v39 = vld [vmem:[#allocation20 + $0xd68] sm:$0xf]  ;;  %v9914_v60 = vld [vmem:[#allocation20 + $0x78] sm:$0xf0] }
 0x6f6   :  { %v9949_v11 = vor.u32 %v12455_v44, %v9946_v3  ;;  %v11160_v40 = vld [vmem:[#allocation20 + $0xa28] sm:$0xf] }
 0x6f7   :  { %7495 = vmatpush.bf16.msra.mxu3 %v10265_v49  ;;  %7534 = vmatpush.bf16.msra.mxu2 %v10649_v56  ;;  %v12681_v49 = vld [vmem:[#allocation20 + $0x7b4] sm:$0xf0] }
 0x6f8   :  { %7573 = vmatpush.bf16.msra.mxu1 %v11033_v23  ;;  %7612 = vmatpush.bf16.msrb.mxu0 %v11417_v29  ;;  %v12777_v56 = vld [vmem:[#allocation20 + $0xab4] sm:$0xf0]  ;;  %v11608_v23 = vld [vmem:[#allocation20 + $0xda8] sm:$0xf]  ;;  %v10841_v26 = vor.u32 %v12681_v49, %v10840_v24  ;;  %v9917_v24 = vor.u32 %v12447_v48, %v9914_v60  ;;  %v12435_v60 = vld [vmem:[#allocation20 + $0xc] sm:$0xf] }
 0x6f9   :  { %v11225_v29 = vor.u32 %v12777_v56, %v11224_v37  ;;  %v11609_v6 = vor.u32 %v12873_v16, %v11608_v23  ;;  %v12765_v49 = vld [vmem:[#allocation20 + $0xa54] sm:$0xf0]  ;;  %v11560_v37 = vld [vmem:[#allocation20 + $0xd48] sm:$0xf]  ;;  %v12443_v56 = vld [vmem:[#allocation20 + $0x4c] sm:$0xf] }
 0x6fa   :  { %v9898_v23 = vld [vmem:[#allocation20 + $0x58] sm:$0xf0]  ;;  %v12853_v48 = vld [vmem:[#allocation20 + $0xd14] sm:$0xf0] }
 0x6fb   :  { %7496 = vmatpush.bf16.msra.mxu3 %v10249_v45  ;;  %7535 = vmatpush.bf16.msra.mxu2 %v10633_v59  ;;  %v12869_v45 = vld [vmem:[#allocation20 + $0xd94] sm:$0xf0] }
 0x6fc   :  { %7574 = vmatpush.bf16.msra.mxu1 %v11017_v0  ;;  %7613 = vmatpush.bf16.msrb.mxu0 %v11401_v58  ;;  %v7240_v14 = vpop.f32.mrf.mxu3  ;;  %v11593_v58 = vor.u32 %v12869_v45, %v11592_v51  ;;  %v12761_v51 = vld [vmem:[#allocation20 + $0xa34] sm:$0xf0]  ;;  %v11544_v45 = vld [vmem:[#allocation20 + $0xd28] sm:$0xf] }
 0x6fd   :  { %v9882_v14 = vld [vmem:[#allocation20 + $0x38] sm:$0xf0] }
 0x6fe   :  { %7497 = vmatmul.bf16.vlgmr.msra.gmra.mxu3 %v13852_v25  ;;  %7536 = vmatmul.bf16.vlgmr.msra.gmra.mxu2 %v13856_v1  ;;  %v13969_v59 = vpop.f32.mrf.mxu1  ;;  %v13971_v0 = vpop.f32.mrf.mxu0 }
 0x6ff   :  { %7541 = vmatpush.bf16.msrb.mxu3 %v10873_v53  ;;  %7580 = vmatpush.bf16.msrb.mxu2 %v11257_v13  ;;  %v10808_v53 = vld [vmem:[#allocation20 + $0x768] sm:$0xf]  ;;  %v12673_v13 = vld [vmem:[#allocation20 + $0x774] sm:$0xf0] }
 0x700   :  { %7619 = vmatpush.bf16.msrb.mxu1 %v11641_v17  ;;  %7658 = vmatpush.bf16.msra.mxu0 %v9981_v35  ;;  %v11192_v17 = vld [vmem:[#allocation20 + $0xa68] sm:$0xf]  ;;  %v12865_v35 = vld [vmem:[#allocation20 + $0xd74] sm:$0xf0]  ;;  %v10809_v21 = vor.u32 %v12673_v13, %v10808_v53  ;;  %v11161_v13 = vor.u32 %v12761_v51, %v11160_v40  ;;  %v12587_v51 = vld [vmem:[#allocation20 + $0x4cc] sm:$0xf] }
 0x701   :  { %7575 = vmatmul.bf16.vlgmr.msra.gmra.mxu1 %v13860_v34  ;;  %7614 = vmatmul.bf16.vlgmr.msrb.gmra.mxu0 %v13867_v30  ;;  %v11193_v46 = vor.u32 %v12769_v57, %v11192_v17  ;;  %v11577_v54 = vor.u32 %v12865_v35, %v11576_v39  ;;  %v7329_v42 = vpop.f32.mrf.mxu2  ;;  %v12661_v53 = vld [vmem:[#allocation20 + $0x714] sm:$0xf0]  ;;  %v11545_v17 = vor.u32 %v12857_v12, %v11544_v45  ;;  %v11144_v57 = vld [vmem:[#allocation20 + $0xa08] sm:$0xf]  ;;  %v10474_v45 = vld [vmem:[#allocation20 + $0x4d8] sm:$0xf0] }
 0x702   :  { %v12757_v39 = vld [vmem:[#allocation20 + $0xa14] sm:$0xf0]  ;;  %v11528_v35 = vld [vmem:[#allocation20 + $0xd08] sm:$0xf] }
 0x703   :  { %7542 = vmatpush.bf16.msrb.mxu3 %v10857_v62  ;;  %7581 = vmatpush.bf16.msrb.mxu2 %v11241_v47  ;;  %v10792_v62 = vld [vmem:[#allocation20 + $0x748] sm:$0xf]  ;;  %v12669_v47 = vld [vmem:[#allocation20 + $0x754] sm:$0xf0] }
 0x704   :  { %7620 = vmatpush.bf16.msrb.mxu1 %v11625_v61  ;;  %7659 = vmatpush.bf16.msra.mxu0 %v9965_v52  ;;  %v11176_v61 = vld [vmem:[#allocation20 + $0xa48] sm:$0xf]  ;;  %v12861_v52 = vld [vmem:[#allocation20 + $0xd54] sm:$0xf0]  ;;  %v10793_v3 = vor.u32 %v12669_v47, %v10792_v62 }
 0x705   :  { %v11768_v62 = vld [vmem:[#allocation20 + $0xee8] sm:$0xf] }
 0x706   :  { %v7370_v16 = vpop.f32.mrf.mxu1  ;;  %v7409_v44 = vpop.f32.mrf.mxu0 }
 0x707   :  { %7543 = vmatpush.bf16.msrb.mxu3 %v10841_v26  ;;  %7582 = vmatpush.bf16.msrb.mxu2 %v11225_v29  ;;  %v11177_v26 = vor.u32 %v12765_v49, %v11176_v61  ;;  %v11561_v29 = vor.u32 %v12861_v52, %v11560_v37  ;;  %v12913_v61 = vld [vmem:[#allocation20 + $0xef4] sm:$0xf0]  ;;  %v10106_v49 = vld [vmem:[#allocation20 + $0x1f8] sm:$0xf0]  ;;  %v11145_v52 = vor.u32 %v12757_v39, %v11144_v57  ;;  %v12583_v57 = vld [vmem:[#allocation20 + $0x4ac] sm:$0xf] }
 0x708   :  { %7621 = vmatpush.bf16.msrb.mxu1 %v11609_v6  ;;  %7660 = vmatpush.bf16.msra.mxu0 %v9949_v11  ;;  %v7290_v6 = vpop.f32.mrf.mxu3  ;;  %v9901_v11 = vor.u32 %v12443_v56, %v9898_v23  ;;  %v11529_v56 = vor.u32 %v12853_v48, %v11528_v35  ;;  %v12591_v23 = vld [vmem:[#allocation20 + $0x4ec] sm:$0xf]  ;;  %v10490_v16 = vld [vmem:[#allocation20 + $0x4f8] sm:$0xf0] }
 0x709   :  { %v7291_v10 = vadd.f32 %v7290_v6, %v13960_v22  ;;  %v9885_v22 = vor.u32 %v12439_v20, %v9882_v14  ;;  %v11368_v6 = vld [vmem:[#allocation20 + $0xbc8] sm:$0xf]  ;;  %v10493_v40 = vor.u32 %v12591_v23, %v10490_v16  ;;  %v10458_v39 = vld [vmem:[#allocation20 + $0x4b8] sm:$0xf0] }
 0x70a   :  { %v11320_v16 = vld [vmem:[#allocation20 + $0xb68] sm:$0xf] }
 0x70b   :  { %7544 = vmatpush.bf16.msrb.mxu3 %v10825_v5  ;;  %7583 = vmatpush.bf16.msrb.mxu2 %v11209_v19  ;;  %v7304_v5 = vadd.f32 %v13942_v27, %v7291_v10  ;;  %v10777_v19 = vor.u32 %v12665_v8, %v10776_v7  ;;  %v12817_v27 = vld [vmem:[#allocation20 + $0xbf4] sm:$0xf0]  ;;  %v11752_v8 = vld [vmem:[#allocation20 + $0xec8] sm:$0xf]  ;;  %v10090_v10 = vld [vmem:[#allocation20 + $0x1d8] sm:$0xf0] }
 0x70c   :  { %7622 = vmatpush.bf16.msrb.mxu1 %v11593_v58  ;;  %7661 = vmatpush.bf16.msra.mxu0 %v9933_v18  ;;  %v10760_v58 = vld [vmem:[#allocation20 + $0x708] sm:$0xf]  ;;  %v7331_v18 = vpop.f32.mrf.mxu2  ;;  %v12813_v7 = vld [vmem:[#allocation20 + $0xbd4] sm:$0xf0] }
 0x70d   :  { %v10761_v47 = vor.u32 %v12661_v53, %v10760_v58  ;;  %v11369_v12 = vor.u32 %v12813_v7, %v11368_v6  ;;  %v11736_v58 = vld [vmem:[#allocation20 + $0xea8] sm:$0xf]  ;;  %v10477_v53 = vor.u32 %v12587_v51, %v10474_v45  ;;  %v10074_v18 = vld [vmem:[#allocation20 + $0x1b8] sm:$0xf0]  ;;  %v12575_v7 = vld [vmem:[#allocation20 + $0x46c] sm:$0xf] }
 0x70e   :  { %v10042_v6 = vld [vmem:[#allocation20 + $0x178] sm:$0xf0]  ;;  %v11304_v51 = vld [vmem:[#allocation20 + $0xb48] sm:$0xf]  ;;  %v12797_v45 = vld [vmem:[#allocation20 + $0xb54] sm:$0xf0] }
 0x70f   :  { %7545 = vmatpush.bf16.msrb.mxu3 %v10809_v21  ;;  %7584 = vmatpush.bf16.msrb.mxu2 %v11193_v46  ;;  %v9866_v21 = vld [vmem:[#allocation20 + $0x18] sm:$0xf0]  ;;  %v7317_v46 = vadd.f32 %v13955_v28, %v7304_v5  ;;  %v11352_v5 = vld [vmem:[#allocation20 + $0xba8] sm:$0xf] }
 0x710   :  { %7623 = vmatpush.bf16.msrb.mxu1 %v11577_v54  ;;  %7662 = vmatpush.bf16.msra.mxu0 %v9917_v24  ;;  %v11384_v54 = vld [vmem:[#allocation20 + $0xbe8] sm:$0xf]  ;;  %v12495_v24 = vld [vmem:[#allocation20 + $0x1ec] sm:$0xf]  ;;  %v7292_v44 = vpop.f32.mrf.mxu3 }
 0x711   :  { %v13976_v37 = vadd.f32 %v7329_v42, %v7317_v46  ;;  %v11385_v28 = vor.u32 %v12817_v27, %v11384_v54  ;;  %v12491_v42 = vld [vmem:[#allocation20 + $0x1cc] sm:$0xf]  ;;  %v11720_v46 = vld [vmem:[#allocation20 + $0xe88] sm:$0xf]  ;;  %v10461_v54 = vor.u32 %v12583_v57, %v10458_v39  ;;  %v12901_v27 = vld [vmem:[#allocation20 + $0xe94] sm:$0xf0]  ;;  %v11305_v39 = vor.u32 %v12797_v45, %v11304_v51 }
 0x712   :  { %v10093_v14 = vor.u32 %v12491_v42, %v10090_v10  ;;  %v12801_v44 = vld [vmem:[#allocation20 + $0xb74] sm:$0xf0]  ;;  %v10234_v45 = vld [vmem:[#allocation20 + $0x2f8] sm:$0xf0] }
 0x713   :  { %7546 = vmatpush.bf16.msrb.mxu3 %v10793_v3  ;;  %7585 = vmatpush.bf16.msrb.mxu2 %v11177_v26  ;;  %v9869_v3 = vor.u32 %v12435_v60, %v9866_v21  ;;  %v11769_v26 = vor.u32 %v12913_v61, %v11768_v62  ;;  %v11336_v60 = vld [vmem:[#allocation20 + $0xb88] sm:$0xf]  ;;  %v12805_v21 = vld [vmem:[#allocation20 + $0xb94] sm:$0xf0]  ;;  %v12483_v62 = vld [vmem:[#allocation20 + $0x18c] sm:$0xf] }
 0x714   :  { %7624 = vmatpush.bf16.msrb.mxu1 %v11561_v29  ;;  %7663 = vmatpush.bf16.msra.mxu0 %v9901_v11  ;;  %v10109_v29 = vor.u32 %v12495_v24, %v10106_v49  ;;  %v12909_v11 = vld [vmem:[#allocation20 + $0xed4] sm:$0xf0]  ;;  %v12579_v61 = vld [vmem:[#allocation20 + $0x48c] sm:$0xf]  ;;  %v10442_v24 = vld [vmem:[#allocation20 + $0x498] sm:$0xf0] }
 0x715   :  { %v11753_v20 = vor.u32 %v12909_v11, %v11752_v8  ;;  %v10426_v8 = vld [vmem:[#allocation20 + $0x478] sm:$0xf0] }
 0x717   :  { %7547 = vmatpush.bf16.msrb.mxu3 %v10777_v19  ;;  %7586 = vmatpush.bf16.msrb.mxu2 %v11161_v13  ;;  %v12809_v19 = vld [vmem:[#allocation20 + $0xbb4] sm:$0xf0] }
 0x718   :  { %7625 = vmatpush.bf16.msrb.mxu1 %v11545_v17  ;;  %7664 = vmatpush.bf16.msra.mxu0 %v9885_v22  ;;  %v12905_v13 = vld [vmem:[#allocation20 + $0xeb4] sm:$0xf0]  ;;  %v12487_v17 = vld [vmem:[#allocation20 + $0x1ac] sm:$0xf]  ;;  %v11353_v35 = vor.u32 %v12809_v19, %v11352_v5 }
 0x719   :  { %v11737_v22 = vor.u32 %v12905_v13, %v11736_v58  ;;  %v10077_v48 = vor.u32 %v12487_v17, %v10074_v18  ;;  %v12893_v19 = vld [vmem:[#allocation20 + $0xe54] sm:$0xf0]  ;;  %v12475_v58 = vld [vmem:[#allocation20 + $0x14c] sm:$0xf]  ;;  %v10410_v17 = vld [vmem:[#allocation20 + $0x458] sm:$0xf0] }
 0x71a   :  { %v12571_v13 = vld [vmem:[#allocation20 + $0x44c] sm:$0xf] }
 0x71b   :  { %7548 = vmatpush.bf16.msrb.mxu3 %v10761_v47  ;;  %7587 = vmatpush.bf16.msrb.mxu2 %v11145_v52  ;;  %v10058_v47 = vld [vmem:[#allocation20 + $0x198] sm:$0xf0] }
 0x71c   :  { %7626 = vmatpush.bf16.msrb.mxu1 %v11529_v56  ;;  %7665 = vmatpush.bf16.msra.mxu0 %v9869_v3  ;;  %v11721_v56 = vor.u32 %v12901_v27, %v11720_v46  ;;  %v10061_v23 = vor.u32 %v12483_v62, %v10058_v47  ;;  %v11704_v3 = vld [vmem:[#allocation20 + $0xe68] sm:$0xf]  ;;  %v12889_v27 = vld [vmem:[#allocation20 + $0xe34] sm:$0xf0]  ;;  %v12471_v62 = vld [vmem:[#allocation20 + $0x12c] sm:$0xf] }
 0x71d   :  { %v11672_v46 = vld [vmem:[#allocation20 + $0xe28] sm:$0xf]  ;;  %v10010_v47 = vld [vmem:[#allocation20 + $0x138] sm:$0xf0] }
 0x71e   :  { %7549 = vmatmul.bf16.vlgmr.msrb.gmra.mxu3 %v13872_v33  ;;  %7588 = vmatmul.bf16.vlgmr.msrb.gmra.mxu2 %v13876_v15  ;;  %v13982_v49 = vpop.f32.mrf.mxu1  ;;  %v13984_v52 = vpop.f32.mrf.mxu0 }
 0x71f   :  { %7593 = vmatpush.bf16.msra.mxu3 %v11385_v28  ;;  %7632 = vmatpush.bf16.msra.mxu2 %v11769_v26  ;;  %v10445_v28 = vor.u32 %v12579_v61, %v10442_v24  ;;  %v12897_v26 = vld [vmem:[#allocation20 + $0xe74] sm:$0xf0]  ;;  %v12567_v61 = vld [vmem:[#allocation20 + $0x42c] sm:$0xf]  ;;  %v10394_v24 = vld [vmem:[#allocation20 + $0x438] sm:$0xf0] }
 0x720   :  { %7671 = vmatpush.bf16.msra.mxu1 %v10109_v29  ;;  %7710 = vmatpush.bf16.msrb.mxu0 %v10493_v40  ;;  %v12479_v29 = vld [vmem:[#allocation20 + $0x16c] sm:$0xf]  ;;  %v11321_v40 = vor.u32 %v12801_v44, %v11320_v16  ;;  %v11705_v11 = vor.u32 %v12897_v26, %v11704_v3  ;;  %v11673_v16 = vor.u32 %v12889_v27, %v11672_v46  ;;  %v12885_v26 = vld [vmem:[#allocation20 + $0xe14] sm:$0xf0] }
 0x721   :  { %7627 = vmatmul.bf16.vlgmr.msrb.gmra.mxu1 %v13881_v36  ;;  %7666 = vmatmul.bf16.vlgmr.msra.gmra.mxu0 %v13794_v55  ;;  %v11337_v55 = vor.u32 %v12805_v21, %v11336_v60  ;;  %v10045_v42 = vor.u32 %v12479_v29, %v10042_v6  ;;  %v7342_v10 = vpop.f32.mrf.mxu3  ;;  %v7381_v5 = vpop.f32.mrf.mxu2  ;;  %v11288_v60 = vld [vmem:[#allocation20 + $0xb28] sm:$0xf]  ;;  %v12793_v21 = vld [vmem:[#allocation20 + $0xb34] sm:$0xf0]  ;;  %v10013_v44 = vor.u32 %v12471_v62, %v10010_v47  ;;  %v12715_v46 = vld [vmem:[#allocation20 + $0x8cc] sm:$0xf] }
 0x722   :  { %v10397_v29 = vor.u32 %v12567_v61, %v10394_v24  ;;  %v11864_v47 = vld [vmem:[#allocation20 + $0xfa8] sm:$0xf]  ;;  %v12937_v61 = vld [vmem:[#allocation20 + $0xfb4] sm:$0xf0]  ;;  %v12519_v24 = vld [vmem:[#allocation20 + $0x2ac] sm:$0xf] }
 0x723   :  { %7594 = vmatpush.bf16.msra.mxu3 %v11369_v12  ;;  %7633 = vmatpush.bf16.msra.mxu2 %v11753_v20  ;;  %v11688_v12 = vld [vmem:[#allocation20 + $0xe48] sm:$0xf]  ;;  %v10429_v20 = vor.u32 %v12575_v7, %v10426_v8  ;;  %v9994_v7 = vld [vmem:[#allocation20 + $0x118] sm:$0xf0]  ;;  %v12563_v8 = vld [vmem:[#allocation20 + $0x40c] sm:$0xf] }
 0x724   :  { %7672 = vmatpush.bf16.msra.mxu1 %v10093_v14  ;;  %7711 = vmatpush.bf16.msrb.mxu0 %v10477_v53  ;;  %v7343_v14 = vadd.f32 %v7342_v10, %v13976_v37  ;;  %v10026_v53 = vld [vmem:[#allocation20 + $0x158] sm:$0xf0]  ;;  %v12527_v10 = vld [vmem:[#allocation20 + $0x2ec] sm:$0xf] }
 0x726   :  { %v7356_v18 = vadd.f32 %v13957_v2, %v7343_v14  ;;  %v7422_v57 = vpop.f32.mrf.mxu1 }
 0x727   :  { %7595 = vmatpush.bf16.msra.mxu3 %v11353_v35  ;;  %7634 = vmatpush.bf16.msra.mxu2 %v11737_v22  ;;  %v7461_v35 = vpop.f32.mrf.mxu0  ;;  %v11689_v22 = vor.u32 %v12893_v19, %v11688_v12  ;;  %v12623_v12 = vld [vmem:[#allocation20 + $0x5ec] sm:$0xf]  ;;  %v11880_v57 = vld [vmem:[#allocation20 + $0xfc8] sm:$0xf] }
 0x728   :  { %7673 = vmatpush.bf16.msra.mxu1 %v10077_v48  ;;  %7712 = vmatpush.bf16.msrb.mxu0 %v10461_v54  ;;  %v10029_v48 = vor.u32 %v12475_v58, %v10026_v53  ;;  %v7369_v37 = vadd.f32 %v13969_v59, %v7356_v18  ;;  %v10413_v54 = vor.u32 %v12571_v13, %v10410_v17  ;;  %v12467_v59 = vld [vmem:[#allocation20 + $0x10c] sm:$0xf]  ;;  %v11002_v58 = vld [vmem:[#allocation20 + $0x8f8] sm:$0xf0] }
 0x729   :  { %v7344_v3 = vpop.f32.mrf.mxu3  ;;  %v7383_v6 = vpop.f32.mrf.mxu2  ;;  %v12719_v19 = vld [vmem:[#allocation20 + $0x8ec] sm:$0xf]  ;;  %v10237_v17 = vor.u32 %v12527_v10, %v10234_v45 }
 0x72a   :  { %v13989_v2 = vadd.f32 %v7381_v5, %v7369_v37  ;;  %v9997_v5 = vor.u32 %v12467_v59, %v9994_v7  ;;  %v12523_v35 = vld [vmem:[#allocation20 + $0x2cc] sm:$0xf]  ;;  %v10986_v37 = vld [vmem:[#allocation20 + $0x8d8] sm:$0xf0]  ;;  %v11865_v59 = vor.u32 %v12937_v61, %v11864_v47  ;;  %v11848_v7 = vld [vmem:[#allocation20 + $0xf88] sm:$0xf] }
 0x72b   :  { %7596 = vmatpush.bf16.msra.mxu3 %v11337_v55  ;;  %7635 = vmatpush.bf16.msra.mxu2 %v11721_v56  ;;  %v11289_v55 = vor.u32 %v12793_v21, %v11288_v60  ;;  %v11272_v56 = vld [vmem:[#allocation20 + $0xb08] sm:$0xf]  ;;  %v12619_v60 = vld [vmem:[#allocation20 + $0x5cc] sm:$0xf]  ;;  %v10602_v21 = vld [vmem:[#allocation20 + $0x5d8] sm:$0xf0] }
 0x72c   :  { %7674 = vmatpush.bf16.msra.mxu1 %v10061_v23  ;;  %7713 = vmatpush.bf16.msrb.mxu0 %v10445_v28  ;;  %v12789_v23 = vld [vmem:[#allocation20 + $0xb14] sm:$0xf0]  ;;  %v11656_v28 = vld [vmem:[#allocation20 + $0xe08] sm:$0xf]  ;;  %v10605_v62 = vor.u32 %v12619_v60, %v10602_v21  ;;  %v12611_v10 = vld [vmem:[#allocation20 + $0x58c] sm:$0xf] }
 0x72d   :  { %v11273_v51 = vor.u32 %v12789_v23, %v11272_v56  ;;  %v11657_v14 = vor.u32 %v12885_v26, %v11656_v28  ;;  %v10202_v56 = vld [vmem:[#allocation20 + $0x2b8] sm:$0xf0]  ;;  %v12615_v23 = vld [vmem:[#allocation20 + $0x5ac] sm:$0xf] }
 0x72e   :  { %v12711_v28 = vld [vmem:[#allocation20 + $0x8ac] sm:$0xf]  ;;  %v10970_v26 = vld [vmem:[#allocation20 + $0x8b8] sm:$0xf0] }
 0x72f   :  { %7597 = vmatpush.bf16.msra.mxu3 %v11321_v40  ;;  %7636 = vmatpush.bf16.msra.mxu2 %v11705_v11  ;;  %v10378_v40 = vld [vmem:[#allocation20 + $0x418] sm:$0xf0]  ;;  %v11896_v11 = vld [vmem:[#allocation20 + $0xfe8] sm:$0xf]  ;;  %v12707_v45 = vld [vmem:[#allocation20 + $0x88c] sm:$0xf] }
 0x730   :  { %7675 = vmatpush.bf16.msra.mxu1 %v10045_v42  ;;  %7714 = vmatpush.bf16.msrb.mxu0 %v10429_v20  ;;  %v12945_v42 = vld [vmem:[#allocation20 + $0xff4] sm:$0xf0]  ;;  %v10618_v20 = vld [vmem:[#allocation20 + $0x5f8] sm:$0xf0]  ;;  %v10381_v53 = vor.u32 %v12563_v8, %v10378_v40  ;;  %v12515_v40 = vld [vmem:[#allocation20 + $0x28c] sm:$0xf] }
 0x731   :  { %v11897_v13 = vor.u32 %v12945_v42, %v11896_v11  ;;  %v10621_v18 = vor.u32 %v12623_v12, %v10618_v20  ;;  %v12933_v8 = vld [vmem:[#allocation20 + $0xf94] sm:$0xf0]  ;;  %v10973_v11 = vor.u32 %v12711_v28, %v10970_v26  ;;  %v10186_v42 = vld [vmem:[#allocation20 + $0x298] sm:$0xf0] }
 0x732   :  { %v10954_v12 = vld [vmem:[#allocation20 + $0x898] sm:$0xf0]  ;;  %v11849_v20 = vor.u32 %v12933_v8, %v11848_v7  ;;  %v11800_v7 = vld [vmem:[#allocation20 + $0xf28] sm:$0xf]  ;;  %v12921_v8 = vld [vmem:[#allocation20 + $0xf34] sm:$0xf0] }
 0x733   :  { %7598 = vmatpush.bf16.msra.mxu3 %v11305_v39  ;;  %7637 = vmatpush.bf16.msra.mxu2 %v11689_v22  ;;  %v12941_v39 = vld [vmem:[#allocation20 + $0xfd4] sm:$0xf0]  ;;  %v11005_v22 = vor.u32 %v12719_v19, %v11002_v58  ;;  %v10189_v19 = vor.u32 %v12515_v40, %v10186_v42  ;;  %v12503_v40 = vld [vmem:[#allocation20 + $0x22c] sm:$0xf]  ;;  %v10138_v42 = vld [vmem:[#allocation20 + $0x238] sm:$0xf0] }
 0x734   :  { %7676 = vmatpush.bf16.msra.mxu1 %v10029_v48  ;;  %7715 = vmatpush.bf16.msrb.mxu0 %v10413_v54  ;;  %v10218_v48 = vld [vmem:[#allocation20 + $0x2d8] sm:$0xf0]  ;;  %v11881_v54 = vor.u32 %v12941_v39, %v11880_v57 }
 0x735   :  { %v10221_v27 = vor.u32 %v12523_v35, %v10218_v48  ;;  %v10170_v57 = vld [vmem:[#allocation20 + $0x278] sm:$0xf0]  ;;  %v12703_v35 = vld [vmem:[#allocation20 + $0x86c] sm:$0xf] }
 0x736   :  { %v10554_v39 = vld [vmem:[#allocation20 + $0x578] sm:$0xf0] }
 0x737   :  { %7599 = vmatpush.bf16.msra.mxu3 %v11289_v55  ;;  %7638 = vmatpush.bf16.msra.mxu2 %v11673_v16  ;;  %v10989_v55 = vor.u32 %v12715_v46, %v10986_v37  ;;  %v10586_v16 = vld [vmem:[#allocation20 + $0x5b8] sm:$0xf0]  ;;  %v11816_v37 = vld [vmem:[#allocation20 + $0xf48] sm:$0xf] }
 0x738   :  { %7677 = vmatpush.bf16.msra.mxu1 %v10013_v44  ;;  %7716 = vmatpush.bf16.msrb.mxu0 %v10397_v29  ;;  %v13992_v44 = vld [vmem:[#allocation22] sm:$0xf]  ;;  %v10205_v29 = vor.u32 %v12519_v24, %v10202_v56  ;;  %v10589_v6 = vor.u32 %v12615_v23, %v10586_v16  ;;  %v10154_v24 = vld [vmem:[#allocation20 + $0x258] sm:$0xf0]  ;;  %v12699_v23 = vld [vmem:[#allocation20 + $0x84c] sm:$0xf] }
 0x739   :  { %v4468_v3 = vperm.slane %v13992_v44, 2  ;;  %v10538_v56 = vld [vmem:[#allocation20 + $0x558] sm:$0xf0] }
 0x73a   :  { %v10922_v16 = vld [vmem:[#allocation20 + $0x858] sm:$0xf0] }
 0x73b   :  { %7600 = vmatpush.bf16.msra.mxu3 %v11273_v51  ;;  %7639 = vmatpush.bf16.msra.mxu2 %v11657_v14  ;;  %v10570_v51 = vld [vmem:[#allocation20 + $0x598] sm:$0xf0] }
 0x73c   :  { %7678 = vmatpush.bf16.msra.mxu1 %v9997_v5  ;;  %7717 = vmatpush.bf16.msrb.mxu0 %v10381_v53  ;;  %v10573_v58 = vor.u32 %v12611_v10, %v10570_v51  ;;  %v11832_v53 = vld [vmem:[#allocation20 + $0xf68] sm:$0xf]  ;;  %v12599_v10 = vld [vmem:[#allocation20 + $0x52c] sm:$0xf]  ;;  %v10522_v51 = vld [vmem:[#allocation20 + $0x538] sm:$0xf0] }
 0x73e   :  { %7601 = vmatmul.bf16.vlgmr.msra.gmra.mxu3 %v13886_v50  ;;  %7640 = vmatmul.bf16.vlgmr.msra.gmra.mxu2 %v13893_v9  ;;  %v14001_v5 = vpop.f32.mrf.mxu0 }
 0x73f   :  { %7645 = vmatpush.bf16.msrb.mxu3 %v11897_v13  ;;  %7684 = vmatpush.bf16.msrb.mxu2 %v10237_v17  ;;  %v12929_v13 = vld [vmem:[#allocation20 + $0xf74] sm:$0xf0]  ;;  %v12511_v17 = vld [vmem:[#allocation20 + $0x26c] sm:$0xf] }
 0x740   :  { %7723 = vmatpush.bf16.msrb.mxu1 %v10621_v18  ;;  %7762 = vmatpush.bf16.msra.mxu0 %v11005_v22  ;;  %v10957_v18 = vor.u32 %v12707_v45, %v10954_v12  ;;  %v10938_v22 = vld [vmem:[#allocation20 + $0x878] sm:$0xf0]  ;;  %v11833_v48 = vor.u32 %v12929_v13, %v11832_v53  ;;  %v10173_v60 = vor.u32 %v12511_v17, %v10170_v57  ;;  %v12499_v13 = vld [vmem:[#allocation20 + $0x20c] sm:$0xf] }
 0x741   :  { %7679 = vmatmul.bf16.vlgmr.msra.gmra.mxu1 %v13804_v31  ;;  %7718 = vmatmul.bf16.vlgmr.msrb.gmra.mxu0 %v13806_v32  ;;  %v7460_v31 = vadd.f32 %v13984_v52, %v4468_v3  ;;  %v7472_v32 = vpop.f32.mrf.mxu1  ;;  %v12607_v52 = vld [vmem:[#allocation20 + $0x56c] sm:$0xf]  ;;  %v7394_v46 = vpop.f32.mrf.mxu3  ;;  %v10906_v45 = vld [vmem:[#allocation20 + $0x838] sm:$0xf0]  ;;  %v11801_v12 = vor.u32 %v12921_v8, %v11800_v7 }
 0x742   :  { %v10557_v21 = vor.u32 %v12607_v52, %v10554_v39  ;;  %v7395_v47 = vadd.f32 %v7394_v46, %v13989_v2  ;;  %v7433_v61 = vpop.f32.mrf.mxu2  ;;  %v10122_v17 = vld [vmem:[#allocation20 + $0x218] sm:$0xf0]  ;;  %v12691_v39 = vld [vmem:[#allocation20 + $0x80c] sm:$0xf] }
 0x743   :  { %7646 = vmatpush.bf16.msrb.mxu3 %v11881_v54  ;;  %7685 = vmatpush.bf16.msrb.mxu2 %v10221_v27  ;;  %v13999_v14 = vadd.f32 %v7472_v32, %v7460_v31  ;;  %v12925_v54 = vld [vmem:[#allocation20 + $0xf54] sm:$0xf0]  ;;  %v12507_v27 = vld [vmem:[#allocation20 + $0x24c] sm:$0xf]  ;;  %v11784_v32 = vld [vmem:[#allocation20 + $0xf08] sm:$0xf] }
 0x744   :  { %7724 = vmatpush.bf16.msrb.mxu1 %v10605_v62  ;;  %7763 = vmatpush.bf16.msra.mxu0 %v10989_v55  ;;  %v10941_v62 = vor.u32 %v12703_v35, %v10938_v22  ;;  %v12603_v55 = vld [vmem:[#allocation20 + $0x54c] sm:$0xf]  ;;  %v7408_v3 = vadd.f32 %v13971_v0, %v7395_v47  ;;  %v11817_v26 = vor.u32 %v12925_v54, %v11816_v37  ;;  %v10506_v52 = vld [vmem:[#allocation20 + $0x518] sm:$0xf0] }
 0x745   :  { %v12695_v31 = vld [vmem:[#allocation20 + $0x82c] sm:$0xf]  ;;  %v10890_v35 = vld [vmem:[#allocation20 + $0x818] sm:$0xf0] }
 0x746   :  { %v7421_v2 = vadd.f32 %v13982_v49, %v7408_v3  ;;  %v12595_v49 = vld [vmem:[#allocation20 + $0x50c] sm:$0xf]  ;;  %v10746_v46 = vld [vmem:[#allocation20 + $0x6f8] sm:$0xf0] }
 0x747   :  { %7647 = vmatpush.bf16.msrb.mxu3 %v11865_v59  ;;  %7686 = vmatpush.bf16.msrb.mxu2 %v10205_v29  ;;  %v7513_v59 = vpop.f32.mrf.mxu0  ;;  %v10157_v29 = vor.u32 %v12507_v27, %v10154_v24  ;;  %v12559_v22 = vld [vmem:[#allocation20 + $0x3ec] sm:$0xf]  ;;  %v11130_v54 = vld [vmem:[#allocation20 + $0x9f8] sm:$0xf0]  ;;  %v10125_v27 = vor.u32 %v12499_v13, %v10122_v17  ;;  %v10893_v24 = vor.u32 %v12691_v39, %v10890_v35 }
 0x748   :  { %7725 = vmatpush.bf16.msrb.mxu1 %v10589_v6  ;;  %7764 = vmatpush.bf16.msra.mxu0 %v10973_v11  ;;  %v10541_v6 = vor.u32 %v12603_v55, %v10538_v56  ;;  %v10925_v11 = vor.u32 %v12699_v23, %v10922_v16  ;;  %v14006_v0 = vadd.f32 %v7433_v61, %v7421_v2  ;;  %v12751_v37 = vld [vmem:[#allocation20 + $0x9ec] sm:$0xf]  ;;  %v11514_v61 = vld [vmem:[#allocation20 + $0xcf8] sm:$0xf0] }
 0x749   :  { %v7474_v28 = vpop.f32.mrf.mxu1  ;;  %v7396_v53 = vpop.f32.mrf.mxu3  ;;  %v12847_v47 = vld [vmem:[#allocation20 + $0xcec] sm:$0xf]  ;;  %v11133_v23 = vor.u32 %v12751_v37, %v11130_v54  ;;  %v10346_v3 = vld [vmem:[#allocation20 + $0x3d8] sm:$0xf0] }
 0x74a   :  { %v7435_v57 = vpop.f32.mrf.mxu2  ;;  %v12555_v16 = vld [vmem:[#allocation20 + $0x3cc] sm:$0xf]  ;;  %v10730_v59 = vld [vmem:[#allocation20 + $0x6d8] sm:$0xf0] }
 0x74b   :  { %7648 = vmatpush.bf16.msrb.mxu3 %v11849_v20  ;;  %7687 = vmatpush.bf16.msrb.mxu2 %v10189_v19  ;;  %v12917_v20 = vld [vmem:[#allocation20 + $0xf14] sm:$0xf0]  ;;  %v10141_v19 = vor.u32 %v12503_v40, %v10138_v42  ;;  %v12651_v28 = vld [vmem:[#allocation20 + $0x6cc] sm:$0xf]  ;;  %v11498_v8 = vld [vmem:[#allocation20 + $0xcd8] sm:$0xf0]  ;;  %v10349_v40 = vor.u32 %v12555_v16, %v10346_v3 }
 0x74c   :  { %7726 = vmatpush.bf16.msrb.mxu1 %v10573_v58  ;;  %7765 = vmatpush.bf16.msra.mxu0 %v10957_v18  ;;  %v10525_v58 = vor.u32 %v12599_v10, %v10522_v51  ;;  %v10909_v18 = vor.u32 %v12695_v31, %v10906_v45  ;;  %v12843_v7 = vld [vmem:[#allocation20 + $0xccc] sm:$0xf]  ;;  %v10733_v2 = vor.u32 %v12651_v28, %v10730_v59  ;;  %v10330_v10 = vld [vmem:[#allocation20 + $0x3b8] sm:$0xf0] }
 0x74d   :  { %v12551_v42 = vld [vmem:[#allocation20 + $0x3ac] sm:$0xf]  ;;  %v11501_v31 = vor.u32 %v12843_v7, %v11498_v8  ;;  %v10714_v45 = vld [vmem:[#allocation20 + $0x6b8] sm:$0xf0] }
 0x74e   :  { %v12647_v51 = vld [vmem:[#allocation20 + $0x6ac] sm:$0xf]  ;;  %v10298_v37 = vld [vmem:[#allocation20 + $0x378] sm:$0xf0] }
 0x74f   :  { %7649 = vmatpush.bf16.msrb.mxu3 %v11833_v48  ;;  %7688 = vmatpush.bf16.msrb.mxu2 %v10173_v60  ;;  %v10362_v48 = vld [vmem:[#allocation20 + $0x3f8] sm:$0xf0]  ;;  %v12655_v60 = vld [vmem:[#allocation20 + $0x6ec] sm:$0xf]  ;;  %v10717_v53 = vor.u32 %v12647_v51, %v10714_v45 }
 0x750   :  { %7727 = vmatpush.bf16.msrb.mxu1 %v10557_v21  ;;  %7766 = vmatpush.bf16.msra.mxu0 %v10941_v62  ;;  %v11785_v21 = vor.u32 %v12917_v20, %v11784_v32  ;;  %v10509_v62 = vor.u32 %v12595_v49, %v10506_v52  ;;  %v10365_v55 = vor.u32 %v12559_v22, %v10362_v48  ;;  %v11098_v32 = vld [vmem:[#allocation20 + $0x9b8] sm:$0xf0]  ;;  %v12839_v20 = vld [vmem:[#allocation20 + $0xcac] sm:$0xf] }
 0x751   :  { %v10749_v56 = vor.u32 %v12655_v60, %v10746_v46  ;;  %v12547_v17 = vld [vmem:[#allocation20 + $0x38c] sm:$0xf]  ;;  %v10314_v49 = vld [vmem:[#allocation20 + $0x398] sm:$0xf0] }
 0x752   :  { %v10698_v52 = vld [vmem:[#allocation20 + $0x698] sm:$0xf0]  ;;  %v12739_v39 = vld [vmem:[#allocation20 + $0x98c] sm:$0xf] }
 0x753   :  { %7650 = vmatpush.bf16.msrb.mxu3 %v11817_v26  ;;  %7689 = vmatpush.bf16.msrb.mxu2 %v10157_v29  ;;  %v11517_v26 = vor.u32 %v12847_v47, %v11514_v61  ;;  %v12747_v29 = vld [vmem:[#allocation20 + $0x9cc] sm:$0xf]  ;;  %v11066_v61 = vld [vmem:[#allocation20 + $0x978] sm:$0xf0] }
 0x754   :  { %7728 = vmatpush.bf16.msrb.mxu1 %v10541_v6  ;;  %7767 = vmatpush.bf16.msra.mxu0 %v10925_v11  ;;  %v11114_v6 = vld [vmem:[#allocation20 + $0x9d8] sm:$0xf0]  ;;  %v12835_v35 = vld [vmem:[#allocation20 + $0xc8c] sm:$0xf] }
 0x755   :  { %v11117_v11 = vor.u32 %v12747_v29, %v11114_v6  ;;  %v12543_v46 = vld [vmem:[#allocation20 + $0x36c] sm:$0xf]  ;;  %v10666_v8 = vld [vmem:[#allocation20 + $0x658] sm:$0xf0] }
 0x756   :  { %v12639_v54 = vld [vmem:[#allocation20 + $0x66c] sm:$0xf] }
 0x757   :  { %7651 = vmatpush.bf16.msrb.mxu3 %v11801_v12  ;;  %7690 = vmatpush.bf16.msrb.mxu2 %v10141_v19  ;;  %v12743_v12 = vld [vmem:[#allocation20 + $0x9ac] sm:$0xf]  ;;  %v11482_v19 = vld [vmem:[#allocation20 + $0xcb8] sm:$0xf0] }
 0x758   :  { %7729 = vmatpush.bf16.msrb.mxu1 %v10525_v58  ;;  %7768 = vmatpush.bf16.msra.mxu0 %v10909_v18  ;;  %v10333_v58 = vor.u32 %v12551_v42, %v10330_v10  ;;  %v11101_v13 = vor.u32 %v12743_v12, %v11098_v32  ;;  %v12643_v18 = vld [vmem:[#allocation20 + $0x68c] sm:$0xf]  ;;  %v11485_v57 = vor.u32 %v12839_v20, %v11482_v19  ;;  %v11434_v10 = vld [vmem:[#allocation20 + $0xc58] sm:$0xf0] }
 0x759   :  { %v10701_v60 = vor.u32 %v12643_v18, %v10698_v52  ;;  %v12735_v47 = vld [vmem:[#allocation20 + $0x96c] sm:$0xf]  ;;  %v10250_v52 = vld [vmem:[#allocation20 + $0x318] sm:$0xf0] }
 0x75a   :  { %v11069_v16 = vor.u32 %v12735_v47, %v11066_v61  ;;  %v12539_v28 = vld [vmem:[#allocation20 + $0x34c] sm:$0xf]  ;;  %v10874_v47 = vld [vmem:[#allocation20 + $0x7f8] sm:$0xf0] }
 0x75b   :  { %7652 = vmatpush.bf16.msrb.mxu3 %v11785_v21  ;;  %7691 = vmatpush.bf16.msrb.mxu2 %v10125_v27  ;;  %v12635_v59 = vld [vmem:[#allocation20 + $0x64c] sm:$0xf] }
 0x75c   :  { %7730 = vmatpush.bf16.msrb.mxu1 %v10509_v62  ;;  %7769 = vmatpush.bf16.msra.mxu0 %v10893_v24  ;;  %v10682_v62 = vld [vmem:[#allocation20 + $0x678] sm:$0xf0]  ;;  %v12831_v24 = vld [vmem:[#allocation20 + $0xc6c] sm:$0xf]  ;;  %v10669_v12 = vor.u32 %v12635_v59, %v10666_v8 }
 0x75d   :  { %v12827_v42 = vld [vmem:[#allocation20 + $0xc4c] sm:$0xf]  ;;  %v12953_v59 = vld [vmem:[#allocation23 + $0x38] sm:$0xff] }
 0x75e   :  { %7653 = vmatmul.bf16.vlgmr.msrb.gmra.mxu3 %v13905_v63  ;;  %7692 = vmatmul.bf16.vlgmr.msrb.gmra.mxu2 %v13829_v38  ;;  %v11082_v38 = vld [vmem:[#allocation20 + $0x998] sm:$0xf0]  ;;  %v14012_v22 = vpop.f32.mrf.mxu1  ;;  %v14014_v48 = vpop.f32.mrf.mxu0  ;;  %v12535_v20 = vld [vmem:[#allocation20 + $0x32c] sm:$0xf] }
 0x75f   :  { %7697 = vmatpush.bf16.msra.mxu3 %v10365_v55  ;;  %7736 = vmatpush.bf16.msra.mxu2 %v10749_v56  ;;  %v11085_v21 = vor.u32 %v12739_v39, %v11082_v38  ;;  %v11450_v55 = vld [vmem:[#allocation20 + $0xc78] sm:$0xf0]  ;;  %v10301_v56 = vor.u32 %v12543_v46, %v10298_v37  ;;  %v12631_v19 = vld [vmem:[#allocation20 + $0x62c] sm:$0xf] }
 0x760   :  { %7775 = vmatpush.bf16.msra.mxu1 %v11133_v23  ;;  %7814 = vmatpush.bf16.msrb.mxu0 %v11517_v26  ;;  %v10685_v23 = vor.u32 %v12639_v54, %v10682_v62  ;;  %v10282_v26 = vld [vmem:[#allocation20 + $0x358] sm:$0xf0]  ;;  %v11453_v29 = vor.u32 %v12831_v24, %v11450_v55  ;;  %v12819_v54 = vld [vmem:[#allocation20 + $0xc0c] sm:$0xf] }
 0x761   :  { %7731 = vmatmul.bf16.vlgmr.msrb.gmra.mxu1 %v13833_v41  ;;  %7770 = vmatmul.bf16.vlgmr.msra.gmra.mxu0 %v13839_v43  ;;  %v11466_v41 = vld [vmem:[#allocation20 + $0xc98] sm:$0xf0]  ;;  %v10317_v43 = vor.u32 %v12547_v17, %v10314_v49  ;;  %v7446_v3 = vpop.f32.mrf.mxu3  ;;  %v7485_v7 = vpop.f32.mrf.mxu2  ;;  %v12687_v62 = vld [vmem:[#allocation20 + $0x7ec] sm:$0xf] }
 0x762   :  { %v11469_v27 = vor.u32 %v12835_v35, %v11466_v41  ;;  %v14017_v6 = vadd.f32 %v7446_v3, %v14006_v0  ;;  %v10266_v0 = vld [vmem:[#allocation20 + $0x338] sm:$0xf0]  ;;  %v12627_v41 = vld [vmem:[#allocation20 + $0x60c] sm:$0xf] }
 0x763   :  { %7698 = vmatpush.bf16.msra.mxu3 %v10349_v40  ;;  %7737 = vmatpush.bf16.msra.mxu2 %v10733_v2  ;;  %v12731_v40 = vld [vmem:[#allocation20 + $0x94c] sm:$0xf]  ;;  %v11050_v2 = vld [vmem:[#allocation20 + $0x958] sm:$0xf0]  ;;  %v10269_v18 = vor.u32 %v12535_v20, %v10266_v0 }
 0x764   :  { %7776 = vmatpush.bf16.msra.mxu1 %v11117_v11  ;;  %7815 = vmatpush.bf16.msrb.mxu0 %v11501_v31  ;;  %v14020_v11 = vadd.f32 %v7485_v7, %v13999_v14  ;;  %v10285_v31 = vor.u32 %v12539_v28, %v10282_v26  ;;  %v11053_v32 = vor.u32 %v12731_v40, %v11050_v2  ;;  %v11034_v17 = vld [vmem:[#allocation20 + $0x938] sm:$0xf0]  ;;  %v12823_v14 = vld [vmem:[#allocation20 + $0xc2c] sm:$0xf] }
 0x765   :  { %v11418_v49 = vld [vmem:[#allocation20 + $0xc38] sm:$0xf0]  ;;  %v12783_v61 = vld [vmem:[#allocation20 + $0xaec] sm:$0xf]  ;;  %v10877_v26 = vor.u32 %v12687_v62, %v10874_v47 }
 0x766   :  { %v7526_v51 = vpop.f32.mrf.mxu1  ;;  %v7565_v45 = vpop.f32.mrf.mxu0  ;;  %v11018_v37 = vld [vmem:[#allocation20 + $0x918] sm:$0xf0]  ;;  %v12683_v8 = vld [vmem:[#allocation20 + $0x7cc] sm:$0xf] }
 0x767   :  { %7699 = vmatpush.bf16.msra.mxu3 %v10333_v58  ;;  %7738 = vmatpush.bf16.msra.mxu2 %v10717_v53  ;;  %v11437_v58 = vor.u32 %v12827_v42, %v11434_v10  ;;  %v10650_v53 = vld [vmem:[#allocation20 + $0x638] sm:$0xf0]  ;;  %v12779_v2 = vld [vmem:[#allocation20 + $0xacc] sm:$0xf]  ;;  %v12952_v45 = vld [vmem:[#allocation23 + $0x30] sm:$0xff] }
 0x768   :  { %7777 = vmatpush.bf16.msra.mxu1 %v11101_v13  ;;  %7816 = vmatpush.bf16.msrb.mxu0 %v11485_v57  ;;  %v12727_v13 = vld [vmem:[#allocation20 + $0x92c] sm:$0xf]  ;;  %v10653_v39 = vor.u32 %v12631_v19, %v10650_v53  ;;  %v11258_v55 = vld [vmem:[#allocation20 + $0xaf8] sm:$0xf0] }
 0x769   :  { %v12531_v57 = vld [vmem:[#allocation20 + $0x30c] sm:$0xf]  ;;  %v11037_v38 = vor.u32 %v12727_v13, %v11034_v17  ;;  %v7448_v35 = vpop.f32.mrf.mxu3  ;;  %v7487_v46 = vpop.f32.mrf.mxu2  ;;  %v10858_v40 = vld [vmem:[#allocation20 + $0x7d8] sm:$0xf0] }
 0x76a   :  { %v10253_v24 = vor.u32 %v12531_v57, %v10250_v52  ;;  %v11242_v42 = vld [vmem:[#allocation20 + $0xad8] sm:$0xf0]  ;;  %v12875_v10 = vld [vmem:[#allocation20 + $0xdcc] sm:$0xf] }
 0x76b   :  { %7700 = vmatpush.bf16.msra.mxu3 %v10317_v43  ;;  %7739 = vmatpush.bf16.msra.mxu2 %v10701_v60  ;;  %v10634_v43 = vld [vmem:[#allocation20 + $0x618] sm:$0xf0]  ;;  %v12723_v60 = vld [vmem:[#allocation20 + $0x90c] sm:$0xf] }
 0x76c   :  { %7778 = vmatpush.bf16.msra.mxu1 %v11085_v21  ;;  %7817 = vmatpush.bf16.msrb.mxu0 %v11469_v27  ;;  %v11421_v21 = vor.u32 %v12823_v14, %v11418_v49  ;;  %v11402_v27 = vld [vmem:[#allocation20 + $0xc18] sm:$0xf0]  ;;  %v11021_v3 = vor.u32 %v12723_v60, %v11018_v37  ;;  %v12679_v20 = vld [vmem:[#allocation20 + $0x7ac] sm:$0xf] }
 0x76d   :  { %v11405_v28 = vor.u32 %v12819_v54, %v11402_v27  ;;  %v11626_v51 = vld [vmem:[#allocation20 + $0xdd8] sm:$0xf0]  ;;  %v12775_v19 = vld [vmem:[#allocation20 + $0xaac] sm:$0xf] }
 0x76e   :  { %v10842_v0 = vld [vmem:[#allocation20 + $0x7b8] sm:$0xf0]  ;;  %v12871_v53 = vld [vmem:[#allocation20 + $0xdac] sm:$0xf] }
 0x76f   :  { %7701 = vmatpush.bf16.msra.mxu3 %v10301_v56  ;;  %7740 = vmatpush.bf16.msra.mxu2 %v10685_v23  ;;  %v12879_v56 = vld [vmem:[#allocation20 + $0xdec] sm:$0xf]  ;;  %v11642_v23 = vld [vmem:[#allocation20 + $0xdf8] sm:$0xf0]  ;;  %v10845_v17 = vor.u32 %v12679_v20, %v10842_v0 }
 0x770   :  { %7779 = vmatpush.bf16.msra.mxu1 %v11069_v16  ;;  %7818 = vmatpush.bf16.msrb.mxu0 %v11453_v29  ;;  %v10637_v16 = vor.u32 %v12627_v41, %v10634_v43  ;;  %v11261_v29 = vor.u32 %v12783_v61, %v11258_v55  ;;  %v11645_v7 = vor.u32 %v12879_v56, %v11642_v23  ;;  %v11610_v13 = vld [vmem:[#allocation20 + $0xdb8] sm:$0xf0]  ;;  %v12951_v14 = vld [vmem:[#allocation23 + $0x28] sm:$0xff]  ;;  %v12950_v41 = vld [vmem:[#allocation23 + $0x20] sm:$0xff] }
 0x771   :  { %v12675_v57 = vld [vmem:[#allocation20 + $0x78c] sm:$0xf]  ;;  %v10826_v52 = vld [vmem:[#allocation20 + $0x798] sm:$0xf0] }
 0x772   :  { %v11594_v35 = vld [vmem:[#allocation20 + $0xd98] sm:$0xf0]  ;;  %v12767_v37 = vld [vmem:[#allocation20 + $0xa6c] sm:$0xf] }
 0x773   :  { %7702 = vmatpush.bf16.msra.mxu3 %v10285_v31  ;;  %7741 = vmatpush.bf16.msra.mxu2 %v10669_v12  ;;  %v10861_v31 = vor.u32 %v12683_v8, %v10858_v40  ;;  %v11245_v12 = vor.u32 %v12779_v2, %v11242_v42  ;;  %v10810_v46 = vld [vmem:[#allocation20 + $0x778] sm:$0xf0]  ;;  %v12863_v27 = vld [vmem:[#allocation20 + $0xd6c] sm:$0xf]  ;;  %v12948_v42 = vld [vmem:[#allocation23 + $0x10] sm:$0xff] }
 0x774   :  { %7780 = vmatpush.bf16.msra.mxu1 %v11053_v32  ;;  %7819 = vmatpush.bf16.msrb.mxu0 %v11437_v58  ;;  %v11629_v32 = vor.u32 %v12875_v10, %v11626_v51  ;;  %v11226_v58 = vld [vmem:[#allocation20 + $0xab8] sm:$0xf0]  ;;  %v12667_v23 = vld [vmem:[#allocation20 + $0x74c] sm:$0xf] }
 0x775   :  { %v11229_v49 = vor.u32 %v12775_v19, %v11226_v58  ;;  %v11194_v54 = vld [vmem:[#allocation20 + $0xa78] sm:$0xf0]  ;;  %v12855_v0 = vld [vmem:[#allocation20 + $0xd2c] sm:$0xf] }
 0x776   :  { %v11578_v62 = vld [vmem:[#allocation20 + $0xd78] sm:$0xf0] }
 0x777   :  { %7703 = vmatpush.bf16.msra.mxu3 %v10269_v18  ;;  %7742 = vmatpush.bf16.msra.mxu2 %v10653_v39  ;;  %v11613_v18 = vor.u32 %v12871_v53, %v11610_v13  ;;  %v12771_v39 = vld [vmem:[#allocation20 + $0xa8c] sm:$0xf]  ;;  %v12949_v61 = vld [vmem:[#allocation23 + $0x18] sm:$0xff]  ;;  %v11581_v55 = vor.u32 %v12863_v27, %v11578_v62 }
 0x778   :  { %7781 = vmatpush.bf16.msra.mxu1 %v11037_v38  ;;  %7820 = vmatpush.bf16.msrb.mxu0 %v11421_v21  ;;  %v12867_v38 = vld [vmem:[#allocation20 + $0xd8c] sm:$0xf]  ;;  %v11162_v20 = vld [vmem:[#allocation20 + $0xa38] sm:$0xf0] }
 0x779   :  { %v11597_v60 = vor.u32 %v12867_v38, %v11594_v35  ;;  %v12671_v21 = vld [vmem:[#allocation20 + $0x76c] sm:$0xf]  ;;  %v11546_v19 = vld [vmem:[#allocation20 + $0xd38] sm:$0xf0] }
 0x77a   :  { %v10813_v47 = vor.u32 %v12671_v21, %v10810_v46  ;;  %v12947_v53 = vld [vmem:[#allocation23 + $0x8] sm:$0xff]  ;;  %v11386_v35 = vld [vmem:[#allocation20 + $0xbf8] sm:$0xf0]  ;;  %v12946_v46 = vld [vmem:[#allocation23] sm:$0xff] }
 0x77b   :  { %7704 = vmatpush.bf16.msra.mxu3 %v10253_v24  ;;  %7743 = vmatpush.bf16.msra.mxu2 %v10637_v16  ;;  %v11197_v24 = vor.u32 %v12767_v37, %v11194_v54  ;;  %v10794_v16 = vld [vmem:[#allocation20 + $0x758] sm:$0xf0]  ;;  %v12815_v38 = vld [vmem:[#allocation20 + $0xbec] sm:$0xf]  ;;  %v7866_v54 = vmax.f32 %v13963_v4, 0.0 }
 0x77c   :  { %7782 = vmatpush.bf16.msra.mxu1 %v11021_v3  ;;  %7821 = vmatpush.bf16.msrb.mxu0 %v11405_v28  ;;  %v12763_v3 = vld [vmem:[#allocation20 + $0xa4c] sm:$0xf]  ;;  %v10797_v2 = vor.u32 %v12667_v23, %v10794_v16  ;;  %v11389_v37 = vor.u32 %v12815_v38, %v11386_v35  ;;  %v12961_v62 = vld [vmem:[#allocation23 + $0x78] sm:$0xff]  ;;  %v12956_v38 = vld [vmem:[#allocation23 + $0x50] sm:$0xff] }
 0x77d   :  { %v7934_v23 = vpack.c.bf16 %v7866_v54, %v7866_v54  ;;  %v12903_v4 = vld [vmem:[#allocation20 + $0xeac] sm:$0xf]  ;;  %v11274_v54 = vld [vmem:[#allocation20 + $0xb18] sm:$0xf0] }
 0x77e   :  { %7705 = vmatmul.bf16.vlgmr.msra.gmra.mxu3 %v13852_v25  ;;  %7744 = vmatmul.bf16.vlgmr.msra.gmra.mxu2 %v13856_v1  ;;  %v11210_v25 = vld [vmem:[#allocation20 + $0xa98] sm:$0xf0]  ;;  %v14026_v1 = vpop.f32.mrf.mxu1  ;;  %v12791_v35 = vld [vmem:[#allocation20 + $0xb2c] sm:$0xf] }
 0x77f   :  { %7749 = vmatpush.bf16.msrb.mxu3 %v10877_v26  ;;  %7788 = vmatpush.bf16.msrb.mxu2 %v11261_v29  ;;  %v11213_v43 = vor.u32 %v12771_v39, %v11210_v25  ;;  %v12859_v29 = vld [vmem:[#allocation20 + $0xd4c] sm:$0xf]  ;;  %v11146_v39 = vld [vmem:[#allocation20 + $0xa18] sm:$0xf0] }
 0x780   :  { %7827 = vmatpush.bf16.msrb.mxu1 %v11645_v7  ;;  %8134 = vmatpush.bf16.msra.mxu0 %v12953_v59  ;;  %v11178_v59 = vld [vmem:[#allocation20 + $0xa58] sm:$0xf0] }
 0x781   :  { %7783 = vmatmul.bf16.vlgmr.msra.gmra.mxu1 %v13860_v34  ;;  %7822 = vmatmul.bf16.vlgmr.msrb.gmra.mxu0 %v13867_v30  ;;  %v10829_v34 = vor.u32 %v12675_v57, %v10826_v52  ;;  %v14028_v30 = vpop.f32.mrf.mxu0  ;;  %v7498_v56 = vpop.f32.mrf.mxu3  ;;  %v11562_v7 = vld [vmem:[#allocation20 + $0xd58] sm:$0xf0]  ;;  %v11181_v51 = vor.u32 %v12763_v3, %v11178_v59  ;;  %v12755_v57 = vld [vmem:[#allocation20 + $0xa0c] sm:$0xf]  ;;  %v12960_v3 = vld [vmem:[#allocation23 + $0x70] sm:$0xff] }
 0x782   :  { %v7499_v28 = vadd.f32 %v7498_v56, %v14020_v11  ;;  %v7537_v26 = vpop.f32.mrf.mxu2  ;;  %v11530_v25 = vld [vmem:[#allocation20 + $0xd18] sm:$0xf0] }
 0x783   :  { %7750 = vmatpush.bf16.msrb.mxu3 %v10861_v31  ;;  %7789 = vmatpush.bf16.msrb.mxu2 %v11245_v12  ;;  %v11565_v31 = vor.u32 %v12859_v29, %v11562_v7  ;;  %v10778_v12 = vld [vmem:[#allocation20 + $0x738] sm:$0xf0] }
 0x784   :  { %7828 = vmatpush.bf16.msrb.mxu1 %v11629_v32  ;;  %8135 = vmatpush.bf16.msra.mxu0 %v12952_v45  ;;  %v7512_v8 = vadd.f32 %v14001_v5, %v7499_v28  ;;  %v12663_v45 = vld [vmem:[#allocation20 + $0x72c] sm:$0xf]  ;;  %v11738_v59 = vld [vmem:[#allocation20 + $0xeb8] sm:$0xf0] }
 0x785   :  { %v12759_v32 = vld [vmem:[#allocation20 + $0xa2c] sm:$0xf]  ;;  %v10781_v5 = vor.u32 %v12663_v45, %v10778_v12  ;;  %v11741_v7 = vor.u32 %v12903_v4, %v11738_v59  ;;  %v11322_v12 = vld [vmem:[#allocation20 + $0xb78] sm:$0xf0] }
 0x786   :  { %v7578_v40 = vpop.f32.mrf.mxu1  ;;  %v7525_v11 = vadd.f32 %v14012_v22, %v7512_v8  ;;  %v11165_v13 = vor.u32 %v12759_v32, %v11162_v20  ;;  %v12851_v22 = vld [vmem:[#allocation20 + $0xd0c] sm:$0xf] }
 0x787   :  { %7751 = vmatpush.bf16.msrb.mxu3 %v10845_v17  ;;  %7790 = vmatpush.bf16.msrb.mxu2 %v11229_v49  ;;  %v11549_v17 = vor.u32 %v12855_v0, %v11546_v19  ;;  %v12659_v49 = vld [vmem:[#allocation20 + $0x70c] sm:$0xf]  ;;  %v11533_v21 = vor.u32 %v12851_v22, %v11530_v25  ;;  %v12957_v19 = vld [vmem:[#allocation23 + $0x58] sm:$0xff] }
 0x788   :  { %7829 = vmatpush.bf16.msrb.mxu1 %v11613_v18  ;;  %8136 = vmatpush.bf16.msra.mxu0 %v12951_v14  ;;  %v14033_v58 = vadd.f32 %v7537_v26, %v7525_v11  ;;  %v10762_v18 = vld [vmem:[#allocation20 + $0x718] sm:$0xf0]  ;;  %v12807_v28 = vld [vmem:[#allocation20 + $0xbac] sm:$0xf] }
 0x789   :  { %v7617_v10 = vpop.f32.mrf.mxu0  ;;  %v7500_v14 = vpop.f32.mrf.mxu3  ;;  %v11354_v26 = vld [vmem:[#allocation20 + $0xbb8] sm:$0xf0]  ;;  %v12959_v8 = vld [vmem:[#allocation23 + $0x68] sm:$0xff] }
 0x78a   :  { %v7539_v52 = vpop.f32.mrf.mxu2  ;;  %v11357_v29 = vor.u32 %v12807_v28, %v11354_v26  ;;  %v12803_v40 = vld [vmem:[#allocation20 + $0xb8c] sm:$0xf]  ;;  %v11722_v10 = vld [vmem:[#allocation20 + $0xe98] sm:$0xf0] }
 0x78b   :  { %7752 = vmatpush.bf16.msrb.mxu3 %v10829_v34  ;;  %7791 = vmatpush.bf16.msrb.mxu2 %v11213_v43  ;;  %v10765_v34 = vor.u32 %v12659_v49, %v10762_v18  ;;  %v11770_v43 = vld [vmem:[#allocation20 + $0xef8] sm:$0xf0]  ;;  %v12799_v45 = vld [vmem:[#allocation20 + $0xb6c] sm:$0xf] }
 0x78c   :  { %7830 = vmatpush.bf16.msrb.mxu1 %v11597_v60  ;;  %8137 = vmatpush.bf16.msra.mxu0 %v12950_v41  ;;  %v12911_v41 = vld [vmem:[#allocation20 + $0xeec] sm:$0xf]  ;;  %v11149_v60 = vor.u32 %v12755_v57, %v11146_v39  ;;  %v11706_v11 = vld [vmem:[#allocation20 + $0xe78] sm:$0xf0]  ;;  %v11325_v20 = vor.u32 %v12799_v45, %v11322_v12 }
 0x78d   :  { %v11773_v27 = vor.u32 %v12911_v41, %v11770_v43  ;;  %v12895_v32 = vld [vmem:[#allocation20 + $0xe6c] sm:$0xf]  ;;  %v11690_v18 = vld [vmem:[#allocation20 + $0xe58] sm:$0xf0] }
 0x78e   :  { %v11709_v0 = vor.u32 %v12895_v32, %v11706_v11  ;;  %v12891_v49 = vld [vmem:[#allocation20 + $0xe4c] sm:$0xf]  ;;  %v11882_v26 = vld [vmem:[#allocation20 + $0xfd8] sm:$0xf0] }
 0x78f   :  { %7753 = vmatpush.bf16.msrb.mxu3 %v10813_v47  ;;  %7792 = vmatpush.bf16.msrb.mxu2 %v11197_v24  ;;  %v12811_v47 = vld [vmem:[#allocation20 + $0xbcc] sm:$0xf]  ;;  %v11693_v25 = vor.u32 %v12891_v49, %v11690_v18  ;;  %v12964_v18 = vld [vmem:[#allocation23 + $0x90] sm:$0xff] }
 0x790   :  { %7831 = vmatpush.bf16.msrb.mxu1 %v11581_v55  ;;  %8138 = vmatpush.bf16.msra.mxu0 %v12949_v61  ;;  %v11370_v61 = vld [vmem:[#allocation20 + $0xbd8] sm:$0xf0]  ;;  %v12907_v24 = vld [vmem:[#allocation20 + $0xecc] sm:$0xf] }
 0x791   :  { %v11754_v55 = vld [vmem:[#allocation20 + $0xed8] sm:$0xf0]  ;;  %v11373_v56 = vor.u32 %v12811_v47, %v11370_v61  ;;  %v12887_v43 = vld [vmem:[#allocation20 + $0xe2c] sm:$0xf] }
 0x792   :  { %v11757_v16 = vor.u32 %v12907_v24, %v11754_v55  ;;  %v11658_v47 = vld [vmem:[#allocation20 + $0xe18] sm:$0xf0]  ;;  %v12943_v61 = vld [vmem:[#allocation20 + $0xfec] sm:$0xf] }
 0x793   :  { %7754 = vmatpush.bf16.msrb.mxu3 %v10797_v2  ;;  %7793 = vmatpush.bf16.msrb.mxu2 %v11181_v51  ;;  %v11338_v2 = vld [vmem:[#allocation20 + $0xb98] sm:$0xf0]  ;;  %v12939_v28 = vld [vmem:[#allocation20 + $0xfcc] sm:$0xf] }
 0x794   :  { %7832 = vmatpush.bf16.msrb.mxu1 %v11565_v31  ;;  %8139 = vmatpush.bf16.msra.mxu0 %v12948_v42  ;;  %v12899_v42 = vld [vmem:[#allocation20 + $0xe8c] sm:$0xf]  ;;  %v12958_v31 = vld [vmem:[#allocation23 + $0x60] sm:$0xff]  ;;  %v11898_v24 = vld [vmem:[#allocation20 + $0xff8] sm:$0xf0]  ;;  %v11885_v59 = vor.u32 %v12939_v28, %v11882_v26 }
 0x795   :  { %v12927_v32 = vld [vmem:[#allocation20 + $0xf6c] sm:$0xf] }
 0x797   :  { %7755 = vmatpush.bf16.msrb.mxu3 %v10781_v5  ;;  %7794 = vmatpush.bf16.msrb.mxu2 %v11165_v13  ;;  %v11306_v13 = vld [vmem:[#allocation20 + $0xb58] sm:$0xf0] }
 0x798   :  { %7833 = vmatpush.bf16.msrb.mxu1 %v11549_v17  ;;  %8140 = vmatpush.bf16.msra.mxu0 %v12947_v53  ;;  %v12795_v53 = vld [vmem:[#allocation20 + $0xb4c] sm:$0xf] }
 0x799   :  { %v11309_v39 = vor.u32 %v12795_v53, %v11306_v13 }
 0x79b   :  { %7756 = vmatpush.bf16.msrb.mxu3 %v10765_v34  ;;  %7795 = vmatpush.bf16.msrb.mxu2 %v11149_v60  ;;  %v11290_v34 = vld [vmem:[#allocation20 + $0xb38] sm:$0xf0] }
 0x79c   :  { %7834 = vmatpush.bf16.msrb.mxu1 %v11533_v21  ;;  %8141 = vmatpush.bf16.msra.mxu0 %v12946_v46  ;;  %v11293_v60 = vor.u32 %v12791_v35, %v11290_v34  ;;  %v12955_v46 = vld [vmem:[#allocation23 + $0x48] sm:$0xff]  ;;  %v11786_v35 = vld [vmem:[#allocation20 + $0xf18] sm:$0xf0] }
 0x79e   :  { %7757 = vmatmul.bf16.vlgmr.msrb.gmra.mxu3 %v13872_v33  ;;  %7796 = vmatmul.bf16.vlgmr.msrb.gmra.mxu2 %v13876_v15  ;;  %v14039_v51 = vpop.f32.mrf.mxu1  ;;  %v11341_v33 = vor.u32 %v12803_v40, %v11338_v2  ;;  %v14041_v15 = vpop.f32.mrf.mxu0  ;;  %v12967_v2 = vld [vmem:[#allocation23 + $0xa8] sm:$0xff] }
 0x79f   :  { %7801 = vmatpush.bf16.msra.mxu3 %v11389_v37  ;;  %7840 = vmatpush.bf16.msra.mxu2 %v11773_v27  ;;  %v12787_v37 = vld [vmem:[#allocation20 + $0xb0c] sm:$0xf] }
 0x7a0   :  { %8147 = vmatpush.bf16.msra.mxu1 %v12961_v62  ;;  %8142 = vmatmul.bf16.vlgmr.msra.gmra.mxu0 %v7934_v23  ;;  %v12883_v62 = vld [vmem:[#allocation20 + $0xe0c] sm:$0xf]  ;;  %v11277_v55 = vor.u32 %v12787_v37, %v11274_v54  ;;  %v7867_v23 = vmax.f32 %v14017_v6, 0.0  ;;  %v4469_v6 = vperm.slane %v13992_v44, 3 }
 0x7a1   :  { %7835 = vmatmul.bf16.vlgmr.msrb.gmra.mxu1 %v13881_v36  ;;  %v11725_v36 = vor.u32 %v12899_v42, %v11722_v10  ;;  %v7550_v5 = vpop.f32.mrf.mxu3  ;;  %v14044_v14 = vpop.f32.mrf.mxu2  ;;  %v12931_v42 = vld [vmem:[#allocation20 + $0xf8c] sm:$0xf]  ;;  %v11850_v10 = vld [vmem:[#allocation20 + $0xf98] sm:$0xf0] }
 0x7a2   :  { %v7551_v17 = vadd.f32 %v7550_v5, %v14033_v58  ;;  %v11674_v58 = vld [vmem:[#allocation20 + $0xe38] sm:$0xf0]  ;;  %v7935_v4 = vpack.c.bf16 %v7867_v23, %v7867_v23 }
 0x7a3   :  { %7802 = vmatpush.bf16.msra.mxu3 %v11373_v56  ;;  %7841 = vmatpush.bf16.msra.mxu2 %v11757_v16  ;;  %v11677_v21 = vor.u32 %v12887_v43, %v11674_v58  ;;  %v12954_v56 = vld [vmem:[#allocation23 + $0x40] sm:$0xff]  ;;  %v11901_v16 = vor.u32 %v12943_v61, %v11898_v24  ;;  %v11818_v5 = vld [vmem:[#allocation20 + $0xf58] sm:$0xf0] }
 0x7a4   :  { %8148 = vmatpush.bf16.msra.mxu1 %v12960_v3  ;;  %v7564_v57 = vadd.f32 %v14014_v48, %v7551_v17  ;;  %v12969_v3 = vld [vmem:[#allocation23 + $0xb8] sm:$0xff]  ;;  %v12962_v43 = vld [vmem:[#allocation23 + $0x80] sm:$0xff] }
 0x7a6   :  { %v7630_v52 = vpop.f32.mrf.mxu1  ;;  %v7669_v22 = vpop.f32.mrf.mxu0  ;;  %v7577_v41 = vadd.f32 %v14026_v1, %v7564_v57  ;;  %v11661_v1 = vor.u32 %v12883_v62, %v11658_v47 }
 0x7a7   :  { %7803 = vmatpush.bf16.msra.mxu3 %v11357_v29  ;;  %7842 = vmatpush.bf16.msra.mxu2 %v11741_v7  ;;  %v12968_v29 = vld [vmem:[#allocation23 + $0xb0] sm:$0xff]  ;;  %v12935_v7 = vld [vmem:[#allocation20 + $0xfac] sm:$0xf] }
 0x7a8   :  { %8149 = vmatpush.bf16.msra.mxu1 %v12959_v8  ;;  %v11866_v8 = vld [vmem:[#allocation20 + $0xfb8] sm:$0xf0]  ;;  %v7590_v11 = vadd.f32 %v14044_v14, %v7577_v41  ;;  %v12919_v52 = vld [vmem:[#allocation20 + $0xf2c] sm:$0xf] }
 0x7a9   :  { %v7552_v48 = vpop.f32.mrf.mxu3  ;;  %v7591_v27 = vpop.f32.mrf.mxu2  ;;  %v11869_v40 = vor.u32 %v12935_v7, %v11866_v8  ;;  %v12963_v22 = vld [vmem:[#allocation23 + $0x88] sm:$0xff] }
 0x7ab   :  { %7804 = vmatpush.bf16.msra.mxu3 %v11341_v33  ;;  %7843 = vmatpush.bf16.msra.mxu2 %v11725_v36  ;;  %v7668_v33 = vadd.f32 %v14041_v15, %v4469_v6 }
 0x7ac   :  { %8150 = vmatpush.bf16.msra.mxu1 %v12958_v31  ;;  %v11853_v31 = vor.u32 %v12931_v42, %v11850_v10  ;;  %v12977_v42 = vld [vmem:[#allocation23 + $0xf8] sm:$0xff] }
 0x7af   :  { %7805 = vmatpush.bf16.msra.mxu3 %v11325_v20  ;;  %7844 = vmatpush.bf16.msra.mxu2 %v11709_v0  ;;  %v12965_v20 = vld [vmem:[#allocation23 + $0x98] sm:$0xff] }
 0x7b0   :  { %8151 = vmatpush.bf16.msra.mxu1 %v12957_v19  ;;  %v12923_v19 = vld [vmem:[#allocation20 + $0xf4c] sm:$0xf] }
 0x7b1   :  { %v11821_v49 = vor.u32 %v12923_v19, %v11818_v5 }
 0x7b3   :  { %7806 = vmatpush.bf16.msra.mxu3 %v11309_v39  ;;  %7845 = vmatpush.bf16.msra.mxu2 %v11693_v25  ;;  %v11802_v39 = vld [vmem:[#allocation20 + $0xf38] sm:$0xf0] }
 0x7b4   :  { %8152 = vmatpush.bf16.msra.mxu1 %v12956_v38  ;;  %v11805_v14 = vor.u32 %v12919_v52, %v11802_v39  ;;  %v12915_v38 = vld [vmem:[#allocation20 + $0xf0c] sm:$0xf] }
 0x7b5   :  { %v11789_v41 = vor.u32 %v12915_v38, %v11786_v35 }
 0x7b7   :  { %7807 = vmatpush.bf16.msra.mxu3 %v11293_v60  ;;  %7846 = vmatpush.bf16.msra.mxu2 %v11677_v21 }
 0x7b8   :  { %8153 = vmatpush.bf16.msra.mxu1 %v12955_v46 }
 0x7bb   :  { %7808 = vmatpush.bf16.msra.mxu3 %v11277_v55  ;;  %7847 = vmatpush.bf16.msra.mxu2 %v11661_v1 }
 0x7bc   :  { %8154 = vmatpush.bf16.msra.mxu1 %v12954_v56 }
 0x7be   :  { %7809 = vmatmul.bf16.vlgmr.msra.gmra.mxu3 %v13886_v50  ;;  %7848 = vmatmul.bf16.vlgmr.msra.gmra.mxu2 %v13893_v9  ;;  %v7680_v36 = vpop.f32.mrf.mxu1  ;;  %v12966_v50 = vld [vmem:[#allocation23 + $0xa0] sm:$0xff]  ;;  %v7719_v12 = vpop.f32.mrf.mxu0  ;;  %v11834_v9 = vld [vmem:[#allocation20 + $0xf78] sm:$0xf0] }
 0x7bf   :  { %7853 = vmatpush.bf16.msrb.mxu3 %v11901_v16  ;;  %8160 = vmatpush.bf16.msrb.mxu2 %v12969_v3  ;;  %v7681_v45 = vadd.f32 %v7680_v36, %v7668_v33  ;;  %v11837_v44 = vor.u32 %v12927_v32, %v11834_v9  ;;  %v12974_v9 = vld [vmem:[#allocation23 + $0xe0] sm:$0xff] }
 0x7c0   :  { %8155 = vmatmul.bf16.vlgmr.msra.gmra.mxu1 %v7935_v4 }
 0x7c1   :  { %v7602_v0 = vpop.f32.mrf.mxu3  ;;  %v7641_v15 = vpop.f32.mrf.mxu2 }
 0x7c2   :  { %v7603_v53 = vadd.f32 %v7602_v0, %v7590_v11  ;;  %v12973_v11 = vld [vmem:[#allocation23 + $0xd8] sm:$0xff] }
 0x7c3   :  { %7854 = vmatpush.bf16.msrb.mxu3 %v11885_v59  ;;  %8161 = vmatpush.bf16.msrb.mxu2 %v12968_v29 }
 0x7c4   :  { %v7616_v13 = vadd.f32 %v14028_v30, %v7603_v53  ;;  %v12971_v53 = vld [vmem:[#allocation23 + $0xc8] sm:$0xff] }
 0x7c6   :  { %v7682_v17 = vpop.f32.mrf.mxu1  ;;  %v7721_v57 = vpop.f32.mrf.mxu0  ;;  %v7629_v30 = vadd.f32 %v14039_v51, %v7616_v13 }
 0x7c7   :  { %7855 = vmatpush.bf16.msrb.mxu3 %v11869_v40  ;;  %8162 = vmatpush.bf16.msrb.mxu2 %v12967_v2  ;;  %v12970_v17 = vld [vmem:[#allocation23 + $0xc0] sm:$0xff] }
 0x7c8   :  { %v7642_v21 = vadd.f32 %v7641_v15, %v7629_v30 }
 0x7c9   :  { %v7604_v25 = vpop.f32.mrf.mxu3  ;;  %v7643_v34 = vpop.f32.mrf.mxu2 }
 0x7cb   :  { %7856 = vmatpush.bf16.msrb.mxu3 %v11853_v31  ;;  %8163 = vmatpush.bf16.msrb.mxu2 %v12966_v50  ;;  %v12976_v50 = vld [vmem:[#allocation23 + $0xf0] sm:$0xff] }
 0x7cf   :  { %7857 = vmatpush.bf16.msrb.mxu3 %v11837_v44  ;;  %8164 = vmatpush.bf16.msrb.mxu2 %v12965_v20  ;;  %v13005_v44 = vld [vmem:[#allocation25] ss:$0 sm:$0xff]  ;;  %v12972_v20 = vld [vmem:[#allocation23 + $0xd0] sm:$0xff] }
 0x7d3   :  { %7858 = vmatpush.bf16.msrb.mxu3 %v11821_v49  ;;  %8165 = vmatpush.bf16.msrb.mxu2 %v12964_v18 }
 0x7d7   :  { %7859 = vmatpush.bf16.msrb.mxu3 %v11805_v14  ;;  %8166 = vmatpush.bf16.msrb.mxu2 %v12963_v22 }
 0x7db   :  { %7860 = vmatpush.bf16.msrb.mxu3 %v11789_v41  ;;  %8167 = vmatpush.bf16.msrb.mxu2 %v12962_v43 }
 0x7de   :  { %7861 = vmatmul.bf16.vlgmr.msrb.gmra.mxu3 %v13905_v63  ;;  %v7732_v58 = vpop.f32.mrf.mxu1  ;;  %v7771_v60 = vpop.f32.mrf.mxu0 }
 0x7df   :  { %8173 = vmatpush.bf16.msra.mxu3 %v12977_v42 }
 0x7e1   :  { %v7654_v46 = vpop.f32.mrf.mxu3  ;;  %v7693_v37 = vpop.f32.mrf.mxu2 }
 0x7e2   :  { %v7655_v48 = vadd.f32 %v7654_v46, %v7642_v21  ;;  %v7694_v54 = vadd.f32 %v7693_v37, %v7681_v45  ;;  %v12975_v45 = vld [vmem:[#allocation23 + $0xe8] sm:$0xff] }
 0x7e3   :  { %8174 = vmatpush.bf16.msra.mxu3 %v12976_v50 }
 0x7e4   :  { %v7868_v27 = vmax.f32 %v7655_v48, 0.0 }
 0x7e6   :  { %v7734_v62 = vpop.f32.mrf.mxu1  ;;  %v7773_v47 = vpop.f32.mrf.mxu0  ;;  %v7936_v61 = vpack.c.bf16 %v7868_v27, %v7868_v27 }
 0x7e7   :  { %8175 = vmatpush.bf16.msra.mxu3 %v12975_v45 }
 0x7e8   :  { %8168 = vmatmul.bf16.vlgmr.msrb.gmra.mxu2 %v7936_v61 }
 0x7e9   :  { %v7656_v24 = vpop.f32.mrf.mxu3  ;;  %v7695_v55 = vpop.f32.mrf.mxu2 }
 0x7eb   :  { %8176 = vmatpush.bf16.msra.mxu3 %v12974_v9 }
 0x7ef   :  { %8177 = vmatpush.bf16.msra.mxu3 %v12973_v11 }
 0x7f3   :  { %8178 = vmatpush.bf16.msra.mxu3 %v12972_v20 }
 0x7f7   :  { %8179 = vmatpush.bf16.msra.mxu3 %v12971_v53 }
 0x7fb   :  { %8180 = vmatpush.bf16.msra.mxu3 %v12970_v17 }
 0x7fe   :  { %v7784_v1 = vpop.f32.mrf.mxu1  ;;  %v7823_v56 = vpop.f32.mrf.mxu0 }
 0x801   :  { %v7706_v23 = vpop.f32.mrf.mxu3  ;;  %v7745_v16 = vpop.f32.mrf.mxu2 }
 0x802   :  { %v7707_v63 = vadd.f32 %v7706_v23, %v7694_v54 }
 0x804   :  { %v7720_v51 = vadd.f32 %v7719_v12, %v7707_v63 }
 0x806   :  { %v7786_v3 = vpop.f32.mrf.mxu1  ;;  %v7825_v28 = vpop.f32.mrf.mxu0  ;;  %v7733_v26 = vadd.f32 %v7732_v58, %v7720_v51 }
 0x808   :  { %v7746_v4 = vadd.f32 %v7745_v16, %v7733_v26 }
 0x809   :  { %v7708_v59 = vpop.f32.mrf.mxu3  ;;  %v7747_v29 = vpop.f32.mrf.mxu2 }
 0x81d   :  { %v8143_v8 = vpop.f32.mrf.mxu0 }
 0x81e   :  { %v7836_v7 = vpop.f32.mrf.mxu1  ;;  %v8144_v0 = vadd.f32 %v13005_v44, %v8143_v8 }
 0x821   :  { %v7758_v6 = vpop.f32.mrf.mxu3  ;;  %v7797_v40 = vpop.f32.mrf.mxu2 }
 0x822   :  { %v7759_v2 = vadd.f32 %v7758_v6, %v7746_v4 }
 0x824   :  { %v7772_v10 = vadd.f32 %v7771_v60, %v7759_v2 }
 0x825   :  { %v8145_v36 = vpop.f32.mrf.mxu0 }
 0x826   :  { %v7838_v33 = vpop.f32.mrf.mxu1  ;;  %v7785_v31 = vadd.f32 %v7784_v1, %v7772_v10 }
 0x828   :  { %v7798_v15 = vadd.f32 %v7797_v40, %v7785_v31 }
 0x829   :  { %v7760_v12 = vpop.f32.mrf.mxu3  ;;  %v7799_v32 = vpop.f32.mrf.mxu2 }
 0x83d   :  { %v8156_v19 = vpop.f32.mrf.mxu1 }
 0x83e   :  { %v8157_v5 = vadd.f32 %v8156_v19, %v8144_v0 }
 0x841   :  { %v7810_v13 = vpop.f32.mrf.mxu3  ;;  %v7849_v18 = vpop.f32.mrf.mxu2 }
 0x842   :  { %v7811_v49 = vadd.f32 %v7810_v13, %v7798_v15 }
 0x844   :  { %v7824_v57 = vadd.f32 %v7823_v56, %v7811_v49 }
 0x845   :  { %v8158_v52 = vpop.f32.mrf.mxu1 }
 0x846   :  { %v7837_v22 = vadd.f32 %v7836_v7, %v7824_v57 }
 0x848   :  { %v7850_v25 = vadd.f32 %v7849_v18, %v7837_v22 }
 0x849   :  { %v7812_v39 = vpop.f32.mrf.mxu3  ;;  %v7851_v14 = vpop.f32.mrf.mxu2 }
 0x861   :  { %v7862_v38 = vpop.f32.mrf.mxu3 }
 0x862   :  { %v7863_v35 = vadd.f32 %v7862_v38, %v7850_v25 }
 0x864   :  { %v7869_v34 = vmax.f32 %v7863_v35, 0.0 }
 0x866   :  { %v7937_v41 = vpack.c.bf16 %v7869_v34, %v7869_v34 }
 0x868   :  { %8181 = vmatmul.bf16.vlgmr.msra.gmra.mxu3 %v7937_v41 }
 0x869   :  { %v7864_v43 = vpop.f32.mrf.mxu3 }
 0x86b   :  { %v8169_v30 = vpop.f32.mrf.mxu2 }
 0x86c   :  { %v8170_v58 = vadd.f32 %v8169_v30, %v8157_v5 }
 0x873   :  { %v8171_v60 = vpop.f32.mrf.mxu2 }
 0x8eb   :  { %v8182_v21 = vpop.f32.mrf.mxu3 }
 0x8ec   :  { %v8183_v46 = vadd.f32 %v8182_v21, %v8170_v58 }
 0x8ee   :  { %v8186_v48 = vadd.f32 0.5, %v8183_v46 }
 0x8f0   :  { %8187 = vst [vmem:[#allocation26] sm:$0x3] %v8186_v48 }
 0x8f1   :  { %8198 = dma.vmem_to_hbm [thread:$0]  %s8194_s14, 32, %s8196_s27, [#allocation4]  }
 0x8f3   :  { %v8184_v37 = vpop.f32.mrf.mxu3 }
 0x8f4   :  { %13411 = dma.done.wait [#allocation4], 32  }
 0x8f5   :  { %13412 = vsyncadd [#allocation4], 4294967264 }
 0x8f6   :  { %8203 = vsyncpa [#allocation3], 1 }
 0x8f7   :  { %8204 = vsyncpa [#allocation6], 1 }
 0x8f8   :  { %8205 = vsyncpa [#allocation9], 1 }
 0x8f9   :  { %8206 = vsyncpa [#allocation12], 1 }
 0x8fa   :  { %8207 = vsyncpa [#allocation15], 1 }
 0x8fb   :  { %8208 = vsyncpa [#allocation18], 1 }
 0x8fc   :  { %8209 = vsyncpa [#allocation21], 1 }
 0x8fd   :  { %8210 = vsyncpa [#allocation24], 1 }
 0x8fe   :  { %8211 = vsyncpa [#allocation4], 1 }

</bundles_post_ra>
